<compile_context>
chip_gen: v7x
topology: tpu7x:2x2x1
jax: 0.10.0
libtpu: 0.0.40
codegen_flags: <defaults>
</compile_context>

<pallas_src>
import functools

import jax
import jax.numpy as jnp
from jax import lax
from jax.experimental import pallas as pl
from jax.experimental.pallas import tpu as pltpu


# ----------------------------------------------------------------------------
# Fused Pallas kernel: whole EDSR forward for one batch element
# ----------------------------------------------------------------------------
def _edsr_kernel(x_ref, w_ref, b_ref, mask_ref, o_ref, a_ref, xin_ref, *,
                 F, Wp, n_res, r_min, span, n_pad):
    # x_ref    : (n_pad, F)           bf16  padded-flat input image (zero halo)
    # w_ref    : (n_conv, 3, 3F, F)   bf16  dx-fused weights [ky, kx*F+ci, co]
    # b_ref    : (n_conv, 1, F)       f32   biases
    # mask_ref : (span, 1)            f32   1.0 on interior rows, 0.0 on pad rows
    # o_ref    : (n_pad, F)           f32   padded-flat output (interior valid)
    # a_ref    : (n_pad, F)  bf16 VMEM scratch -- conv-input staging buffer
    # xin_ref  : (span, F)   f32  VMEM scratch -- x_in for the global skip
    nB = span + 2 * Wp
    off = r_min - Wp
    n_bot = n_pad - r_min - span

    # Keep the halo rows of the staging buffer at zero.  Two small stores per
    # grid step (scratch is per-core; "parallel" grid steps may run on
    # different cores, so we do not gate this on program_id == 0).
    a_ref[pl.ds(0, r_min), :] = jnp.zeros((r_min, F), jnp.bfloat16)
    a_ref[pl.ds(r_min + span, n_bot), :] = jnp.zeros((n_bot, F), jnp.bfloat16)

    mask = mask_ref[...]                                   # (span, 1) f32

    def conv(src, w3, b1, relu):
        # src : (n_pad, F) bf16 ref with zero halo.  Returns (span, F) f32.
        # dx-fused im2col: bm[k, kx*F + c] = src[off - 1 + k + kx, c]
        bm = jnp.concatenate(
            [src[pl.ds(off - 1, nB), :],
             src[pl.ds(off, nB), :],
             src[pl.ds(off + 1, nB), :]], axis=-1)         # (nB, 3F) bf16
        # Three chained K=3F dots into one f32 accumulator (MRB-friendly on
        # v7x); accumulator initialised by the first dot -- no jnp.zeros.
        acc = jnp.dot(bm[0:span], w3[0],
                      preferred_element_type=jnp.float32)
        acc = acc + jnp.dot(bm[Wp:Wp + span], w3[1],
                            preferred_element_type=jnp.float32)
        acc = acc + jnp.dot(bm[2 * Wp:2 * Wp + span], w3[2],
                            preferred_element_type=jnp.float32)
        out = acc + b1                                     # (span,F) + (1,F)
        if relu:
            out = jnp.maximum(out, 0.0)
        return out * mask                                  # re-zero pad rows

    def stage(val_f32):
        # Single bf16 cast per conv input (not per tap).
        a_ref[pl.ds(r_min, span), :] = val_f32.astype(jnp.bfloat16)

    # conv_in -- taps read straight from the input block (halo from wrapper).
    y = conv(x_ref, w_ref[0], b_ref[0], relu=False)
    xin_ref[...] = y

    # Residual trunk: x <- x + conv2(relu(conv1(x))).
    def block(i, x):
        stage(x)
        h = conv(a_ref, w_ref[1 + 2 * i], b_ref[1 + 2 * i], relu=True)
        stage(h)
        r = conv(a_ref, w_ref[2 + 2 * i], b_ref[2 + 2 * i], relu=False)
        return x + r

    x = lax.fori_loop(0, n_res, block, y)

    # conv_out on (x + x_in); the global skip add is fused into the kernel.
    stage(x + xin_ref[...])
    y_out = conv(a_ref, w_ref[2 * n_res + 1], b_ref[2 * n_res + 1], relu=False)
    o_ref[pl.ds(r_min, span), :] = y_out


# ----------------------------------------------------------------------------
# Wrapper: pack params / image, call the fused kernel
# ----------------------------------------------------------------------------
def _pack_edsr_params(params, F):
    """Stack all conv weights/biases, channel-padded to trunk width F.

    Weights are dx-fused: (n_conv, 3, 3, F, F) -> (n_conv, 3, 3F, F) with
    w_fused[l, ky, kx*F + ci, co] = w[l, ky, kx, ci, co].
    """
    def pad_one(w, b):
        cin, cout = w.shape[2], w.shape[3]
        w = jnp.pad(w, ((0, 0), (0, 0), (0, F - cin), (0, F - cout)))
        b = jnp.pad(b, ((0, F - b.shape[0]),))
        return w, b

    pairs = [(params["conv_in"]["w"], params["conv_in"]["b"])]
    for blk in params["residuals"]:
        pairs.append((blk["w1"], blk["b1"]))
        pairs.append((blk["w2"], blk["b2"]))
    pairs.append((params["conv_out"]["w"], params["conv_out"]["b"]))

    ws, bs = zip(*(pad_one(w, b) for w, b in pairs))
    w_all = jnp.stack(ws).reshape(len(ws), 3, 3 * F, F).astype(jnp.bfloat16)
    b_all = jnp.stack(bs).astype(jnp.float32)[:, None, :]     # (n_conv, 1, F)
    return w_all, b_all


def edsr_forward(x_nchw, params):
    F = params["conv_in"]["w"].shape[-1]          # trunk width (num_filters)
    n_res = len(params["residuals"])
    n_conv = 2 * n_res + 2

    # NCHW (PyTorch) -> NHWC; channels padded to F (zero weights => identical).
    x = jnp.transpose(x_nchw, (0, 2, 3, 1)).astype(jnp.float32)
    N, H, W, Cin = x.shape
    assert F >= Cin, "num_filters must be >= num_channels"

    Wp = ((W + 1 + 7) // 8) * 8       # row-chunk width (>= W+1, multiple of 8)
    off = Wp - W                      # interior offset within a chunk (>= 1)
    Hp = H + 2
    n_pad = Hp * Wp + 8               # +8 rows: bottom-right halo overshoot
    r_min = Wp + off                  # flat row of pixel (0, 0)
    span = (H - 1) * Wp + W           # rows spanned by the interior

    # Pack the image into the padded-flat layout (zero halo, bf16, chan-pad).
    xc = jnp.pad(x, ((0, 0), (0, 0), (0, 0), (0, F - Cin))).astype(jnp.bfloat16)
    buf = jnp.zeros((N, Hp, Wp, F), jnp.bfloat16)
    buf = buf.at[:, 1:H + 1, off:, :].set(xc)
    x_flat = jnp.pad(buf.reshape(N, Hp * Wp, F),
                     ((0, 0), (0, n_pad - Hp * Wp), (0, 0)))

    # 0/1 mask over the interior span (zero on the `off` pad slots per chunk).
    rows = jnp.arange(span, dtype=jnp.int32) + r_min
    mask = ((rows % Wp) >= off).astype(jnp.float32)[:, None]      # (span, 1)

    w_all, b_all = _pack_edsr_params(params, F)

    kernel = functools.partial(_edsr_kernel, F=F, Wp=Wp, n_res=n_res,
                               r_min=r_min, span=span, n_pad=n_pad)
    out = pl.pallas_call(
        kernel,
        out_shape=jax.ShapeDtypeStruct((N, n_pad, F), jnp.float32),
        grid=(N,),
        in_specs=[
            pl.BlockSpec((None, n_pad, F), lambda n: (n, 0, 0)),
            pl.BlockSpec((n_conv, 3, 3 * F, F), lambda n: (0, 0, 0, 0)),
            pl.BlockSpec((n_conv, 1, F), lambda n: (0, 0, 0)),
            pl.BlockSpec((span, 1), lambda n: (0, 0)),
        ],
        out_specs=pl.BlockSpec((None, n_pad, F), lambda n: (n, 0, 0)),
        scratch_shapes=[
            pltpu.VMEM((n_pad, F), jnp.bfloat16),     # staging buffer
            pltpu.VMEM((span, F), jnp.float32),       # x_in for the skip
        ],
        compiler_params=pltpu.CompilerParams(
            dimension_semantics=("parallel",),
            vmem_limit_bytes=32 * 1024 * 1024),
    )(x_flat, w_all, b_all, mask)

    # Unpack: padded-flat -> NHWC interior -> NCHW, drop channel padding.
    out = out[:, :Hp * Wp, :].reshape(N, Hp, Wp, F)[:, 1:H + 1, off:, :Cin]
    return jnp.transpose(out, (0, 3, 1, 2))


# ----------------------------------------------------------------------------
# Parameters (PyTorch-Conv2d-style init)
# ----------------------------------------------------------------------------
def init_edsr_params(key, num_channels=4, num_filters=32, num_residuals=3):
    def conv_params(k, cin, cout):
        kw, kb = jax.random.split(k)
        bound = 1.0 / jnp.sqrt(cin * 9.0)
        w = jax.random.uniform(kw, (3, 3, cin, cout), jnp.float32, -bound, bound)
        b = jax.random.uniform(kb, (cout,), jnp.float32, -bound, bound)
        return {"w": w, "b": b}

    keys = jax.random.split(key, 2 + 2 * num_residuals)
    params = {
        "conv_in": conv_params(keys[0], num_channels, num_filters),
        "conv_out": conv_params(keys[1], num_filters, num_channels),
        "residuals": [],
    }
    for i in range(num_residuals):
        c1 = conv_params(keys[2 + 2 * i], num_filters, num_filters)
        c2 = conv_params(keys[3 + 2 * i], num_filters, num_filters)
        params["residuals"].append(
            {"w1": c1["w"], "b1": c1["b"], "w2": c2["w"], "b2": c2["b"]}
        )
    return params


# ----------------------------------------------------------------------------
# Pure-JAX references (for correctness checks)
# ----------------------------------------------------------------------------
def _conv3x3_ref(x, w, b, *, bf16_operands):
    if bf16_operands:
        x = x.astype(jnp.bfloat16)
        w = w.astype(jnp.bfloat16)
        precision = None
    else:
        precision = jax.lax.Precision.HIGHEST
    y = jax.lax.conv_general_dilated(
        x, w, window_strides=(1, 1), padding="SAME",
        dimension_numbers=("NHWC", "HWIO", "NHWC"),
        precision=precision,
        preferred_element_type=jnp.float32,
    )
    return y + b[None, None, None, :]


def edsr_forward_ref(x_nchw, params, *, bf16_operands=False):
    conv = functools.partial(_conv3x3_ref, bf16_operands=bf16_operands)
    x = jnp.transpose(x_nchw, (0, 2, 3, 1)).astype(jnp.float32)
    x = conv(x, params["conv_in"]["w"], params["conv_in"]["b"])
    x_in = x
    for blk in params["residuals"]:
        r = jnp.maximum(conv(x, blk["w1"], blk["b1"]), 0.0)
        r = conv(r, blk["w2"], blk["b2"])
        x = x + r
    x = conv(x + x_in, params["conv_out"]["w"], params["conv_out"]["b"])
    return jnp.transpose(x, (0, 3, 1, 2))


if __name__ == "__main__":
    key = jax.random.PRNGKey(0)
    k_params, k_x = jax.random.split(key)

    num_channels, num_filters, num_residuals = 4, 32, 3
    params = init_edsr_params(k_params, num_channels, num_filters, num_residuals)
    x = jax.random.normal(k_x, (2, num_channels, 16, 16), jnp.float32)  # NCHW

    out = jax.block_until_ready(jax.jit(edsr_forward)(x, params))

    # Matched-precision reference: bf16 MXU operands, f32 accumulation.
    ref_bf16 = jax.block_until_ready(
        jax.jit(functools.partial(edsr_forward_ref, bf16_operands=True))(x, params))
    # Full-f32 reference (PyTorch-equivalent numerics).
    ref_f32 = jax.block_until_ready(jax.jit(edsr_forward_ref)(x, params))

    assert out.shape == x.shape, (out.shape, x.shape)
    assert bool(jnp.all(jnp.isfinite(out)))
    max_err = float(jnp.max(jnp.abs(out - ref_bf16)))
    assert jnp.allclose(out, ref_bf16, atol=5e-3, rtol=5e-3), max_err
    rel_rms = float(jnp.linalg.norm(out - ref_f32) / jnp.linalg.norm(ref_f32))
    assert rel_rms < 3e-2, rel_rms
    print("KERNEL_OK")
</pallas_src>

<mosaic_0001>
module attributes {stable_mosaic.version = 11 : i64} {
  func.func @_edsr_kernel(%arg0: i32, %arg1: memref<1x440x32xbf16, #tpu.memory_space<vmem>>, %arg2: memref<8x3x96x32xbf16, #tpu.memory_space<vmem>>, %arg3: memref<8x1x32xf32, #tpu.memory_space<vmem>>, %arg4: memref<376x1xf32, #tpu.memory_space<vmem>>, %arg5: memref<1x440x32xf32, #tpu.memory_space<vmem>>, %arg6: memref<440x32xbf16, #tpu.memory_space<vmem>>, %arg7: memref<376x32xf32, #tpu.memory_space<vmem>>) attributes {dimension_semantics = [#tpu.dimension_semantics<parallel>], iteration_bounds = array<i64: 2>, scalar_prefetch = 0 : i64, scratch_operands = 2 : i64, tpu.core_type = #tpu.core_type<tc>, window_params = [{transform_indices = @transform_0, window_bounds = array<i64: 1, 440, 32>}, {pipeline_mode = #tpu.pipeline_mode<synchronous>, transform_indices = @transform_1, window_bounds = array<i64: 8, 3, 96, 32>}, {pipeline_mode = #tpu.pipeline_mode<synchronous>, transform_indices = @transform_2, window_bounds = array<i64: 8, 1, 32>}, {pipeline_mode = #tpu.pipeline_mode<synchronous>, transform_indices = @transform_3, window_bounds = array<i64: 376, 1>}, {transform_indices = @transform_4, window_bounds = array<i64: 1, 440, 32>}]} {
    %cst = arith.constant 0.000000e+00 : bf16
    %0 = vector.broadcast %cst : bf16 to vector<32x32xbf16>
    %c0 = arith.constant 0 : index
    %c0_0 = arith.constant 0 : index
    %1 = vector.load %arg6[%c0, %c0_0] : memref<440x32xbf16, #tpu.memory_space<vmem>>, vector<32x32xbf16>
    tpu.vector_store %arg6[%c0, %c0_0], %0 {strides = array<i32>} : memref<440x32xbf16, #tpu.memory_space<vmem>>, vector<32x32xbf16>,
    %cst_1 = arith.constant 0.000000e+00 : bf16
    %2 = vector.broadcast %cst_1 : bf16 to vector<32x32xbf16>
    %c408 = arith.constant 408 : index
    %c0_2 = arith.constant 0 : index
    %3 = vector.load %arg6[%c408, %c0_2] : memref<440x32xbf16, #tpu.memory_space<vmem>>, vector<32x32xbf16>
    tpu.vector_store %arg6[%c408, %c0_2], %2 {strides = array<i32>} : memref<440x32xbf16, #tpu.memory_space<vmem>>, vector<32x32xbf16>,
    %c0_3 = arith.constant 0 : index
    %c0_4 = arith.constant 0 : index
    %4 = vector.load %arg4[%c0_3, %c0_4] : memref<376x1xf32, #tpu.memory_space<vmem>>, vector<376x1xf32>
    %c0_5 = arith.constant 0 : index
    %c0_6 = arith.constant 0 : index
    %c0_7 = arith.constant 0 : index
    %c0_8 = arith.constant 0 : index
    %5 = vector.load %arg2[%c0_5, %c0_6, %c0_7, %c0_8] : memref<8x3x96x32xbf16, #tpu.memory_space<vmem>>, vector<1x3x96x32xbf16>
    %6 = vector.shape_cast %5 : vector<1x3x96x32xbf16> to vector<3x96x32xbf16>
    %c0_9 = arith.constant 0 : index
    %c0_10 = arith.constant 0 : index
    %c0_11 = arith.constant 0 : index
    %7 = vector.load %arg3[%c0_9, %c0_10, %c0_11] : memref<8x1x32xf32, #tpu.memory_space<vmem>>, vector<1x1x32xf32>
    %8 = vector.shape_cast %7 : vector<1x1x32xf32> to vector<1x32xf32>
    %c0_12 = arith.constant 0 : index
    %c7 = arith.constant 7 : index
    %c0_13 = arith.constant 0 : index
    %9 = vector.load %arg1[%c0_12, %c7, %c0_13] : memref<1x440x32xbf16, #tpu.memory_space<vmem>>, vector<1x424x32xbf16>
    %10 = vector.shape_cast %9 : vector<1x424x32xbf16> to vector<424x32xbf16>
    %c0_14 = arith.constant 0 : index
    %c8 = arith.constant 8 : index
    %c0_15 = arith.constant 0 : index
    %11 = vector.load %arg1[%c0_14, %c8, %c0_15] : memref<1x440x32xbf16, #tpu.memory_space<vmem>>, vector<1x424x32xbf16>
    %12 = vector.shape_cast %11 : vector<1x424x32xbf16> to vector<424x32xbf16>
    %c0_16 = arith.constant 0 : index
    %c9 = arith.constant 9 : index
    %c0_17 = arith.constant 0 : index
    %13 = vector.load %arg1[%c0_16, %c9, %c0_17] : memref<1x440x32xbf16, #tpu.memory_space<vmem>>, vector<1x424x32xbf16>
    %14 = vector.shape_cast %13 : vector<1x424x32xbf16> to vector<424x32xbf16>
    %15 = tpu.concatenate %10, %12, %14 in 1 : vector<424x32xbf16>, vector<424x32xbf16>, vector<424x32xbf16> -> vector<424x96xbf16>
    %16 = vector.extract_strided_slice %15 {offsets = [0, 0], sizes = [376, 96], strides = [1, 1]} : vector<424x96xbf16> to vector<376x96xbf16>
    %17 = vector.extract_strided_slice %6 {offsets = [0, 0, 0], sizes = [1, 96, 32], strides = [1, 1, 1]} : vector<3x96x32xbf16> to vector<1x96x32xbf16>
    %18 = vector.shape_cast %17 : vector<1x96x32xbf16> to vector<96x32xbf16>
    %cst_18 = arith.constant dense<0.000000e+00> : vector<376x32xf32>
    %19 = tpu.matmul %16, %18, %cst_18 {dimension_numbers = #tpu.dot_dimension_numbers<[1], [0], [0], [1], [0, 0, 1, 1], [], []>} : vector<376x96xbf16>, vector<96x32xbf16>, vector<376x32xf32> -> vector<376x32xf32>
    %20 = vector.extract_strided_slice %15 {offsets = [24, 0], sizes = [376, 96], strides = [1, 1]} : vector<424x96xbf16> to vector<376x96xbf16>
    %21 = vector.extract_strided_slice %6 {offsets = [1, 0, 0], sizes = [1, 96, 32], strides = [1, 1, 1]} : vector<3x96x32xbf16> to vector<1x96x32xbf16>
    %22 = vector.shape_cast %21 : vector<1x96x32xbf16> to vector<96x32xbf16>
    %cst_19 = arith.constant dense<0.000000e+00> : vector<376x32xf32>
    %23 = tpu.matmul %20, %22, %cst_19 {dimension_numbers = #tpu.dot_dimension_numbers<[1], [0], [0], [1], [0, 0, 1, 1], [], []>} : vector<376x96xbf16>, vector<96x32xbf16>, vector<376x32xf32> -> vector<376x32xf32>
    %24 = arith.addf %19, %23 : vector<376x32xf32>
    %25 = vector.extract_strided_slice %15 {offsets = [48, 0], sizes = [376, 96], strides = [1, 1]} : vector<424x96xbf16> to vector<376x96xbf16>
    %26 = vector.extract_strided_slice %6 {offsets = [2, 0, 0], sizes = [1, 96, 32], strides = [1, 1, 1]} : vector<3x96x32xbf16> to vector<1x96x32xbf16>
    %27 = vector.shape_cast %26 : vector<1x96x32xbf16> to vector<96x32xbf16>
    %cst_20 = arith.constant dense<0.000000e+00> : vector<376x32xf32>
    %28 = tpu.matmul %25, %27, %cst_20 {dimension_numbers = #tpu.dot_dimension_numbers<[1], [0], [0], [1], [0, 0, 1, 1], [], []>} : vector<376x96xbf16>, vector<96x32xbf16>, vector<376x32xf32> -> vector<376x32xf32>
    %29 = arith.addf %24, %28 : vector<376x32xf32>
    %30 = vector.broadcast %8 : vector<1x32xf32> to vector<376x32xf32>
    %31 = arith.addf %29, %30 : vector<376x32xf32>
    %32 = vector.broadcast %4 : vector<376x1xf32> to vector<376x32xf32>
    %33 = arith.mulf %31, %32 : vector<376x32xf32>
    %c0_21 = arith.constant 0 : index
    %c0_22 = arith.constant 0 : index
    %34 = vector.load %arg7[%c0_21, %c0_22] : memref<376x32xf32, #tpu.memory_space<vmem>>, vector<376x32xf32>
    tpu.vector_store %arg7[%c0_21, %c0_22], %33 {strides = array<i32>} : memref<376x32xf32, #tpu.memory_space<vmem>>, vector<376x32xf32>,
    %c0_i32 = arith.constant 0 : i32
    %c3_i32 = arith.constant 3 : i32
    %35 = arith.addi %c0_i32, %c3_i32 : i32
    %c1_i32 = arith.constant 1 : i32
    %36 = scf.for %arg8 = %c0_i32 to %35 step %c1_i32 iter_args(%arg9 = %33) -> (vector<376x32xf32>)  : i32 {
      %70 = arith.truncf %arg9 : vector<376x32xf32> to vector<376x32xbf16>
      %c32_46 = arith.constant 32 : index
      %c0_47 = arith.constant 0 : index
      %71 = vector.load %arg6[%c32_46, %c0_47] : memref<440x32xbf16, #tpu.memory_space<vmem>>, vector<376x32xbf16>
      tpu.vector_store %arg6[%c32_46, %c0_47], %70 {strides = array<i32>} : memref<440x32xbf16, #tpu.memory_space<vmem>>, vector<376x32xbf16>,
      %c2_i32 = arith.constant 2 : i32
      %72 = arith.muli %c2_i32, %arg8 : i32
      %c1_i32_48 = arith.constant 1 : i32
      %73 = arith.addi %c1_i32_48, %72 : i32
      %74 = arith.index_cast %73 : i32 to index
      %c0_49 = arith.constant 0 : index
      %c0_50 = arith.constant 0 : index
      %c0_51 = arith.constant 0 : index
      %75 = vector.load %arg2[%74, %c0_49, %c0_50, %c0_51] : memref<8x3x96x32xbf16, #tpu.memory_space<vmem>>, vector<1x3x96x32xbf16>
      %76 = vector.shape_cast %75 : vector<1x3x96x32xbf16> to vector<3x96x32xbf16>
      %c2_i32_52 = arith.constant 2 : i32
      %77 = arith.muli %c2_i32_52, %arg8 : i32
      %c1_i32_53 = arith.constant 1 : i32
      %78 = arith.addi %c1_i32_53, %77 : i32
      %79 = arith.index_cast %78 : i32 to index
      %c0_54 = arith.constant 0 : index
      %c0_55 = arith.constant 0 : index
      %80 = vector.load %arg3[%79, %c0_54, %c0_55] : memref<8x1x32xf32, #tpu.memory_space<vmem>>, vector<1x1x32xf32>
      %81 = vector.shape_cast %80 : vector<1x1x32xf32> to vector<1x32xf32>
      %c7_56 = arith.constant 7 : index
      %c0_57 = arith.constant 0 : index
      %82 = vector.load %arg6[%c7_56, %c0_57] : memref<440x32xbf16, #tpu.memory_space<vmem>>, vector<424x32xbf16>
      %c8_58 = arith.constant 8 : index
      %c0_59 = arith.constant 0 : index
      %83 = vector.load %arg6[%c8_58, %c0_59] : memref<440x32xbf16, #tpu.memory_space<vmem>>, vector<424x32xbf16>
      %c9_60 = arith.constant 9 : index
      %c0_61 = arith.constant 0 : index
      %84 = vector.load %arg6[%c9_60, %c0_61] : memref<440x32xbf16, #tpu.memory_space<vmem>>, vector<424x32xbf16>
      %85 = tpu.concatenate %82, %83, %84 in 1 : vector<424x32xbf16>, vector<424x32xbf16>, vector<424x32xbf16> -> vector<424x96xbf16>
      %86 = vector.extract_strided_slice %85 {offsets = [0, 0], sizes = [376, 96], strides = [1, 1]} : vector<424x96xbf16> to vector<376x96xbf16>
      %87 = vector.extract_strided_slice %76 {offsets = [0, 0, 0], sizes = [1, 96, 32], strides = [1, 1, 1]} : vector<3x96x32xbf16> to vector<1x96x32xbf16>
      %88 = vector.shape_cast %87 : vector<1x96x32xbf16> to vector<96x32xbf16>
      %cst_62 = arith.constant dense<0.000000e+00> : vector<376x32xf32>
      %89 = tpu.matmul %86, %88, %cst_62 {dimension_numbers = #tpu.dot_dimension_numbers<[1], [0], [0], [1], [0, 0, 1, 1], [], []>} : vector<376x96xbf16>, vector<96x32xbf16>, vector<376x32xf32> -> vector<376x32xf32>
      %90 = vector.extract_strided_slice %85 {offsets = [24, 0], sizes = [376, 96], strides = [1, 1]} : vector<424x96xbf16> to vector<376x96xbf16>
      %91 = vector.extract_strided_slice %76 {offsets = [1, 0, 0], sizes = [1, 96, 32], strides = [1, 1, 1]} : vector<3x96x32xbf16> to vector<1x96x32xbf16>
      %92 = vector.shape_cast %91 : vector<1x96x32xbf16> to vector<96x32xbf16>
      %cst_63 = arith.constant dense<0.000000e+00> : vector<376x32xf32>
      %93 = tpu.matmul %90, %92, %cst_63 {dimension_numbers = #tpu.dot_dimension_numbers<[1], [0], [0], [1], [0, 0, 1, 1], [], []>} : vector<376x96xbf16>, vector<96x32xbf16>, vector<376x32xf32> -> vector<376x32xf32>
      %94 = arith.addf %89, %93 : vector<376x32xf32>
      %95 = vector.extract_strided_slice %85 {offsets = [48, 0], sizes = [376, 96], strides = [1, 1]} : vector<424x96xbf16> to vector<376x96xbf16>
      %96 = vector.extract_strided_slice %76 {offsets = [2, 0, 0], sizes = [1, 96, 32], strides = [1, 1, 1]} : vector<3x96x32xbf16> to vector<1x96x32xbf16>
      %97 = vector.shape_cast %96 : vector<1x96x32xbf16> to vector<96x32xbf16>
      %cst_64 = arith.constant dense<0.000000e+00> : vector<376x32xf32>
      %98 = tpu.matmul %95, %97, %cst_64 {dimension_numbers = #tpu.dot_dimension_numbers<[1], [0], [0], [1], [0, 0, 1, 1], [], []>} : vector<376x96xbf16>, vector<96x32xbf16>, vector<376x32xf32> -> vector<376x32xf32>
      %99 = arith.addf %94, %98 : vector<376x32xf32>
      %100 = vector.broadcast %81 : vector<1x32xf32> to vector<376x32xf32>
      %101 = arith.addf %99, %100 : vector<376x32xf32>
      %cst_65 = arith.constant 0.000000e+00 : f32
      %102 = vector.broadcast %cst_65 : f32 to vector<376x32xf32>
      %103 = arith.maximumf %101, %102 : vector<376x32xf32>
      %104 = vector.broadcast %4 : vector<376x1xf32> to vector<376x32xf32>
      %105 = arith.mulf %103, %104 : vector<376x32xf32>
      %106 = arith.truncf %105 : vector<376x32xf32> to vector<376x32xbf16>
      %c32_66 = arith.constant 32 : index
      %c0_67 = arith.constant 0 : index
      %107 = vector.load %arg6[%c32_66, %c0_67] : memref<440x32xbf16, #tpu.memory_space<vmem>>, vector<376x32xbf16>
      tpu.vector_store %arg6[%c32_66, %c0_67], %106 {strides = array<i32>} : memref<440x32xbf16, #tpu.memory_space<vmem>>, vector<376x32xbf16>,
      %c2_i32_68 = arith.constant 2 : i32
      %108 = arith.muli %c2_i32_68, %arg8 : i32
      %c2_i32_69 = arith.constant 2 : i32
      %109 = arith.addi %c2_i32_69, %108 : i32
      %110 = arith.index_cast %109 : i32 to index
      %c0_70 = arith.constant 0 : index
      %c0_71 = arith.constant 0 : index
      %c0_72 = arith.constant 0 : index
      %111 = vector.load %arg2[%110, %c0_70, %c0_71, %c0_72] : memref<8x3x96x32xbf16, #tpu.memory_space<vmem>>, vector<1x3x96x32xbf16>
      %112 = vector.shape_cast %111 : vector<1x3x96x32xbf16> to vector<3x96x32xbf16>
      %c2_i32_73 = arith.constant 2 : i32
      %113 = arith.muli %c2_i32_73, %arg8 : i32
      %c2_i32_74 = arith.constant 2 : i32
      %114 = arith.addi %c2_i32_74, %113 : i32
      %115 = arith.index_cast %114 : i32 to index
      %c0_75 = arith.constant 0 : index
      %c0_76 = arith.constant 0 : index
      %116 = vector.load %arg3[%115, %c0_75, %c0_76] : memref<8x1x32xf32, #tpu.memory_space<vmem>>, vector<1x1x32xf32>
      %117 = vector.shape_cast %116 : vector<1x1x32xf32> to vector<1x32xf32>
      %c7_77 = arith.constant 7 : index
      %c0_78 = arith.constant 0 : index
      %118 = vector.load %arg6[%c7_77, %c0_78] : memref<440x32xbf16, #tpu.memory_space<vmem>>, vector<424x32xbf16>
      %c8_79 = arith.constant 8 : index
      %c0_80 = arith.constant 0 : index
      %119 = vector.load %arg6[%c8_79, %c0_80] : memref<440x32xbf16, #tpu.memory_space<vmem>>, vector<424x32xbf16>
      %c9_81 = arith.constant 9 : index
      %c0_82 = arith.constant 0 : index
      %120 = vector.load %arg6[%c9_81, %c0_82] : memref<440x32xbf16, #tpu.memory_space<vmem>>, vector<424x32xbf16>
      %121 = tpu.concatenate %118, %119, %120 in 1 : vector<424x32xbf16>, vector<424x32xbf16>, vector<424x32xbf16> -> vector<424x96xbf16>
      %122 = vector.extract_strided_slice %121 {offsets = [0, 0], sizes = [376, 96], strides = [1, 1]} : vector<424x96xbf16> to vector<376x96xbf16>
      %123 = vector.extract_strided_slice %112 {offsets = [0, 0, 0], sizes = [1, 96, 32], strides = [1, 1, 1]} : vector<3x96x32xbf16> to vector<1x96x32xbf16>
      %124 = vector.shape_cast %123 : vector<1x96x32xbf16> to vector<96x32xbf16>
      %cst_83 = arith.constant dense<0.000000e+00> : vector<376x32xf32>
      %125 = tpu.matmul %122, %124, %cst_83 {dimension_numbers = #tpu.dot_dimension_numbers<[1], [0], [0], [1], [0, 0, 1, 1], [], []>} : vector<376x96xbf16>, vector<96x32xbf16>, vector<376x32xf32> -> vector<376x32xf32>
      %126 = vector.extract_strided_slice %121 {offsets = [24, 0], sizes = [376, 96], strides = [1, 1]} : vector<424x96xbf16> to vector<376x96xbf16>
      %127 = vector.extract_strided_slice %112 {offsets = [1, 0, 0], sizes = [1, 96, 32], strides = [1, 1, 1]} : vector<3x96x32xbf16> to vector<1x96x32xbf16>
      %128 = vector.shape_cast %127 : vector<1x96x32xbf16> to vector<96x32xbf16>
      %cst_84 = arith.constant dense<0.000000e+00> : vector<376x32xf32>
      %129 = tpu.matmul %126, %128, %cst_84 {dimension_numbers = #tpu.dot_dimension_numbers<[1], [0], [0], [1], [0, 0, 1, 1], [], []>} : vector<376x96xbf16>, vector<96x32xbf16>, vector<376x32xf32> -> vector<376x32xf32>
      %130 = arith.addf %125, %129 : vector<376x32xf32>
      %131 = vector.extract_strided_slice %121 {offsets = [48, 0], sizes = [376, 96], strides = [1, 1]} : vector<424x96xbf16> to vector<376x96xbf16>
      %132 = vector.extract_strided_slice %112 {offsets = [2, 0, 0], sizes = [1, 96, 32], strides = [1, 1, 1]} : vector<3x96x32xbf16> to vector<1x96x32xbf16>
      %133 = vector.shape_cast %132 : vector<1x96x32xbf16> to vector<96x32xbf16>
      %cst_85 = arith.constant dense<0.000000e+00> : vector<376x32xf32>
      %134 = tpu.matmul %131, %133, %cst_85 {dimension_numbers = #tpu.dot_dimension_numbers<[1], [0], [0], [1], [0, 0, 1, 1], [], []>} : vector<376x96xbf16>, vector<96x32xbf16>, vector<376x32xf32> -> vector<376x32xf32>
      %135 = arith.addf %130, %134 : vector<376x32xf32>
      %136 = vector.broadcast %117 : vector<1x32xf32> to vector<376x32xf32>
      %137 = arith.addf %135, %136 : vector<376x32xf32>
      %138 = vector.broadcast %4 : vector<376x1xf32> to vector<376x32xf32>
      %139 = arith.mulf %137, %138 : vector<376x32xf32>
      %140 = arith.addf %arg9, %139 : vector<376x32xf32>
      scf.yield %140 : vector<376x32xf32>
    }
    %c3_i32_23 = arith.constant 3 : i32
    %c0_24 = arith.constant 0 : index
    %c0_25 = arith.constant 0 : index
    %37 = vector.load %arg7[%c0_24, %c0_25] : memref<376x32xf32, #tpu.memory_space<vmem>>, vector<376x32xf32>
    %38 = arith.addf %36, %37 : vector<376x32xf32>
    %39 = arith.truncf %38 : vector<376x32xf32> to vector<376x32xbf16>
    %c32 = arith.constant 32 : index
    %c0_26 = arith.constant 0 : index
    %40 = vector.load %arg6[%c32, %c0_26] : memref<440x32xbf16, #tpu.memory_space<vmem>>, vector<376x32xbf16>
    tpu.vector_store %arg6[%c32, %c0_26], %39 {strides = array<i32>} : memref<440x32xbf16, #tpu.memory_space<vmem>>, vector<376x32xbf16>,
    %c7_27 = arith.constant 7 : index
    %c0_28 = arith.constant 0 : index
    %c0_29 = arith.constant 0 : index
    %c0_30 = arith.constant 0 : index
    %41 = vector.load %arg2[%c7_27, %c0_28, %c0_29, %c0_30] : memref<8x3x96x32xbf16, #tpu.memory_space<vmem>>, vector<1x3x96x32xbf16>
    %42 = vector.shape_cast %41 : vector<1x3x96x32xbf16> to vector<3x96x32xbf16>
    %c7_31 = arith.constant 7 : index
    %c0_32 = arith.constant 0 : index
    %c0_33 = arith.constant 0 : index
    %43 = vector.load %arg3[%c7_31, %c0_32, %c0_33] : memref<8x1x32xf32, #tpu.memory_space<vmem>>, vector<1x1x32xf32>
    %44 = vector.shape_cast %43 : vector<1x1x32xf32> to vector<1x32xf32>
    %c7_34 = arith.constant 7 : index
    %c0_35 = arith.constant 0 : index
    %45 = vector.load %arg6[%c7_34, %c0_35] : memref<440x32xbf16, #tpu.memory_space<vmem>>, vector<424x32xbf16>
    %c8_36 = arith.constant 8 : index
    %c0_37 = arith.constant 0 : index
    %46 = vector.load %arg6[%c8_36, %c0_37] : memref<440x32xbf16, #tpu.memory_space<vmem>>, vector<424x32xbf16>
    %c9_38 = arith.constant 9 : index
    %c0_39 = arith.constant 0 : index
    %47 = vector.load %arg6[%c9_38, %c0_39] : memref<440x32xbf16, #tpu.memory_space<vmem>>, vector<424x32xbf16>
    %48 = tpu.concatenate %45, %46, %47 in 1 : vector<424x32xbf16>, vector<424x32xbf16>, vector<424x32xbf16> -> vector<424x96xbf16>
    %49 = vector.extract_strided_slice %48 {offsets = [0, 0], sizes = [376, 96], strides = [1, 1]} : vector<424x96xbf16> to vector<376x96xbf16>
    %50 = vector.extract_strided_slice %42 {offsets = [0, 0, 0], sizes = [1, 96, 32], strides = [1, 1, 1]} : vector<3x96x32xbf16> to vector<1x96x32xbf16>
    %51 = vector.shape_cast %50 : vector<1x96x32xbf16> to vector<96x32xbf16>
    %cst_40 = arith.constant dense<0.000000e+00> : vector<376x32xf32>
    %52 = tpu.matmul %49, %51, %cst_40 {dimension_numbers = #tpu.dot_dimension_numbers<[1], [0], [0], [1], [0, 0, 1, 1], [], []>} : vector<376x96xbf16>, vector<96x32xbf16>, vector<376x32xf32> -> vector<376x32xf32>
    %53 = vector.extract_strided_slice %48 {offsets = [24, 0], sizes = [376, 96], strides = [1, 1]} : vector<424x96xbf16> to vector<376x96xbf16>
    %54 = vector.extract_strided_slice %42 {offsets = [1, 0, 0], sizes = [1, 96, 32], strides = [1, 1, 1]} : vector<3x96x32xbf16> to vector<1x96x32xbf16>
    %55 = vector.shape_cast %54 : vector<1x96x32xbf16> to vector<96x32xbf16>
    %cst_41 = arith.constant dense<0.000000e+00> : vector<376x32xf32>
    %56 = tpu.matmul %53, %55, %cst_41 {dimension_numbers = #tpu.dot_dimension_numbers<[1], [0], [0], [1], [0, 0, 1, 1], [], []>} : vector<376x96xbf16>, vector<96x32xbf16>, vector<376x32xf32> -> vector<376x32xf32>
    %57 = arith.addf %52, %56 : vector<376x32xf32>
    %58 = vector.extract_strided_slice %48 {offsets = [48, 0], sizes = [376, 96], strides = [1, 1]} : vector<424x96xbf16> to vector<376x96xbf16>
    %59 = vector.extract_strided_slice %42 {offsets = [2, 0, 0], sizes = [1, 96, 32], strides = [1, 1, 1]} : vector<3x96x32xbf16> to vector<1x96x32xbf16>
    %60 = vector.shape_cast %59 : vector<1x96x32xbf16> to vector<96x32xbf16>
    %cst_42 = arith.constant dense<0.000000e+00> : vector<376x32xf32>
    %61 = tpu.matmul %58, %60, %cst_42 {dimension_numbers = #tpu.dot_dimension_numbers<[1], [0], [0], [1], [0, 0, 1, 1], [], []>} : vector<376x96xbf16>, vector<96x32xbf16>, vector<376x32xf32> -> vector<376x32xf32>
    %62 = arith.addf %57, %61 : vector<376x32xf32>
    %63 = vector.broadcast %44 : vector<1x32xf32> to vector<376x32xf32>
    %64 = arith.addf %62, %63 : vector<376x32xf32>
    %65 = vector.broadcast %4 : vector<376x1xf32> to vector<376x32xf32>
    %66 = arith.mulf %64, %65 : vector<376x32xf32>
    %c0_43 = arith.constant 0 : index
    %c32_44 = arith.constant 32 : index
    %c0_45 = arith.constant 0 : index
    %67 = vector.load %arg5[%c0_43, %c32_44, %c0_45] : memref<1x440x32xf32, #tpu.memory_space<vmem>>, vector<1x376x32xf32>
    %68 = vector.shape_cast %67 : vector<1x376x32xf32> to vector<376x32xf32>
    %69 = vector.shape_cast %66 : vector<376x32xf32> to vector<1x376x32xf32>
    tpu.vector_store %arg5[%c0_43, %c32_44, %c0_45], %69 {strides = array<i32>} : memref<1x440x32xf32, #tpu.memory_space<vmem>>, vector<1x376x32xf32>,
    return
  }
  func.func @transform_0(%arg0: i32) -> (i32, i32, i32) {
    %c0_i32 = arith.constant 0 : i32
    %c0_i32_0 = arith.constant 0 : i32
    %c0_i32_1 = arith.constant 0 : i32
    return %arg0, %c0_i32, %c0_i32_0 : i32, i32, i32
  }
  func.func @transform_1(%arg0: i32) -> (i32, i32, i32, i32) {
    %c0_i32 = arith.constant 0 : i32
    %c0_i32_0 = arith.constant 0 : i32
    %c0_i32_1 = arith.constant 0 : i32
    %c0_i32_2 = arith.constant 0 : i32
    %c0_i32_3 = arith.constant 0 : i32
    return %c0_i32, %c0_i32_0, %c0_i32_1, %c0_i32_2 : i32, i32, i32, i32
  }
  func.func @transform_2(%arg0: i32) -> (i32, i32, i32) {
    %c0_i32 = arith.constant 0 : i32
    %c0_i32_0 = arith.constant 0 : i32
    %c0_i32_1 = arith.constant 0 : i32
    %c0_i32_2 = arith.constant 0 : i32
    return %c0_i32, %c0_i32_0, %c0_i32_1 : i32, i32, i32
  }
  func.func @transform_3(%arg0: i32) -> (i32, i32) {
    %c0_i32 = arith.constant 0 : i32
    %c0_i32_0 = arith.constant 0 : i32
    %c0_i32_1 = arith.constant 0 : i32
    return %c0_i32, %c0_i32_0 : i32, i32
  }
  func.func @transform_4(%arg0: i32) -> (i32, i32, i32) {
    %c0_i32 = arith.constant 0 : i32
    %c0_i32_0 = arith.constant 0 : i32
    %c0_i32_1 = arith.constant 0 : i32
    return %arg0, %c0_i32, %c0_i32_0 : i32, i32, i32
  }
}

</mosaic_0001>

<bundles_post_ra>
// kernel: edsr_forward.1
= control target key start
LH: loop header
LB: loop body
LE: loop exit
PB: predicated region body
PF: predicated region fallthrough
CT: control target
= control target key end

     0   :  { %s13960_s15 = smov 0   ;;  %s19302_s0 = inlined_call_operand.vmem [shape: bf16[2,440,32], index: 0, kind: input, shape index: {}]   ;;  %s19303_s1 = inlined_call_operand.vmem [shape: bf16[8,3,96,32], index: 1, kind: input, shape index: {}]   ;;  %s19304_s2 = inlined_call_operand.vmem [shape: f32[8,1,32], index: 2, kind: input, shape index: {}]   ;;  %s19305_s3 = inlined_call_operand.vmem [shape: f32[376,1], index: 3, kind: input, shape index: {}]   ;;  %s19306_s4 = inlined_call_operand.vmem [shape: f32[2,440,32], index: 4, kind: output, shape index: {}]  }
   0x1 LB: > { %s10432_s16 = sadd.s32 4294967295, %s13736_s15   ;;  %p10436_p0 = scmp.ge.s32.totalorder %s13736_s15, 1  ;;  %s13736_s15 = sphi %s13960_s15, %s14_s15  }
   0x2   : > { %p162_p1 = scmp.lt.s32.totalorder %s13736_s15, 3 }
   0x4   : > { %p163_p2 = pnand %p10436_p0, %p162_p1 }
   0x6   : > { %166 = sbr.rel (%p163_p2) target bundleno = 2292 (0x8f4), region = 36 }
   0xd   : > { %p188_p3 = scmp.lt.s32.totalorder %s10432_s16, 1  ;;  %v13309_v0 = vld [vmem:[%s19303_s1 + $0x30] sm:$0xff]   ;;  %v13974_v1 = vld [vmem:[%s19303_s1] sm:$0xff]   ;;  %v13311_v2 = vld [vmem:[%s19303_s1 + $0x38] sm:$0xff]   ;;  %vm809_vm0 = vcmask 1042432   ;;  %s13930_s13 = smov 64  }
   0xe   : > { %11784 = vmatprep.subr.bf16.mxu1 %v13309_v0  ;;  %11844 = vmatprep.subr.bf16.mxu0 %v13974_v1  ;;  %v13312_v3 = vld [vmem:[%s19303_s1 + $0x8] sm:$0xff]   ;;  %v13314_v4 = vld [vmem:[%s19303_s1 + $0x40] sm:$0xff]   ;;  %v13315_v5 = vld [vmem:[%s19303_s1 + $0x10] sm:$0xff]   ;;  %vm509_vm1 = vsmask.f32 3328  ;;  %s13931_s21 = smov 32  }
   0xf   : > { %s20233_s16 = smov (!%p188_p3, %s10432_s16), 1  ;;  %11785 = vmatpush3.bf16.msra.mxu1 %v13309_v0  ;;  %11845 = vmatpush3.bf16.msra.mxu0 %v13974_v1  ;;  %v13317_v22 = vld [vmem:[%s19303_s1 + $0x48] sm:$0xff]   ;;  %v13318_v40 = vld [vmem:[%s19303_s1 + $0x18] sm:$0xff]   ;;  %v13321_v46 = vld [vmem:[%s19303_s1 + $0x50] sm:$0xff]   ;;  %vm199_vm2 = vcmask 257024   ;;  %vm917_vm3 = vcmask 261120  }
  0x10   : > { %s12880_s23 = smul.u32 220, %s20233_s16  ;;  %11786 = vmatprep.subr.bf16.mxu1 %v13311_v2  ;;  %11846 = vmatprep.subr.bf16.mxu0 %v13312_v3  ;;  %v13322_v52 = vld [vmem:[%s19303_s1 + $0x20] sm:$0xff]   ;;  %vm999_vm4 = vcmask 523264   ;;  %vm1054_vm5 = vsmask.f32 256  ;;  %vm1262_vm6 = vcmask 785408  }
  0x11   : > { %s12881_s26 = smul.u32 440, %s20233_s16  ;;  %vm1559_vm7 = vsmask.f32 4352  ;;  %s15683_s11 = smov 0  }
  0x12   : > { %s13990_s5 = scalar_lea.vmem %s19302_s0, %s12880_s23 }
  0x13   : > { %s13998_s10 = scalar_lea.vmem %s19306_s4, %s12881_s26  ;;  %v14001_v6 = vld [vmem:[%s13990_s5 + $0xc] sm:$0xf]  ;;  %v14004_v7 = vld [vmem:[%s13990_s5 + $0x10] sm:$0xf]  ;;  %v14007_v8 = vld [vmem:[%s13990_s5 + $0x14] sm:$0xf]  ;;  %11787 = vmatpush3.bf16.msra.mxu1 %v13311_v2  ;;  %11847 = vmatpush3.bf16.msra.mxu0 %v13312_v3 }
  0x14   : > { %19561 = vst [vmem:[#allocation4_spill] sm:$0xff] %v14004_v7  ;;  %19562 = vst [vmem:[#allocation5_spill] sm:$0xff] %v14007_v8  ;;  %v14010_v9 = vld [vmem:[%s13990_s5 + $0x18] sm:$0xf]  ;;  %v14014_v10 = vcombine.low %v14001_v6, %v14004_v7  ;;  %v14017_v11 = vld [vmem:[%s13990_s5 + $0x4] sm:$0xf]  ;;  %11788 = vmatprep.subr.bf16.mxu1 %v13314_v4  ;;  %11848 = vmatprep.subr.bf16.mxu0 %v13315_v5 }
  0x15   : > { %v14020_v12 = vld [vmem:[%s13990_s5 + $0x8] sm:$0xf]  ;;  %v10468_v14 = vcombine.low %v14007_v8, %v14010_v9  ;;  %v14031_v16 = vld [vmem:[%s13990_s5 + $0x1c] sm:$0xf]  ;;  %v14034_v17 = vld [vmem:[%s13990_s5 + $0x20] sm:$0xf] }
  0x16   : > { %v14028_v15 = vcombine.low %v14017_v11, %v14020_v12  ;;  %v811_v18 = vrot.slane %v14014_v10, 5  ;;  %v14039_v19 = vcombine.low %v14031_v16, %v14034_v17  ;;  %v519_v20 = vshrl.u32 %v14014_v10, 16  ;;  %v14048_v27 = vld [vmem:[%s13990_s5 + $0x24] sm:$0xf]  ;;  %v14051_v28 = vld [vmem:[%s13990_s5 + $0x28] sm:$0xf] }
  0x17   : > { %v522_v21 = vshll.u32 %v14014_v10, 16  ;;  %v813_v23 = vrot.slane %v10468_v14, 5  ;;  %v528_v25 = vshrl.u32 %v10468_v14, 16  ;;  %v531_v26 = vshll.u32 %v10468_v14, 16  ;;  %v14054_v29 = vld [vmem:[%s13990_s5 + $0x2c] sm:$0xf]  ;;  %11789 = vmatpush3.bf16.msra.mxu1 %v13314_v4  ;;  %11849 = vmatpush3.bf16.msra.mxu0 %v13315_v5 }
  0x18   : > { %v810_v24 = vrot.slane %v14028_v15, 5  ;;  %v815_v30 = vrot.slane %v14039_v19, 5  ;;  %v521_v31 = vrot.slane %v519_v20, 4  ;;  %v537_v33 = vshrl.u32 %v14039_v19, 16  ;;  %v14059_v34 = vld [vmem:[%s13990_s5 + $0x30] sm:$0xf]  ;;  %11790 = vmatprep.subr.bf16.mxu1 %v13317_v22  ;;  %11850 = vmatprep.subr.bf16.mxu0 %v13318_v40 }
  0x19   : > { %v524_v32 = vrot.slane %v522_v21, 5  ;;  %v814_v35 = vsel %vm809_vm0, %v811_v18, %v813_v23  ;;  %v530_v36 = vrot.slane %v528_v25, 4  ;;  %v533_v37 = vrot.slane %v531_v26, 5  ;;  %v14067_v39 = vld [vmem:[%s13990_s5 + $0x34] sm:$0xf]  ;;  %v13325_v10 = vld [vmem:[%s19303_s1 + $0x58] sm:$0xff]  }
  0x1a   : > { %863 = vrot.lane.b32.xlu0 %v810_v24, %s13930_s13  ;;  %v540_v38 = vshll.u32 %v14039_v19, 16  ;;  %19563 = vst [vmem:[#allocation6_spill] sm:$0xff] %v14067_v39  ;;  %867 = vrot.lane.b32.xlu1 %v814_v35, %s13930_s13  ;;  %v816_v41 = vsel %vm809_vm0, %v813_v23, %v815_v30  ;;  %v539_v43 = vrot.slane %v537_v33, 4  ;;  %v14077_v44 = vld [vmem:[%s13990_s5 + $0x38] sm:$0xf]  ;;  %v511_v49 = vshrl.u32 %v14028_v15, 16 }
  0x1b   : > { %v525_v42 = vor.u32 %v524_v32, %v521_v31  ;;  %v14080_v45 = vld [vmem:[%s13990_s5 + $0x3c] sm:$0xf]  ;;  %v534_v47 = vor.u32 %v533_v37, %v530_v36  ;;  %v514_v50 = vshll.u32 %v14028_v15, 16  ;;  %v14088_v51 = vld [vmem:[%s13990_s5 + $0x40] sm:$0xf]  ;;  %11791 = vmatpush3.bf16.msra.mxu1 %v13317_v22  ;;  %v10470_v53 = vcombine.low %v14048_v27, %v14051_v28  ;;  %11851 = vmatpush3.bf16.msra.mxu0 %v13318_v40 }
  0x1c   : > { %v542_v48 = vrot.slane %v540_v38, 5  ;;  %v14097_v54 = vcombine.low %v14054_v29, %v14059_v34  ;;  %v14101_v55 = vcombine.low %v14067_v39, %v14077_v44  ;;  %v14105_v56 = vcombine.low %v14080_v45, %v14088_v51  ;;  %11792 = vmatprep.subr.bf16.mxu1 %v13321_v46  ;;  %11852 = vmatprep.subr.bf16.mxu0 %v13322_v52  ;;  %v14119_v25 = vld [vmem:[%s13990_s5 + $0x44] sm:$0xf]  ;;  %v14131_v32 = vld [vmem:[%s13990_s5 + $0x48] sm:$0xf] }
  0x1d   : > { %v535_v57 = vsel %vm509_vm1, %v525_v42, %v534_v47  ;;  %v513_v59 = vrot.slane %v511_v49, 4  ;;  %v516_v60 = vrot.slane %v514_v50, 5  ;;  %v546_v61 = vshrl.u32 %v10470_v53, 16  ;;  %v14134_v33 = vld [vmem:[%s13990_s5 + $0x4c] sm:$0xf]  ;;  %v14181_v19 = vld [vmem:[%s19303_s1 + $0x60] sm:$0xff]  }
  0x1e   : > { %v543_v58 = vor.u32 %v542_v48, %v539_v43  ;;  %869 = vrot.lane.b32.xlu1 %v816_v41, %s13930_s13  ;;  %756 = vrot.lane.b32.xlu0 %v535_v57, %s13931_s21  ;;  %v549_v62 = vshll.u32 %v10470_v53, 16  ;;  %v555_v63 = vshrl.u32 %v14097_v54, 16  ;;  %v558_v0 = vshll.u32 %v14097_v54, 16  ;;  %v14139_v37 = vld [vmem:[%s13990_s5 + $0x50] sm:$0xf]  ;;  %19567 = vst [vmem:[#allocation10_spill] sm:$0xff] %v14181_v19 }
  0x1f   : > { %v812_v3 = vsel %vm809_vm0, %v810_v24, %v811_v18  ;;  %v517_v4 = vor.u32 %v516_v60, %v513_v59  ;;  %11793 = vmatpush3.bf16.msra.mxu1 %v13321_v46  ;;  %v548_v5 = vrot.slane %v546_v61, 4  ;;  %11853 = vmatpush3.bf16.msra.mxu0 %v13322_v52  ;;  %v817_v21 = vrot.slane %v10470_v53, 5  ;;  %19564 = vst [vmem:[#allocation7_spill] sm:$0xff] %v14139_v37  ;;  %v14142_v38 = vld [vmem:[%s13990_s5 + $0x54] sm:$0xf]  ;;  %v13326_v52 = vld [vmem:[%s19303_s1 + $0x28] sm:$0xff]  }
  0x20   : > { %v544_v2 = vsel %vm509_vm1, %v534_v47, %v543_v58  ;;  %v551_v14 = vrot.slane %v549_v62, 5  ;;  %v557_v15 = vrot.slane %v555_v63, 4  ;;  %v560_v20 = vrot.slane %v558_v0, 5  ;;  %19565 = vst [vmem:[#allocation8_spill] sm:$0xff] %v14142_v38  ;;  %11794 = vmatprep.subr.bf16.mxu1 %v13325_v10  ;;  %v14147_v47 = vld [vmem:[%s13990_s5 + $0x58] sm:$0xf]  ;;  %11854 = vmatprep.subr.bf16.mxu0 %v13326_v52 }
  0x21   : > { %v819_v22 = vrot.slane %v14097_v54, 5  ;;  %v564_v23 = vshrl.u32 %v14101_v55, 16  ;;  %v567_v26 = vshll.u32 %v14101_v55, 16  ;;  %v573_v31 = vshrl.u32 %v14105_v56, 16  ;;  %v14172_v60 = vld [vmem:[%s13990_s5 + $0x60] sm:$0xf] }
  0x22   : > { %758 = vrot.lane.b32.xlu0 %v544_v2, %s13931_s21  ;;  %865 = vrot.lane.b32.xlu1 %v812_v3, %s13930_s13  ;;  %v552_v18 = vor.u32 %v551_v14, %v548_v5  ;;  %v14126_v24 = vor.u32 %v560_v20, %v557_v15  ;;  %v526_v35 = vsel %vm509_vm1, %v517_v4, %v525_v42  ;;  %v576_v36 = vshll.u32 %v14105_v56, 16 }
  0x23   : > { %v566_v40 = vrot.slane %v564_v23, 4  ;;  %v569_v41 = vrot.slane %v567_v26, 5  ;;  %v821_v43 = vrot.slane %v14101_v55, 5  ;;  %v823_v46 = vrot.slane %v14105_v56, 5  ;;  %11795 = vmatpush3.bf16.msra.mxu1 %v13325_v10  ;;  %v14168_v56 = vld [vmem:[%s13990_s5 + $0x5c] sm:$0xf]  ;;  %11855 = vmatpush3.bf16.msra.mxu0 %v13326_v52 }
  0x24   : > { %v820_v42 = vsel %vm809_vm0, %v817_v21, %v819_v22  ;;  %v575_v48 = vrot.slane %v573_v31, 4  ;;  %v578_v49 = vrot.slane %v576_v36, 5  ;;  %v10474_v50 = vcombine.low %v14119_v25, %v14131_v32  ;;  %12504 = vmatprep.subr.bf16.mxu1 %v13974_v1  ;;  %19566 = vst [vmem:[#allocation9_spill] sm:$0xff] %v14172_v60  ;;  %11904 = vmatprep.subr.bf16.mxu0 %v14181_v19  ;;  %v14200_v23 = vld [vmem:[%s13990_s5 + $0x68] sm:$0xf] }
  0x25   : > { %v562_v53 = vsel %vm509_vm1, %v552_v18, %v14126_v24  ;;  %v818_v54 = vsel %vm809_vm0, %v815_v30, %v817_v21  ;;  %v14165_v55 = vcombine.low %v14134_v33, %v14139_v37  ;;  %v553_v57 = vsel %vm509_vm1, %v543_v58, %v552_v18  ;;  %v14197_v21 = vld [vmem:[%s13990_s5 + $0x64] sm:$0xf]  ;;  %19569 = vst [vmem:[#allocation12_spill] sm:$0xff] %v14200_v23  ;;  %v14203_v10 = vld [vmem:[%s13990_s5 + $0x6c] sm:$0xf] }
  0x26   : > { %752 = vrot.lane.b32.xlu1 %v517_v4, %s13931_s21  ;;  %754 = vrot.lane.b32.xlu0 %v526_v35, %s13931_s21  ;;  %v582_v1 = vshrl.u32 %v10474_v50, 16  ;;  %v585_v59 = vshll.u32 %v10474_v50, 16  ;;  %v14176_v61 = vcombine.low %v14142_v38, %v14147_v47  ;;  %v570_v30 = vor.u32 %v569_v41, %v566_v40  ;;  %19568 = vst [vmem:[#allocation11_spill] sm:$0xff] %v14197_v21  ;;  %v14209_v36 = vld [vmem:[%s13990_s5 + $0x70] sm:$0xf] }
  0x27   : > { %v14184_v62 = vsel %vm809_vm0, %v821_v43, %v823_v46  ;;  %v591_v58 = vshrl.u32 %v14165_v55, 16  ;;  %v594_v63 = vshll.u32 %v14165_v55, 16  ;;  %v579_v0 = vor.u32 %v578_v49, %v575_v48  ;;  %19570 = vst [vmem:[#allocation13_spill] sm:$0xff] %v14203_v10  ;;  %19571 = vst [vmem:[#allocation14_spill] sm:$0xff] %v14209_v36  ;;  %v14212_v40 = vld [vmem:[%s13990_s5 + $0x74] sm:$0xf] }
  0x28   : > { %v584_v2 = vrot.slane %v582_v1, 4  ;;  %v587_v3 = vrot.slane %v585_v59, 5  ;;  %v825_v4 = vrot.slane %v10474_v50, 5  ;;  %v827_v15 = vrot.slane %v14165_v55, 5  ;;  %19572 = vst [vmem:[#allocation15_spill] sm:$0xff] %v14212_v40 }
  0x29   : > { %v593_v5 = vrot.slane %v591_v58, 4  ;;  %v596_v14 = vrot.slane %v594_v63, 5  ;;  %v14194_v20 = vcombine.low %v14168_v56, %v14172_v60  ;;  %v822_v18 = vsel %vm809_vm0, %v819_v22, %v821_v43  ;;  %v14220_v43 = vld [vmem:[%s13990_s5 + $0x78] sm:$0xf]  ;;  %v14229_v1 = vld [vmem:[%s13990_s5 + $0x80] sm:$0xf] }
  0x2a   : > { %762 = vrot.lane.b32.xlu1 %v562_v53, %s13931_s21  ;;  %760 = vrot.lane.b32.xlu0 %v553_v57, %s13931_s21  ;;  %v588_v26 = vor.u32 %v587_v3, %v584_v2  ;;  %v600_v31 = vshrl.u32 %v14176_v61, 16  ;;  %v603_v35 = vshll.u32 %v14176_v61, 16  ;;  %v829_v22 = vrot.slane %v14176_v61, 5  ;;  %19573 = vst [vmem:[#allocation16_spill] sm:$0xff] %v14220_v43  ;;  %v14226_v57 = vld [vmem:[%s13990_s5 + $0x7c] sm:$0xf] }
  0x2b   : > { %v14214_v41 = vor.u32 %v596_v14, %v593_v5  ;;  %v609_v48 = vshrl.u32 %v14194_v20, 16  ;;  %v612_v49 = vshll.u32 %v14194_v20, 16  ;;  %v580_v50 = vsel %vm509_vm1, %v570_v30, %v579_v0  ;;  %19574 = vst [vmem:[#allocation17_spill] sm:$0xff] %v14226_v57  ;;  %19575 = vst [vmem:[#allocation18_spill] sm:$0xff] %v14229_v1  ;;  %v14243_v63 = vld [vmem:[%s13990_s5 + $0x88] sm:$0xf] }
  0x2c   : > { %v571_v52 = vsel %vm509_vm1, %v14126_v24, %v570_v30  ;;  %v602_v53 = vrot.slane %v600_v31, 4  ;;  %v605_v55 = vrot.slane %v603_v35, 5  ;;  %v14234_v59 = vsel %vm809_vm0, %v825_v4, %v827_v15  ;;  %v14240_v30 = vld [vmem:[%s13990_s5 + $0x84] sm:$0xf]  ;;  %19577 = vst [vmem:[#allocation20_spill] sm:$0xff] %v14243_v63 }
  0x2d   : > { %v14237_v61 = vsel %vm809_vm0, %v823_v46, %v825_v4  ;;  %v611_v58 = vrot.slane %v609_v48, 4  ;;  %v614_v24 = vrot.slane %v612_v49, 5  ;;  %19576 = vst [vmem:[#allocation19_spill] sm:$0xff] %v14240_v30  ;;  %v831_v2 = vrot.slane %v14194_v20, 5  ;;  %v14253_v5 = vld [vmem:[%s13990_s5 + $0x8c] sm:$0xf] }
  0x2e   : > { %873 = vrot.lane.b32.xlu1 %v820_v42, %s13930_s13  ;;  %871 = vrot.lane.b32.xlu0 %v818_v54, %s13930_s13  ;;  %v10478_v3 = vcombine.low %v14197_v21, %v14200_v23  ;;  %v10479_v42 = vcombine.low %v14203_v10, %v14209_v36  ;;  %v10480_v54 = vcombine.low %v14212_v40, %v14220_v43  ;;  %v14256_v46 = vld [vmem:[%s13990_s5 + $0x90] sm:$0xf] }
  0x2f   : > { %19578 = vst [vmem:[#allocation21_spill] sm:$0xff] %v14253_v5  ;;  %19579 = vst [vmem:[#allocation22_spill] sm:$0xff] %v14256_v46  ;;  %v598_v4 = vsel %vm509_vm1, %v588_v26, %v14214_v41  ;;  %v589_v14 = vsel %vm509_vm1, %v579_v0, %v588_v26  ;;  %v606_v31 = vor.u32 %v605_v55, %v602_v53 }
  0x30   : > { %v14262_v20 = vsel %vm809_vm0, %v827_v15, %v829_v22  ;;  %v618_v35 = vshrl.u32 %v10478_v3, 16  ;;  %v621_v48 = vshll.u32 %v10478_v3, 16  ;;  %v627_v49 = vshrl.u32 %v10479_v42, 16 }
  0x31   : > { %v14266_v13 = vcombine.low %v14226_v57, %v14229_v1  ;;  %v615_v19 = vor.u32 %v614_v24, %v611_v58  ;;  %v630_v8 = vshll.u32 %v10479_v42, 16  ;;  %v14272_v0 = vcombine.low %v14240_v30, %v14243_v63 }
  0x32   : > { %766 = vrot.lane.b32.xlu1 %v580_v50, %s13931_s21  ;;  %764 = vrot.lane.b32.xlu0 %v571_v52, %s13931_s21  ;;  %v14276_v15 = vcombine.low %v14253_v5, %v14256_v46  ;;  %v620_v26 = vrot.slane %v618_v35, 4  ;;  %v623_v53 = vrot.slane %v621_v48, 5  ;;  %v629_v55 = vrot.slane %v627_v49, 4  ;;  %v14357_v5 = vld [vmem:[%s13990_s5 + $0xbc] sm:$0xf] }
  0x33   : > { %19580 = vst [vmem:[#allocation23_spill] sm:$0xff] %v14266_v13  ;;  %v636_v7 = vshrl.u32 %v10480_v54, 16  ;;  %v632_v1 = vrot.slane %v630_v8, 5  ;;  %v833_v50 = vrot.slane %v10478_v3, 5  ;;  %v835_v36 = vrot.slane %v10479_v42, 5  ;;  %19589 = vst [vmem:[#allocation31_spill] sm:$0xff] %v14357_v5 }
  0x34   : > { %v639_v52 = vshll.u32 %v10480_v54, 16  ;;  %v624_v58 = vor.u32 %v623_v53, %v620_v26  ;;  %v645_v30 = vshrl.u32 %v14266_v13, 16  ;;  %v648_v63 = vshll.u32 %v14266_v13, 16  ;;  %v14285_v3 = vld [vmem:[%s13990_s5 + $0x94] sm:$0xf] }
  0x35   : > { %v638_v24 = vrot.slane %v636_v7, 4  ;;  %v633_v35 = vor.u32 %v632_v1, %v629_v55  ;;  %v837_v49 = vrot.slane %v10480_v54, 5  ;;  %19581 = vst [vmem:[#allocation24_spill] sm:$0xff] %v14285_v3  ;;  %v14288_v42 = vld [vmem:[%s13990_s5 + $0x98] sm:$0xf]  ;;  %v14291_v7 = vsel %vm809_vm0, %v829_v22, %v831_v2 }
  0x36   : > { %877 = vrot.lane.b32.xlu1 %v14184_v62, %s13930_s13  ;;  %875 = vrot.lane.b32.xlu0 %v822_v18, %s13930_s13  ;;  %v641_v48 = vrot.slane %v639_v52, 5  ;;  %19582 = vst [vmem:[#allocation25_spill] sm:$0xff] %v14288_v42  ;;  %v647_v26 = vrot.slane %v645_v30, 4  ;;  %v650_v53 = vrot.slane %v648_v63, 5  ;;  %v654_v46 = vshrl.u32 %v14272_v0, 16  ;;  %v19609_v38 = vld [vmem:[#allocation21_spill] sm:$0xff] }
  0x37   : > { %v14295_v62 = vld [vmem:[%s13990_s5 + $0x9c] sm:$0xf]  ;;  %v616_v18 = vsel %vm509_vm1, %v606_v31, %v615_v19  ;;  %v607_v1 = vsel %vm509_vm1, %v14214_v41, %v606_v31  ;;  %v14301_v54 = vsel %vm809_vm0, %v833_v50, %v835_v36  ;;  %v14304_v52 = vsel %vm509_vm1, %v615_v19, %v624_v58  ;;  %v14312_v8 = vld [vmem:[%s13990_s5 + $0xa0] sm:$0xf] }
  0x38   : > { %19583 = vst [vmem:[#allocation26_spill] sm:$0xff] %v14295_v62  ;;  %v642_v55 = vor.u32 %v641_v48, %v638_v24  ;;  %v14307_v22 = vsel %vm809_vm0, %v831_v2, %v833_v50  ;;  %v657_v30 = vshll.u32 %v14272_v0, 16  ;;  %v663_v63 = vshrl.u32 %v14276_v15, 16  ;;  %19584 = vst [vmem:[#allocation27_spill] sm:$0xff] %v14312_v8 }
  0x39   : > { %v14317_v19 = vsel %vm509_vm1, %v624_v58, %v633_v35  ;;  %v14319_v41 = vor.u32 %v650_v53, %v647_v26  ;;  %v19585_v2 = vrot.slane %v14266_v13, 5  ;;  %v666_v50 = vshll.u32 %v14276_v15, 16  ;;  %v14338_v13 = vld [vmem:[%s13990_s5 + $0xa4] sm:$0xf] }
  0x3a   : > { %770 = vrot.lane.b32.xlu1 %v598_v4, %s13931_s21  ;;  %768 = vrot.lane.b32.xlu0 %v589_v14, %s13931_s21  ;;  %v14328_v4 = vsel %vm809_vm0, %v835_v36, %v837_v49  ;;  %v656_v24 = vrot.slane %v654_v46, 4  ;;  %v659_v14 = vrot.slane %v657_v30, 5  ;;  %v10484_v58 = vcombine.low %v14285_v3, %v14288_v42  ;;  %v14341_v36 = vld [vmem:[%s13990_s5 + $0xa8] sm:$0xf]  ;;  %v14344_v46 = vld [vmem:[%s13990_s5 + $0xac] sm:$0xf] }
  0x3b   : > { %v14324_v31 = vsel %vm809_vm0, %v837_v49, %v19585_v2  ;;  %19587 = vst [vmem:[#allocation29_spill] sm:$0xff] %v14328_v4  ;;  %v14333_v48 = vsel %vm509_vm1, %v633_v35, %v642_v55  ;;  %v665_v26 = vrot.slane %v663_v63, 4  ;;  %v668_v53 = vrot.slane %v666_v50, 5  ;;  %v14347_v49 = vld [vmem:[%s13990_s5 + $0xb0] sm:$0xf] }
  0x3c   : > { %19586 = vst [vmem:[#allocation28_spill] sm:$0xff] %v14324_v31  ;;  %v10485_v2 = vcombine.low %v14295_v62, %v14312_v8  ;;  %v14350_v30 = vld [vmem:[%s13990_s5 + $0xb4] sm:$0xf]  ;;  %v14353_v3 = vld [vmem:[%s13990_s5 + $0xb8] sm:$0xf]  ;;  %v672_v63 = vshrl.u32 %v10484_v58, 16  ;;  %v14374_v35 = vsel %vm509_vm1, %v642_v55, %v14319_v41  ;;  %v14376_v43 = vor.u32 %v659_v14, %v656_v24 }
  0x3d   : > { %19588 = vst [vmem:[#allocation30_spill] sm:$0xff] %v14353_v3  ;;  %v675_v42 = vshll.u32 %v10484_v58, 16  ;;  %v845_v50 = vrot.slane %v10484_v58, 5  ;;  %v14360_v8 = vld [vmem:[%s13990_s5 + $0xc0] sm:$0xf]  ;;  %v19593_v21 = vrot.slane %v14276_v15, 5  ;;  %v10487_v24 = vcombine.low %v14344_v46, %v14347_v49 }
  0x3e   : > { %19590 = vst [vmem:[#allocation32_spill] sm:$0xff] %v14360_v8  ;;  %v14363_v62 = vld [vmem:[%s13990_s5 + $0xc4] sm:$0xf]  ;;  %v14366_v4 = vld [vmem:[%s13990_s5 + $0xc8] sm:$0xf]  ;;  %881 = vrot.lane.b32.xlu1 %v14234_v59, %s13930_s13  ;;  %879 = vrot.lane.b32.xlu0 %v14237_v61, %s13930_s13  ;;  %v681_v31 = vshrl.u32 %v10485_v2, 16  ;;  %v14383_v59 = vor.u32 %v668_v53, %v665_v26  ;;  %v10489_v14 = vcombine.low %v14357_v5, %v14360_v8 }
  0x3f   : > { %19591 = vst [vmem:[#allocation33_spill] sm:$0xff] %v14363_v62  ;;  %19592 = vst [vmem:[#allocation34_spill] sm:$0xff] %v14366_v4  ;;  %v684_v58 = vshll.u32 %v10485_v2, 16  ;;  %v847_v40 = vrot.slane %v10485_v2, 5  ;;  %v674_v57 = vrot.slane %v672_v63, 4  ;;  %v677_v60 = vrot.slane %v675_v42, 5 }
  0x40   : > { %v14381_v23 = vsel %vm809_vm0, %v19593_v21, %v845_v50  ;;  %v683_v10 = vrot.slane %v681_v31, 4  ;;  %v10486_v2 = vcombine.low %v14338_v13, %v14341_v36  ;;  %v10488_v42 = vcombine.low %v14350_v30, %v14353_v3 }
  0x41   : > { %19594 = vst [vmem:[#allocation35_spill] sm:$0xff] %v14381_v23  ;;  %v686_v61 = vrot.slane %v684_v58, 5  ;;  %v14386_v37 = vsel %vm809_vm0, %v845_v50, %v847_v40  ;;  %v678_v55 = vor.u32 %v677_v60, %v674_v57  ;;  %v14401_v60 = vcombine.low %v14363_v62, %v14366_v4 }
  0x42   : > { %19595 = vst [vmem:[#allocation36_spill] sm:$0xff] %v14386_v37  ;;  %774 = vrot.lane.b32.xlu1 %v616_v18, %s13931_s21  ;;  %772 = vrot.lane.b32.xlu0 %v607_v1, %s13931_s21  ;;  %v690_v26 = vshrl.u32 %v10486_v2, 16  ;;  %v693_v53 = vshll.u32 %v10486_v2, 16  ;;  %v699_v18 = vshrl.u32 %v10487_v24, 16  ;;  %v849_v63 = vrot.slane %v10486_v2, 5 }
  0x43   : > { %v687_v31 = vor.u32 %v686_v61, %v683_v10  ;;  %v14405_v57 = vsel %vm509_vm1, %v14383_v59, %v678_v55  ;;  %v702_v10 = vshll.u32 %v10487_v24, 16  ;;  %v851_v50 = vrot.slane %v10487_v24, 5  ;;  %v14421_v2 = vld [vmem:[%s13990_s5 + $0xcc] sm:$0xf]  ;;  %v14424_v24 = vld [vmem:[%s13990_s5 + $0xd0] sm:$0xf] }
  0x44   : > { %v692_v58 = vrot.slane %v690_v26, 4  ;;  %v695_v61 = vrot.slane %v693_v53, 5  ;;  %v701_v21 = vrot.slane %v699_v18, 4  ;;  %v708_v4 = vshrl.u32 %v10488_v42, 16 }
  0x45   : > { %v14408_v1 = vsel %vm509_vm1, %v678_v55, %v687_v31  ;;  %v704_v8 = vrot.slane %v702_v10, 5  ;;  %v14415_v62 = vsel %vm809_vm0, %v849_v63, %v851_v50  ;;  %v14418_v55 = vsel %vm809_vm0, %v847_v40, %v849_v63 }
  0x46   : > { %885 = vrot.lane.b32.xlu1 %v14291_v7, %s13930_s13  ;;  %883 = vrot.lane.b32.xlu0 %v14262_v20, %s13930_s13  ;;  %19596 = vst [vmem:[#allocation37_spill] sm:$0xff] %v14418_v55  ;;  %v711_v3 = vshll.u32 %v10488_v42, 16  ;;  %v696_v26 = vor.u32 %v695_v61, %v692_v58  ;;  %v710_v53 = vrot.slane %v708_v4, 4  ;;  %v717_v18 = vshrl.u32 %v10489_v14, 16  ;;  %v346_v58 = vld [vmem:[%s13990_s5 + $0xd8] sm:$0x1] }
  0x47   : > { %v720_v5 = vshll.u32 %v10489_v14, 16  ;;  %v705_v7 = vor.u32 %v704_v8, %v701_v21  ;;  %v853_v37 = vrot.slane %v10488_v42, 5  ;;  %v855_v20 = vrot.slane %v10489_v14, 5  ;;  %v14447_v14 = vld [vmem:[%s13990_s5 + $0xd4] sm:$0xf] }
  0x48   : > { %v713_v23 = vrot.slane %v711_v3, 5  ;;  %v14427_v10 = vsel %vm509_vm1, %v687_v31, %v696_v26  ;;  %v719_v40 = vrot.slane %v717_v18, 4  ;;  %v10491_v55 = vcombine.low %v14421_v2, %v14424_v24 }
  0x49   : > { %v722_v63 = vrot.slane %v720_v5, 5  ;;  %v14436_v8 = vsel %vm509_vm1, %v696_v26, %v705_v7  ;;  %v14439_v4 = vsel %vm809_vm0, %v853_v37, %v855_v20  ;;  %v726_v42 = vshrl.u32 %v14401_v60, 16 }
  0x4a   : > { %778 = vrot.lane.b32.xlu1 %v14317_v19, %s13931_s21  ;;  %776 = vrot.lane.b32.xlu0 %v14304_v52, %s13931_s21  ;;  %v714_v3 = vor.u32 %v713_v23, %v710_v53  ;;  %v14443_v21 = vsel %vm809_vm0, %v851_v50, %v853_v37  ;;  %v729_v31 = vshll.u32 %v14401_v60, 16  ;;  %v735_v19 = vshrl.u32 %v10491_v55, 16  ;;  %v14455_v53 = vld [vmem:[%s13990_s5] sm:$0x8] }
  0x4b   : > { %v723_v5 = vor.u32 %v722_v63, %v719_v40  ;;  %v728_v61 = vrot.slane %v726_v42, 4  ;;  %v738_v23 = vshll.u32 %v10491_v55, 16  ;;  %v857_v26 = vrot.slane %v14401_v60, 5 }
  0x4c   : > { %v14451_v52 = vsel %vm509_vm1, %v705_v7, %v714_v3  ;;  %v731_v37 = vrot.slane %v729_v31, 5  ;;  %v737_v50 = vrot.slane %v735_v19, 4  ;;  %v859_v40 = vrot.slane %v10491_v55, 5  ;;  %v19620_v55 = vld [vmem:[#allocation23_spill] sm:$0xff] }
  0x4d   : > { %v14458_v18 = vsel %vm509_vm1, %v714_v3, %v723_v5  ;;  %v740_v7 = vrot.slane %v738_v23, 5  ;;  %v14465_v63 = vsel %vm809_vm0, %v855_v20, %v857_v26  ;;  %v10492_v60 = vcombine.low %v14447_v14, %v14447_v14 }
  0x4e   : > { %889 = vrot.lane.b32.xlu1 %v14301_v54, %s13930_s13  ;;  %887 = vrot.lane.b32.xlu0 %v14307_v22, %s13930_s13  ;;  %19597 = vst [vmem:[#allocation38_spill] sm:$0xff] %v14465_v63  ;;  %v10493_v42 = vcombine.low %v14447_v14, %v346_v58  ;;  %v732_v3 = vor.u32 %v731_v37, %v728_v61  ;;  %v19602_v58 = vld [vmem:[#allocation9_spill] sm:$0xff]  ;;  %v19622_v61 = vld [vmem:[#allocation27_spill] sm:$0xff] }
  0x4f   : > { %v14471_v31 = vsel %vm809_vm0, %v857_v26, %v859_v40  ;;  %v741_v22 = vor.u32 %v740_v7, %v737_v50  ;;  %v744_v19 = vshrl.u32 %v10492_v60, 16  ;;  %v747_v23 = vshll.u32 %v10492_v60, 16 }
  0x50   : > { %v861_v20 = vrot.slane %v10493_v42, 5  ;;  %v14478_v63 = vsel %vm509_vm1, %v723_v5, %v732_v3  ;;  %v661_v60 = vsel %vm509_vm1, %v14319_v41, %v14376_v43  ;;  %v19601_v42 = vld [vmem:[#allocation11_spill] sm:$0xff]  ;;  %v670_v39 = vsel %vm509_vm1, %v14376_v43, %v14383_v59 }
  0x51   : > { %v742_v37 = vsel %vm509_vm1, %v732_v3, %v741_v22  ;;  %v746_v50 = vrot.slane %v744_v19, 4  ;;  %v749_v5 = vrot.slane %v747_v23, 5  ;;  %v19607_v3 = vld [vmem:[#allocation28_spill] sm:$0xff]  ;;  %v19611_v41 = vld [vmem:[#allocation19_spill] sm:$0xff]  ;;  %v13932_v26 = vmov 0  }
  0x52   : > { %782 = vrot.lane.b32.xlu1 %v14374_v35, %s13931_s21  ;;  %780 = vrot.lane.b32.xlu0 %v14333_v48, %s13931_s21  ;;  %v862_v7 = vsel %vm809_vm0, %v859_v40, %v861_v20  ;;  %v19608_v40 = vld [vmem:[#allocation29_spill] sm:$0xff]  ;;  %v19610_v19 = vld [vmem:[#allocation20_spill] sm:$0xff]  ;;  %v19612_v20 = vld [vmem:[#allocation18_spill] sm:$0xff]  ;;  %200 = vst.msk [vmem:[#allocation2] sm:$0xf] %vm199_vm2, %v13932_v26  ;;  %v19617_v43 = vrot.slane %v14276_v15, 5 }
  0x53   : > { %v750_v48 = vor.u32 %v749_v5, %v746_v50  ;;  %13280 = vset.pattern.permute.xlu1 %v13932_v26  ;;  %v19613_v5 = vld [vmem:[#allocation26_spill] sm:$0xff]  ;;  %13279 = vset.pattern.permute.xlu0 %v13932_v26  ;;  %201 = vst.msk [vmem:[#allocation2 + $0x4] sm:$0xf] %vm199_vm2, %v13932_v26  ;;  %202 = vst.msk [vmem:[#allocation2 + $0x8] sm:$0xf] %vm199_vm2, %v13932_v26  ;;  %v19618_v59 = vrot.slane %v14272_v0, 5 }
  0x54   : > { %203 = vst.msk [vmem:[#allocation2 + $0xc] sm:$0xf] %vm199_vm2, %v13932_v26  ;;  %204 = vst.msk [vmem:[#allocation2 + $0xcc] sm:$0xf] %vm199_vm2, %v13932_v26  ;;  %v19621_v35 = vrot.slane %v19620_v55, 5  ;;  %v19623_v15 = vld [vmem:[#allocation36_spill] sm:$0xff] }
  0x55   : > { %v751_v23 = vsel %vm509_vm1, %v741_v22, %v750_v48  ;;  %205 = vst.msk [vmem:[#allocation2 + $0xd0] sm:$0xf] %vm199_vm2, %v13932_v26  ;;  %206 = vst.msk [vmem:[#allocation2 + $0xd4] sm:$0xf] %vm199_vm2, %v13932_v26  ;;  %v844_v22 = vsel %vm809_vm0, %v19618_v59, %v19617_v43  ;;  %v19619_v48 = vmov %v19618_v59  ;;  %v19624_v55 = vld [vmem:[#allocation35_spill] sm:$0xff]  ;;  %v19629_v43 = vld [vmem:[#allocation37_spill] sm:$0xff] }
  0x56   : > { %893 = vrot.lane.b32.xlu1 %v19607_v3, %s13930_s13  ;;  %891 = vrot.lane.b32.xlu0 %v19608_v40, %s13930_s13  ;;  %v19614_v3 = vld [vmem:[#allocation25_spill] sm:$0xff]  ;;  %v19616_v40 = vld [vmem:[#allocation22_spill] sm:$0xff]  ;;  %207 = vst.msk [vmem:[#allocation2 + $0xd8] sm:$0xf] %vm199_vm2, %v13932_v26  ;;  %v842_v54 = vsel %vm809_vm0, %v19621_v35, %v19619_v48  ;;  %v19625_v26 = vld [vmem:[#allocation31_spill] sm:$0xff] }
  0x57   : > { %v19630_v59 = vld [vmem:[#allocation34_spill] sm:$0xff] }
  0x5a   : > { %786 = vrot.lane.b32.xlu1 %v670_v39, %s13931_s21  ;;  %784 = vrot.lane.b32.xlu0 %v661_v60, %s13931_s21  ;;  %v10460_v39 = vcombine.low %v14341_v36, %v14344_v46 }
  0x5e   : > { %897 = vrot.lane.b32.xlu1 %v844_v22, %s13930_s13  ;;  %895 = vrot.lane.b32.xlu0 %v842_v54, %s13930_s13  ;;  %v19626_v54 = vld [vmem:[#allocation30_spill] sm:$0xff] }
  0x62   : > { %790 = vrot.lane.b32.xlu1 %v14408_v1, %s13931_s21  ;;  %788 = vrot.lane.b32.xlu0 %v14405_v57, %s13931_s21  ;;  %v19627_v1 = vld [vmem:[#allocation33_spill] sm:$0xff]  ;;  %v19628_v57 = vld [vmem:[#allocation32_spill] sm:$0xff] }
  0x66   : > { %901 = vrot.lane.b32.xlu1 %v19623_v15, %s13930_s13  ;;  %899 = vrot.lane.b32.xlu0 %v19624_v55, %s13930_s13  ;;  %v19632_v55 = vld [vmem:[#allocation4_spill] sm:$0xff] }
  0x6a   : > { %794 = vrot.lane.b32.xlu1 %v14436_v8, %s13931_s21  ;;  %792 = vrot.lane.b32.xlu0 %v14427_v10, %s13931_s21  ;;  %v209_v8 = vld [vmem:[%s19305_s3 + $0x8] sm:$0xff] }
  0x6e   : > { %905 = vrot.lane.b32.xlu1 %v14415_v62, %s13930_s13  ;;  %903 = vrot.lane.b32.xlu0 %v19629_v43, %s13930_s13  ;;  %v19631_v62 = vld [vmem:[#allocation38_spill] sm:$0xff]  ;;  %v19633_v43 = vld [vmem:[#allocation5_spill] sm:$0xff] }
  0x72   : > { %798 = vrot.lane.b32.xlu1 %v14458_v18, %s13931_s21  ;;  %796 = vrot.lane.b32.xlu0 %v14451_v52, %s13931_s21  ;;  %v211_v52 = vld [vmem:[%s19305_s3 + $0x18] sm:$0xff] }
  0x76   : > { %909 = vrot.lane.b32.xlu1 %v14439_v4, %s13930_s13  ;;  %907 = vrot.lane.b32.xlu0 %v14443_v21, %s13930_s13  ;;  %v208_v4 = vld [vmem:[%s19305_s3] sm:$0xff]  ;;  %v210_v21 = vld [vmem:[%s19305_s3 + $0x10] sm:$0xff] }
  0x7a   : > { %802 = vrot.lane.b32.xlu1 %v742_v37, %s13931_s21  ;;  %800 = vrot.lane.b32.xlu0 %v14478_v63, %s13931_s21  ;;  %v212_v63 = vld [vmem:[%s19305_s3 + $0x20] sm:$0xff] }
  0x7e   : > { %913 = vrot.lane.b32.xlu1 %v14471_v31, %s13930_s13  ;;  %911 = vrot.lane.b32.xlu0 %v19631_v62, %s13930_s13  ;;  %v213_v31 = vld [vmem:[%s19305_s3 + $0x28] sm:$0xff]  ;;  %v19634_v62 = vcombine.low %v19632_v55, %v19633_v43  ;;  %v19635_v55 = vcombine.low %v14010_v9, %v14031_v16  ;;  %v218_v43 = vld [vmem:[%s19305_s3 + $0x50] sm:$0xff] }
  0x82   : > { %804 = vrot.lane.b32.xlu0 %v751_v23, %s13931_s21  ;;  %915 = vrot.lane.b32.xlu1 %v862_v7, %s13930_s13  ;;  %v214_v7 = vld [vmem:[%s19305_s3 + $0x30] sm:$0xff]  ;;  %v215_v23 = vld [vmem:[%s19305_s3 + $0x38] sm:$0xff] }
  0x86   : > { %2388 = vperm.xlu1 %13280, %v209_v8   ;;  %2383 = vperm.xlu0 %13279, %v208_v4  }
  0x8a   : > { %2393 = vperm.xlu1 %13280, %v210_v21   ;;  %2398 = vperm.xlu0 %13279, %v211_v52   ;;  %v216_v21 = vld [vmem:[%s19305_s3 + $0x40] sm:$0xff]  ;;  %v217_v52 = vld [vmem:[%s19305_s3 + $0x48] sm:$0xff] }
  0x8c   : > { %v864_v18 = vpop.permute.xlu0 %863  ;;  %v868_v37 = vpop.permute.xlu1 %867 }
  0x8e   : > { %2403 = vperm.xlu1 %13280, %v212_v63   ;;  %2408 = vperm.xlu0 %13279, %v213_v31  }
  0x90   : > { %v870_v48 = vpop.permute.xlu1 %869  ;;  %v757_v15 = vpop.permute.xlu0 %756 }
  0x91   : > { %v926_v8 = vsel %vm917_vm3, %v19634_v62, %v757_v15  ;;  %v219_v62 = vld [vmem:[%s19305_s3 + $0x58] sm:$0xff] }
  0x92   : > { %v1005_v4 = vsel %vm999_vm4, %v926_v8, %v868_v37  ;;  %2413 = vperm.xlu1 %13280, %v214_v7   ;;  %2418 = vperm.xlu0 %13279, %v215_v23  }
  0x93   : > { %v1058_v63 = vshrl.u32 %v1005_v4, 16  ;;  %v1061_v31 = vshll.u32 %v1005_v4, 16 }
  0x94   : > { %v759_v10 = vpop.permute.xlu0 %758  ;;  %v866_v35 = vpop.permute.xlu1 %865 }
  0x95   : > { %v929_v15 = vsel %vm917_vm3, %v19635_v55, %v759_v10  ;;  %v1573_v8 = vrot.slane %v1058_v63, 3  ;;  %v1574_v4 = vrot.slane %v1061_v31, 4  ;;  %v1060_v16 = vrot.slane %v1058_v63, 7 }
  0x96   : > { %v1007_v37 = vsel %vm999_vm4, %v929_v15, %v870_v48  ;;  %2423 = vperm.xlu1 %13280, %v216_v21   ;;  %2428 = vperm.xlu0 %13279, %v217_v52   ;;  %v19636_v52 = vcombine.low %v14455_v53, %v14017_v11  ;;  %v220_v11 = vld [vmem:[%s19305_s3 + $0x60] sm:$0xff] }
  0x97   : > { %v1065_v7 = vshrl.u32 %v1007_v37, 16  ;;  %v1068_v23 = vshll.u32 %v1007_v37, 16  ;;  %v19637_v37 = vcombine.low %v14020_v12, %v14001_v6  ;;  %v221_v6 = vld [vmem:[%s19305_s3 + $0x68] sm:$0xff] }
  0x98   : > { %v753_v22 = vpop.permute.xlu1 %752  ;;  %v755_v9 = vpop.permute.xlu0 %754 }
  0x99   : > { %v14646_v10 = vrot.slane %v1065_v7, 7  ;;  %v1577_v48 = vrot.slane %v1065_v7, 3  ;;  %v1578_v21 = vrot.slane %v1068_v23, 4  ;;  %v920_v55 = vsel %vm917_vm3, %v19636_v52, %v753_v22 }
  0x9a   : > { %v1001_v15 = vsel %vm999_vm4, %v920_v55, %v864_v18  ;;  %v923_v0 = vsel %vm917_vm3, %v19637_v37, %v755_v9  ;;  %2433 = vperm.xlu1 %13280, %v218_v43   ;;  %2438 = vperm.xlu0 %13279, %v219_v62   ;;  %v1063_v9 = vor.u32 %v1061_v31, %v1060_v16 }
  0x9b   : > { %v1070_v63 = vor.u32 %v1068_v23, %v14646_v10  ;;  %v1560_v7 = vshrl.u32 %v1001_v15, 16  ;;  %v1563_v60 = vshll.u32 %v1001_v15, 16  ;;  %v1003_v50 = vsel %vm999_vm4, %v923_v0, %v866_v35 }
  0x9c   : > { %v1055_v12 = vshrl.u32 %v1003_v50, 16  ;;  %v1568_v53 = vshll.u32 %v1003_v50, 16  ;;  %v763_v22 = vpop.permute.xlu1 %762  ;;  %v761_v18 = vpop.permute.xlu0 %760  ;;  %v14665_v43 = vor.u32 %v1578_v21, %v1577_v48  ;;  %v1575_v52 = vor.u32 %v1574_v4, %v1573_v8  ;;  %v222_v48 = vld [vmem:[%s19305_s3 + $0x70] sm:$0xff] }
  0x9d   : > { %v1562_v23 = vrot.slane %v1560_v7, 3  ;;  %v1565_v62 = vrot.slane %v1563_v60, 4  ;;  %v1071_v55 = vsel %vm1054_vm5, %v1060_v16, %v1070_v63  ;;  %v19638_v60 = vcombine.low %v14051_v28, %v14054_v29 }
  0x9e   : > { %v1570_v0 = vrot.slane %v1568_v53, 4  ;;  %v1057_v35 = vrot.slane %v1055_v12, 7  ;;  %v1567_v15 = vrot.slane %v1055_v12, 3  ;;  %2443 = vperm.xlu1 %13280, %v220_v11   ;;  %2448 = vperm.xlu0 %13279, %v221_v6   ;;  %v1580_v50 = vsel %vm1559_vm7, %v1575_v52, %v14665_v43  ;;  %v223_v11 = vld [vmem:[%s19305_s3 + $0x78] sm:$0xff]  ;;  %v13345_v53 = vld [vmem:[%s19303_s1] sm:$0xff]  }
  0x9f   : > { %v1566_v37 = vor.u32 %v1565_v62, %v1562_v23  ;;  %v935_v31 = vsel %vm917_vm3, %v19638_v60, %v763_v22  ;;  %v19639_v8 = vcombine.low %v14034_v17, %v14048_v27  ;;  %v13330_v23 = vld [vmem:[%s19303_s1 + $0x68] sm:$0xff]   ;;  %v224_v60 = vld [vmem:[%s19305_s3 + $0x80] sm:$0xff] }
  0xa0   : > { %v874_v16 = vpop.permute.xlu1 %873  ;;  %v1064_v21 = vsel %vm1054_vm5, %v1057_v35, %v1063_v9  ;;  %v872_v63 = vpop.permute.xlu0 %871  ;;  %v1571_v7 = vor.u32 %v1570_v0, %v1567_v15 }
  0xa1   : > { %v932_v4 = vsel %vm917_vm3, %v19639_v8, %v761_v18  ;;  %v1011_v6 = vsel %vm999_vm4, %v935_v31, %v874_v16  ;;  %11796 = vmatprep.mubr.msk.bf16.mxu1 %vm1262_vm6, %v1064_v21  ;;  %v19640_v16 = vld [vmem:[#allocation10_spill] sm:$0xff] }
  0xa2   : > { %v1009_v28 = vsel %vm999_vm4, %v932_v4, %v872_v63  ;;  %v1079_v29 = vshrl.u32 %v1011_v6, 16  ;;  %v1082_v12 = vshll.u32 %v1011_v6, 16  ;;  %11797 = vmatmul.mubr.msk.bf16.vlgmr.msra.gmra.mrb[0].mxu1 %vm1262_vm6, %v1071_v55  ;;  %2453 = vperm.xlu1 %13280, %v222_v48   ;;  %v1572_v22 = vsel %vm1559_vm7, %v1566_v37, %v1571_v7  ;;  %v13346_v37 = vld [vmem:[%s19303_s1 + $0x8] sm:$0xff]  }
  0xa3   : > { %v1072_v17 = vshrl.u32 %v1009_v28, 16  ;;  %v1075_v27 = vshll.u32 %v1009_v28, 16  ;;  %12510 = vmatpush3.bf16.msra.mxu1 %v13345_v53  ;;  %v1576_v18 = vsel %vm1559_vm7, %v1571_v7, %v1575_v52  ;;  %2458 = vperm.xlu0 %13279, %v223_v11   ;;  %v19641_v63 = vcombine.low %v14077_v44, %v14080_v45  ;;  %v13333_v11 = vld [vmem:[%s19303_s1 + $0x70] sm:$0xff]   ;;  %v19642_v6 = vld [vmem:[#allocation6_spill] sm:$0xff] }
  0xa4   : > { %v14697_v62 = vrot.slane %v1079_v29, 7  ;;  %v1585_v9 = vrot.slane %v1079_v29, 3  ;;  %v1586_v0 = vrot.slane %v1082_v12, 4  ;;  %11856 = vmatprep.mubr.msk.bf16.mxu0 %vm1262_vm6, %v1572_v22  ;;  %v767_v55 = vpop.permute.xlu1 %766  ;;  %v765_v15 = vpop.permute.xlu0 %764  ;;  %12505 = vmatprep.subr.bf16.mxu1 %v13346_v37  ;;  %v19643_v28 = vcombine.low %v14059_v34, %v19642_v6  ;;  %v13347_v45 = vld [vmem:[%s19303_s1 + $0x10] sm:$0xff]  }
  0xa5   : > { %v1074_v35 = vrot.slane %v1072_v17, 7  ;;  %v1581_v52 = vrot.slane %v1072_v17, 3  ;;  %v1582_v48 = vrot.slane %v1075_v27, 4  ;;  %11857 = vmatmul.mubr.msk.bf16.vlgmr.msra.gmra.mrb[0].mxu0 %vm1262_vm6, %v1576_v18  ;;  %v941_v7 = vsel %vm917_vm3, %v19641_v63, %v767_v55  ;;  %v226_v22 = vld [vmem:[%s19305_s3 + $0x90] sm:$0xff]  ;;  %v13336_v55 = vld [vmem:[%s19303_s1 + $0x78] sm:$0xff]  }
  0xa6   : > { %v1084_v31 = vor.u32 %v1082_v12, %v14697_v62  ;;  %v14708_v8 = vor.u32 %v1586_v0, %v1585_v9  ;;  %11860 = vmatprep.mubr.msk.bf16.mxu0 %vm1262_vm6, %v1580_v50  ;;  %11905 = vmatpush3.bf16.msra.mxu0 %v19640_v16  ;;  %v938_v29 = vsel %vm917_vm3, %v19643_v28, %v765_v15 }
  0xa7   : > { %v1077_v4 = vor.u32 %v1075_v27, %v1074_v35  ;;  %v1583_v21 = vor.u32 %v1582_v48, %v1581_v52  ;;  %11906 = vmatprep.subr.bf16.mxu0 %v13330_v23  ;;  %12511 = vmatpush3.bf16.msra.mxu1 %v13346_v37 }
  0xa8   : > { %v878_v50 = vpop.permute.xlu1 %877  ;;  %v876_v12 = vpop.permute.xlu0 %875  ;;  %v1085_v44 = vsel %vm1054_vm5, %v1074_v35, %v1084_v31  ;;  %12506 = vmatprep.subr.bf16.mxu1 %v13347_v45  ;;  %2463 = vperm.xlu1 %13280, %v224_v60  }
  0xa9   : > { %v1078_v17 = vsel %vm1054_vm5, %v14646_v10, %v1077_v4  ;;  %v1015_v27 = vsel %vm999_vm4, %v941_v7, %v878_v50  ;;  %v1013_v53 = vsel %vm999_vm4, %v938_v29, %v876_v12  ;;  %v14734_v34 = vsel %vm1559_vm7, %v14665_v43, %v1583_v21  ;;  %v225_v43 = vld [vmem:[%s19305_s3 + $0x88] sm:$0xff]  ;;  %v13339_v12 = vld [vmem:[%s19303_s1 + $0x80] sm:$0xff]  }
  0xaa   : > { %11800 = vmatprep.mubr.msk.bf16.mxu1 %vm1262_vm6, %v1078_v17  ;;  %v14738_v10 = vsel %vm1559_vm7, %v1583_v21, %v14708_v8  ;;  %v1093_v18 = vshrl.u32 %v1015_v27, 16  ;;  %v1096_v9 = vshll.u32 %v1015_v27, 16  ;;  %v1086_v0 = vshrl.u32 %v1013_v53, 16  ;;  %11907 = vmatpush3.bf16.msra.mxu0 %v13330_v23  ;;  %v13348_v23 = vld [vmem:[%s19303_s1 + $0x18] sm:$0xff]   ;;  %v228_v21 = vld [vmem:[%s19305_s3 + $0xa0] sm:$0xff] }
  0xab   : > { %v1089_v35 = vshll.u32 %v1013_v53, 16  ;;  %11801 = vmatmul.mubr.msk.bf16.gmra.mrb[4].mxu1 %vm1262_vm6, %v1085_v44  ;;  %11908 = vmatprep.subr.bf16.mxu0 %v13333_v11  ;;  %v19644_v29 = vcombine.low %v14131_v32, %v14134_v33  ;;  %v19645_v17 = vcombine.low %v14088_v51, %v14119_v25  ;;  %v13349_v33 = vld [vmem:[%s19303_s1 + $0x20] sm:$0xff]  }
  0xac   : > { %12512 = vmatpush3.bf16.msra.mxu1 %v13347_v45  ;;  %v14750_v15 = vrot.slane %v1093_v18, 7  ;;  %v1593_v37 = vrot.slane %v1093_v18, 3  ;;  %v1594_v52 = vrot.slane %v1096_v9, 4  ;;  %v1088_v48 = vrot.slane %v1086_v0, 7  ;;  %v771_v60 = vpop.permute.xlu1 %770  ;;  %v769_v31 = vpop.permute.xlu0 %768  ;;  %2473 = vperm.xlu1 %13280, %v226_v22  }
  0xad   : > { %12507 = vmatprep.subr.bf16.mxu1 %v13348_v23  ;;  %v1589_v4 = vrot.slane %v1086_v0, 3  ;;  %v1590_v16 = vrot.slane %v1089_v35, 4  ;;  %11861 = vmatmul.mubr.msk.bf16.gmra.mrb[4].mxu0 %vm1262_vm6, %v14734_v34  ;;  %v947_v50 = vsel %vm917_vm3, %v19644_v29, %v771_v60  ;;  %v944_v44 = vsel %vm917_vm3, %v19645_v17, %v769_v31 }
  0xae   : > { %2468 = vperm.xlu0 %13279, %v225_v43   ;;  %v1098_v63 = vor.u32 %v1096_v9, %v14750_v15  ;;  %v14761_v7 = vor.u32 %v1594_v52, %v1593_v37  ;;  %v1091_v6 = vor.u32 %v1089_v35, %v1088_v48  ;;  %11864 = vmatprep.mubr.msk.bf16.mxu0 %vm1262_vm6, %v14738_v10  ;;  %v13342_v43 = vld [vmem:[%s19303_s1 + $0x88] sm:$0xff]  }
  0xaf   : > { %11909 = vmatpush3.bf16.msra.mxu0 %v13333_v11  ;;  %v1591_v28 = vor.u32 %v1590_v16, %v1589_v4 }
  0xb0   : > { %11910 = vmatprep.subr.bf16.mxu0 %v13336_v55  ;;  %12513 = vmatpush3.bf16.msra.mxu1 %v13348_v23  ;;  %v882_v45 = vpop.permute.xlu1 %881  ;;  %v880_v27 = vpop.permute.xlu0 %879  ;;  %v1092_v11 = vsel %vm1054_vm5, %v14697_v62, %v1091_v6  ;;  %v1099_v32 = vsel %vm1054_vm5, %v1088_v48, %v1098_v63  ;;  %v230_v62 = vld [vmem:[%s19305_s3 + $0xb0] sm:$0xff] }
  0xb1   : > { %12508 = vmatprep.subr.bf16.mxu1 %v13349_v33  ;;  %2483 = vperm.xlu1 %13280, %v228_v21   ;;  %v1019_v53 = vsel %vm999_vm4, %v947_v50, %v882_v45  ;;  %v1017_v22 = vsel %vm999_vm4, %v944_v44, %v880_v27  ;;  %v14787_v51 = vsel %vm1559_vm7, %v14708_v8, %v1591_v28  ;;  %v227_v8 = vld [vmem:[%s19305_s3 + $0x98] sm:$0xff]  ;;  %v232_v21 = vld [vmem:[%s19305_s3 + $0xc0] sm:$0xff]  ;;  %v19647_v44 = vld [vmem:[#allocation7_spill] sm:$0xff] }
  0xb2   : > { %11804 = vmatprep.mubr.msk.bf16.mxu1 %vm1262_vm6, %v1092_v11  ;;  %v14791_v25 = vsel %vm1559_vm7, %v1591_v28, %v14761_v7  ;;  %v1107_v18 = vshrl.u32 %v1019_v53, 16  ;;  %v1110_v9 = vshll.u32 %v1019_v53, 16  ;;  %v1100_v0 = vshrl.u32 %v1017_v22, 16  ;;  %2478 = vperm.xlu0 %13279, %v227_v8   ;;  %v19648_v45 = vld [vmem:[#allocation8_spill] sm:$0xff] }
  0xb3   : > { %v1103_v35 = vshll.u32 %v1017_v22, 16  ;;  %11805 = vmatmul.mubr.msk.bf16.gmra.mrb[8].mxu1 %vm1262_vm6, %v1099_v32  ;;  %11911 = vmatpush3.bf16.msra.mxu0 %v13336_v55  ;;  %v13350_v55 = vld [vmem:[%s19303_s1 + $0x28] sm:$0xff]   ;;  %v19646_v50 = vcombine.low %v14147_v47, %v14168_v56  ;;  %v19649_v27 = vcombine.low %v19647_v44, %v19648_v45 }
  0xb4   : > { %11912 = vmatprep.subr.bf16.mxu0 %v13339_v12  ;;  %12514 = vmatpush3.bf16.msra.mxu1 %v13349_v33  ;;  %v14803_v37 = vrot.slane %v1107_v18, 7  ;;  %v1601_v52 = vrot.slane %v1107_v18, 3  ;;  %v1602_v48 = vrot.slane %v1110_v9, 4  ;;  %v1102_v60 = vrot.slane %v1100_v0, 7  ;;  %v775_v31 = vpop.permute.xlu1 %774  ;;  %v773_v23 = vpop.permute.xlu0 %772  ;;  %v229_v22 = vld [vmem:[%s19305_s3 + $0xa8] sm:$0xff] }
  0xb5   : > { %12509 = vmatprep.subr.bf16.mxu1 %v13350_v55  ;;  %2493 = vperm.xlu1 %13280, %v230_v62   ;;  %v1597_v4 = vrot.slane %v1100_v0, 3  ;;  %v1598_v16 = vrot.slane %v1103_v35, 4  ;;  %v953_v17 = vsel %vm917_vm3, %v19646_v50, %v775_v31  ;;  %v950_v11 = vsel %vm917_vm3, %v19649_v27, %v773_v23  ;;  %v19650_v50 = vld [vmem:[#allocation12_spill] sm:$0xff] }
  0xb6   : > { %11865 = vmatmul.mubr.msk.bf16.gmra.mrb[8].mxu0 %vm1262_vm6, %v14787_v51  ;;  %v1112_v63 = vor.u32 %v1110_v9, %v14803_v37  ;;  %v1603_v6 = vor.u32 %v1602_v48, %v1601_v52  ;;  %v1105_v28 = vor.u32 %v1103_v35, %v1102_v60  ;;  %2488 = vperm.xlu0 %13279, %v229_v22   ;;  %v233_v22 = vld [vmem:[%s19305_s3 + $0xc8] sm:$0xff] }
  0xb7   : > { %11868 = vmatprep.mubr.msk.bf16.mxu0 %vm1262_vm6, %v14791_v25  ;;  %11913 = vmatpush3.bf16.msra.mxu0 %v13339_v12  ;;  %v1599_v29 = vor.u32 %v1598_v16, %v1597_v4  ;;  %v19653_v27 = vcombine.low %v19602_v58, %v19601_v42 }
  0xb8   : > { %11914 = vmatprep.subr.bf16.mxu0 %v13342_v43  ;;  %12515 = vmatpush3.bf16.msra.mxu1 %v13350_v55  ;;  %v886_v32 = vpop.permute.xlu1 %885  ;;  %v884_v33 = vpop.permute.xlu0 %883  ;;  %v1106_v53 = vsel %vm1054_vm5, %v14750_v15, %v1105_v28  ;;  %v1113_v12 = vsel %vm1054_vm5, %v1102_v60, %v1112_v63  ;;  %v234_v15 = vld [vmem:[%s19305_s3 + $0xd0] sm:$0xff]  ;;  %v231_v55 = vld [vmem:[%s19305_s3 + $0xb8] sm:$0xff] }
  0xb9   : > { %2503 = vperm.xlu1 %13280, %v232_v21   ;;  %v1023_v47 = vsel %vm999_vm4, %v953_v17, %v886_v32  ;;  %v1021_v56 = vsel %vm999_vm4, %v950_v11, %v884_v33  ;;  %11808 = vmatprep.mubr.msk.bf16.mxu1 %vm1262_vm6, %v1106_v53  ;;  %v14835_v62 = vsel %vm1559_vm7, %v14761_v7, %v1599_v29  ;;  %v19651_v17 = vld [vmem:[#allocation13_spill] sm:$0xff] }
  0xba   : > { %v14838_v18 = vsel %vm1559_vm7, %v1599_v29, %v1603_v6  ;;  %v1121_v9 = vshrl.u32 %v1023_v47, 16  ;;  %v1124_v0 = vshll.u32 %v1023_v47, 16  ;;  %v1114_v35 = vshrl.u32 %v1021_v56, 16  ;;  %2498 = vperm.xlu0 %13279, %v231_v55  }
  0xbb   : > { %v1117_v8 = vshll.u32 %v1021_v56, 16  ;;  %11809 = vmatmul.mubr.msk.bf16.gmra.mrb[12].mxu1 %vm1262_vm6, %v1113_v12  ;;  %11915 = vmatpush3.bf16.msra.mxu0 %v13342_v43  ;;  %v236_v43 = vld [vmem:[%s19305_s3 + $0xe0] sm:$0xff]  ;;  %v19652_v44 = vcombine.low %v19650_v50, %v19651_v17  ;;  %v19654_v50 = vld [vmem:[#allocation16_spill] sm:$0xff] }
  0xbc   : > { %v1123_v52 = vrot.slane %v1121_v9, 7  ;;  %v1609_v48 = vrot.slane %v1121_v9, 3  ;;  %v1610_v60 = vrot.slane %v1124_v0, 4  ;;  %v1116_v7 = vrot.slane %v1114_v35, 7  ;;  %v779_v31 = vpop.permute.xlu1 %778  ;;  %v777_v23 = vpop.permute.xlu0 %776  ;;  %v19655_v17 = vld [vmem:[#allocation17_spill] sm:$0xff] }
  0xbd   : > { %2513 = vperm.xlu1 %13280, %v234_v15   ;;  %v1605_v4 = vrot.slane %v1114_v35, 3  ;;  %v1606_v16 = vrot.slane %v1117_v8, 4  ;;  %v959_v45 = vsel %vm917_vm3, %v19652_v44, %v779_v31  ;;  %v956_v11 = vsel %vm917_vm3, %v19653_v27, %v777_v23  ;;  %v235_v23 = vld [vmem:[%s19305_s3 + $0xd8] sm:$0xff]  ;;  %v19657_v27 = vld [vmem:[#allocation14_spill] sm:$0xff] }
  0xbe   : > { %11869 = vmatmul.mubr.msk.bf16.gmra.mrb[12].mxu0 %vm1262_vm6, %v14835_v62  ;;  %v1126_v21 = vor.u32 %v1124_v0, %v1123_v52  ;;  %v1611_v63 = vor.u32 %v1610_v60, %v1609_v48  ;;  %v1119_v28 = vor.u32 %v1117_v8, %v1116_v7  ;;  %2508 = vperm.xlu0 %13279, %v233_v22  }
  0xbf   : > { %11872 = vmatprep.mubr.msk.bf16.mxu0 %vm1262_vm6, %v14838_v18  ;;  %v1607_v29 = vor.u32 %v1606_v16, %v1605_v4  ;;  %v240_v16 = vld [vmem:[%s19305_s3 + $0x100] sm:$0xff]  ;;  %v19656_v44 = vcombine.low %v19654_v50, %v19655_v17 }
  0xc0   : > { %v890_v32 = vpop.permute.xlu1 %889  ;;  %v888_v33 = vpop.permute.xlu0 %887  ;;  %v1120_v53 = vsel %vm1054_vm5, %v14803_v37, %v1119_v28  ;;  %v1127_v12 = vsel %vm1054_vm5, %v1116_v7, %v1126_v21  ;;  %v238_v37 = vld [vmem:[%s19305_s3 + $0xf0] sm:$0xff] }
  0xc1   : > { %2523 = vperm.xlu1 %13280, %v236_v43   ;;  %v1027_v47 = vsel %vm999_vm4, %v959_v45, %v890_v32  ;;  %v1025_v56 = vsel %vm999_vm4, %v956_v11, %v888_v33  ;;  %11812 = vmatprep.mubr.msk.bf16.mxu1 %vm1262_vm6, %v1120_v53  ;;  %v14872_v58 = vsel %vm1559_vm7, %v1603_v6, %v1607_v29  ;;  %v19658_v11 = vld [vmem:[#allocation15_spill] sm:$0xff] }
  0xc2   : > { %v14875_v42 = vsel %vm1559_vm7, %v1607_v29, %v1611_v63  ;;  %v1135_v15 = vshrl.u32 %v1027_v47, 16  ;;  %v1138_v9 = vshll.u32 %v1027_v47, 16  ;;  %v1128_v0 = vshrl.u32 %v1025_v56, 16  ;;  %2518 = vperm.xlu0 %13279, %v235_v23  }
  0xc3   : > { %v1131_v35 = vshll.u32 %v1025_v56, 16  ;;  %11813 = vmatmul.mubr.msk.bf16.gmra.mrb[16].mxu1 %vm1262_vm6, %v1127_v12  ;;  %v19659_v32 = vcombine.low %v19657_v27, %v19658_v11  ;;  %v237_v56 = vld [vmem:[%s19305_s3 + $0xe8] sm:$0xff]  ;;  %v19660_v27 = vcombine.low %v19610_v19, %v19609_v38 }
  0xc4   : > { %v1137_v8 = vrot.slane %v1135_v15, 7  ;;  %v1617_v48 = vrot.slane %v1135_v15, 3  ;;  %v1618_v60 = vrot.slane %v1138_v9, 4  ;;  %v1130_v7 = vrot.slane %v1128_v0, 7  ;;  %v783_v6 = vpop.permute.xlu1 %782  ;;  %v781_v31 = vpop.permute.xlu0 %780 }
  0xc5   : > { %2533 = vperm.xlu1 %13280, %v238_v37   ;;  %v1613_v55 = vrot.slane %v1128_v0, 3  ;;  %v1614_v4 = vrot.slane %v1131_v35, 4  ;;  %v965_v45 = vsel %vm917_vm3, %v19656_v44, %v783_v6  ;;  %v962_v33 = vsel %vm917_vm3, %v19659_v32, %v781_v31 }
  0xc6   : > { %11873 = vmatmul.mubr.msk.bf16.gmra.mrb[16].mxu0 %vm1262_vm6, %v14872_v58  ;;  %v1140_v43 = vor.u32 %v1138_v9, %v1137_v8  ;;  %v1619_v21 = vor.u32 %v1618_v60, %v1617_v48  ;;  %v1133_v28 = vor.u32 %v1131_v35, %v1130_v7  ;;  %2528 = vperm.xlu0 %13279, %v237_v56  }
  0xc7   : > { %11876 = vmatprep.mubr.msk.bf16.mxu0 %vm1262_vm6, %v14875_v42  ;;  %v1615_v29 = vor.u32 %v1614_v4, %v1613_v55  ;;  %v19661_v32 = vcombine.low %v19612_v20, %v19611_v41 }
  0xc8   : > { %v894_v53 = vpop.permute.xlu1 %893  ;;  %v892_v12 = vpop.permute.xlu0 %891  ;;  %v1134_v22 = vsel %vm1054_vm5, %v1123_v52, %v1133_v28  ;;  %v1141_v47 = vsel %vm1054_vm5, %v1130_v7, %v1140_v43  ;;  %v242_v52 = vld [vmem:[%s19305_s3 + $0x110] sm:$0xff] }
  0xc9   : > { %2543 = vperm.xlu1 %13280, %v240_v16   ;;  %v1031_v37 = vsel %vm999_vm4, %v965_v45, %v894_v53  ;;  %v1029_v15 = vsel %vm999_vm4, %v962_v33, %v892_v12  ;;  %11816 = vmatprep.mubr.msk.bf16.mxu1 %vm1262_vm6, %v1134_v22  ;;  %v14908_v9 = vsel %vm1559_vm7, %v1611_v63, %v1615_v29  ;;  %v239_v16 = vld [vmem:[%s19305_s3 + $0xf8] sm:$0xff] }
  0xca   : > { %v14911_v0 = vsel %vm1559_vm7, %v1615_v29, %v1619_v21  ;;  %v1149_v35 = vshrl.u32 %v1031_v37, 16  ;;  %v1152_v48 = vshll.u32 %v1031_v37, 16  ;;  %v1142_v60 = vshrl.u32 %v1029_v15, 16  ;;  %v244_v29 = vld [vmem:[%s19305_s3 + $0x120] sm:$0xff]  ;;  %2538 = vperm.xlu0 %13279, %v239_v16  }
  0xcb   : > { %v1145_v7 = vshll.u32 %v1029_v15, 16  ;;  %11817 = vmatmul.mubr.msk.bf16.gmra.mrb[20].mxu1 %vm1262_vm6, %v1141_v47 }
  0xcc   : > { %v1151_v6 = vrot.slane %v1149_v35, 7  ;;  %v1625_v31 = vrot.slane %v1149_v35, 3  ;;  %v1626_v23 = vrot.slane %v1152_v48, 4  ;;  %v1144_v55 = vrot.slane %v1142_v60, 7  ;;  %v787_v63 = vpop.permute.xlu1 %786  ;;  %v785_v4 = vpop.permute.xlu0 %784 }
  0xcd   : > { %2553 = vperm.xlu1 %13280, %v242_v52   ;;  %v1621_v43 = vrot.slane %v1142_v60, 3  ;;  %v1622_v28 = vrot.slane %v1145_v7, 4  ;;  %v971_v11 = vsel %vm917_vm3, %v19660_v27, %v787_v63  ;;  %v968_v33 = vsel %vm917_vm3, %v19661_v32, %v785_v4  ;;  %v248_v4 = vld [vmem:[%s19305_s3 + $0x140] sm:$0xff] }
  0xce   : > { %11877 = vmatmul.mubr.msk.bf16.gmra.mrb[20].mxu0 %vm1262_vm6, %v14908_v9  ;;  %v1154_v50 = vor.u32 %v1152_v48, %v1151_v6  ;;  %v1627_v17 = vor.u32 %v1626_v23, %v1625_v31  ;;  %v1147_v44 = vor.u32 %v1145_v7, %v1144_v55  ;;  %v243_v23 = vld [vmem:[%s19305_s3 + $0x118] sm:$0xff] }
  0xcf   : > { %11916 = vmatprep.mubr.msk.bf16.mxu0 %vm1262_vm6, %v14734_v34  ;;  %v1623_v45 = vor.u32 %v1622_v28, %v1621_v43  ;;  %v241_v34 = vld [vmem:[%s19305_s3 + $0x108] sm:$0xff] }
  0xd0   : > { %v898_v53 = vpop.permute.xlu1 %897  ;;  %v896_v12 = vpop.permute.xlu0 %895  ;;  %v1148_v22 = vsel %vm1054_vm5, %v1137_v8, %v1147_v44  ;;  %v1155_v47 = vsel %vm1054_vm5, %v1144_v55, %v1154_v50  ;;  %v246_v8 = vld [vmem:[%s19305_s3 + $0x130] sm:$0xff]  ;;  %2548 = vperm.xlu0 %13279, %v241_v34   ;;  %v19662_v50 = vcombine.low %v19614_v3, %v19613_v5 }
  0xd1   : > { %2563 = vperm.xlu1 %13280, %v244_v29   ;;  %v1035_v38 = vsel %vm999_vm4, %v971_v11, %v898_v53  ;;  %v1033_v19 = vsel %vm999_vm4, %v968_v33, %v896_v12  ;;  %11820 = vmatprep.mubr.msk.bf16.mxu1 %vm1262_vm6, %v1148_v22  ;;  %v14944_v41 = vsel %vm1559_vm7, %v1619_v21, %v1623_v45 }
  0xd2   : > { %v14947_v20 = vsel %vm1559_vm7, %v1623_v45, %v1627_v17  ;;  %v1163_v56 = vshrl.u32 %v1035_v38, 16  ;;  %v1166_v37 = vshll.u32 %v1035_v38, 16  ;;  %v1156_v15 = vshrl.u32 %v1033_v19, 16  ;;  %v19663_v45 = vld [vmem:[#allocation24_spill] sm:$0xff] }
  0xd3   : > { %v1159_v52 = vshll.u32 %v1033_v19, 16  ;;  %11821 = vmatmul.mubr.msk.bf16.gmra.mrb[24].mxu1 %vm1262_vm6, %v1155_v47 }
  0xd4   : > { %v1165_v35 = vrot.slane %v1163_v56, 7  ;;  %v1633_v48 = vrot.slane %v1163_v56, 3  ;;  %v1634_v60 = vrot.slane %v1166_v37, 4  ;;  %v1158_v7 = vrot.slane %v1156_v15, 7  ;;  %v791_v21 = vpop.permute.xlu1 %790  ;;  %v789_v31 = vpop.permute.xlu0 %788  ;;  %2558 = vperm.xlu0 %13279, %v243_v23  }
  0xd5   : > { %2573 = vperm.xlu1 %13280, %v246_v8   ;;  %v1629_v55 = vrot.slane %v1156_v15, 3  ;;  %v1630_v63 = vrot.slane %v1159_v52, 4  ;;  %v977_v44 = vsel %vm917_vm3, %v19662_v50, %v791_v21 }
  0xd6   : > { %11917 = vmatmul.mubr.msk.bf16.vlgmr.msra.gmra.mrb[0].mxu0 %vm1262_vm6, %v14738_v10  ;;  %v1168_v16 = vor.u32 %v1166_v37, %v1165_v35  ;;  %v1635_v43 = vor.u32 %v1634_v60, %v1633_v48  ;;  %v1161_v28 = vor.u32 %v1159_v52, %v1158_v7  ;;  %v19664_v10 = vcombine.low %v19616_v40, %v19663_v45  ;;  %v247_v52 = vld [vmem:[%s19305_s3 + $0x138] sm:$0xff] }
  0xd7   : > { %11920 = vmatprep.mubr.msk.bf16.mxu0 %vm1262_vm6, %v14787_v51  ;;  %v1631_v29 = vor.u32 %v1630_v63, %v1629_v55  ;;  %v245_v51 = vld [vmem:[%s19305_s3 + $0x128] sm:$0xff] }
  0xd8   : > { %v974_v27 = vsel %vm917_vm3, %v19664_v10, %v789_v31  ;;  %v902_v11 = vpop.permute.xlu1 %901  ;;  %v900_v32 = vpop.permute.xlu0 %899  ;;  %v1162_v33 = vsel %vm1054_vm5, %v1151_v6, %v1161_v28  ;;  %v1169_v53 = vsel %vm1054_vm5, %v1158_v7, %v1168_v16  ;;  %v250_v6 = vld [vmem:[%s19305_s3 + $0x150] sm:$0xff]  ;;  %2568 = vperm.xlu0 %13279, %v245_v51   ;;  %v252_v7 = vld [vmem:[%s19305_s3 + $0x160] sm:$0xff]  ;;  %v251_v51 = vld [vmem:[%s19305_s3 + $0x158] sm:$0xff] }
  0xd9   : > { %2583 = vperm.xlu1 %13280, %v248_v4   ;;  %v1039_v5 = vsel %vm999_vm4, %v977_v44, %v902_v11  ;;  %v1037_v3 = vsel %vm999_vm4, %v974_v27, %v900_v32  ;;  %11824 = vmatprep.mubr.msk.bf16.mxu1 %vm1262_vm6, %v1162_v33  ;;  %v14980_v40 = vsel %vm1559_vm7, %v1627_v17, %v1631_v29 }
  0xda   : > { %v14983_v12 = vsel %vm1559_vm7, %v1631_v29, %v1635_v43  ;;  %v1177_v22 = vshrl.u32 %v1039_v5, 16  ;;  %v1180_v47 = vshll.u32 %v1039_v5, 16  ;;  %v1170_v34 = vshrl.u32 %v1037_v3, 16 }
  0xdb   : > { %v1173_v38 = vshll.u32 %v1037_v3, 16  ;;  %11825 = vmatmul.mubr.msk.bf16.gmra.mrb[28].mxu1 %vm1262_vm6, %v1169_v53 }
  0xdc   : > { %v1179_v19 = vrot.slane %v1177_v22, 7  ;;  %v1641_v8 = vrot.slane %v1177_v22, 3  ;;  %v1642_v56 = vrot.slane %v1180_v47, 4  ;;  %v1172_v37 = vrot.slane %v1170_v34, 7  ;;  %v795_v17 = vpop.permute.xlu1 %794  ;;  %v793_v15 = vpop.permute.xlu0 %792  ;;  %2578 = vperm.xlu0 %13279, %v247_v52  }
  0xdd   : > { %2593 = vperm.xlu1 %13280, %v250_v6   ;;  %v1637_v48 = vrot.slane %v1170_v34, 3  ;;  %v1638_v60 = vrot.slane %v1173_v38, 4  ;;  %v983_v63 = vsel %vm917_vm3, %v10460_v39, %v795_v17  ;;  %v254_v39 = vld [vmem:[%s19305_s3 + $0x170] sm:$0xff] }
  0xde   : > { %11921 = vmatmul.mubr.msk.bf16.gmra.mrb[4].mxu0 %vm1262_vm6, %v14791_v25  ;;  %v1182_v21 = vor.u32 %v1180_v47, %v1179_v19  ;;  %v1643_v31 = vor.u32 %v1642_v56, %v1641_v8  ;;  %v1175_v23 = vor.u32 %v1173_v38, %v1172_v37  ;;  %v19665_v25 = vcombine.low %v19622_v61, %v14338_v13 }
  0xdf   : > { %11924 = vmatprep.mubr.msk.bf16.mxu0 %vm1262_vm6, %v14835_v62  ;;  %v1639_v55 = vor.u32 %v1638_v60, %v1637_v48  ;;  %v249_v62 = vld [vmem:[%s19305_s3 + $0x148] sm:$0xff]  ;;  %v19666_v38 = vcombine.low %v19626_v54, %v19625_v26  ;;  %v19667_v56 = vcombine.low %v14347_v49, %v14350_v30 }
  0xe0   : > { %v980_v4 = vsel %vm917_vm3, %v19665_v25, %v793_v15  ;;  %v906_v16 = vpop.permute.xlu1 %905  ;;  %v904_v28 = vpop.permute.xlu0 %903  ;;  %v1176_v29 = vsel %vm1054_vm5, %v1165_v35, %v1175_v23  ;;  %v1183_v50 = vsel %vm1054_vm5, %v1172_v37, %v1182_v21  ;;  %2588 = vperm.xlu0 %13279, %v249_v62  }
  0xe1   : > { %2603 = vperm.xlu1 %13280, %v252_v7   ;;  %v1043_v36 = vsel %vm999_vm4, %v983_v63, %v906_v16  ;;  %v1041_v46 = vsel %vm999_vm4, %v980_v4, %v904_v28  ;;  %11828 = vmatprep.mubr.msk.bf16.mxu1 %vm1262_vm6, %v1176_v29  ;;  %v15016_v13 = vsel %vm1559_vm7, %v1635_v43, %v1639_v55 }
  0xe2   : > { %v15019_v61 = vsel %vm1559_vm7, %v1639_v55, %v1643_v31  ;;  %v1191_v35 = vshrl.u32 %v1043_v36, 16  ;;  %v1194_v44 = vshll.u32 %v1043_v36, 16  ;;  %v1184_v45 = vshrl.u32 %v1041_v46, 16 }
  0xe3   : > { %v1187_v10 = vshll.u32 %v1041_v46, 16  ;;  %11829 = vmatmul.mubr.msk.bf16.gmra.mrb[32].mxu1 %vm1262_vm6, %v1183_v50  ;;  %v19668_v36 = vcombine.low %v19630_v59, %v14421_v2 }
  0xe4   : > { %v1193_v27 = vrot.slane %v1191_v35, 7  ;;  %v1649_v11 = vrot.slane %v1191_v35, 3  ;;  %v1650_v32 = vrot.slane %v1194_v44, 4  ;;  %v1186_v33 = vrot.slane %v1184_v45, 7  ;;  %v799_v43 = vpop.permute.xlu1 %798  ;;  %v797_v53 = vpop.permute.xlu0 %796  ;;  %2598 = vperm.xlu0 %13279, %v251_v51  }
  0xe5   : > { %2613 = vperm.xlu1 %13280, %v254_v39   ;;  %v1645_v5 = vrot.slane %v1184_v45, 3  ;;  %v1646_v3 = vrot.slane %v1187_v10, 4  ;;  %v989_v8 = vsel %vm917_vm3, %v19666_v38, %v799_v43  ;;  %v986_v37 = vsel %vm917_vm3, %v19667_v56, %v797_v53 }
  0xe6   : > { %11925 = vmatmul.mubr.msk.bf16.gmra.mrb[8].mxu0 %vm1262_vm6, %v14838_v18  ;;  %v1196_v6 = vor.u32 %v1194_v44, %v1193_v27  ;;  %v1651_v22 = vor.u32 %v1650_v32, %v1649_v11  ;;  %v1189_v47 = vor.u32 %v1187_v10, %v1186_v33  ;;  %v19669_v39 = vcombine.low %v19628_v57, %v19627_v1 }
  0xe7   : > { %11928 = vmatprep.mubr.msk.bf16.mxu0 %vm1262_vm6, %v14872_v58  ;;  %v1647_v34 = vor.u32 %v1646_v3, %v1645_v5  ;;  %v253_v58 = vld [vmem:[%s19305_s3 + $0x168] sm:$0xff] }
  0xe8   : > { %v910_v17 = vpop.permute.xlu1 %909  ;;  %v908_v18 = vpop.permute.xlu0 %907  ;;  %v1190_v15 = vsel %vm1054_vm5, %v1179_v19, %v1189_v47  ;;  %v1197_v52 = vsel %vm1054_vm5, %v1186_v33, %v1196_v6  ;;  %2608 = vperm.xlu0 %13279, %v253_v58  }
  0xe9   : > { %v1047_v48 = vsel %vm999_vm4, %v989_v8, %v910_v17  ;;  %v1045_v26 = vsel %vm999_vm4, %v986_v37, %v908_v18  ;;  %11832 = vmatprep.mubr.msk.bf16.mxu1 %vm1262_vm6, %v1190_v15  ;;  %v15049_v49 = vsel %vm1559_vm7, %v1643_v31, %v1647_v34  ;;  %v15052_v30 = vsel %vm1559_vm7, %v1647_v34, %v1651_v22 }
  0xea   : > { %v1205_v54 = vshrl.u32 %v1047_v48, 16  ;;  %v1208_v19 = vshll.u32 %v1047_v48, 16  ;;  %v1198_v60 = vshrl.u32 %v1045_v26, 16  ;;  %v1201_v7 = vshll.u32 %v1045_v26, 16 }
  0xeb   : > { %11833 = vmatmul.mubr.msk.bf16.gmra.mrb[36].mxu1 %vm1262_vm6, %v1197_v52 }
  0xec   : > { %v1207_v21 = vrot.slane %v1205_v54, 7  ;;  %v1657_v23 = vrot.slane %v1205_v54, 3  ;;  %v1658_v55 = vrot.slane %v1208_v19, 4  ;;  %v1200_v63 = vrot.slane %v1198_v60, 7  ;;  %v803_v25 = vpop.permute.xlu1 %802  ;;  %v801_v4 = vpop.permute.xlu0 %800 }
  0xed   : > { %v1653_v16 = vrot.slane %v1198_v60, 3  ;;  %v1654_v28 = vrot.slane %v1201_v7, 4  ;;  %v995_v46 = vsel %vm917_vm3, %v19668_v36, %v803_v25  ;;  %v992_v35 = vsel %vm917_vm3, %v19669_v39, %v801_v4 }
  0xee   : > { %11929 = vmatmul.mubr.msk.bf16.gmra.mrb[12].mxu0 %vm1262_vm6, %v14875_v42  ;;  %v1210_v31 = vor.u32 %v1208_v19, %v1207_v21  ;;  %v15057_v29 = vor.u32 %v1658_v55, %v1657_v23  ;;  %v1203_v50 = vor.u32 %v1201_v7, %v1200_v63 }
  0xef   : > { %11932 = vmatprep.mubr.msk.bf16.mxu0 %vm1262_vm6, %v14908_v9  ;;  %v1655_v62 = vor.u32 %v1654_v28, %v1653_v16 }
  0xf0   : > { %v914_v44 = vpop.permute.xlu1 %913  ;;  %v912_v42 = vpop.permute.xlu0 %911  ;;  %v1204_v45 = vsel %vm1054_vm5, %v1193_v27, %v1203_v50  ;;  %v1211_v10 = vsel %vm1054_vm5, %v1200_v63, %v1210_v31 }
  0xf1   : > { %v1051_v11 = vsel %vm999_vm4, %v995_v46, %v914_v44  ;;  %v1049_v9 = vsel %vm999_vm4, %v992_v35, %v912_v42  ;;  %11836 = vmatprep.mubr.msk.bf16.mxu1 %vm1262_vm6, %v1204_v45  ;;  %v1656_v2 = vsel %vm1559_vm7, %v1651_v22, %v1655_v62  ;;  %v1660_v59 = vsel %vm1559_vm7, %v1655_v62, %v15057_v29 }
  0xf2   : > { %v1219_v1 = vshrl.u32 %v1051_v11, 16  ;;  %v1222_v57 = vshll.u32 %v1051_v11, 16  ;;  %v1212_v32 = vshrl.u32 %v1049_v9, 16  ;;  %v1215_v33 = vshll.u32 %v1049_v9, 16 }
  0xf3   : > { %11837 = vmatmul.mubr.msk.bf16.gmra.mrb[40].mxu1 %vm1262_vm6, %v1211_v10  ;;  %v19670_v22 = vcombine.low %v14424_v24, %v14447_v14 }
  0xf4   : > { %v1221_v27 = vrot.slane %v1219_v1, 7  ;;  %v1997_v43 = vrot.slane %v1219_v1, 3  ;;  %v1998_v53 = vrot.slane %v1222_v57, 4  ;;  %v1214_v51 = vrot.slane %v1212_v32, 7  ;;  %v805_v5 = vpop.permute.xlu0 %804  ;;  %v916_v3 = vpop.permute.xlu1 %915 }
  0xf5   : > { %v1993_v6 = vrot.slane %v1212_v32, 3  ;;  %v1994_v47 = vrot.slane %v1215_v33, 4  ;;  %v998_v34 = vsel %vm917_vm3, %v19670_v22, %v805_v5 }
  0xf6   : > { %11933 = vmatmul.mubr.msk.bf16.gmra.mrb[16].mxu0 %vm1262_vm6, %v14911_v0  ;;  %v1224_v38 = vor.u32 %v1222_v57, %v1221_v27  ;;  %v1999_v8 = vor.u32 %v1998_v53, %v1997_v43  ;;  %v1217_v56 = vor.u32 %v1215_v33, %v1214_v51  ;;  %v1053_v37 = vsel %vm999_vm4, %v998_v34, %v916_v3  ;;  %v15206_v43 = vld [vmem:[%s19304_s2] ss:$0 sm:$0xff] }
  0xf7   : > { %11936 = vmatprep.mubr.msk.bf16.mxu0 %vm1262_vm6, %v14944_v41  ;;  %v1995_v17 = vor.u32 %v1994_v47, %v1993_v6  ;;  %v2001_v18 = vshrl.u32 %v1053_v37, 16  ;;  %v2004_v15 = vshll.u32 %v1053_v37, 16 }
  0xf8   : > { %v1218_v52 = vsel %vm1054_vm5, %v1207_v21, %v1217_v56  ;;  %v1225_v58 = vsel %vm1054_vm5, %v1214_v51, %v1224_v38 }
  0xf9   : > { %v2003_v48 = vrot.slane %v2001_v18, 3  ;;  %v2006_v26 = vrot.slane %v2004_v15, 4  ;;  %11840 = vmatprep.mubr.msk.bf16.mxu1 %vm1262_vm6, %v1218_v52  ;;  %v1996_v24 = vsel %vm1559_vm7, %v15057_v29, %v1995_v17  ;;  %v2000_v14 = vsel %vm1559_vm7, %v1995_v17, %v1999_v8 }
  0xfb   : > { %11841 = vmatmul.mubr.msk.bf16.gmra.mrb[44].mxu1 %vm1262_vm6, %v1225_v58  ;;  %v2007_v54 = vor.u32 %v2006_v26, %v2003_v48 }
  0xfc   : > { %11880 = vmatprep.mubr.msk.bf16.mxu1 %vm1262_vm6, %v14911_v0 }
  0xfd   : > { %v2008_v19 = vsel %vm1559_vm7, %v1999_v8, %v2007_v54 }
  0xfe   : > { %11937 = vmatmul.mubr.msk.bf16.gmra.mrb[20].mxu0 %vm1262_vm6, %v14947_v20 }
  0xff   : > { %11940 = vmatprep.mubr.msk.bf16.mxu0 %vm1262_vm6, %v14980_v40 }
 0x103   : > { %11881 = vmatmul.mubr.msk.bf16.vlgmr.msra.gmra.mrb[24].mxu1 %vm1262_vm6, %v14944_v41 }
 0x104   : > { %11884 = vmatprep.mubr.msk.bf16.mxu1 %vm1262_vm6, %v14947_v20 }
 0x105   : > { %v15137_v20 = vpop.permute.xlu1 %2388 }
 0x106   : > { %11941 = vmatmul.mubr.msk.bf16.gmra.mrb[24].mxu0 %vm1262_vm6, %v14983_v12  ;;  %19671 = vst [vmem:[#allocation11_spill] sm:$0xff] %v15137_v20 }
 0x107   : > { %11944 = vmatprep.mubr.msk.bf16.mxu0 %vm1262_vm6, %v15016_v13 }
 0x10b   : > { %11885 = vmatmul.mubr.msk.bf16.gmra.mrb[28].mxu1 %vm1262_vm6, %v14980_v40 }
 0x10c   : > { %11888 = vmatprep.mubr.msk.bf16.mxu1 %vm1262_vm6, %v14983_v12 }
 0x10e   : > { %11945 = vmatmul.mubr.msk.bf16.gmra.mrb[28].mxu0 %vm1262_vm6, %v15019_v61 }
 0x10f   : > { %11948 = vmatprep.mubr.msk.bf16.mxu0 %vm1262_vm6, %v15049_v49 }
 0x113   : > { %11889 = vmatmul.mubr.msk.bf16.gmra.mrb[32].mxu1 %vm1262_vm6, %v15016_v13  ;;  %v15139_v13 = vpop.permute.xlu1 %2393 }
 0x114   : > { %11892 = vmatprep.mubr.msk.bf16.mxu1 %vm1262_vm6, %v15019_v61  ;;  %19672 = vst [vmem:[#allocation9_spill] sm:$0xff] %v15139_v13 }
 0x116   : > { %11949 = vmatmul.mubr.msk.bf16.gmra.mrb[32].mxu0 %vm1262_vm6, %v15052_v30 }
 0x117   : > { %11952 = vmatprep.mubr.msk.bf16.mxu0 %vm1262_vm6, %v1656_v2  ;;  %v15145_v21 = vpop.permute.xlu1 %2403 }
 0x118   : > { %19674 = vst [vmem:[#allocation29_spill] sm:$0xff] %v15145_v21 }
 0x11b   : > { %11893 = vmatmul.mubr.msk.bf16.gmra.mrb[36].mxu1 %vm1262_vm6, %v15049_v49  ;;  %v15157_v16 = vpop.permute.xlu1 %2413 }
 0x11c   : > { %11896 = vmatprep.mubr.msk.bf16.mxu1 %vm1262_vm6, %v15052_v30  ;;  %v15141_v30 = vpop.permute.xlu0 %2383  ;;  %19676 = vst [vmem:[#allocation20_spill] sm:$0xff] %v15157_v16 }
 0x11d   : > { %19673 = vst [vmem:[#allocation28_spill] sm:$0xff] %v15141_v30 }
 0x11e   : > { %11953 = vmatmul.mubr.msk.bf16.gmra.mrb[36].mxu0 %vm1262_vm6, %v1660_v59 }
 0x11f   : > { %11956 = vmatprep.mubr.msk.bf16.mxu0 %vm1262_vm6, %v1996_v24  ;;  %v15165_v50 = vpop.permute.xlu1 %2423 }
 0x120   : > { %v15147_v23 = vpop.permute.xlu0 %2398  ;;  %19678 = vst [vmem:[#allocation18_spill] sm:$0xff] %v15165_v50 }
 0x121   : > { %19675 = vst [vmem:[#allocation21_spill] sm:$0xff] %v15147_v23 }
 0x123   : > { %11897 = vmatmul.mubr.msk.bf16.gmra.mrb[40].mxu1 %vm1262_vm6, %v1656_v2  ;;  %v15173_v39 = vpop.permute.xlu1 %2433 }
 0x124   : > { %11900 = vmatprep.mubr.msk.bf16.mxu1 %vm1262_vm6, %v1660_v59  ;;  %v15159_v28 = vpop.permute.xlu0 %2408  ;;  %19680 = vst [vmem:[#allocation25_spill] sm:$0xff] %v15173_v39 }
 0x125   : > { %19677 = vst [vmem:[#allocation19_spill] sm:$0xff] %v15159_v28 }
 0x126   : > { %11957 = vmatmul.mubr.msk.bf16.gmra.mrb[40].mxu0 %vm1262_vm6, %v2000_v14 }
 0x127   : > { %11960 = vmatprep.mubr.msk.bf16.mxu0 %vm1262_vm6, %v2008_v19  ;;  %v15185_v11 = vpop.permute.xlu1 %2443 }
 0x128   : > { %v15171_v46 = vpop.permute.xlu0 %2418  ;;  %19682 = vst [vmem:[#allocation23_spill] sm:$0xff] %v15185_v11 }
 0x129   : > { %19679 = vst [vmem:[#allocation26_spill] sm:$0xff] %v15171_v46 }
 0x12b   : > { %11901 = vmatmul.mubr.msk.bf16.gmra.mrb[48].mxu1 %vm1262_vm6, %v15057_v29  ;;  %v15197_v32 = vpop.permute.xlu1 %2453 }
 0x12c   : > { %v15179_v42 = vpop.permute.xlu0 %2428  ;;  %19684 = vst [vmem:[#allocation36_spill] sm:$0xff] %v15197_v32 }
 0x12d   : > { %19681 = vst [vmem:[#allocation22_spill] sm:$0xff] %v15179_v42 }
 0x12e   : > { %11961 = vmatmul.mubr.msk.bf16.gmra.mrb[44].mxu0 %vm1262_vm6, %v2007_v54 }
 0x12f   : > { %v15201_v27 = vpop.permute.xlu1 %2463 }
 0x130   : > { %v15187_v9 = vpop.permute.xlu0 %2438  ;;  %19686 = vst [vmem:[#allocation31_spill] sm:$0xff] %v15201_v27 }
 0x131   : > { %19683 = vst [vmem:[#allocation27_spill] sm:$0xff] %v15187_v9 }
 0x133   : > { %v15212_v37 = vpop.permute.xlu1 %2473 }
 0x134   : > { %v15199_v33 = vpop.permute.xlu0 %2448  ;;  %19688 = vst [vmem:[#allocation33_spill] sm:$0xff] %v15212_v37 }
 0x135   : > { %19685 = vst [vmem:[#allocation35_spill] sm:$0xff] %v15199_v33 }
 0x138   : > { %v15208_v51 = vpop.permute.xlu0 %2458 }
 0x139   : > { %19687 = vst [vmem:[#allocation30_spill] sm:$0xff] %v15208_v51 }
 0x13c   : > { %v15222_v58 = vpop.permute.xlu0 %2468 }
 0x13d   : > { %19690 = vst [vmem:[#allocation37_spill] sm:$0xff] %v15222_v58 }
 0x175   : > { %v11798_v0 = vpop.f32.mrb[0].mxu1 }
 0x176   : > { %v1369_v41 = vpop.f32.mrb[1].mxu1 }
 0x177   : > { %v11799_v40 = vpop.f32.mrb[2].mxu1 }
 0x178   : > { %v1372_v12 = vpop.f32.mrb[3].mxu1 }
 0x17e   : > { %v11802_v61 = vpop.f32.mrb[4].mxu1 }
 0x17f   : > { %v1385_v49 = vpop.f32.mrb[5].mxu1 }
 0x180   : > { %v11803_v60 = vpop.f32.mrb[6].mxu1 }
 0x181   : > { %v15143_v7 = vpop.f32.mrb[7].mxu1 }
 0x186   : > { %v15149_v55 = vpop.f32.mrb[8].mxu1 }
 0x187   : > { %v15151_v63 = vpop.f32.mrb[9].mxu1 }
 0x188   : > { %v15153_v25 = vpop.f32.mrb[10].mxu1 }
 0x189   : > { %v15155_v4 = vpop.f32.mrb[11].mxu1 }
 0x18e   : > { %v15161_v31 = vpop.f32.mrb[12].mxu1 }
 0x18f   : > { %v15163_v29 = vpop.f32.mrb[13].mxu1 }
 0x190   : > { %v15167_v62 = vpop.f32.mrb[14].mxu1 }
 0x191   : > { %v15169_v36 = vpop.f32.mrb[15].mxu1 }
 0x196   : > { %v15175_v35 = vpop.f32.mrb[16].mxu1 }
 0x197   : > { %v15177_v44 = vpop.f32.mrb[17].mxu1 }
 0x198   : > { %v15181_v45 = vpop.f32.mrb[18].mxu1 }
 0x199   : > { %v15183_v10 = vpop.f32.mrb[19].mxu1 }
 0x19e   : > { %v15189_v2 = vpop.f32.mrb[20].mxu1 }
 0x19f   : > { %v15191_v59 = vpop.f32.mrb[21].mxu1 }
 0x1a0   : > { %v15193_v1 = vpop.f32.mrb[22].mxu1 }
 0x1a1   : > { %v15195_v57 = vpop.f32.mrb[23].mxu1 }
 0x1a9   : > { %v11918_v53 = vpop.f32.mrb[0].mxu0 }
 0x1aa   : > { %v12516_v5 = vadd.f32 %v11918_v53, %v11798_v0  ;;  %v2091_v3 = vpop.f32.mrb[1].mxu0 }
 0x1ab   : > { %v12517_v6 = vadd.f32 %v2091_v3, %v1369_v41  ;;  %v11919_v47 = vpop.f32.mrb[2].mxu0  ;;  %v15238_v41 = vpop.permute.xlu1 %2483 }
 0x1ac   : > { %v2336_v22 = vadd.f32 %v12516_v5, %v15206_v43  ;;  %v12518_v34 = vadd.f32 %v11919_v47, %v11799_v40  ;;  %v2094_v38 = vpop.f32.mrb[3].mxu0  ;;  %19691 = vst [vmem:[#allocation34_spill] sm:$0xff] %v15238_v41 }
 0x1ad   : > { %v2334_v8 = vadd.f32 %v12517_v6, %v15206_v43  ;;  %v12519_v56 = vadd.f32 %v2094_v38, %v1372_v12  ;;  %v15243_v6 = vpop.permute.xlu0 %2478 }
 0x1ae   : > { %v15215_v17 = vmul.f32 %v15139_v13, %v2336_v22   ;;  %v2337_v18 = vadd.f32 %v12518_v34, %v15206_v43  ;;  %19692 = vst [vmem:[#allocation38_spill] sm:$0xff] %v15243_v6 }
 0x1af   : > { %v15219_v15 = vmul.f32 %v15141_v30, %v2334_v8   ;;  %v2335_v52 = vadd.f32 %v12519_v56, %v15206_v43  ;;  %v15263_v38 = vpop.permute.xlu1 %2493 }
 0x1b0   : > { %2665 = vst.msk [vmem:[#allocation3 + $0x10] sm:$0xff] %vm917_vm3, %v15215_v17  ;;  %v15227_v48 = vmul.f32 %v15147_v23, %v2337_v18   ;;  %19693 = vst [vmem:[#allocation4_spill] sm:$0xff] %v15263_v38 }
 0x1b1   : > { %19689 = vst [vmem:[#allocation32_spill] sm:$0xff] %v15219_v15  ;;  %2663 = vst.msk [vmem:[#allocation3] sm:$0xff] %vm917_vm3, %v15219_v15  ;;  %v15232_v26 = vmul.f32 %v15137_v20, %v2335_v52   ;;  %v11922_v24 = vpop.f32.mrb[4].mxu0 }
 0x1b2   : > { %2666 = vst.msk [vmem:[#allocation3 + $0x18] sm:$0xff] %vm917_vm3, %v15227_v48  ;;  %v12520_v14 = vadd.f32 %v11922_v24, %v11802_v61  ;;  %v2107_v54 = vpop.f32.mrb[5].mxu0  ;;  %v15271_v24 = vpop.permute.xlu0 %2488 }
 0x1b3   : > { %2664 = vst.msk [vmem:[#allocation3 + $0x8] sm:$0xff] %vm917_vm3, %v15232_v26  ;;  %v12521_v19 = vadd.f32 %v2107_v54, %v1385_v49  ;;  %v11923_v0 = vpop.f32.mrb[6].mxu0  ;;  %19694 = vst [vmem:[#allocation5_spill] sm:$0xff] %v15271_v24 }
 0x1b4   : > { %v2340_v40 = vadd.f32 %v12520_v14, %v15206_v43  ;;  %v12522_v12 = vadd.f32 %v11923_v0, %v11803_v60  ;;  %v2110_v53 = vpop.f32.mrb[7].mxu0 }
 0x1b5   : > { %v2338_v5 = vadd.f32 %v12521_v19, %v15206_v43  ;;  %v12523_v3 = vadd.f32 %v2110_v53, %v15143_v7 }
 0x1b6   : > { %v15246_v61 = vmul.f32 %v15157_v16, %v2340_v40   ;;  %v2341_v47 = vadd.f32 %v12522_v12, %v15206_v43 }
 0x1b7   : > { %v15250_v49 = vmul.f32 %v15145_v21, %v2338_v5   ;;  %v2339_v22 = vadd.f32 %v12523_v3, %v15206_v43  ;;  %v15285_v5 = vpop.permute.xlu1 %2503 }
 0x1b8   : > { %2669 = vst.msk [vmem:[#allocation3 + $0x30] sm:$0xff] %vm917_vm3, %v15246_v61  ;;  %v15256_v60 = vmul.f32 %v15171_v46, %v2341_v47   ;;  %19695 = vst [vmem:[#allocation10_spill] sm:$0xff] %v15285_v5  ;;  %v15297_v47 = vpop.permute.xlu0 %2498 }
 0x1b9   : > { %2667 = vst.msk [vmem:[#allocation3 + $0x20] sm:$0xff] %vm917_vm3, %v15250_v49  ;;  %v15261_v7 = vmul.f32 %v15159_v28, %v2339_v22   ;;  %v11926_v34 = vpop.f32.mrb[8].mxu0  ;;  %19696 = vst [vmem:[#allocation6_spill] sm:$0xff] %v15297_v47 }
 0x1ba   : > { %2670 = vst.msk [vmem:[#allocation3 + $0x38] sm:$0xff] %vm917_vm3, %v15256_v60  ;;  %v12524_v8 = vadd.f32 %v11926_v34, %v15149_v55  ;;  %v2123_v56 = vpop.f32.mrb[9].mxu0 }
 0x1bb   : > { %2668 = vst.msk [vmem:[#allocation3 + $0x28] sm:$0xff] %vm917_vm3, %v15261_v7  ;;  %v12525_v18 = vadd.f32 %v2123_v56, %v15151_v63  ;;  %v11927_v52 = vpop.f32.mrb[10].mxu0 }
 0x1bc   : > { %v2344_v14 = vadd.f32 %v12524_v8, %v15206_v43  ;;  %v12526_v54 = vadd.f32 %v11927_v52, %v15153_v25  ;;  %v2126_v19 = vpop.f32.mrb[11].mxu0 }
 0x1bd   : > { %v2342_v0 = vadd.f32 %v12525_v18, %v15206_v43  ;;  %v12527_v40 = vadd.f32 %v2126_v19, %v15155_v4 }
 0x1be   : > { %v15278_v55 = vmul.f32 %v15173_v39, %v2344_v14   ;;  %v2345_v12 = vadd.f32 %v12526_v54, %v15206_v43 }
 0x1bf   : > { %v15282_v53 = vmul.f32 %v15165_v50, %v2342_v0   ;;  %v2343_v63 = vadd.f32 %v12527_v40, %v15206_v43  ;;  %v15309_v0 = vpop.permute.xlu1 %2513 }
 0x1c0   : > { %2673 = vst.msk [vmem:[#allocation3 + $0x50] sm:$0xff] %vm917_vm3, %v15278_v55  ;;  %v15290_v25 = vmul.f32 %v15187_v9, %v2345_v12   ;;  %19697 = vst [vmem:[#allocation7_spill] sm:$0xff] %v15309_v0 }
 0x1c1   : > { %2671 = vst.msk [vmem:[#allocation3 + $0x40] sm:$0xff] %vm917_vm3, %v15282_v53  ;;  %v15295_v4 = vmul.f32 %v15179_v42, %v2343_v63   ;;  %v11930_v3 = vpop.f32.mrb[12].mxu0  ;;  %v15319_v63 = vpop.permute.xlu0 %2508 }
 0x1c2   : > { %2674 = vst.msk [vmem:[#allocation3 + $0x58] sm:$0xff] %vm917_vm3, %v15290_v25  ;;  %v12528_v22 = vadd.f32 %v11930_v3, %v15161_v31  ;;  %v2139_v34 = vpop.f32.mrb[13].mxu0  ;;  %19698 = vst [vmem:[#allocation8_spill] sm:$0xff] %v15319_v63 }
 0x1c3   : > { %2672 = vst.msk [vmem:[#allocation3 + $0x48] sm:$0xff] %vm917_vm3, %v15295_v4  ;;  %v12529_v8 = vadd.f32 %v2139_v34, %v15163_v29  ;;  %v11931_v56 = vpop.f32.mrb[14].mxu0 }
 0x1c4   : > { %v2348_v18 = vadd.f32 %v12528_v22, %v15206_v43  ;;  %v12530_v52 = vadd.f32 %v11931_v56, %v15167_v62  ;;  %v2142_v14 = vpop.f32.mrb[15].mxu0 }
 0x1c5   : > { %v2346_v54 = vadd.f32 %v12529_v8, %v15206_v43  ;;  %v12531_v19 = vadd.f32 %v2142_v14, %v15169_v36 }
 0x1c6   : > { %v15312_v31 = vmul.f32 %v15197_v32, %v2348_v18   ;;  %v2349_v40 = vadd.f32 %v12530_v52, %v15206_v43  ;;  %v15337_v18 = vpop.permute.xlu1 %2523 }
 0x1c7   : > { %v15316_v12 = vmul.f32 %v15185_v11, %v2346_v54   ;;  %v2347_v29 = vadd.f32 %v12531_v19, %v15206_v43  ;;  %19699 = vst [vmem:[#allocation12_spill] sm:$0xff] %v15337_v18 }
 0x1c8   : > { %2677 = vst.msk [vmem:[#allocation3 + $0x70] sm:$0xff] %vm917_vm3, %v15312_v31  ;;  %v15324_v62 = vmul.f32 %v15208_v51, %v2349_v40  }
 0x1c9   : > { %2675 = vst.msk [vmem:[#allocation3 + $0x60] sm:$0xff] %vm917_vm3, %v15316_v12  ;;  %v15329_v36 = vmul.f32 %v15199_v33, %v2347_v29   ;;  %v11934_v3 = vpop.f32.mrb[16].mxu0  ;;  %v15343_v29 = vpop.permute.xlu0 %2518 }
 0x1ca   : > { %2678 = vst.msk [vmem:[#allocation3 + $0x78] sm:$0xff] %vm917_vm3, %v15324_v62  ;;  %v12532_v22 = vadd.f32 %v11934_v3, %v15175_v35  ;;  %v2155_v34 = vpop.f32.mrb[17].mxu0  ;;  %19700 = vst [vmem:[#allocation13_spill] sm:$0xff] %v15343_v29 }
 0x1cb   : > { %2676 = vst.msk [vmem:[#allocation3 + $0x68] sm:$0xff] %vm917_vm3, %v15329_v36  ;;  %v12533_v8 = vadd.f32 %v2155_v34, %v15177_v44  ;;  %v11935_v56 = vpop.f32.mrb[18].mxu0 }
 0x1cc   : > { %v2352_v52 = vadd.f32 %v12532_v22, %v15206_v43  ;;  %v12534_v14 = vadd.f32 %v11935_v56, %v15181_v45  ;;  %v2158_v54 = vpop.f32.mrb[19].mxu0 }
 0x1cd   : > { %v2350_v19 = vadd.f32 %v12533_v8, %v15206_v43  ;;  %v12535_v40 = vadd.f32 %v2158_v54, %v15183_v10  ;;  %v15369_v54 = vpop.permute.xlu1 %2533 }
 0x1ce   : > { %v15346_v35 = vmul.f32 %v15212_v37, %v2352_v52   ;;  %v2353_v3 = vadd.f32 %v12534_v14, %v15206_v43  ;;  %v15349_v44 = vpop.f32.mrb[44].mxu1  ;;  %19701 = vst [vmem:[#allocation16_spill] sm:$0xff] %v15369_v54 }
 0x1cf   : > { %v15352_v34 = vmul.f32 %v15201_v27, %v2350_v19   ;;  %v2351_v22 = vadd.f32 %v12535_v40, %v15206_v43  ;;  %v15355_v45 = vpop.f32.mrb[45].mxu1 }
 0x1d0   : > { %2681 = vst.msk [vmem:[#allocation3 + $0x90] sm:$0xff] %vm917_vm3, %v15346_v35  ;;  %v15360_v10 = vmul.f32 %v15243_v6, %v2353_v3   ;;  %v11843_v8 = vpop.f32.mrb[46].mxu1  ;;  %v15377_v6 = vpop.permute.xlu0 %2528 }
 0x1d1   : > { %2679 = vst.msk [vmem:[#allocation3 + $0x80] sm:$0xff] %vm917_vm3, %v15352_v34  ;;  %v15365_v56 = vmul.f32 %v15222_v58, %v2351_v22   ;;  %v11938_v52 = vpop.f32.mrb[20].mxu0  ;;  %v15367_v14 = vpop.f32.mrb[47].mxu1  ;;  %19702 = vst [vmem:[#allocation17_spill] sm:$0xff] %v15377_v6 }
 0x1d2   : > { %2682 = vst.msk [vmem:[#allocation3 + $0x98] sm:$0xff] %vm917_vm3, %v15360_v10  ;;  %v12536_v19 = vadd.f32 %v11938_v52, %v15189_v2  ;;  %v2171_v40 = vpop.f32.mrb[21].mxu0 }
 0x1d3   : > { %2680 = vst.msk [vmem:[#allocation3 + $0x88] sm:$0xff] %vm917_vm3, %v15365_v56  ;;  %v12537_v3 = vadd.f32 %v2171_v40, %v15191_v59  ;;  %v11939_v8 = vpop.f32.mrb[22].mxu0 }
 0x1d4   : > { %v2356_v22 = vadd.f32 %v12536_v19, %v15206_v43  ;;  %v12538_v58 = vadd.f32 %v11939_v8, %v15193_v1  ;;  %v2174_v27 = vpop.f32.mrb[23].mxu0  ;;  %v15391_v19 = vpop.permute.xlu1 %2543 }
 0x1d5   : > { %v2354_v37 = vadd.f32 %v12537_v3, %v15206_v43  ;;  %v12539_v33 = vadd.f32 %v2174_v27, %v15195_v57  ;;  %19703 = vst [vmem:[#allocation14_spill] sm:$0xff] %v15391_v19  ;;  %v15403_v3 = vpop.permute.xlu0 %2538 }
 0x1d6   : > { %v15384_v2 = vmul.f32 %v15263_v38, %v2356_v22   ;;  %v2357_v52 = vadd.f32 %v12538_v58, %v15206_v43  ;;  %v11882_v51 = vpop.f32.mrb[24].mxu1  ;;  %19704 = vst [vmem:[#allocation15_spill] sm:$0xff] %v15403_v3 }
 0x1d7   : > { %v15388_v59 = vmul.f32 %v15238_v41, %v2354_v37   ;;  %v2355_v40 = vadd.f32 %v12539_v33, %v15206_v43  ;;  %v1899_v11 = vpop.f32.mrb[25].mxu1 }
 0x1d8   : > { %2685 = vst.msk [vmem:[#allocation3 + $0xb0] sm:$0xff] %vm917_vm3, %v15384_v2  ;;  %v15396_v1 = vmul.f32 %v15297_v47, %v2357_v52   ;;  %v11883_v57 = vpop.f32.mrb[26].mxu1  ;;  %v15411_v32 = vpop.permute.xlu1 %2553 }
 0x1d9   : > { %2683 = vst.msk [vmem:[#allocation3 + $0xa0] sm:$0xff] %vm917_vm3, %v15388_v59  ;;  %v15401_v27 = vmul.f32 %v15271_v24, %v2355_v40   ;;  %v11942_v37 = vpop.f32.mrb[24].mxu0  ;;  %v1902_v58 = vpop.f32.mrb[27].mxu1  ;;  %19705 = vst [vmem:[#allocation24_spill] sm:$0xff] %v15411_v32 }
 0x1da   : > { %2686 = vst.msk [vmem:[#allocation3 + $0xb8] sm:$0xff] %vm917_vm3, %v15396_v1  ;;  %v12540_v33 = vadd.f32 %v11942_v37, %v11882_v51  ;;  %v2187_v8 = vpop.f32.mrb[25].mxu0 }
 0x1db   : > { %2684 = vst.msk [vmem:[#allocation3 + $0xa8] sm:$0xff] %vm917_vm3, %v15401_v27  ;;  %v12541_v22 = vadd.f32 %v2187_v8, %v1899_v11  ;;  %v11943_v52 = vpop.f32.mrb[26].mxu0 }
 0x1dc   : > { %v2360_v47 = vadd.f32 %v12540_v33, %v15206_v43  ;;  %v12542_v41 = vadd.f32 %v11943_v52, %v11883_v57  ;;  %v2190_v38 = vpop.f32.mrb[27].mxu0  ;;  %v15421_v33 = vpop.permute.xlu0 %2548 }
 0x1dd   : > { %v2358_v40 = vadd.f32 %v12541_v22, %v15206_v43  ;;  %v12543_v24 = vadd.f32 %v2190_v38, %v1902_v58  ;;  %19706 = vst [vmem:[#allocation39_spill] sm:$0xff] %v15421_v33 }
 0x1de   : > { %v15414_v42 = vmul.f32 %v15309_v0, %v2360_v47   ;;  %v2361_v51 = vadd.f32 %v12542_v41, %v15206_v43  ;;  %v11886_v37 = vpop.f32.mrb[28].mxu1 }
 0x1df   : > { %v15418_v9 = vmul.f32 %v15285_v5, %v2358_v40   ;;  %v2359_v11 = vadd.f32 %v12543_v24, %v15206_v43  ;;  %v1915_v8 = vpop.f32.mrb[29].mxu1 }
 0x1e0   : > { %2689 = vst.msk [vmem:[#allocation3 + $0xd0] sm:$0xff] %vm917_vm3, %v15414_v42  ;;  %v15426_v38 = vmul.f32 %v15343_v29, %v2361_v51   ;;  %v11887_v57 = vpop.f32.mrb[30].mxu1  ;;  %v15437_v51 = vpop.permute.xlu1 %2563 }
 0x1e1   : > { %2687 = vst.msk [vmem:[#allocation3 + $0xc0] sm:$0xff] %vm917_vm3, %v15418_v9  ;;  %v15431_v41 = vmul.f32 %v15319_v63, %v2359_v11   ;;  %v11946_v47 = vpop.f32.mrb[28].mxu0  ;;  %v1918_v58 = vpop.f32.mrb[31].mxu1  ;;  %19707 = vst [vmem:[#allocation40_spill] sm:$0xff] %v15437_v51 }
 0x1e2   : > { %2690 = vst.msk [vmem:[#allocation3 + $0xd8] sm:$0xff] %vm917_vm3, %v15426_v38  ;;  %v12544_v24 = vadd.f32 %v11946_v47, %v11886_v37  ;;  %v2203_v22 = vpop.f32.mrb[29].mxu0  ;;  %v15441_v50 = vpop.permute.xlu0 %2558 }
 0x1e3   : > { %2688 = vst.msk [vmem:[#allocation3 + $0xc8] sm:$0xff] %vm917_vm3, %v15431_v41  ;;  %v12545_v52 = vadd.f32 %v2203_v22, %v1915_v8  ;;  %v11947_v40 = vpop.f32.mrb[30].mxu0  ;;  %19708 = vst [vmem:[#allocation41_spill] sm:$0xff] %v15441_v50 }
 0x1e4   : > { %v2364_v29 = vadd.f32 %v12544_v24, %v15206_v43  ;;  %v12546_v5 = vadd.f32 %v11947_v40, %v11887_v57  ;;  %v2206_v0 = vpop.f32.mrb[31].mxu0  ;;  %v15461_v24 = vpop.permute.xlu1 %2573 }
 0x1e5   : > { %v2362_v11 = vadd.f32 %v12545_v52, %v15206_v43  ;;  %v12547_v63 = vadd.f32 %v2206_v0, %v1918_v58  ;;  %19709 = vst [vmem:[#allocation42_spill] sm:$0xff] %v15461_v24 }
 0x1e6   : > { %v15444_v39 = vmul.f32 %v15369_v54, %v2364_v29   ;;  %v2365_v37 = vadd.f32 %v12546_v5, %v15206_v43  ;;  %v11890_v47 = vpop.f32.mrb[32].mxu1 }
 0x1e7   : > { %v15448_v8 = vmul.f32 %v15337_v18, %v2362_v11   ;;  %v2363_v22 = vadd.f32 %v12547_v63, %v15206_v43  ;;  %v1931_v28 = vpop.f32.mrb[33].mxu1 }
 0x1e8   : > { %2693 = vst.msk [vmem:[#allocation3 + $0xf0] sm:$0xff] %vm917_vm3, %v15444_v39  ;;  %v15454_v57 = vmul.f32 %v15403_v3, %v2365_v37   ;;  %v11891_v0 = vpop.f32.mrb[34].mxu1  ;;  %v15467_v37 = vpop.permute.xlu0 %2568 }
 0x1e9   : > { %2691 = vst.msk [vmem:[#allocation3 + $0xe0] sm:$0xff] %vm917_vm3, %v15448_v8  ;;  %v15459_v29 = vmul.f32 %v15377_v6, %v2363_v22   ;;  %v11950_v5 = vpop.f32.mrb[32].mxu0  ;;  %v1934_v58 = vpop.f32.mrb[35].mxu1  ;;  %19710 = vst [vmem:[#allocation43_spill] sm:$0xff] %v15467_v37 }
 0x1ea   : > { %2694 = vst.msk [vmem:[#allocation3 + $0xf8] sm:$0xff] %vm917_vm3, %v15454_v57  ;;  %v12548_v63 = vadd.f32 %v11950_v5, %v11890_v47  ;;  %v2219_v52 = vpop.f32.mrb[33].mxu0  ;;  %v15479_v16 = vpop.permute.xlu1 %2583 }
 0x1eb   : > { %2692 = vst.msk [vmem:[#allocation3 + $0xe8] sm:$0xff] %vm917_vm3, %v15459_v29  ;;  %v12549_v40 = vadd.f32 %v2219_v52, %v1931_v28  ;;  %v11951_v11 = vpop.f32.mrb[34].mxu0  ;;  %19711 = vst [vmem:[#allocation44_spill] sm:$0xff] %v15479_v16 }
 0x1ec   : > { %v2368_v3 = vadd.f32 %v12548_v63, %v15206_v43  ;;  %v12550_v22 = vadd.f32 %v11951_v11, %v11891_v0  ;;  %v2222_v6 = vpop.f32.mrb[35].mxu0  ;;  %v15491_v63 = vpop.permute.xlu0 %2578 }
 0x1ed   : > { %v2366_v18 = vadd.f32 %v12549_v40, %v15206_v43  ;;  %v12551_v54 = vadd.f32 %v2222_v6, %v1934_v58  ;;  %19712 = vst [vmem:[#allocation45_spill] sm:$0xff] %v15491_v63 }
 0x1ee   : > { %v15472_v46 = vmul.f32 %v15411_v32, %v2368_v3   ;;  %v2369_v47 = vadd.f32 %v12550_v22, %v15206_v43  ;;  %v11894_v5 = vpop.f32.mrb[36].mxu1 }
 0x1ef   : > { %v15476_v21 = vmul.f32 %v15391_v19, %v2366_v18   ;;  %v2367_v28 = vadd.f32 %v12551_v54, %v15206_v43  ;;  %v1947_v52 = vpop.f32.mrb[37].mxu1 }
 0x1f0   : > { %2697 = vst.msk [vmem:[#allocation3 + $0x110] sm:$0xff] %vm917_vm3, %v15472_v46  ;;  %v15484_v0 = vmul.f32 %v15441_v50, %v2369_v47   ;;  %v11895_v6 = vpop.f32.mrb[38].mxu1 }
 0x1f1   : > { %2695 = vst.msk [vmem:[#allocation3 + $0x100] sm:$0xff] %vm917_vm3, %v15476_v21  ;;  %v15489_v3 = vmul.f32 %v15421_v33, %v2367_v28   ;;  %v11954_v18 = vpop.f32.mrb[36].mxu0  ;;  %v1950_v58 = vpop.f32.mrb[39].mxu1 }
 0x1f2   : > { %2698 = vst.msk [vmem:[#allocation3 + $0x118] sm:$0xff] %vm917_vm3, %v15484_v0  ;;  %v12552_v54 = vadd.f32 %v11954_v18, %v11894_v5  ;;  %v2235_v40 = vpop.f32.mrb[37].mxu0  ;;  %v15503_v5 = vpop.permute.xlu1 %2593 }
 0x1f3   : > { %2696 = vst.msk [vmem:[#allocation3 + $0x108] sm:$0xff] %vm917_vm3, %v15489_v3  ;;  %v12553_v11 = vadd.f32 %v2235_v40, %v1947_v52  ;;  %v11955_v22 = vpop.f32.mrb[38].mxu0  ;;  %19713 = vst [vmem:[#allocation46_spill] sm:$0xff] %v15503_v5 }
 0x1f4   : > { %v2372_v47 = vadd.f32 %v12552_v54, %v15206_v43  ;;  %v12554_v50 = vadd.f32 %v11955_v22, %v11895_v6  ;;  %v2238_v19 = vpop.f32.mrb[39].mxu0  ;;  %v15509_v54 = vpop.permute.xlu0 %2588 }
 0x1f5   : > { %v2370_v28 = vadd.f32 %v12553_v11, %v15206_v43  ;;  %v12555_v33 = vadd.f32 %v2238_v19, %v1950_v58  ;;  %19714 = vst [vmem:[#allocation47_spill] sm:$0xff] %v15509_v54 }
 0x1f6   : > { %v15500_v32 = vmul.f32 %v15461_v24, %v2372_v47   ;;  %v2373_v20 = vadd.f32 %v12554_v50, %v15206_v43  ;;  %v11898_v23 = vpop.f32.mrb[40].mxu1  ;;  %v15521_v13 = vpop.permute.xlu1 %2603 }
 0x1f7   : > { %v15506_v18 = vmul.f32 %v15437_v51, %v2370_v28   ;;  %v2371_v52 = vadd.f32 %v12555_v33, %v15206_v43  ;;  %v1963_v40 = vpop.f32.mrb[41].mxu1  ;;  %19715 = vst [vmem:[#allocation48_spill] sm:$0xff] %v15521_v13 }
 0x1f8   : > { %2701 = vst.msk [vmem:[#allocation3 + $0x130] sm:$0xff] %vm917_vm3, %v15500_v32  ;;  %v2655_v19 = vmul.f32 %v15491_v63, %v2373_v20   ;;  %v11899_v6 = vpop.f32.mrb[42].mxu1 }
 0x1f9   : > { %2699 = vst.msk [vmem:[#allocation3 + $0x120] sm:$0xff] %vm917_vm3, %v15506_v18  ;;  %v2653_v50 = vmul.f32 %v15467_v37, %v2371_v52   ;;  %v11958_v58 = vpop.f32.mrb[40].mxu0  ;;  %v1966_v11 = vpop.f32.mrb[43].mxu1 }
 0x1fa   : > { %2702 = vst.msk [vmem:[#allocation3 + $0x138] sm:$0xff] %vm917_vm3, %v2655_v19  ;;  %v12556_v22 = vadd.f32 %v11958_v58, %v11898_v23  ;;  %v2251_v33 = vpop.f32.mrb[41].mxu0  ;;  %v15525_v23 = vpop.permute.xlu0 %2598 }
 0x1fb   : > { %2700 = vst.msk [vmem:[#allocation3 + $0x128] sm:$0xff] %vm917_vm3, %v2653_v50  ;;  %v12557_v47 = vadd.f32 %v2251_v33, %v1963_v40  ;;  %v11959_v28 = vpop.f32.mrb[42].mxu0  ;;  %19716 = vst [vmem:[#allocation49_spill] sm:$0xff] %v15525_v23 }
 0x1fc   : > { %v2376_v51 = vadd.f32 %v12556_v22, %v15206_v43  ;;  %v12558_v24 = vadd.f32 %v11959_v28, %v11899_v6  ;;  %v2254_v20 = vpop.f32.mrb[43].mxu0 }
 0x1fd   : > { %v2374_v63 = vadd.f32 %v12557_v47, %v15206_v43  ;;  %v12559_v30 = vadd.f32 %v2254_v20, %v1966_v11 }
 0x1fe   : > { %v2658_v52 = vmul.f32 %v15503_v5, %v2376_v51   ;;  %v2377_v37 = vadd.f32 %v12558_v24, %v15206_v43  ;;  %v11902_v15 = vpop.f32.mrb[48].mxu1 }
 0x1ff   : > { %v2656_v58 = vmul.f32 %v15479_v16, %v2374_v63   ;;  %v2375_v40 = vadd.f32 %v12559_v30, %v15206_v43  ;;  %v1988_v22 = vadd.f32 %v11902_v15, %v15349_v44  ;;  %v1979_v6 = vpop.f32.mrb[49].mxu1 }
 0x200   : > { %2705 = vst.msk [vmem:[#allocation3 + $0x150] sm:$0xff] %vm917_vm3, %v2658_v52  ;;  %v2659_v11 = vmul.f32 %v15525_v23, %v2377_v37   ;;  %v1980_v33 = vadd.f32 %v1979_v6, %v15355_v45  ;;  %v11903_v47 = vpop.f32.mrb[50].mxu1  ;;  %v15539_v6 = vpop.permute.xlu1 %2613 }
 0x201   : > { %2703 = vst.msk [vmem:[#allocation3 + $0x140] sm:$0xff] %vm917_vm3, %v2656_v58  ;;  %v2657_v51 = vmul.f32 %v15509_v54, %v2375_v40   ;;  %v11962_v24 = vpop.f32.mrb[44].mxu0  ;;  %v1982_v28 = vpop.f32.mrb[51].mxu1  ;;  %19717 = vst [vmem:[#allocation50_spill] sm:$0xff] %v15539_v6 }
 0x202   : > { %2706 = vst.msk [vmem:[#allocation3 + $0x158] sm:$0xff] %vm917_vm3, %v2659_v11  ;;  %v2327_v63 = vadd.f32 %v11962_v24, %v1988_v22  ;;  %v2267_v30 = vpop.f32.mrb[45].mxu0  ;;  %v1983_v15 = vadd.f32 %v1982_v28, %v15367_v14  ;;  %v15545_v24 = vpop.permute.xlu0 %2608 }
 0x203   : > { %2704 = vst.msk [vmem:[#allocation3 + $0x148] sm:$0xff] %vm917_vm3, %v2657_v51  ;;  %v2325_v44 = vadd.f32 %v2267_v30, %v1980_v33  ;;  %v11963_v20 = vpop.f32.mrb[46].mxu0  ;;  %19718 = vst [vmem:[#allocation51_spill] sm:$0xff] %v15545_v24 }
 0x204   : > { %v2380_v37 = vadd.f32 %v15206_v43, %v2327_v63  ;;  %v2270_v45 = vpop.f32.mrb[47].mxu0 }
 0x205   : > { %v2378_v47 = vadd.f32 %v15206_v43, %v2325_v44  ;;  %v2326_v40 = vadd.f32 %v2270_v45, %v1983_v15 }
 0x206   : > { %v2662_v54 = vmul.f32 %v15539_v6, %v2380_v37  }
 0x207   : > { %v2660_v23 = vmul.f32 %v15521_v13, %v2378_v47   ;;  %v2379_v22 = vadd.f32 %v15206_v43, %v2326_v40  ;;  %v19719_v43 = vld [vmem:[#allocation32_spill] sm:$0xff] }
 0x208   : > { %2709 = vst.msk [vmem:[#allocation3 + $0x170] sm:$0xff] %vm917_vm3, %v2662_v54 }
 0x209   : > { %2707 = vst.msk [vmem:[#allocation3 + $0x160] sm:$0xff] %vm917_vm3, %v2660_v23  ;;  %v2661_v14 = vmul.f32 %v15545_v24, %v2379_v22  }
 0x20b   : > { %2708 = vst.msk [vmem:[#allocation3 + $0x168] sm:$0xff] %vm917_vm3, %v2661_v14 }
 0x20c LB: >> { %19720 = vst [vmem:[#allocation52_spill] sm:$0xff] %v13740_v54  ;;  %19721 = vst [vmem:[#allocation53_spill] sm:$0xff] %v13744_v14  ;;  %v3043_v33 = vld [vmem:[#allocation2 + $0x4] sm:$0xf]  ;;  %v3044_v28 = vld [vmem:[#allocation2 + $0x8] sm:$0xf]  ;;  %v11283_v63 = vpack.c.bf16 %v13924_v43, %v13924_v43  ;;  %v11284_v30 = vpack.c.bf16 %v13920_v26, %v13920_v26  ;;  %v11285_v15 = vpack.c.bf16 %v13916_v17, %v13916_v17  ;;  %s13928_s11 = sphi %s15683_s11, %s20068_s11   ;;  %v13924_v43 = vphi %v19719_v43, %v20067_v43   ;;  %v13920_v26 = vphi %v15232_v26, %v20066_v26   ;;  %v13916_v17 = vphi %v15215_v17, %v20065_v17   ;;  %v13912_v48 = vphi %v15227_v48, %v20064_v48   ;;  %v13908_v49 = vphi %v15250_v49, %v20063_v49   ;;  %v13904_v7 = vphi %v15261_v7, %v20062_v7   ;;  %v13900_v61 = vphi %v15246_v61, %v20061_v61   ;;  %v13896_v60 = vphi %v15256_v60, %v20060_v60   ;;  %v13892_v53 = vphi %v15282_v53, %v20059_v53   ;;  %v13888_v4 = vphi %v15295_v4, %v20058_v4   ;;  %v13884_v55 = vphi %v15278_v55, %v20057_v55   ;;  %v13880_v25 = vphi %v15290_v25, %v20056_v25   ;;  %v13876_v12 = vphi %v15316_v12, %v20055_v12   ;;  %v13872_v36 = vphi %v15329_v36, %v20054_v36   ;;  %v13868_v31 = vphi %v15312_v31, %v20053_v31   ;;  %v13864_v62 = vphi %v15324_v62, %v20052_v62   ;;  %v13860_v34 = vphi %v15352_v34, %v20051_v34   ;;  %v13856_v56 = vphi %v15365_v56, %v20050_v56   ;;  %v13852_v35 = vphi %v15346_v35, %v20049_v35   ;;  %v13848_v10 = vphi %v15360_v10, %v20048_v10   ;;  %v13844_v59 = vphi %v15388_v59, %v20047_v59   ;;  %v13840_v27 = vphi %v15401_v27, %v20046_v27   ;;  %v13836_v2 = vphi %v15384_v2, %v20045_v2   ;;  %v13832_v1 = vphi %v15396_v1, %v20044_v1   ;;  %v13828_v9 = vphi %v15418_v9, %v20043_v9   ;;  %v13824_v41 = vphi %v15431_v41, %v20042_v41   ;;  %v13820_v42 = vphi %v15414_v42, %v20041_v42   ;;  %v13816_v38 = vphi %v15426_v38, %v20040_v38   ;;  %v13812_v8 = vphi %v15448_v8, %v20039_v8   ;;  %v13808_v29 = vphi %v15459_v29, %v20038_v29   ;;  %v13804_v39 = vphi %v15444_v39, %v20037_v39   ;;  %v13800_v57 = vphi %v15454_v57, %v20036_v57   ;;  %v13796_v21 = vphi %v15476_v21, %v20035_v21   ;;  %v13792_v3 = vphi %v15489_v3, %v20034_v3   ;;  %v13788_v46 = vphi %v15472_v46, %v20033_v46   ;;  %v13784_v0 = vphi %v15484_v0, %v20032_v0   ;;  %v13780_v18 = vphi %v15506_v18, %v20031_v18   ;;  %v13776_v50 = vphi %v2653_v50, %v20030_v50   ;;  %v13772_v32 = vphi %v15500_v32, %v20029_v32   ;;  %v13768_v19 = vphi %v2655_v19, %v20028_v19   ;;  %v13764_v58 = vphi %v2656_v58, %v20027_v58   ;;  %v13760_v51 = vphi %v2657_v51, %v20026_v51   ;;  %v13756_v52 = vphi %v2658_v52, %v20025_v52   ;;  %v13752_v11 = vphi %v2659_v11, %v20023_v11   ;;  %v13748_v23 = vphi %v2660_v23, %v20021_v23   ;;  %v13744_v14 = vphi %v2661_v14, %v20020_v14   ;;  %v13740_v54 = vphi %v2662_v54, %v20019_v54  }
 0x20d   : >> { %19722 = vst [vmem:[#allocation54_spill] sm:$0xff] %v13748_v23  ;;  %19723 = vst [vmem:[#allocation55_spill] sm:$0xff] %v13752_v11  ;;  %v11286_v44 = vpack.c.bf16 %v13912_v48, %v13912_v48  ;;  %v15837_v20 = vcombine.low %v3043_v33, %v3044_v28  ;;  %s10633_s12 = smul.u32 288, %s13928_s11  ;;  %v11287_v37 = vpack.c.bf16 %v13908_v49, %v13908_v49  ;;  %v3045_v28 = vld [vmem:[#allocation2 + $0xc] sm:$0xf]  ;;  %s13933_s18 = smov 64  }
 0x20e   : >> { %19724 = vst [vmem:[#allocation56_spill] sm:$0xff] %v13756_v52  ;;  %19725 = vst [vmem:[#allocation57_spill] sm:$0xff] %v13760_v51  ;;  %v11288_v40 = vpack.c.bf16 %v13904_v7, %v13904_v7  ;;  %v11289_v22 = vpack.c.bf16 %v13900_v61, %v13900_v61  ;;  %s13934_s19 = smov 32   ;;  %s10670_s20 = sshll.u32 %s13928_s11, 1 }
 0x20f   : >> { %19726 = vst [vmem:[#allocation58_spill] sm:$0xff] %v13764_v58  ;;  %19727 = vst [vmem:[#allocation59_spill] sm:$0xff] %v13768_v19  ;;  %v3260_v45 = vshrl.u32 %v15837_v20, 16  ;;  %v3263_v47 = vshll.u32 %v15837_v20, 16  ;;  %s15851_s17 = scalar_lea.vmem %s19303_s1, %s10633_s12  ;;  %s16653_s24 = scalar_lea.vmem %s19304_s2, %s10670_s20 }
 0x210   : >> { %19728 = vst [vmem:[#allocation60_spill] sm:$0xff] %v13772_v32  ;;  %19729 = vst [vmem:[#allocation61_spill] sm:$0xff] %v13776_v50  ;;  %v13379_v33 = vld [vmem:[%s15851_s17 + $0xc0] sm:$0xff]   ;;  %s2715_s25 = sadd.s32 1, %s13928_s11  }
 0x211   : >> { %19730 = vst [vmem:[#allocation62_spill] sm:$0xff] %v13780_v18  ;;  %19731 = vst [vmem:[#allocation63_spill] sm:$0xff] %v13784_v0  ;;  %11964 = vmatprep.subr.bf16.mxu0 %v13379_v33  ;;  %p17849_p4 = scmp.ge.s32.totalorder %s2715_s25, 3   ;;  %s20068_s11 = smov %s2715_s25 }
 0x212   : >> { %19732 = vst [vmem:[#allocation64_spill] sm:$0xff] %v13788_v46  ;;  %19733 = vst [vmem:[#allocation65_spill] sm:$0xff] %v13792_v3  ;;  %11965 = vmatpush3.bf16.msra.mxu0 %v13379_v33 }
 0x213   : >> { %19734 = vst [vmem:[#allocation66_spill] sm:$0xff] %v13796_v21  ;;  %19735 = vst [vmem:[#allocation67_spill] sm:$0xff] %v13800_v57 }
 0x214   : >> { %19736 = vst [vmem:[#allocation68_spill] sm:$0xff] %v13804_v39  ;;  %19737 = vst [vmem:[#allocation69_spill] sm:$0xff] %v13808_v29 }
 0x215   : >> { %19738 = vst [vmem:[#allocation70_spill] sm:$0xff] %v13812_v8  ;;  %19739 = vst [vmem:[#allocation71_spill] sm:$0xff] %v13816_v38 }
 0x216   : >> { %19740 = vst [vmem:[#allocation72_spill] sm:$0xff] %v13820_v42  ;;  %19741 = vst [vmem:[#allocation73_spill] sm:$0xff] %v13824_v41 }
 0x217   : >> { %19742 = vst [vmem:[#allocation74_spill] sm:$0xff] %v13828_v9  ;;  %19743 = vst [vmem:[#allocation75_spill] sm:$0xff] %v13832_v1 }
 0x218   : >> { %19744 = vst [vmem:[#allocation76_spill] sm:$0xff] %v13836_v2  ;;  %19745 = vst [vmem:[#allocation77_spill] sm:$0xff] %v13840_v27 }
 0x219   : >> { %19746 = vst [vmem:[#allocation78_spill] sm:$0xff] %v13844_v59  ;;  %19747 = vst [vmem:[#allocation79_spill] sm:$0xff] %v13848_v10 }
 0x21a   : >> { %19748 = vst [vmem:[#allocation80_spill] sm:$0xff] %v13852_v35  ;;  %19749 = vst [vmem:[#allocation81_spill] sm:$0xff] %v13856_v56 }
 0x21b   : >> { %19750 = vst [vmem:[#allocation82_spill] sm:$0xff] %v13860_v34  ;;  %19751 = vst [vmem:[#allocation83_spill] sm:$0xff] %v13864_v62 }
 0x21c   : >> { %19752 = vst [vmem:[#allocation84_spill] sm:$0xff] %v13868_v31  ;;  %19753 = vst [vmem:[#allocation85_spill] sm:$0xff] %v13872_v36 }
 0x21d   : >> { %19754 = vst [vmem:[#allocation86_spill] sm:$0xff] %v13876_v12  ;;  %19755 = vst [vmem:[#allocation87_spill] sm:$0xff] %v13880_v25 }
 0x21e   : >> { %19756 = vst [vmem:[#allocation88_spill] sm:$0xff] %v13884_v55  ;;  %19757 = vst [vmem:[#allocation89_spill] sm:$0xff] %v13888_v4 }
 0x21f   : >> { %19758 = vst [vmem:[#allocation90_spill] sm:$0xff] %v13892_v53  ;;  %19759 = vst [vmem:[#allocation91_spill] sm:$0xff] %v13896_v60 }
 0x220   : >> { %19760 = vst [vmem:[#allocation92_spill] sm:$0xff] %v13900_v61  ;;  %19761 = vst [vmem:[#allocation93_spill] sm:$0xff] %v13904_v7  ;;  %v3265_v7 = vrot.slane %v3263_v47, 5  ;;  %v11295_v47 = vpack.c.bf16 %v13876_v12, %v13876_v12 }
 0x221   : >> { %19762 = vst [vmem:[#allocation94_spill] sm:$0xff] %v13908_v49  ;;  %19763 = vst [vmem:[#allocation95_spill] sm:$0xff] %v13912_v48  ;;  %v13381_v49 = vld [vmem:[%s15851_s17 + $0xd0] sm:$0xff]  }
 0x222   : >> { %19764 = vst [vmem:[#allocation96_spill] sm:$0xff] %v13916_v17  ;;  %19765 = vst [vmem:[#allocation97_spill] sm:$0xff] %v13920_v26 }
 0x223   : >> { %19766 = vst [vmem:[#allocation98_spill] sm:$0xff] %v13924_v43  ;;  %2952 = vst.msk [vmem:[#allocation2 + $0x10] sm:$0xf] %vm199_vm2, %v11283_v63 }
 0x224   : >> { %2953 = vst.msk [vmem:[#allocation2 + $0x14] sm:$0xf] %vm199_vm2, %v11284_v30  ;;  %2954 = vst.msk [vmem:[#allocation2 + $0x18] sm:$0xf] %vm199_vm2, %v11285_v15  ;;  %v3262_v30 = vrot.slane %v3260_v45, 4  ;;  %v11291_v15 = vpack.c.bf16 %v13892_v53, %v13892_v53  ;;  %v11292_v45 = vpack.c.bf16 %v13888_v4, %v13888_v4 }
 0x225   : >> { %2955 = vst.msk [vmem:[#allocation2 + $0x1c] sm:$0xf] %vm199_vm2, %v11286_v44  ;;  %2956 = vst.msk [vmem:[#allocation2 + $0x20] sm:$0xf] %vm199_vm2, %v11287_v37  ;;  %v11290_v44 = vpack.c.bf16 %v13896_v60, %v13896_v60  ;;  %v13380_v37 = vld [vmem:[%s15851_s17 + $0xc8] sm:$0xff]   ;;  %v11294_v60 = vpack.c.bf16 %v13880_v25, %v13880_v25  ;;  %v11296_v25 = vpack.c.bf16 %v13872_v36, %v13872_v36 }
 0x226   : >> { %2957 = vst.msk [vmem:[#allocation2 + $0x24] sm:$0xf] %vm199_vm2, %v11288_v40  ;;  %2958 = vst.msk [vmem:[#allocation2 + $0x28] sm:$0xf] %vm199_vm2, %v11289_v22  ;;  %v11293_v40 = vpack.c.bf16 %v13884_v55, %v13884_v55  ;;  %11966 = vmatprep.subr.bf16.mxu0 %v13380_v37  ;;  %v15880_v55 = vor.u32 %v3265_v7, %v3262_v30 }
 0x227   : >> { %2960 = vst.msk [vmem:[#allocation2 + $0x30] sm:$0xf] %vm199_vm2, %v11291_v15  ;;  %2959 = vst.msk [vmem:[#allocation2 + $0x2c] sm:$0xf] %vm199_vm2, %v11290_v44  ;;  %11967 = vmatpush3.bf16.msra.mxu0 %v13380_v37  ;;  %v19767_v37 = vrot.slane %v15837_v20, 5 }
 0x228   : >> { %2961 = vst.msk [vmem:[#allocation2 + $0x34] sm:$0xf] %vm199_vm2, %v11292_v45  ;;  %2962 = vst.msk [vmem:[#allocation2 + $0x38] sm:$0xf] %vm199_vm2, %v11293_v40  ;;  %11968 = vmatprep.subr.bf16.mxu0 %v13381_v49  ;;  %v13382_v40 = vld [vmem:[%s15851_s17 + $0xd8] sm:$0xff]  }
 0x229   : >> { %2963 = vst.msk [vmem:[#allocation2 + $0x3c] sm:$0xf] %vm199_vm2, %v11294_v60  ;;  %2964 = vst.msk [vmem:[#allocation2 + $0x40] sm:$0xf] %vm199_vm2, %v11295_v47 }
 0x22a   : >> { %v3046_v22 = vld [vmem:[#allocation2 + $0x10] sm:$0xf]  ;;  %2965 = vst.msk [vmem:[#allocation2 + $0x44] sm:$0xf] %vm199_vm2, %v11296_v25 }
 0x22b   : >> { %v3047_v63 = vld [vmem:[#allocation2 + $0x14] sm:$0xf]  ;;  %v3048_v53 = vld [vmem:[#allocation2 + $0x18] sm:$0xf]  ;;  %v10700_v33 = vcombine.low %v3045_v28, %v3046_v22  ;;  %v11297_v28 = vpack.c.bf16 %v13868_v31, %v13868_v31  ;;  %11969 = vmatpush3.bf16.msra.mxu0 %v13381_v49 }
 0x22c   : >> { %v10701_v15 = vcombine.low %v3047_v63, %v3048_v53  ;;  %v3049_v44 = vld [vmem:[#allocation2 + $0x1c] sm:$0xf]  ;;  %v3050_v4 = vld [vmem:[#allocation2 + $0x20] sm:$0xf]  ;;  %11970 = vmatprep.subr.bf16.mxu0 %v13382_v40 }
 0x22d   : >> { %v3559_v53 = vrot.slane %v10700_v33, 5  ;;  %v15888_v22 = vcombine.low %v3049_v44, %v3050_v4  ;;  %v3268_v45 = vshrl.u32 %v10700_v33, 16  ;;  %v3271_v7 = vshll.u32 %v10700_v33, 16  ;;  %v3051_v60 = vld [vmem:[#allocation2 + $0x24] sm:$0xf] }
 0x22e   : >> { %v3561_v63 = vrot.slane %v10701_v15, 5  ;;  %v3277_v30 = vshrl.u32 %v10701_v15, 16  ;;  %v3280_v12 = vshll.u32 %v10701_v15, 16  ;;  %2966 = vst.msk [vmem:[#allocation2 + $0x48] sm:$0xf] %vm199_vm2, %v11297_v28 }
 0x22f   : >> { %v3563_v36 = vrot.slane %v15888_v22, 5  ;;  %v3560_v4 = vsel %vm809_vm0, %v19767_v37, %v3559_v53  ;;  %v3270_v44 = vrot.slane %v3268_v45, 4  ;;  %v3052_v31 = vld [vmem:[#allocation2 + $0x28] sm:$0xf]  ;;  %v3054_v61 = vld [vmem:[#allocation2 + $0x30] sm:$0xf]  ;;  %11971 = vmatpush3.bf16.msra.mxu0 %v13382_v40 }
 0x230   : >> { %v3562_v47 = vsel %vm809_vm0, %v3559_v53, %v3561_v63  ;;  %v3273_v33 = vrot.slane %v3271_v7, 5  ;;  %v3279_v15 = vrot.slane %v3277_v30, 4  ;;  %v3282_v25 = vrot.slane %v3280_v12, 5  ;;  %v3053_v26 = vld [vmem:[#allocation2 + $0x2c] sm:$0xf]  ;;  %v13383_v45 = vld [vmem:[%s15851_s17 + $0xe0] sm:$0xff]  }
 0x231   : >> { %3615 = vrot.lane.b32.xlu1 %v3562_v47, %s13933_s18  ;;  %v3286_v28 = vshrl.u32 %v15888_v22, 16  ;;  %v3564_v48 = vsel %vm809_vm0, %v3561_v63, %v3563_v36  ;;  %v3289_v43 = vshll.u32 %v15888_v22, 16  ;;  %v10703_v17 = vcombine.low %v3051_v60, %v3052_v31  ;;  %v3055_v30 = vld [vmem:[#allocation2 + $0x34] sm:$0xf]  ;;  %v3056_v12 = vld [vmem:[#allocation2 + $0x38] sm:$0xf]  ;;  %11972 = vmatprep.subr.bf16.mxu0 %v13383_v45 }
 0x232   : >> { %v15902_v53 = vcombine.low %v3053_v26, %v3054_v61  ;;  %3617 = vrot.lane.b32.xlu0 %v3564_v48, %s13933_s18  ;;  %v3274_v37 = vor.u32 %v3273_v33, %v3270_v44  ;;  %v3283_v47 = vor.u32 %v3282_v25, %v3279_v15  ;;  %v3057_v63 = vld [vmem:[#allocation2 + $0x3c] sm:$0xf]  ;;  %v3058_v22 = vld [vmem:[#allocation2 + $0x40] sm:$0xf]  ;;  %v3059_v15 = vld [vmem:[#allocation2 + $0x44] sm:$0xf]  ;;  %v10705_v16 = vcombine.low %v3055_v30, %v3056_v12 }
 0x233   : >> { %v3288_v7 = vrot.slane %v3286_v28, 4  ;;  %v3291_v24 = vrot.slane %v3289_v43, 5  ;;  %v3295_v13 = vshrl.u32 %v10703_v17, 16  ;;  %v3298_v6 = vshll.u32 %v10703_v17, 16  ;;  %v13384_v25 = vld [vmem:[%s15851_s17 + $0xe8] sm:$0xff]   ;;  %11973 = vmatpush3.bf16.msra.mxu0 %v13383_v45 }
 0x234   : >> { %v3304_v49 = vshrl.u32 %v15902_v53, 16  ;;  %v3284_v26 = vsel %vm509_vm1, %v3274_v37, %v3283_v47  ;;  %v3275_v61 = vsel %vm509_vm1, %v15880_v55, %v3274_v37  ;;  %v3307_v48 = vshll.u32 %v15902_v53, 16  ;;  %11974 = vmatprep.subr.bf16.mxu0 %v13384_v25 }
 0x235   : >> { %3613 = vrot.lane.b32.xlu1 %v3560_v4, %s13933_s18  ;;  %v3565_v31 = vrot.slane %v10703_v17, 5  ;;  %v3292_v60 = vor.u32 %v3291_v24, %v3288_v7  ;;  %v3297_v43 = vrot.slane %v3295_v13, 4  ;;  %v3300_v44 = vrot.slane %v3298_v6, 5  ;;  %v3060_v37 = vld [vmem:[#allocation2 + $0x48] sm:$0xf] }
 0x236   : >> { %v3306_v33 = vrot.slane %v3304_v49, 4  ;;  %3505 = vrot.lane.b32.xlu0 %v3284_v26, %s13934_s19  ;;  %v3309_v4 = vrot.slane %v3307_v48, 5  ;;  %v3567_v28 = vrot.slane %v15902_v53, 5  ;;  %v10706_v40 = vcombine.low %v3057_v63, %v3058_v22  ;;  %v15922_v48 = vld [vmem:[%s15851_s17 + $0x90] sm:$0xff]  }
 0x237   : >> { %v3293_v17 = vsel %vm509_vm1, %v3283_v47, %v3292_v60  ;;  %v3301_v5 = vor.u32 %v3300_v44, %v3297_v43  ;;  %v15916_v24 = vcombine.low %v3059_v15, %v3060_v37  ;;  %v3566_v6 = vsel %vm809_vm0, %v3563_v36, %v3565_v31  ;;  %11975 = vmatpush3.bf16.msra.mxu0 %v13384_v25 }
 0x238   : >> { %v3310_v13 = vor.u32 %v3309_v4, %v3306_v33  ;;  %v3313_v7 = vshrl.u32 %v10705_v16, 16  ;;  %v3316_v49 = vshll.u32 %v10705_v16, 16  ;;  %v3568_v26 = vsel %vm809_vm0, %v3565_v31, %v3567_v28  ;;  %12024 = vmatprep.subr.bf16.mxu0 %v15922_v48 }
 0x239   : >> { %3503 = vrot.lane.b32.xlu1 %v3275_v61, %s13934_s19  ;;  %v3322_v53 = vshrl.u32 %v10706_v40, 16  ;;  %v3325_v30 = vshll.u32 %v10706_v40, 16  ;;  %v3569_v12 = vrot.slane %v10705_v16, 5  ;;  %v3571_v22 = vrot.slane %v10706_v40, 5 }
 0x23a   : >> { %3507 = vrot.lane.b32.xlu0 %v3293_v17, %s13934_s19  ;;  %v3311_v47 = vsel %vm509_vm1, %v3301_v5, %v3310_v13  ;;  %v3315_v63 = vrot.slane %v3313_v7, 4  ;;  %v3318_v61 = vrot.slane %v3316_v49, 5  ;;  %v3302_v36 = vsel %vm509_vm1, %v3292_v60, %v3301_v5 }
 0x23b   : >> { %v3324_v43 = vrot.slane %v3322_v53, 4  ;;  %v3327_v44 = vrot.slane %v3325_v30, 5  ;;  %v3331_v45 = vshrl.u32 %v15916_v24, 16  ;;  %v3570_v16 = vsel %vm809_vm0, %v3567_v28, %v3569_v12 }
 0x23c   : >> { %v3319_v31 = vor.u32 %v3318_v61, %v3315_v63  ;;  %v3334_v33 = vshll.u32 %v15916_v24, 16  ;;  %v11298_v15 = vpack.c.bf16 %v13864_v62, %v13864_v62  ;;  %v3572_v37 = vsel %vm809_vm0, %v3569_v12, %v3571_v22 }
 0x23d   : >> { %3511 = vrot.lane.b32.xlu1 %v3311_v47, %s13934_s19  ;;  %v3328_v4 = vor.u32 %v3327_v44, %v3324_v43  ;;  %v11299_v5 = vpack.c.bf16 %v13860_v34, %v13860_v34  ;;  %v3573_v60 = vrot.slane %v15916_v24, 5  ;;  %v3333_v17 = vrot.slane %v3331_v45, 4 }
 0x23e   : >> { %3509 = vrot.lane.b32.xlu0 %v3302_v36, %s13934_s19  ;;  %v3336_v28 = vrot.slane %v3334_v33, 5  ;;  %2967 = vst.msk [vmem:[#allocation2 + $0x4c] sm:$0xf] %vm199_vm2, %v11298_v15  ;;  %v3320_v40 = vsel %vm509_vm1, %v3310_v13, %v3319_v31  ;;  %v11300_v49 = vpack.c.bf16 %v13856_v56, %v13856_v56  ;;  %v11301_v53 = vpack.c.bf16 %v13852_v35, %v13852_v35 }
 0x23f   : >> { %v3329_v25 = vsel %vm509_vm1, %v3319_v31, %v3328_v4  ;;  %2968 = vst.msk [vmem:[#allocation2 + $0x50] sm:$0xf] %vm199_vm2, %v11299_v5  ;;  %v15947_v7 = vsel %vm809_vm0, %v3571_v22, %v3573_v60  ;;  %v11302_v30 = vpack.c.bf16 %v13848_v10, %v13848_v10  ;;  %v11304_v12 = vpack.c.bf16 %v13840_v27, %v13840_v27 }
 0x240   : >> { %v3337_v13 = vor.u32 %v3336_v28, %v3333_v17  ;;  %2969 = vst.msk [vmem:[#allocation2 + $0x54] sm:$0xf] %vm199_vm2, %v11300_v49  ;;  %2970 = vst.msk [vmem:[#allocation2 + $0x58] sm:$0xf] %vm199_vm2, %v11301_v53  ;;  %v11307_v63 = vpack.c.bf16 %v13828_v9, %v13828_v9  ;;  %v11306_v22 = vpack.c.bf16 %v13832_v1, %v13832_v1 }
 0x241   : >> { %3621 = vrot.lane.b32.xlu1 %v3568_v26, %s13933_s18  ;;  %v11303_v26 = vpack.c.bf16 %v13844_v59, %v13844_v59  ;;  %2971 = vst.msk [vmem:[#allocation2 + $0x5c] sm:$0xf] %vm199_vm2, %v11302_v30  ;;  %2973 = vst.msk [vmem:[#allocation2 + $0x64] sm:$0xf] %vm199_vm2, %v11304_v12  ;;  %v11309_v36 = vpack.c.bf16 %v13820_v42, %v13820_v42  ;;  %v11308_v44 = vpack.c.bf16 %v13824_v41, %v13824_v41 }
 0x242   : >> { %3619 = vrot.lane.b32.xlu0 %v3566_v6, %s13933_s18  ;;  %v11305_v6 = vpack.c.bf16 %v13836_v2, %v13836_v2  ;;  %2976 = vst.msk [vmem:[#allocation2 + $0x70] sm:$0xf] %vm199_vm2, %v11307_v63  ;;  %2975 = vst.msk [vmem:[#allocation2 + $0x6c] sm:$0xf] %vm199_vm2, %v11306_v22  ;;  %v11311_v45 = vpack.c.bf16 %v13812_v8, %v13812_v8  ;;  %v3338_v28 = vsel %vm509_vm1, %v3328_v4, %v3337_v13 }
 0x243   : >> { %2972 = vst.msk [vmem:[#allocation2 + $0x60] sm:$0xf] %vm199_vm2, %v11303_v26  ;;  %2978 = vst.msk [vmem:[#allocation2 + $0x78] sm:$0xf] %vm199_vm2, %v11309_v36  ;;  %v11313_v4 = vpack.c.bf16 %v13804_v39, %v13804_v39 }
 0x244   : >> { %2974 = vst.msk [vmem:[#allocation2 + $0x68] sm:$0xf] %vm199_vm2, %v11305_v6  ;;  %2977 = vst.msk [vmem:[#allocation2 + $0x74] sm:$0xf] %vm199_vm2, %v11308_v44 }
 0x245   : >> { %3515 = vrot.lane.b32.xlu1 %v3329_v25, %s13934_s19  ;;  %v15966_v47 = vld [vmem:[#allocation2 + $0x4c] sm:$0xf]  ;;  %2980 = vst.msk [vmem:[#allocation2 + $0x80] sm:$0xf] %vm199_vm2, %v11311_v45  ;;  %2982 = vst.msk [vmem:[#allocation2 + $0x88] sm:$0xf] %vm199_vm2, %v11313_v4 }
 0x246   : >> { %3513 = vrot.lane.b32.xlu0 %v3320_v40, %s13934_s19  ;;  %v15973_v61 = vld [vmem:[#allocation2 + $0x50] sm:$0xf] }
 0x247   : >> { %v15982_v43 = vcombine.low %v15966_v47, %v15973_v61  ;;  %v15995_v5 = vld [vmem:[#allocation2 + $0x54] sm:$0xf]  ;;  %v16001_v17 = vld [vmem:[#allocation2 + $0x58] sm:$0xf] }
 0x248   : >> { %v16007_v49 = vcombine.low %v15995_v5, %v16001_v17  ;;  %v16012_v26 = vld [vmem:[#allocation2 + $0x5c] sm:$0xf]  ;;  %v16014_v30 = vld [vmem:[#allocation2 + $0x64] sm:$0xf] }
 0x249   : >> { %3625 = vrot.lane.b32.xlu1 %v3572_v37, %s13933_s18  ;;  %v3340_v31 = vshrl.u32 %v15982_v43, 16  ;;  %v3343_v33 = vshll.u32 %v15982_v43, 16  ;;  %v19469_v15 = vrot.slane %v15982_v43, 5  ;;  %v11310_v37 = vpack.c.bf16 %v13816_v38, %v13816_v38 }
 0x24a   : >> { %3623 = vrot.lane.b32.xlu0 %v3570_v16, %s13933_s18  ;;  %v16009_v53 = vld [vmem:[#allocation2 + $0x60] sm:$0xf]  ;;  %v11312_v16 = vpack.c.bf16 %v13808_v29, %v13808_v29  ;;  %v3349_v6 = vshrl.u32 %v16007_v49, 16  ;;  %v3352_v63 = vshll.u32 %v16007_v49, 16  ;;  %v3577_v4 = vrot.slane %v16007_v49, 5 }
 0x24b   : >> { %v3342_v40 = vrot.slane %v3340_v31, 4  ;;  %v3345_v25 = vrot.slane %v3343_v33, 5  ;;  %2979 = vst.msk [vmem:[#allocation2 + $0x7c] sm:$0xf] %vm199_vm2, %v11310_v37  ;;  %v16024_v22 = vcombine.low %v16012_v26, %v16009_v53  ;;  %v16026_v36 = vld [vmem:[#allocation2 + $0x68] sm:$0xf]  ;;  %v3576_v44 = vsel %vm809_vm0, %v3573_v60, %v19469_v15 }
 0x24c   : >> { %v16036_v45 = vcombine.low %v16014_v30, %v16026_v36  ;;  %v16038_v31 = vld [vmem:[#allocation2 + $0x70] sm:$0xf]  ;;  %2981 = vst.msk [vmem:[#allocation2 + $0x84] sm:$0xf] %vm199_vm2, %v11312_v16  ;;  %v11314_v33 = vpack.c.bf16 %v13800_v57, %v13800_v57  ;;  %v11315_v37 = vpack.c.bf16 %v13796_v21, %v13796_v21  ;;  %v3354_v60 = vrot.slane %v3352_v63, 5 }
 0x24d   : >> { %v3346_v12 = vor.u32 %v3345_v25, %v3342_v40  ;;  %v3358_v40 = vshrl.u32 %v16024_v22, 16  ;;  %v16048_v25 = vld [vmem:[#allocation2 + $0x6c] sm:$0xf]  ;;  %v3361_v16 = vshll.u32 %v16024_v22, 16  ;;  %v3579_v15 = vrot.slane %v16024_v22, 5 }
 0x24e   : >> { %3517 = vrot.lane.b32.xlu0 %v3338_v28, %s13934_s19  ;;  %v3351_v28 = vrot.slane %v3349_v6, 4  ;;  %v3367_v29 = vshrl.u32 %v16036_v45, 16  ;;  %2983 = vst.msk [vmem:[#allocation2 + $0x8c] sm:$0xf] %vm199_vm2, %v11314_v33  ;;  %2984 = vst.msk [vmem:[#allocation2 + $0x90] sm:$0xf] %vm199_vm2, %v11315_v37  ;;  %v10712_v21 = vcombine.low %v16048_v25, %v16038_v31 }
 0x24f   : >> { %v3347_v24 = vsel %vm509_vm1, %v3337_v13, %v3346_v12  ;;  %v3360_v6 = vrot.slane %v3358_v40, 4  ;;  %v3370_v63 = vshll.u32 %v16036_v45, 16  ;;  %v16062_v57 = vld [vmem:[#allocation2 + $0x78] sm:$0xf]  ;;  %v3363_v49 = vrot.slane %v3361_v16, 5 }
 0x250   : >> { %3519 = vrot.lane.b32.xlu1 %v3347_v24, %s13934_s19  ;;  %v3355_v13 = vor.u32 %v3354_v60, %v3351_v28  ;;  %v16060_v24 = vld [vmem:[#allocation2 + $0x74] sm:$0xf]  ;;  %v3369_v22 = vrot.slane %v3367_v29, 4  ;;  %v16068_v33 = vld [vmem:[#allocation2 + $0x80] sm:$0xf]  ;;  %v3376_v60 = vshrl.u32 %v10712_v21, 16 }
 0x251   : >> { %v3372_v28 = vrot.slane %v3370_v63, 5  ;;  %v3379_v40 = vshll.u32 %v10712_v21, 16  ;;  %v3364_v39 = vor.u32 %v3363_v49, %v3360_v6  ;;  %v3581_v41 = vrot.slane %v16036_v45, 5 }
 0x252   : >> { %3627 = vrot.lane.b32.xlu0 %v15947_v7, %s13933_s18  ;;  %v16066_v8 = vld [vmem:[#allocation2 + $0x7c] sm:$0xf]  ;;  %v3356_v37 = vsel %vm509_vm1, %v3346_v12, %v3355_v13  ;;  %v16075_v38 = vcombine.low %v16060_v24, %v16062_v57  ;;  %v3378_v7 = vrot.slane %v3376_v60, 4  ;;  %v16083_v12 = vld [vmem:[#allocation2 + $0x88] sm:$0xf]  ;;  %v19768_v45 = vrot.slane %v15982_v43, 5 }
 0x253   : >> { %v3381_v29 = vrot.slane %v3379_v40, 5  ;;  %v16079_v16 = vcombine.low %v16066_v8, %v16068_v33  ;;  %v16081_v9 = vld [vmem:[#allocation2 + $0x84] sm:$0xf]  ;;  %v3580_v60 = vsel %vm809_vm0, %v3577_v4, %v3579_v15  ;;  %v3373_v40 = vor.u32 %v3372_v28, %v3369_v22 }
 0x254   : >> { %3629 = vrot.lane.b32.xlu1 %v3576_v44, %s13933_s18  ;;  %v3365_v44 = vsel %vm509_vm1, %v3355_v13, %v3364_v39  ;;  %v3578_v6 = vsel %vm809_vm0, %v19768_v45, %v3577_v4  ;;  %v3385_v63 = vshrl.u32 %v16075_v38, 16  ;;  %v3388_v49 = vshll.u32 %v16075_v38, 16 }
 0x255   : >> { %v3394_v42 = vshrl.u32 %v16079_v16, 16  ;;  %v3397_v27 = vshll.u32 %v16079_v16, 16  ;;  %v16095_v1 = vld [vmem:[#allocation2 + $0x8c] sm:$0xf]  ;;  %v3382_v43 = vor.u32 %v3381_v29, %v3378_v7  ;;  %v3583_v13 = vrot.slane %v10712_v21, 5 }
 0x256   : >> { %3521 = vrot.lane.b32.xlu0 %v3356_v37, %s13934_s19  ;;  %v16097_v37 = vld [vmem:[#allocation2 + $0x90] sm:$0xf]  ;;  %v3387_v45 = vrot.slane %v3385_v63, 4  ;;  %v3390_v59 = vrot.slane %v3388_v49, 5  ;;  %v3585_v10 = vrot.slane %v16075_v38, 5  ;;  %v16103_v4 = vcombine.low %v16081_v9, %v16083_v12 }
 0x257   : >> { %v3396_v2 = vrot.slane %v3394_v42, 4  ;;  %v3399_v56 = vrot.slane %v3397_v27, 5  ;;  %v16108_v28 = vcombine.low %v16095_v1, %v16097_v37  ;;  %v3374_v7 = vsel %vm509_vm1, %v3364_v39, %v3373_v40 }
 0x258   : >> { %3523 = vrot.lane.b32.xlu1 %v3365_v44, %s13934_s19  ;;  %v3391_v22 = vor.u32 %v3390_v59, %v3387_v45  ;;  %v3403_v29 = vshrl.u32 %v16103_v4, 16  ;;  %v3406_v42 = vshll.u32 %v16103_v4, 16  ;;  %v3582_v27 = vsel %vm809_vm0, %v3579_v15, %v3581_v41 }
 0x259   : >> { %v3400_v21 = vor.u32 %v3399_v56, %v3396_v2  ;;  %v3584_v38 = vsel %vm809_vm0, %v3581_v41, %v3583_v13  ;;  %v3412_v44 = vshrl.u32 %v16108_v28, 16  ;;  %v3383_v59 = vsel %vm509_vm1, %v3373_v40, %v3382_v43 }
 0x25a   : >> { %3631 = vrot.lane.b32.xlu0 %v3578_v6, %s13933_s18  ;;  %v3586_v6 = vsel %vm809_vm0, %v3583_v13, %v3585_v10  ;;  %v3587_v63 = vrot.slane %v16079_v16, 5  ;;  %v3415_v39 = vshll.u32 %v16108_v28, 16  ;;  %v3392_v56 = vsel %vm509_vm1, %v3382_v43, %v3391_v22 }
 0x25b   : >> { %v3405_v2 = vrot.slane %v3403_v29, 4  ;;  %v3408_v49 = vrot.slane %v3406_v42, 5  ;;  %v3401_v15 = vsel %vm509_vm1, %v3391_v22, %v3400_v21  ;;  %v3414_v41 = vrot.slane %v3412_v44, 4 }
 0x25c   : >> { %3633 = vrot.lane.b32.xlu1 %v3580_v60, %s13933_s18  ;;  %v11317_v60 = vpack.c.bf16 %v13788_v46, %v13788_v46  ;;  %v3417_v40 = vrot.slane %v3415_v39, 5  ;;  %v11316_v13 = vpack.c.bf16 %v13792_v3, %v13792_v3  ;;  %v11318_v43 = vpack.c.bf16 %v13784_v0, %v13784_v0 }
 0x25d   : >> { %v3409_v45 = vor.u32 %v3408_v49, %v3405_v2  ;;  %v11319_v22 = vpack.c.bf16 %v13780_v18, %v13780_v18  ;;  %v11320_v29 = vpack.c.bf16 %v13776_v50, %v13776_v50  ;;  %v11322_v42 = vpack.c.bf16 %v13768_v19, %v13768_v19 }
 0x25e   : >> { %3525 = vrot.lane.b32.xlu0 %v3374_v7, %s13934_s19  ;;  %2986 = vst.msk [vmem:[#allocation2 + $0x98] sm:$0xf] %vm199_vm2, %v11317_v60  ;;  %2985 = vst.msk [vmem:[#allocation2 + $0x94] sm:$0xf] %vm199_vm2, %v11316_v13  ;;  %v11321_v7 = vpack.c.bf16 %v13772_v32, %v13772_v32  ;;  %v11324_v44 = vpack.c.bf16 %v13760_v51, %v13760_v51  ;;  %v11327_v39 = vpack.c.bf16 %v13748_v23, %v13748_v23  ;;  %v16251_v32 = vld [vmem:[#allocation2 + $0xcc] sm:$0xf] }
 0x25f   : >> { %2987 = vst.msk [vmem:[#allocation2 + $0x9c] sm:$0xf] %vm199_vm2, %v11318_v43  ;;  %2988 = vst.msk [vmem:[#allocation2 + $0xa0] sm:$0xf] %vm199_vm2, %v11319_v22  ;;  %v3418_v2 = vor.u32 %v3417_v40, %v3414_v41  ;;  %v11329_v60 = vpack.c.bf16 %v13740_v54, %v13740_v54  ;;  %v3589_v41 = vrot.slane %v16103_v4, 5  ;;  %v11328_v43 = vpack.c.bf16 %v13744_v14, %v13744_v14 }
 0x260   : >> { %3527 = vrot.lane.b32.xlu1 %v3383_v59, %s13934_s19  ;;  %2990 = vst.msk [vmem:[#allocation2 + $0xa8] sm:$0xf] %vm199_vm2, %v11321_v7  ;;  %2989 = vst.msk [vmem:[#allocation2 + $0xa4] sm:$0xf] %vm199_vm2, %v11320_v29  ;;  %v11326_v59 = vpack.c.bf16 %v13752_v11, %v13752_v11 }
 0x261   : >> { %2991 = vst.msk [vmem:[#allocation2 + $0xac] sm:$0xf] %vm199_vm2, %v11322_v42  ;;  %2993 = vst.msk [vmem:[#allocation2 + $0xb4] sm:$0xf] %vm199_vm2, %v11324_v44  ;;  %v3419_v4 = vsel %vm509_vm1, %v3409_v45, %v3418_v2 }
 0x262   : >> { %3635 = vrot.lane.b32.xlu0 %v3582_v27, %s13933_s18  ;;  %v11323_v27 = vpack.c.bf16 %v13764_v58, %v13764_v58  ;;  %2995 = vst.msk [vmem:[#allocation2 + $0xbc] sm:$0xf] %vm199_vm2, %v11326_v59  ;;  %2996 = vst.msk [vmem:[#allocation2 + $0xc0] sm:$0xf] %vm199_vm2, %v11327_v39 }
 0x263   : >> { %2998 = vst.msk [vmem:[#allocation2 + $0xc8] sm:$0xf] %vm199_vm2, %v11329_v60  ;;  %2997 = vst.msk [vmem:[#allocation2 + $0xc4] sm:$0xf] %vm199_vm2, %v11328_v43 }
 0x264   : >> { %3637 = vrot.lane.b32.xlu1 %v3584_v38, %s13933_s18  ;;  %2992 = vst.msk [vmem:[#allocation2 + $0xb0] sm:$0xf] %vm199_vm2, %v11323_v27  ;;  %v11325_v38 = vpack.c.bf16 %v13756_v52, %v13756_v52 }
 0x265   : >> { %v16164_v49 = vld [vmem:[#allocation2 + $0x98] sm:$0xf] }
 0x266   : >> { %3529 = vrot.lane.b32.xlu0 %v3392_v56, %s13934_s19  ;;  %v3588_v56 = vsel %vm809_vm0, %v3585_v10, %v3587_v63  ;;  %2994 = vst.msk [vmem:[#allocation2 + $0xb8] sm:$0xf] %vm199_vm2, %v11325_v38  ;;  %v3410_v10 = vsel %vm509_vm1, %v3400_v21, %v3409_v45  ;;  %v16179_v13 = vld [vmem:[#allocation2 + $0x9c] sm:$0xf]  ;;  %v3591_v21 = vrot.slane %v16108_v28, 5  ;;  %v3590_v45 = vsel %vm809_vm0, %v3587_v63, %v3589_v41 }
 0x267   : >> { %v16193_v42 = vld [vmem:[#allocation2 + $0xa8] sm:$0xf]  ;;  %v16199_v44 = vld [vmem:[#allocation2 + $0xa4] sm:$0xf] }
 0x268   : >> { %3531 = vrot.lane.b32.xlu1 %v3401_v15, %s13934_s19  ;;  %v16168_v15 = vld [vmem:[#allocation2 + $0x94] sm:$0xf]  ;;  %v16206_v39 = vcombine.low %v16199_v44, %v16193_v42  ;;  %v3592_v16 = vsel %vm809_vm0, %v3589_v41, %v3591_v21 }
 0x269   : >> { %v10717_v40 = vcombine.low %v16168_v15, %v16164_v49  ;;  %v16227_v51 = vld [vmem:[#allocation2 + $0xbc] sm:$0xf]  ;;  %v16230_v58 = vld [vmem:[#allocation2 + $0xc0] sm:$0xf] }
 0x26a   : >> { %3639 = vrot.lane.b32.xlu0 %v3586_v6, %s13933_s18  ;;  %v16181_v6 = vld [vmem:[#allocation2 + $0xa0] sm:$0xf]  ;;  %v16239_v19 = vcombine.low %v16227_v51, %v16230_v58 }
 0x26b   : >> { %v16188_v22 = vcombine.low %v16179_v13, %v16181_v6  ;;  %v3421_v7 = vshrl.u32 %v10717_v40, 16  ;;  %v3424_v29 = vshll.u32 %v10717_v40, 16  ;;  %v16210_v60 = vld [vmem:[#allocation2 + $0xb0] sm:$0xf] }
 0x26c   : >> { %3641 = vrot.lane.b32.xlu1 %v3588_v56, %s13933_s18  ;;  %v16208_v56 = vld [vmem:[#allocation2 + $0xac] sm:$0xf]  ;;  %v3469_v18 = vshll.u32 %v16239_v19, 16 }
 0x26d   : >> { %v3430_v27 = vshrl.u32 %v16188_v22, 16  ;;  %v3433_v38 = vshll.u32 %v16188_v22, 16  ;;  %v3423_v59 = vrot.slane %v3421_v7, 4  ;;  %v3426_v28 = vrot.slane %v3424_v29, 5  ;;  %v16220_v23 = vld [vmem:[#allocation2 + $0xb8] sm:$0xf] }
 0x26e   : >> { %3533 = vrot.lane.b32.xlu0 %v3410_v10, %s13934_s19  ;;  %v16215_v14 = vcombine.low %v16208_v56, %v16210_v60  ;;  %v3439_v7 = vshrl.u32 %v16206_v39, 16  ;;  %v3442_v29 = vshll.u32 %v16206_v39, 16 }
 0x26f   : >> { %v3432_v10 = vrot.slane %v3430_v27, 4  ;;  %v3435_v43 = vrot.slane %v3433_v38, 5  ;;  %v3427_v63 = vor.u32 %v3426_v28, %v3423_v59  ;;  %v16225_v38 = vld [vmem:[#allocation2 + $0xb4] sm:$0xf]  ;;  %v3593_v59 = vrot.slane %v10717_v40, 5 }
 0x270   : >> { %3535 = vrot.lane.b32.xlu1 %v3419_v4, %s13934_s19  ;;  %v3448_v4 = vshrl.u32 %v16215_v14, 16  ;;  %v3451_v27 = vshll.u32 %v16215_v14, 16  ;;  %v3441_v28 = vrot.slane %v3439_v7, 4  ;;  %v3444_v11 = vrot.slane %v3442_v29, 5 }
 0x271   : >> { %v3436_v54 = vor.u32 %v3435_v43, %v3432_v10  ;;  %v3428_v41 = vsel %vm509_vm1, %v3418_v2, %v3427_v63  ;;  %v3595_v10 = vrot.slane %v16188_v22, 5  ;;  %v10721_v50 = vcombine.low %v16225_v38, %v16220_v23  ;;  %v16246_v22 = vld [vmem:[#allocation2 + $0xc8] sm:$0xf] }
 0x272   : >> { %3643 = vrot.lane.b32.xlu0 %v3590_v45, %s13933_s18  ;;  %v3450_v43 = vrot.slane %v3448_v4, 4  ;;  %v3453_v52 = vrot.slane %v3451_v27, 5  ;;  %v3594_v2 = vsel %vm809_vm0, %v3591_v21, %v3593_v59  ;;  %v3445_v40 = vor.u32 %v3444_v11, %v3441_v28 }
 0x273   : >> { %v3437_v45 = vsel %vm509_vm1, %v3427_v63, %v3436_v54  ;;  %v3457_v7 = vshrl.u32 %v10721_v50, 16  ;;  %v16244_v63 = vld [vmem:[#allocation2 + $0xc4] sm:$0xf]  ;;  %v3596_v29 = vsel %vm809_vm0, %v3593_v59, %v3595_v10  ;;  %v3466_v27 = vshrl.u32 %v16239_v19, 16 }
 0x274   : >> { %3645 = vrot.lane.b32.xlu1 %v3592_v16, %s13933_s18  ;;  %v3460_v16 = vshll.u32 %v10721_v50, 16  ;;  %v3454_v4 = vor.u32 %v3453_v52, %v3450_v43  ;;  %v3597_v11 = vrot.slane %v16206_v39, 5  ;;  %v3446_v21 = vsel %vm509_vm1, %v3436_v54, %v3445_v40 }
 0x275   : >> { %v3459_v28 = vrot.slane %v3457_v7, 4  ;;  %v10723_v59 = vcombine.low %v16244_v63, %v16246_v22  ;;  %v3599_v3 = vrot.slane %v16215_v14, 5  ;;  %v3468_v0 = vrot.slane %v3466_v27, 4 }
 0x276   : >> { %3537 = vrot.lane.b32.xlu0 %v3428_v41, %s13934_s19  ;;  %v16253_v41 = vld [vmem:[#allocation2 + $0xd0] sm:$0xf]  ;;  %v3455_v43 = vsel %vm509_vm1, %v3445_v40, %v3454_v4  ;;  %v3598_v54 = vsel %vm809_vm0, %v3595_v10, %v3597_v11  ;;  %v3601_v40 = vrot.slane %v10721_v50, 5  ;;  %v16272_v10 = vld [vmem:[#allocation2 + $0xd4] sm:$0xf] }
 0x277   : >> { %v10724_v52 = vcombine.low %v16251_v32, %v16253_v41  ;;  %v3475_v7 = vshrl.u32 %v10723_v59, 16  ;;  %v10725_v50 = vcombine.low %v16272_v10, %v16272_v10 }
 0x278   : >> { %3539 = vrot.lane.b32.xlu1 %v3437_v45, %s13934_s19  ;;  %v3462_v45 = vrot.slane %v3460_v16, 5  ;;  %v3478_v16 = vshll.u32 %v10723_v59, 16 }
 0x279   : >> { %v3484_v34 = vshrl.u32 %v10724_v52, 16  ;;  %v3487_v35 = vshll.u32 %v10724_v52, 16 }
 0x27a   : >> { %3647 = vrot.lane.b32.xlu0 %v3594_v2, %s13933_s18  ;;  %v3471_v2 = vrot.slane %v3469_v18, 5  ;;  %v3463_v39 = vor.u32 %v3462_v45, %v3459_v28  ;;  %v3477_v18 = vrot.slane %v3475_v7, 4  ;;  %v3480_v27 = vrot.slane %v3478_v16, 5  ;;  %v3096_v7 = vld [vmem:[#allocation2 + $0xd8] sm:$0x1] }
 0x27b   : >> { %v3603_v28 = vrot.slane %v16239_v19, 5  ;;  %v3486_v45 = vrot.slane %v3484_v34, 4  ;;  %v3605_v19 = vrot.slane %v10723_v59, 5  ;;  %v3493_v34 = vshrl.u32 %v10725_v50, 16 }
 0x27c   : >> { %3649 = vrot.lane.b32.xlu1 %v3596_v29, %s13933_s18  ;;  %v3600_v29 = vsel %vm809_vm0, %v3597_v11, %v3599_v3  ;;  %v3472_v46 = vor.u32 %v3471_v2, %v3468_v0  ;;  %v3464_v14 = vsel %vm509_vm1, %v3454_v4, %v3463_v39  ;;  %v3489_v11 = vrot.slane %v3487_v35, 5 }
 0x27d   : >> { %v3602_v0 = vsel %vm809_vm0, %v3599_v3, %v3601_v40  ;;  %v3604_v4 = vsel %vm809_vm0, %v3601_v40, %v3603_v28  ;;  %v3496_v35 = vshll.u32 %v10725_v50, 16  ;;  %v10726_v59 = vcombine.low %v16272_v10, %v3096_v7 }
 0x27e   : >> { %3541 = vrot.lane.b32.xlu0 %v3446_v21, %s13934_s19  ;;  %v3473_v21 = vsel %vm509_vm1, %v3463_v39, %v3472_v46  ;;  %v3490_v2 = vor.u32 %v3489_v11, %v3486_v45  ;;  %v3607_v39 = vrot.slane %v10724_v52, 5 }
 0x27f   : >> { %v3498_v40 = vrot.slane %v3496_v35, 5  ;;  %v3609_v52 = vrot.slane %v10726_v59, 5  ;;  %v13458_v35 = vld [vmem:[#allocation2 + $0x1c] sm:$0xf] }
 0x280   : >> { %3543 = vrot.lane.b32.xlu1 %v3455_v43, %s13934_s19  ;;  %v3481_v43 = vor.u32 %v3480_v27, %v3477_v18 }
 0x282   : >> { %3651 = vrot.lane.b32.xlu0 %v3598_v54, %s13933_s18  ;;  %v3482_v54 = vsel %vm509_vm1, %v3472_v46, %v3481_v43  ;;  %v3491_v3 = vsel %vm509_vm1, %v3481_v43, %v3490_v2  ;;  %v3608_v46 = vsel %vm809_vm0, %v3605_v19, %v3607_v39  ;;  %v13454_v43 = vld [vmem:[#allocation2 + $0x14] sm:$0xf] }
 0x284   : >> { %3653 = vrot.lane.b32.xlu1 %v3600_v29, %s13933_s18  ;;  %v3606_v29 = vsel %vm809_vm0, %v3603_v28, %v3605_v19  ;;  %v3610_v28 = vsel %vm809_vm0, %v3607_v39, %v3609_v52 }
 0x286   : >> { %3545 = vrot.lane.b32.xlu0 %v3464_v14, %s13934_s19  ;;  %v3495_v14 = vrot.slane %v3493_v34, 4 }
 0x288   : >> { %3547 = vrot.lane.b32.xlu1 %v3473_v21, %s13934_s19  ;;  %v3499_v18 = vor.u32 %v3498_v40, %v3495_v14  ;;  %v19769_v21 = vrot.slane %v15837_v20, 5  ;;  %v13457_v20 = vld [vmem:[#allocation2 + $0x18] sm:$0xf] }
 0x28a   : >> { %3655 = vrot.lane.b32.xlu0 %v3602_v0, %s13933_s18  ;;  %v3500_v27 = vsel %vm509_vm1, %v3490_v2, %v3499_v18  ;;  %v13453_v0 = vld [vmem:[#allocation2 + $0x10] sm:$0xf] }
 0x28b   : >> { %v10674_v50 = vcombine.low %v13453_v0, %v13454_v43  ;;  %v13459_v0 = vld [vmem:[#allocation2 + $0x28] sm:$0xf]  ;;  %v13460_v43 = vld [vmem:[#allocation2 + $0x2c] sm:$0xf] }
 0x28c   : >> { %3657 = vrot.lane.b32.xlu1 %v3604_v4, %s13933_s18 }
 0x28e   : >> { %3549 = vrot.lane.b32.xlu0 %v3482_v54, %s13934_s19  ;;  %v13455_v54 = vld [vmem:[#allocation2 + $0x8] sm:$0xf] }
 0x290   : >> { %3551 = vrot.lane.b32.xlu1 %v3491_v3, %s13934_s19  ;;  %v10675_v3 = vcombine.low %v13457_v20, %v13458_v35  ;;  %v13461_v20 = vld [vmem:[#allocation2 + $0x20] sm:$0xf]  ;;  %v13462_v35 = vld [vmem:[#allocation2 + $0x24] sm:$0xf] }
 0x292   : >> { %3659 = vrot.lane.b32.xlu0 %v3606_v29, %s13933_s18 }
 0x294   : >> { %3661 = vrot.lane.b32.xlu1 %v3608_v46, %s13933_s18 }
 0x296   : >> { %3501 = vrot.lane.b32.xlu0 %v15880_v55, %s13934_s19  ;;  %v13456_v55 = vld [vmem:[#allocation2 + $0xc] sm:$0xf] }
 0x297   : >> { %v10673_v19 = vcombine.low %v13455_v54, %v13456_v55 }
 0x298   : >> { %3611 = vrot.lane.b32.xlu1 %v19769_v21, %s13933_s18 }
 0x29a   : >> { %3553 = vrot.lane.b32.xlu0 %v3500_v27, %s13934_s19 }
 0x29c   : >> { %3663 = vrot.lane.b32.xlu1 %v3610_v28, %s13933_s18 }
 0x2a3   : >> { %v3616_v45 = vpop.permute.xlu1 %3615 }
 0x2a4   : >> { %v3618_v11 = vpop.permute.xlu0 %3617 }
 0x2a7   : >> { %v3614_v4 = vpop.permute.xlu1 %3613 }
 0x2a8   : >> { %v3506_v2 = vpop.permute.xlu0 %3505 }
 0x2a9   : >> { %v3673_v34 = vsel %vm917_vm3, %v10674_v50, %v3506_v2  ;;  %v10677_v50 = vcombine.low %v13459_v0, %v13460_v43 }
 0x2aa   : >> { %v3751_v39 = vsel %vm999_vm4, %v3673_v34, %v3616_v45 }
 0x2ab   : >> { %v3504_v7 = vpop.permute.xlu1 %3503  ;;  %v3803_v29 = vshrl.u32 %v3751_v39, 16  ;;  %v3806_v40 = vshll.u32 %v3751_v39, 16 }
 0x2ac   : >> { %v3670_v14 = vsel %vm917_vm3, %v10673_v19, %v3504_v7  ;;  %v3508_v59 = vpop.permute.xlu0 %3507 }
 0x2ad   : >> { %v3749_v46 = vsel %vm999_vm4, %v3670_v14, %v3614_v4  ;;  %v4316_v18 = vrot.slane %v3803_v29, 3  ;;  %v3676_v27 = vsel %vm917_vm3, %v10675_v3, %v3508_v59  ;;  %v3805_v45 = vrot.slane %v3803_v29, 7 }
 0x2ae   : >> { %v4311_v52 = vshll.u32 %v3749_v46, 16  ;;  %v3800_v21 = vshrl.u32 %v3749_v46, 16  ;;  %v3753_v28 = vsel %vm999_vm4, %v3676_v27, %v3618_v11  ;;  %v4317_v55 = vrot.slane %v3806_v40, 4 }
 0x2af   : >> { %v3512_v54 = vpop.permute.xlu1 %3511  ;;  %v3810_v34 = vshrl.u32 %v3753_v28, 16  ;;  %v3813_v19 = vshll.u32 %v3753_v28, 16  ;;  %v10676_v4 = vcombine.low %v13461_v20, %v13462_v35  ;;  %v3808_v14 = vor.u32 %v3806_v40, %v3805_v45  ;;  %v13464_v35 = vld [vmem:[#allocation2 + $0x3c] sm:$0xf] }
 0x2b0   : >> { %v4313_v2 = vrot.slane %v4311_v52, 4  ;;  %v3510_v39 = vpop.permute.xlu0 %3509  ;;  %v3802_v7 = vrot.slane %v3800_v21, 7  ;;  %v4310_v16 = vrot.slane %v3800_v21, 3  ;;  %v4318_v3 = vor.u32 %v4317_v55, %v4316_v18 }
 0x2b1   : >> { %v3812_v46 = vrot.slane %v3810_v34, 7  ;;  %v4320_v11 = vrot.slane %v3810_v34, 3  ;;  %v4321_v59 = vrot.slane %v3813_v19, 4  ;;  %v3682_v27 = vsel %vm917_vm3, %v10677_v50, %v3512_v54  ;;  %v13386_v34 = vld [vmem:[%s15851_s17 + $0x98] sm:$0xff]  }
 0x2b2   : >> { %v3809_v29 = vsel %vm1054_vm5, %v3802_v7, %v3808_v14  ;;  %v16312_v52 = vor.u32 %v4313_v2, %v4310_v16  ;;  %v3679_v40 = vsel %vm917_vm3, %v10676_v4, %v3510_v39  ;;  %v13463_v2 = vld [vmem:[#allocation2 + $0x38] sm:$0xf] }
 0x2b3   : >> { %v3622_v0 = vpop.permute.xlu1 %3621  ;;  %11976 = vmatprep.mubr.msk.bf16.mxu0 %vm1262_vm6, %v3809_v29  ;;  %v3815_v43 = vor.u32 %v3813_v19, %v3812_v46  ;;  %v4322_v20 = vor.u32 %v4321_v59, %v4320_v11  ;;  %v10679_v7 = vcombine.low %v13463_v2, %v13464_v35  ;;  %v13465_v29 = vld [vmem:[#allocation2 + $0x30] sm:$0xf] }
 0x2b4   : >> { %19770 = vst [vmem:[#allocation99_spill] sm:$0xff] %v16312_v52  ;;  %v3757_v28 = vsel %vm999_vm4, %v3682_v27, %v3622_v0  ;;  %v3620_v18 = vpop.permute.xlu0 %3619  ;;  %v16320_v50 = vsel %vm1559_vm7, %v16312_v52, %v4318_v3  ;;  %v13388_v52 = vld [vmem:[%s15851_s17 + $0xa8] sm:$0xff]  }
 0x2b5   : >> { %v3824_v21 = vshrl.u32 %v3757_v28, 16  ;;  %v3827_v55 = vshll.u32 %v3757_v28, 16  ;;  %19771 = vst [vmem:[#allocation100_spill] sm:$0xff] %v16320_v50  ;;  %v3755_v54 = vsel %vm999_vm4, %v3679_v40, %v3620_v18  ;;  %v3816_v16 = vsel %vm1054_vm5, %v3805_v45, %v3815_v43  ;;  %v13466_v45 = vld [vmem:[#allocation2 + $0x34] sm:$0xf] }
 0x2b6   : >> { %v16325_v19 = vsel %vm1559_vm7, %v4318_v3, %v4322_v20  ;;  %v3817_v14 = vshrl.u32 %v3755_v54, 16  ;;  %v3820_v4 = vshll.u32 %v3755_v54, 16  ;;  %11977 = vmatmul.mubr.msk.bf16.vlgmr.msra.gmra.mrb[0].mxu0 %vm1262_vm6, %v3816_v16  ;;  %v10678_v0 = vcombine.low %v13465_v29, %v13466_v45  ;;  %v13387_v54 = vld [vmem:[%s15851_s17 + $0xa0] sm:$0xff]  }
 0x2b7   : >> { %19772 = vst [vmem:[#allocation101_spill] sm:$0xff] %v16325_v19  ;;  %v16327_v39 = vrot.slane %v3824_v21, 7  ;;  %v4328_v11 = vrot.slane %v3824_v21, 3  ;;  %v3516_v59 = vpop.permute.xlu1 %3515  ;;  %v4329_v27 = vrot.slane %v3827_v55, 4  ;;  %12025 = vmatpush3.bf16.msra.mxu0 %v15922_v48 }
 0x2b8   : >> { %v3819_v28 = vrot.slane %v3817_v14, 7  ;;  %v4324_v43 = vrot.slane %v3817_v14, 3  ;;  %v4325_v40 = vrot.slane %v3820_v4, 4  ;;  %v3514_v3 = vpop.permute.xlu0 %3513  ;;  %12026 = vmatprep.subr.bf16.mxu0 %v13386_v34  ;;  %v3688_v21 = vsel %vm917_vm3, %v10679_v7, %v3516_v59 }
 0x2b9   : >> { %v3829_v18 = vor.u32 %v3827_v55, %v16327_v39  ;;  %v4330_v2 = vor.u32 %v4329_v27, %v4328_v11  ;;  %v3685_v48 = vsel %vm917_vm3, %v10678_v0, %v3514_v3 }
 0x2ba   : >> { %v3822_v35 = vor.u32 %v3820_v4, %v3819_v28  ;;  %v4326_v62 = vor.u32 %v4325_v40, %v4324_v43 }
 0x2bb   : >> { %v3626_v16 = vpop.permute.xlu1 %3625  ;;  %v3830_v29 = vsel %vm1054_vm5, %v3819_v28, %v3829_v18  ;;  %12027 = vmatpush3.bf16.msra.mxu0 %v13386_v34  ;;  %v13468_v28 = vld [vmem:[#allocation2 + $0x44] sm:$0xf] }
 0x2bc   : >> { %v3761_v19 = vsel %vm999_vm4, %v3688_v21, %v3626_v16  ;;  %v3624_v14 = vpop.permute.xlu0 %3623  ;;  %v3823_v55 = vsel %vm1054_vm5, %v3812_v46, %v3822_v35  ;;  %12028 = vmatprep.subr.bf16.mxu0 %v13387_v54  ;;  %v16340_v11 = vsel %vm1559_vm7, %v4322_v20, %v4326_v62  ;;  %v16345_v4 = vsel %vm1559_vm7, %v4326_v62, %v4330_v2  ;;  %v13389_v62 = vld [vmem:[%s15851_s17 + $0xb0] sm:$0xff]  }
 0x2bd   : >> { %v3838_v45 = vshrl.u32 %v3761_v19, 16  ;;  %v3841_v50 = vshll.u32 %v3761_v19, 16  ;;  %v3759_v7 = vsel %vm999_vm4, %v3685_v48, %v3624_v14  ;;  %11980 = vmatprep.mubr.msk.bf16.mxu0 %vm1262_vm6, %v3823_v55  ;;  %v13467_v19 = vld [vmem:[#allocation2 + $0x40] sm:$0xf]  ;;  %v13469_v48 = vld [vmem:[#allocation2 + $0x48] sm:$0xf] }
 0x2be   : >> { %v3831_v59 = vshrl.u32 %v3759_v7, 16  ;;  %v3834_v34 = vshll.u32 %v3759_v7, 16  ;;  %11981 = vmatmul.mubr.msk.bf16.gmra.mrb[4].mxu0 %vm1262_vm6, %v3830_v29  ;;  %v10680_v43 = vcombine.low %v13467_v19, %v13468_v28  ;;  %v10681_v14 = vcombine.low %v13469_v48, %v15966_v47 }
 0x2bf   : >> { %v3840_v27 = vrot.slane %v3838_v45, 7  ;;  %v4336_v0 = vrot.slane %v3838_v45, 3  ;;  %v4337_v46 = vrot.slane %v3841_v50, 4  ;;  %12029 = vmatpush3.bf16.msra.mxu0 %v13387_v54  ;;  %v10683_v48 = vcombine.low %v16001_v17, %v16012_v26 }
 0x2c0   : >> { %v3833_v20 = vrot.slane %v3831_v59, 7  ;;  %v4332_v40 = vrot.slane %v3831_v59, 3  ;;  %v4333_v3 = vrot.slane %v3834_v34, 4  ;;  %v3518_v21 = vpop.permute.xlu0 %3517  ;;  %12030 = vmatprep.subr.bf16.mxu0 %v13388_v52  ;;  %v13391_v59 = vld [vmem:[%s15851_s17 + $0xb8] sm:$0xff]  }
 0x2c1   : >> { %v3843_v18 = vor.u32 %v3841_v50, %v3840_v27  ;;  %v4338_v16 = vor.u32 %v4337_v46, %v4336_v0  ;;  %v3691_v54 = vsel %vm917_vm3, %v10680_v43, %v3518_v21  ;;  %v16369_v21 = vld [vmem:[%s15851_s17 + $0xf0] sm:$0xff]  }
 0x2c2   : >> { %v3836_v35 = vor.u32 %v3834_v34, %v3833_v20  ;;  %v3520_v45 = vpop.permute.xlu1 %3519  ;;  %v4334_v29 = vor.u32 %v4333_v3, %v4332_v40 }
 0x2c3   : >> { %v3844_v55 = vsel %vm1054_vm5, %v3833_v20, %v3843_v18  ;;  %12031 = vmatpush3.bf16.msra.mxu0 %v13388_v52  ;;  %v3694_v52 = vsel %vm917_vm3, %v10681_v14, %v3520_v45 }
 0x2c4   : >> { %v3628_v7 = vpop.permute.xlu0 %3627  ;;  %v3837_v50 = vsel %vm1054_vm5, %v16327_v39, %v3836_v35  ;;  %12032 = vmatprep.subr.bf16.mxu0 %v13389_v62  ;;  %v16356_v19 = vsel %vm1559_vm7, %v4330_v2, %v4334_v29  ;;  %v16359_v34 = vsel %vm1559_vm7, %v4334_v29, %v4338_v16  ;;  %v10682_v2 = vcombine.low %v15973_v61, %v15995_v5 }
 0x2c5   : >> { %v3763_v47 = vsel %vm999_vm4, %v3691_v54, %v3628_v7  ;;  %11984 = vmatprep.mubr.msk.bf16.mxu0 %vm1262_vm6, %v3837_v50 }
 0x2c6   : >> { %v3845_v0 = vshrl.u32 %v3763_v47, 16  ;;  %v3848_v46 = vshll.u32 %v3763_v47, 16  ;;  %v3630_v28 = vpop.permute.xlu1 %3629  ;;  %11985 = vmatmul.mubr.msk.bf16.gmra.mrb[8].mxu0 %vm1262_vm6, %v3844_v55 }
 0x2c7   : >> { %v3765_v39 = vsel %vm999_vm4, %v3694_v52, %v3630_v28  ;;  %12033 = vmatpush3.bf16.msra.mxu0 %v13389_v62 }
 0x2c8   : >> { %v3847_v43 = vrot.slane %v3845_v0, 7  ;;  %v4340_v20 = vrot.slane %v3845_v0, 3  ;;  %v4341_v40 = vrot.slane %v3848_v46, 4  ;;  %v3852_v3 = vshrl.u32 %v3765_v39, 16  ;;  %v3522_v18 = vpop.permute.xlu0 %3521  ;;  %12034 = vmatprep.subr.bf16.mxu0 %v13391_v59 }
 0x2c9   : >> { %v3855_v35 = vshll.u32 %v3765_v39, 16  ;;  %v3697_v5 = vsel %vm917_vm3, %v10682_v2, %v3522_v18 }
 0x2ca   : >> { %v3850_v14 = vor.u32 %v3848_v46, %v3847_v43  ;;  %v3854_v45 = vrot.slane %v3852_v3, 7  ;;  %v4344_v29 = vrot.slane %v3852_v3, 3  ;;  %v3524_v55 = vpop.permute.xlu1 %3523  ;;  %v4342_v54 = vor.u32 %v4341_v40, %v4340_v20 }
 0x2cb   : >> { %v4345_v7 = vrot.slane %v3855_v35, 4  ;;  %12035 = vmatpush3.bf16.msra.mxu0 %v13391_v59  ;;  %v3700_v52 = vsel %vm917_vm3, %v10683_v48, %v3524_v55  ;;  %v10685_v48 = vcombine.low %v16026_v36, %v16048_v25 }
 0x2cc   : >> { %v3857_v61 = vor.u32 %v3855_v35, %v3854_v45  ;;  %v3632_v62 = vpop.permute.xlu0 %3631  ;;  %v3851_v50 = vsel %vm1054_vm5, %v3840_v27, %v3850_v14  ;;  %12084 = vmatprep.subr.bf16.mxu0 %v16369_v21  ;;  %v16377_v47 = vsel %vm1559_vm7, %v4338_v16, %v4342_v54  ;;  %v10684_v27 = vcombine.low %v16009_v53, %v16014_v30 }
 0x2cd   : >> { %v3767_v17 = vsel %vm999_vm4, %v3697_v5, %v3632_v62  ;;  %11988 = vmatprep.mubr.msk.bf16.mxu0 %vm1262_vm6, %v3851_v50  ;;  %v4346_v26 = vor.u32 %v4345_v7, %v4344_v29 }
 0x2ce   : >> { %v3859_v0 = vshrl.u32 %v3767_v17, 16  ;;  %v3862_v59 = vshll.u32 %v3767_v17, 16  ;;  %v3634_v46 = vpop.permute.xlu1 %3633  ;;  %v3858_v28 = vsel %vm1054_vm5, %v3847_v43, %v3857_v61 }
 0x2cf   : >> { %v3769_v39 = vsel %vm999_vm4, %v3700_v52, %v3634_v46  ;;  %11989 = vmatmul.mubr.msk.bf16.gmra.mrb[12].mxu0 %vm1262_vm6, %v3858_v28  ;;  %v16388_v16 = vsel %vm1559_vm7, %v4342_v54, %v4346_v26 }
 0x2d0   : >> { %v3861_v2 = vrot.slane %v3859_v0, 7  ;;  %v4348_v20 = vrot.slane %v3859_v0, 3  ;;  %v4349_v40 = vrot.slane %v3862_v59, 4  ;;  %v3866_v3 = vshrl.u32 %v3769_v39, 16  ;;  %v3526_v18 = vpop.permute.xlu0 %3525 }
 0x2d1   : >> { %v3869_v35 = vshll.u32 %v3769_v39, 16  ;;  %v3703_v53 = vsel %vm917_vm3, %v10684_v27, %v3526_v18  ;;  %v10687_v18 = vcombine.low %v16062_v57, %v16066_v8 }
 0x2d2   : >> { %v3864_v43 = vor.u32 %v3862_v59, %v3861_v2  ;;  %v3868_v14 = vrot.slane %v3866_v3, 7  ;;  %v4352_v29 = vrot.slane %v3866_v3, 3  ;;  %v3528_v55 = vpop.permute.xlu1 %3527  ;;  %v4350_v7 = vor.u32 %v4349_v40, %v4348_v20 }
 0x2d3   : >> { %v4353_v61 = vrot.slane %v3869_v35, 4  ;;  %v3706_v25 = vsel %vm917_vm3, %v10685_v48, %v3528_v55 }
 0x2d4   : >> { %v3871_v5 = vor.u32 %v3869_v35, %v3868_v14  ;;  %v3636_v30 = vpop.permute.xlu0 %3635  ;;  %v3865_v54 = vsel %vm1054_vm5, %v3854_v45, %v3864_v43  ;;  %v16395_v62 = vsel %vm1559_vm7, %v4346_v26, %v4350_v7  ;;  %v10686_v45 = vcombine.low %v16038_v31, %v16060_v24 }
 0x2d5   : >> { %v3771_v50 = vsel %vm999_vm4, %v3703_v53, %v3636_v30  ;;  %11992 = vmatprep.mubr.msk.bf16.mxu0 %vm1262_vm6, %v3865_v54  ;;  %v4354_v36 = vor.u32 %v4353_v61, %v4352_v29 }
 0x2d6   : >> { %v3873_v17 = vshrl.u32 %v3771_v50, 16  ;;  %v3876_v52 = vshll.u32 %v3771_v50, 16  ;;  %v3638_v0 = vpop.permute.xlu1 %3637  ;;  %v3872_v59 = vsel %vm1054_vm5, %v3861_v2, %v3871_v5 }
 0x2d7   : >> { %v3773_v46 = vsel %vm999_vm4, %v3706_v25, %v3638_v0  ;;  %11993 = vmatmul.mubr.msk.bf16.gmra.mrb[16].mxu0 %vm1262_vm6, %v3872_v59  ;;  %v16406_v26 = vsel %vm1559_vm7, %v4350_v7, %v4354_v36 }
 0x2d8   : >> { %v3875_v28 = vrot.slane %v3873_v17, 7  ;;  %v4356_v39 = vrot.slane %v3873_v17, 3  ;;  %v4357_v27 = vrot.slane %v3876_v52, 4  ;;  %v3880_v20 = vshrl.u32 %v3773_v46, 16  ;;  %v3530_v40 = vpop.permute.xlu0 %3529 }
 0x2d9   : >> { %v3883_v3 = vshll.u32 %v3773_v46, 16  ;;  %v3709_v31 = vsel %vm917_vm3, %v10686_v45, %v3530_v40 }
 0x2da   : >> { %v3878_v2 = vor.u32 %v3876_v52, %v3875_v28  ;;  %v3882_v35 = vrot.slane %v3880_v20, 7  ;;  %v4360_v48 = vrot.slane %v3880_v20, 3  ;;  %v3532_v43 = vpop.permute.xlu1 %3531  ;;  %v4358_v29 = vor.u32 %v4357_v27, %v4356_v39 }
 0x2db   : >> { %v4361_v55 = vrot.slane %v3883_v3, 4  ;;  %v3712_v57 = vsel %vm917_vm3, %v10687_v18, %v3532_v43  ;;  %v10689_v27 = vcombine.low %v16083_v12, %v16095_v1 }
 0x2dc   : >> { %v3885_v61 = vor.u32 %v3883_v3, %v3882_v35  ;;  %v3640_v24 = vpop.permute.xlu0 %3639  ;;  %v3879_v7 = vsel %vm1054_vm5, %v3868_v14, %v3878_v2  ;;  %v16413_v5 = vsel %vm1559_vm7, %v4354_v36, %v4358_v29  ;;  %v10688_v14 = vcombine.low %v16068_v33, %v16081_v9 }
 0x2dd   : >> { %v3775_v53 = vsel %vm999_vm4, %v3709_v31, %v3640_v24  ;;  %11996 = vmatprep.mubr.msk.bf16.mxu0 %vm1262_vm6, %v3879_v7  ;;  %v4362_v8 = vor.u32 %v4361_v55, %v4360_v48 }
 0x2de   : >> { %v3887_v30 = vshrl.u32 %v3775_v53, 16  ;;  %v3890_v54 = vshll.u32 %v3775_v53, 16  ;;  %v3642_v50 = vpop.permute.xlu1 %3641  ;;  %v3886_v25 = vsel %vm1054_vm5, %v3875_v28, %v3885_v61 }
 0x2df   : >> { %v3777_v17 = vsel %vm999_vm4, %v3712_v57, %v3642_v50  ;;  %11997 = vmatmul.mubr.msk.bf16.gmra.mrb[20].mxu0 %vm1262_vm6, %v3886_v25  ;;  %v16424_v36 = vsel %vm1559_vm7, %v4358_v29, %v4362_v8 }
 0x2e0   : >> { %v3889_v52 = vrot.slane %v3887_v30, 7  ;;  %v4364_v0 = vrot.slane %v3887_v30, 3  ;;  %v4365_v59 = vrot.slane %v3890_v54, 4  ;;  %v3894_v46 = vshrl.u32 %v3777_v17, 16  ;;  %v3534_v45 = vpop.permute.xlu0 %3533 }
 0x2e1   : >> { %v3897_v39 = vshll.u32 %v3777_v17, 16  ;;  %v3715_v9 = vsel %vm917_vm3, %v10688_v14, %v3534_v45  ;;  %v10691_v14 = vcombine.low %v16164_v49, %v16179_v13 }
 0x2e2   : >> { %v3892_v28 = vor.u32 %v3890_v54, %v3889_v52  ;;  %v3896_v20 = vrot.slane %v3894_v46, 7  ;;  %v4368_v40 = vrot.slane %v3894_v46, 3  ;;  %v3536_v3 = vpop.permute.xlu1 %3535  ;;  %v4366_v18 = vor.u32 %v4365_v59, %v4364_v0 }
 0x2e3   : >> { %v4369_v2 = vrot.slane %v3897_v39, 4  ;;  %v3718_v12 = vsel %vm917_vm3, %v10689_v27, %v3536_v3 }
 0x2e4   : >> { %v3899_v48 = vor.u32 %v3897_v39, %v3896_v20  ;;  %v3644_v33 = vpop.permute.xlu0 %3643  ;;  %v3893_v43 = vsel %vm1054_vm5, %v3882_v35, %v3892_v28  ;;  %v16431_v29 = vsel %vm1559_vm7, %v4362_v8, %v4366_v18  ;;  %v10690_v35 = vcombine.low %v16097_v37, %v16168_v15 }
 0x2e5   : >> { %v3779_v55 = vsel %vm999_vm4, %v3715_v9, %v3644_v33  ;;  %12000 = vmatprep.mubr.msk.bf16.mxu0 %vm1262_vm6, %v3893_v43  ;;  %v4370_v1 = vor.u32 %v4369_v2, %v4368_v40 }
 0x2e6   : >> { %v3901_v61 = vshrl.u32 %v3779_v55, 16  ;;  %v3904_v31 = vshll.u32 %v3779_v55, 16  ;;  %v3646_v24 = vpop.permute.xlu1 %3645  ;;  %v3900_v7 = vsel %vm1054_vm5, %v3889_v52, %v3899_v48 }
 0x2e7   : >> { %v3781_v53 = vsel %vm999_vm4, %v3718_v12, %v3646_v24  ;;  %12001 = vmatmul.mubr.msk.bf16.gmra.mrb[24].mxu0 %vm1262_vm6, %v3900_v7  ;;  %v16442_v8 = vsel %vm1559_vm7, %v4366_v18, %v4370_v1  ;;  %v10693_v7 = vcombine.low %v16193_v42, %v16208_v56 }
 0x2e8   : >> { %v3903_v57 = vrot.slane %v3901_v61, 7  ;;  %v4372_v30 = vrot.slane %v3901_v61, 3  ;;  %v4373_v54 = vrot.slane %v3904_v31, 4  ;;  %v3908_v50 = vshrl.u32 %v3781_v53, 16  ;;  %v3538_v25 = vpop.permute.xlu0 %3537 }
 0x2e9   : >> { %v3911_v17 = vshll.u32 %v3781_v53, 16  ;;  %v3721_v37 = vsel %vm917_vm3, %v10690_v35, %v3538_v25 }
 0x2ea   : >> { %v3906_v52 = vor.u32 %v3904_v31, %v3903_v57  ;;  %v3910_v0 = vrot.slane %v3908_v50, 7  ;;  %v4376_v59 = vrot.slane %v3908_v50, 3  ;;  %v3540_v46 = vpop.permute.xlu1 %3539  ;;  %v4374_v45 = vor.u32 %v4373_v54, %v4372_v30 }
 0x2eb   : >> { %v4377_v39 = vrot.slane %v3911_v17, 4  ;;  %v3724_v13 = vsel %vm917_vm3, %v10691_v14, %v3540_v46 }
 0x2ec   : >> { %v3913_v27 = vor.u32 %v3911_v17, %v3910_v0  ;;  %v3648_v15 = vpop.permute.xlu0 %3647  ;;  %v3907_v28 = vsel %vm1054_vm5, %v3896_v20, %v3906_v52  ;;  %v16449_v40 = vsel %vm1559_vm7, %v4370_v1, %v4374_v45  ;;  %v10692_v20 = vcombine.low %v16181_v6, %v16199_v44 }
 0x2ed   : >> { %v3783_v3 = vsel %vm999_vm4, %v3721_v37, %v3648_v15  ;;  %12004 = vmatprep.mubr.msk.bf16.mxu0 %vm1262_vm6, %v3907_v28  ;;  %v4378_v49 = vor.u32 %v4377_v39, %v4376_v59 }
 0x2ee   : >> { %v3915_v18 = vshrl.u32 %v3783_v3, 16  ;;  %v3918_v2 = vshll.u32 %v3783_v3, 16  ;;  %v3650_v48 = vpop.permute.xlu1 %3649  ;;  %v3914_v9 = vsel %vm1054_vm5, %v3903_v57, %v3913_v27 }
 0x2ef   : >> { %v3785_v33 = vsel %vm999_vm4, %v3724_v13, %v3650_v48  ;;  %12005 = vmatmul.mubr.msk.bf16.gmra.mrb[28].mxu0 %vm1262_vm6, %v3914_v9  ;;  %v16460_v43 = vsel %vm1559_vm7, %v4374_v45, %v4378_v49 }
 0x2f0   : >> { %v3917_v55 = vrot.slane %v3915_v18, 7  ;;  %v4380_v1 = vrot.slane %v3915_v18, 3  ;;  %v4381_v12 = vrot.slane %v3918_v2, 4  ;;  %v3922_v61 = vshrl.u32 %v3785_v33, 16  ;;  %v3542_v31 = vpop.permute.xlu0 %3541 }
 0x2f1   : >> { %v3925_v24 = vshll.u32 %v3785_v33, 16  ;;  %v3727_v6 = vsel %vm917_vm3, %v10692_v20, %v3542_v31 }
 0x2f2   : >> { %v3920_v53 = vor.u32 %v3918_v2, %v3917_v55  ;;  %v3924_v35 = vrot.slane %v3922_v61, 7  ;;  %v4384_v57 = vrot.slane %v3922_v61, 3  ;;  %v3544_v30 = vpop.permute.xlu1 %3543  ;;  %v4382_v54 = vor.u32 %v4381_v12, %v4380_v1 }
 0x2f3   : >> { %v4385_v50 = vrot.slane %v3925_v24, 4  ;;  %v3730_v56 = vsel %vm917_vm3, %v10693_v7, %v3544_v30  ;;  %v10695_v2 = vcombine.low %v16220_v23, %v16227_v51 }
 0x2f4   : >> { %v3927_v25 = vor.u32 %v3925_v24, %v3924_v35  ;;  %v3652_v44 = vpop.permute.xlu0 %3651  ;;  %v3921_v17 = vsel %vm1054_vm5, %v3910_v0, %v3920_v53  ;;  %v16467_v14 = vsel %vm1559_vm7, %v4378_v49, %v4382_v54  ;;  %v10694_v0 = vcombine.low %v16210_v60, %v16225_v38 }
 0x2f5   : >> { %v3787_v52 = vsel %vm999_vm4, %v3727_v6, %v3652_v44  ;;  %12008 = vmatprep.mubr.msk.bf16.mxu0 %vm1262_vm6, %v3921_v17  ;;  %v4386_v42 = vor.u32 %v4385_v50, %v4384_v57 }
 0x2f6   : >> { %v3929_v59 = vshrl.u32 %v3787_v52, 16  ;;  %v3932_v46 = vshll.u32 %v3787_v52, 16  ;;  %v3654_v45 = vpop.permute.xlu1 %3653  ;;  %v3928_v39 = vsel %vm1054_vm5, %v3917_v55, %v3927_v25 }
 0x2f7   : >> { %v3789_v27 = vsel %vm999_vm4, %v3730_v56, %v3654_v45  ;;  %12009 = vmatmul.mubr.msk.bf16.gmra.mrb[32].mxu0 %vm1262_vm6, %v3928_v39  ;;  %v16478_v37 = vsel %vm1559_vm7, %v4382_v54, %v4386_v42  ;;  %v10697_v56 = vcombine.low %v16246_v22, %v16251_v32  ;;  %v13470_v22 = vld [vmem:[#allocation2 + $0x4] sm:$0xf] }
 0x2f8   : >> { %v3931_v15 = vrot.slane %v3929_v59, 7  ;;  %v4388_v28 = vrot.slane %v3929_v59, 3  ;;  %v4389_v3 = vrot.slane %v3932_v46, 4  ;;  %v3936_v49 = vshrl.u32 %v3789_v27, 16  ;;  %v3546_v13 = vpop.permute.xlu0 %3545 }
 0x2f9   : >> { %v3939_v18 = vshll.u32 %v3789_v27, 16  ;;  %v3733_v60 = vsel %vm917_vm3, %v10694_v0, %v3546_v13  ;;  %v3042_v27 = vld [vmem:[#allocation2] sm:$0x8] }
 0x2fa   : >> { %v3934_v48 = vor.u32 %v3932_v46, %v3931_v15  ;;  %v3938_v9 = vrot.slane %v3936_v49, 7  ;;  %v4392_v33 = vrot.slane %v3936_v49, 3  ;;  %v3548_v20 = vpop.permute.xlu1 %3547  ;;  %v4390_v55 = vor.u32 %v4389_v3, %v4388_v28 }
 0x2fb   : >> { %v4393_v1 = vrot.slane %v3939_v18, 4  ;;  %v3736_v51 = vsel %vm917_vm3, %v10695_v2, %v3548_v20 }
 0x2fc   : >> { %v3941_v12 = vor.u32 %v3939_v18, %v3938_v9  ;;  %v3656_v38 = vpop.permute.xlu0 %3655  ;;  %v3935_v61 = vsel %vm1054_vm5, %v3924_v35, %v3934_v48  ;;  %v16485_v31 = vsel %vm1559_vm7, %v4386_v42, %v4390_v55  ;;  %v10696_v35 = vcombine.low %v16230_v58, %v16244_v63 }
 0x2fd   : >> { %v3791_v24 = vsel %vm999_vm4, %v3733_v60, %v3656_v38  ;;  %12012 = vmatprep.mubr.msk.bf16.mxu0 %vm1262_vm6, %v3935_v61  ;;  %v4394_v23 = vor.u32 %v4393_v1, %v4392_v33  ;;  %v10672_v18 = vcombine.low %v3042_v27, %v13470_v22 }
 0x2fe   : >> { %v3943_v7 = vshrl.u32 %v3791_v24, 16  ;;  %v3946_v53 = vshll.u32 %v3791_v24, 16  ;;  %v3658_v57 = vpop.permute.xlu1 %3657  ;;  %v3942_v30 = vsel %vm1054_vm5, %v3931_v15, %v3941_v12 }
 0x2ff   : >> { %v3793_v54 = vsel %vm999_vm4, %v3736_v51, %v3658_v57  ;;  %12013 = vmatmul.mubr.msk.bf16.gmra.mrb[36].mxu0 %vm1262_vm6, %v3942_v30  ;;  %v16496_v50 = vsel %vm1559_vm7, %v4390_v55, %v4394_v23 }
 0x300   : >> { %v3945_v25 = vrot.slane %v3943_v7, 7  ;;  %v4396_v6 = vrot.slane %v3943_v7, 3  ;;  %v4397_v44 = vrot.slane %v3946_v53, 4  ;;  %v3950_v17 = vshrl.u32 %v3793_v54, 16  ;;  %v3550_v52 = vpop.permute.xlu0 %3549 }
 0x301   : >> { %v3953_v42 = vshll.u32 %v3793_v54, 16  ;;  %v3739_v15 = vsel %vm917_vm3, %v10696_v35, %v3550_v52 }
 0x302   : >> { %v3948_v59 = vor.u32 %v3946_v53, %v3945_v25  ;;  %v3952_v46 = vrot.slane %v3950_v17, 7  ;;  %v4400_v45 = vrot.slane %v3950_v17, 3  ;;  %v3552_v39 = vpop.permute.xlu1 %3551  ;;  %v16500_v0 = vor.u32 %v4397_v44, %v4396_v6 }
 0x303   : >> { %v4401_v58 = vrot.slane %v3953_v42, 4  ;;  %v3742_v2 = vsel %vm917_vm3, %v10697_v56, %v3552_v39 }
 0x304   : >> { %v3955_v63 = vor.u32 %v3953_v42, %v3952_v46  ;;  %v3660_v28 = vpop.permute.xlu0 %3659  ;;  %v3949_v3 = vsel %vm1054_vm5, %v3938_v9, %v3948_v59  ;;  %v16506_v49 = vsel %vm1559_vm7, %v4394_v23, %v16500_v0  ;;  %v19773_v42 = vcombine.low %v16253_v41, %v16272_v10 }
 0x305   : >> { %v16508_v13 = vor.u32 %v4401_v58, %v4400_v45  ;;  %v3795_v32 = vsel %vm999_vm4, %v3739_v15, %v3660_v28  ;;  %12016 = vmatprep.mubr.msk.bf16.mxu0 %vm1262_vm6, %v3949_v3 }
 0x306   : >> { %v3662_v48 = vpop.permute.xlu1 %3661  ;;  %v3957_v33 = vshrl.u32 %v3795_v32, 16  ;;  %v3960_v20 = vshll.u32 %v3795_v32, 16  ;;  %v3956_v55 = vsel %vm1054_vm5, %v3945_v25, %v3955_v63  ;;  %v19774_v32 = vld [vmem:[#allocation99_spill] sm:$0xff] }
 0x307   : >> { %v3797_v9 = vsel %vm999_vm4, %v3742_v2, %v3662_v48  ;;  %12017 = vmatmul.mubr.msk.bf16.gmra.mrb[40].mxu0 %vm1262_vm6, %v3956_v55  ;;  %v13394_v2 = vld [vmem:[%s15851_s17 + $0xf8] sm:$0xff]   ;;  %v13395_v55 = vld [vmem:[%s15851_s17 + $0x100] sm:$0xff]  }
 0x308   : >> { %v3964_v1 = vshrl.u32 %v3797_v9, 16  ;;  %v3967_v12 = vshll.u32 %v3797_v9, 16  ;;  %v3959_v60 = vrot.slane %v3957_v33, 7  ;;  %v4736_v38 = vrot.slane %v3957_v33, 3  ;;  %v3502_v61 = vpop.permute.xlu0 %3501  ;;  %v19775_v33 = vld [vmem:[#allocation100_spill] sm:$0xff]  ;;  %v13396_v9 = vld [vmem:[%s15851_s17 + $0x108] sm:$0xff]  }
 0x309   : >> { %v4737_v24 = vrot.slane %v3960_v20, 4  ;;  %v3667_v23 = vsel %vm917_vm3, %v10672_v18, %v3502_v61  ;;  %v5497_v61 = vld [vmem:[#allocation2 + $0x4] sm:$0xf] }
 0x30a   : >> { %v3966_v51 = vrot.slane %v3964_v1, 7  ;;  %v4740_v7 = vrot.slane %v3964_v1, 3  ;;  %v4741_v53 = vrot.slane %v3967_v12, 4  ;;  %v3962_v57 = vor.u32 %v3960_v20, %v3959_v60  ;;  %v3612_v30 = vpop.permute.xlu1 %3611  ;;  %v19776_v20 = vld [vmem:[#allocation101_spill] sm:$0xff]  ;;  %v13397_v1 = vld [vmem:[%s15851_s17 + $0x110] sm:$0xff]  }
 0x30b   : >> { %v3747_v54 = vsel %vm999_vm4, %v3667_v23, %v3612_v30  ;;  %v16518_v35 = vor.u32 %v4737_v24, %v4736_v38  ;;  %v5498_v24 = vld [vmem:[#allocation2 + $0x8] sm:$0xf]  ;;  %v19777_v23 = vld [vmem:[#allocation9_spill] sm:$0xff] }
 0x30c   : >> { %v3969_v25 = vor.u32 %v3967_v12, %v3966_v51  ;;  %v4303_v6 = vshrl.u32 %v3747_v54, 16  ;;  %v4306_v44 = vshll.u32 %v3747_v54, 16  ;;  %v3554_v17 = vpop.permute.xlu0 %3553  ;;  %v3963_v52 = vsel %vm1054_vm5, %v3952_v46, %v3962_v57 }
 0x30d   : >> { %v3745_v56 = vsel %vm917_vm3, %v19773_v42, %v3554_v17  ;;  %12020 = vmatprep.mubr.msk.bf16.mxu0 %vm1262_vm6, %v3963_v52  ;;  %v4742_v59 = vor.u32 %v4741_v53, %v4740_v7  ;;  %v4403_v12 = vsel %vm1559_vm7, %v16500_v0, %v16508_v13  ;;  %v19778_v53 = vld [vmem:[#allocation28_spill] sm:$0xff]  ;;  %v19780_v17 = vld [vmem:[#allocation11_spill] sm:$0xff] }
 0x30e   : >> { %v4305_v45 = vrot.slane %v4303_v6, 3  ;;  %v4308_v39 = vrot.slane %v4306_v44, 4  ;;  %v3664_v27 = vpop.permute.xlu1 %3663  ;;  %v3970_v58 = vsel %vm1054_vm5, %v3959_v60, %v3969_v25  ;;  %v16667_v6 = vcombine.low %v5497_v61, %v5498_v24 }
 0x30f   : >> { %v3799_v63 = vsel %vm999_vm4, %v3745_v56, %v3664_v27  ;;  %12021 = vmatmul.mubr.msk.bf16.gmra.mrb[44].mxu0 %vm1262_vm6, %v3970_v58  ;;  %v16531_v46 = vsel %vm1559_vm7, %v16518_v35, %v4742_v59 }
 0x310   : >> { %v4744_v41 = vshrl.u32 %v3799_v63, 16  ;;  %v4747_v10 = vshll.u32 %v3799_v63, 16  ;;  %v4309_v15 = vor.u32 %v4308_v39, %v4305_v45 }
 0x312   : >> { %v4746_v28 = vrot.slane %v4744_v41, 3  ;;  %v4749_v3 = vrot.slane %v4747_v10, 4  ;;  %v4315_v22 = vsel %vm1559_vm7, %v4309_v15, %v19774_v32  ;;  %v5714_v10 = vshrl.u32 %v16667_v6, 16  ;;  %v19781_v32 = vld [vmem:[#allocation20_spill] sm:$0xff] }
 0x313   : >> { %12036 = vmatprep.mubr.msk.bf16.mxu0 %vm1262_vm6, %v4315_v22  ;;  %v5717_v15 = vshll.u32 %v16667_v6, 16 }
 0x314   : >> { %v16536_v18 = vor.u32 %v4749_v3, %v4746_v28 }
 0x316   : >> { %v16541_v48 = vsel %vm1559_vm7, %v4742_v59, %v16536_v18 }
 0x317   : >> { %12037 = vmatmul.mubr.msk.bf16.vlgmr.msra.gmra.mrb[0].mxu0 %vm1262_vm6, %v19775_v33 }
 0x318   : >> { %12085 = vmatpush3.bf16.msra.mxu0 %v16369_v21  ;;  %12040 = vmatprep.mubr.msk.bf16.mxu0 %vm1262_vm6, %v19776_v20  ;;  %v13398_v21 = vld [vmem:[%s15851_s17 + $0x118] sm:$0xff]  }
 0x319   : >> { %12086 = vmatprep.subr.bf16.mxu0 %v13394_v2 }
 0x31c   : >> { %12087 = vmatpush3.bf16.msra.mxu0 %v13394_v2  ;;  %v13426_v2 = vld [vmem:[%s15851_s17 + $0x150] sm:$0xff]  }
 0x31d   : >> { %12088 = vmatprep.subr.bf16.mxu0 %v13395_v55  ;;  %12144 = vmatprep.subr.bf16.mxu1 %v13426_v2 }
 0x31e   : >> { %12145 = vmatpush3.bf16.msra.mxu1 %v13426_v2 }
 0x31f   : >> { %12041 = vmatmul.mubr.msk.bf16.gmra.mrb[4].mxu0 %vm1262_vm6, %v16340_v11 }
 0x320   : >> { %12044 = vmatprep.mubr.msk.bf16.mxu0 %vm1262_vm6, %v16345_v4  ;;  %12089 = vmatpush3.bf16.msra.mxu0 %v13395_v55 }
 0x321   : >> { %12090 = vmatprep.subr.bf16.mxu0 %v13396_v9 }
 0x324   : >> { %12091 = vmatpush3.bf16.msra.mxu0 %v13396_v9  ;;  %v19783_v9 = vld [vmem:[#allocation26_spill] sm:$0xff] }
 0x325   : >> { %12092 = vmatprep.subr.bf16.mxu0 %v13397_v1 }
 0x327   : >> { %12045 = vmatmul.mubr.msk.bf16.gmra.mrb[8].mxu0 %vm1262_vm6, %v16356_v19 }
 0x328   : >> { %12048 = vmatprep.mubr.msk.bf16.mxu0 %vm1262_vm6, %v16359_v34  ;;  %12093 = vmatpush3.bf16.msra.mxu0 %v13397_v1 }
 0x329   : >> { %12094 = vmatprep.subr.bf16.mxu0 %v13398_v21 }
 0x32c   : >> { %12095 = vmatpush3.bf16.msra.mxu0 %v13398_v21  ;;  %v5499_v21 = vld [vmem:[#allocation2 + $0xc] sm:$0xf] }
 0x32f   : >> { %12049 = vmatmul.mubr.msk.bf16.gmra.mrb[12].mxu0 %vm1262_vm6, %v16377_v47 }
 0x330   : >> { %12052 = vmatprep.mubr.msk.bf16.mxu0 %vm1262_vm6, %v16388_v16 }
 0x337   : >> { %12053 = vmatmul.mubr.msk.bf16.gmra.mrb[16].mxu0 %vm1262_vm6, %v16395_v62 }
 0x338   : >> { %12056 = vmatprep.mubr.msk.bf16.mxu0 %vm1262_vm6, %v16406_v26 }
 0x33f   : >> { %12057 = vmatmul.mubr.msk.bf16.gmra.mrb[20].mxu0 %vm1262_vm6, %v16413_v5 }
 0x340   : >> { %12060 = vmatprep.mubr.msk.bf16.mxu0 %vm1262_vm6, %v16424_v36 }
 0x347   : >> { %12061 = vmatmul.mubr.msk.bf16.gmra.mrb[24].mxu0 %vm1262_vm6, %v16431_v29 }
 0x348   : >> { %12064 = vmatprep.mubr.msk.bf16.mxu0 %vm1262_vm6, %v16442_v8 }
 0x34f   : >> { %12065 = vmatmul.mubr.msk.bf16.gmra.mrb[28].mxu0 %vm1262_vm6, %v16449_v40 }
 0x350   : >> { %12068 = vmatprep.mubr.msk.bf16.mxu0 %vm1262_vm6, %v16460_v43 }
 0x357   : >> { %12069 = vmatmul.mubr.msk.bf16.gmra.mrb[32].mxu0 %vm1262_vm6, %v16467_v14 }
 0x358   : >> { %12072 = vmatprep.mubr.msk.bf16.mxu0 %vm1262_vm6, %v16478_v37 }
 0x35f   : >> { %12073 = vmatmul.mubr.msk.bf16.gmra.mrb[36].mxu0 %vm1262_vm6, %v16485_v31 }
 0x360   : >> { %12076 = vmatprep.mubr.msk.bf16.mxu0 %vm1262_vm6, %v16496_v50 }
 0x367   : >> { %12077 = vmatmul.mubr.msk.bf16.gmra.mrb[40].mxu0 %vm1262_vm6, %v16506_v49 }
 0x368   : >> { %12080 = vmatprep.mubr.msk.bf16.mxu0 %vm1262_vm6, %v4403_v12 }
 0x36f   : >> { %12081 = vmatmul.mubr.msk.bf16.gmra.mrb[48].mxu0 %vm1262_vm6, %v16508_v13 }
 0x370   : >> { %12096 = vmatprep.mubr.msk.bf16.mxu0 %vm1262_vm6, %v16340_v11  ;;  %v4739_v11 = vsel %vm1559_vm7, %v16508_v13, %v16518_v35  ;;  %v19779_v35 = vld [vmem:[#allocation21_spill] sm:$0xff] }
 0x377   : >> { %12097 = vmatmul.mubr.msk.bf16.vlgmr.msra.gmra.mrb[0].mxu0 %vm1262_vm6, %v16345_v4 }
 0x378   : >> { %12100 = vmatprep.mubr.msk.bf16.mxu0 %vm1262_vm6, %v16356_v19 }
 0x37f   : >> { %12101 = vmatmul.mubr.msk.bf16.gmra.mrb[4].mxu0 %vm1262_vm6, %v16359_v34 }
 0x380   : >> { %12104 = vmatprep.mubr.msk.bf16.mxu0 %vm1262_vm6, %v16377_v47 }
 0x387   : >> { %12105 = vmatmul.mubr.msk.bf16.gmra.mrb[8].mxu0 %vm1262_vm6, %v16388_v16 }
 0x388   : >> { %12108 = vmatprep.mubr.msk.bf16.mxu0 %vm1262_vm6, %v16395_v62 }
 0x38f   : >> { %12109 = vmatmul.mubr.msk.bf16.gmra.mrb[12].mxu0 %vm1262_vm6, %v16406_v26 }
 0x390   : >> { %12112 = vmatprep.mubr.msk.bf16.mxu0 %vm1262_vm6, %v16413_v5 }
 0x397   : >> { %12113 = vmatmul.mubr.msk.bf16.gmra.mrb[16].mxu0 %vm1262_vm6, %v16424_v36 }
 0x398   : >> { %12116 = vmatprep.mubr.msk.bf16.mxu0 %vm1262_vm6, %v16431_v29 }
 0x39f   : >> { %12117 = vmatmul.mubr.msk.bf16.gmra.mrb[20].mxu0 %vm1262_vm6, %v16442_v8 }
 0x3a0   : >> { %12120 = vmatprep.mubr.msk.bf16.mxu0 %vm1262_vm6, %v16449_v40  ;;  %v16658_v40 = vld [vmem:[%s16653_s24 + $0x1] ss:$0 sm:$0xff] }
 0x3a7   : >> { %12121 = vmatmul.mubr.msk.bf16.gmra.mrb[24].mxu0 %vm1262_vm6, %v16460_v43 }
 0x3a8   : >> { %12124 = vmatprep.mubr.msk.bf16.mxu0 %vm1262_vm6, %v16467_v14 }
 0x3af   : >> { %12125 = vmatmul.mubr.msk.bf16.gmra.mrb[28].mxu0 %vm1262_vm6, %v16478_v37 }
 0x3b0   : >> { %12128 = vmatprep.mubr.msk.bf16.mxu0 %vm1262_vm6, %v16485_v31 }
 0x3b7   : >> { %12129 = vmatmul.mubr.msk.bf16.gmra.mrb[32].mxu0 %vm1262_vm6, %v16496_v50 }
 0x3b8   : >> { %12132 = vmatprep.mubr.msk.bf16.mxu0 %vm1262_vm6, %v16506_v49 }
 0x3bf   : >> { %12133 = vmatmul.mubr.msk.bf16.gmra.mrb[36].mxu0 %vm1262_vm6, %v4403_v12  ;;  %v5716_v12 = vrot.slane %v5714_v10, 4 }
 0x3c0   : >> { %12136 = vmatprep.mubr.msk.bf16.mxu0 %vm1262_vm6, %v4739_v11  ;;  %v5719_v11 = vrot.slane %v5717_v15, 5 }
 0x3c2   : >> { %v16703_v24 = vor.u32 %v5719_v11, %v5716_v12 }
 0x3c7   : >> { %12137 = vmatmul.mubr.msk.bf16.gmra.mrb[40].mxu0 %vm1262_vm6, %v16531_v46 }
 0x3c8   : >> { %12140 = vmatprep.mubr.msk.bf16.mxu0 %vm1262_vm6, %v16541_v48  ;;  %v19782_v48 = vld [vmem:[#allocation29_spill] sm:$0xff] }
 0x3cf   : >> { %12141 = vmatmul.mubr.msk.bf16.gmra.mrb[52].mxu0 %vm1262_vm6, %v16536_v18 }
 0x3e2   : >> { %v12022_v4 = vpop.f32.mrb[44].mxu0 }
 0x3e3   : >> { %v4289_v19 = vpop.f32.mrb[45].mxu0 }
 0x3e4   : >> { %v12023_v34 = vpop.f32.mrb[46].mxu0 }
 0x3e5   : >> { %v4292_v47 = vpop.f32.mrb[47].mxu0 }
 0x442   : >> { %v12082_v16 = vpop.f32.mrb[48].mxu0 }
 0x443   : >> { %v16646_v62 = vadd.f32 %v12082_v16, %v12022_v4  ;;  %v4722_v26 = vpop.f32.mrb[49].mxu0 }
 0x444   : >> { %v16648_v5 = vadd.f32 %v4722_v26, %v4289_v19  ;;  %v12083_v36 = vpop.f32.mrb[50].mxu0  ;;  %v19784_v19 = vld [vmem:[#allocation19_spill] sm:$0xff] }
 0x445   : >> { %v4725_v29 = vpop.f32.mrb[51].mxu0 }
 0x446   : >> { %v16655_v8 = vadd.f32 %v4725_v29, %v4292_v47 }
 0x44a   : >> { %v12098_v43 = vpop.f32.mrb[0].mxu0 }
 0x44b   : >> { %v5079_v14 = vadd.f32 %v12098_v43, %v16658_v40  ;;  %v4834_v37 = vpop.f32.mrb[1].mxu0  ;;  %v13428_v43 = vld [vmem:[%s15851_s17 + $0x158] sm:$0xff]  }
 0x44c   : >> { %v5077_v31 = vadd.f32 %v16658_v40, %v4834_v37  ;;  %v12099_v50 = vpop.f32.mrb[2].mxu0  ;;  %12146 = vmatprep.subr.bf16.mxu1 %v13428_v43 }
 0x44d   : >> { %v5126_v0 = vmax.f32 %v5079_v14, 0.0  ;;  %v5080_v49 = vadd.f32 %v12099_v50, %v16658_v40  ;;  %v4837_v13 = vpop.f32.mrb[3].mxu0  ;;  %12147 = vmatpush3.bf16.msra.mxu1 %v13428_v43  ;;  %v19503_v43 = vrot.slane %v16667_v6, 5 }
 0x44e   : >> { %v5124_v60 = vmax.f32 %v5077_v31, 0.0  ;;  %v5078_v38 = vadd.f32 %v16658_v40, %v4837_v13 }
 0x44f   : >> { %v5173_v51 = vmul.f32 %v5126_v0, %v19777_v23  ;;  %v5127_v7 = vmax.f32 %v5080_v49, 0.0 }
 0x450   : >> { %v5171_v57 = vmul.f32 %v5124_v60, %v19778_v53  ;;  %v5125_v30 = vmax.f32 %v5078_v38, 0.0 }
 0x451   : >> { %v11332_v54 = vpack.c.bf16 %v5173_v51, %v5173_v51  ;;  %v5174_v25 = vmul.f32 %v5127_v7, %v19779_v35 }
 0x452   : >> { %v11330_v44 = vpack.c.bf16 %v5171_v57, %v5171_v57  ;;  %v5172_v52 = vmul.f32 %v5125_v30, %v19780_v17  ;;  %v12102_v42 = vpop.f32.mrb[4].mxu0 }
 0x453   : >> { %5409 = vst.msk [vmem:[#allocation2 + $0x18] sm:$0xf] %vm199_vm2, %v11332_v54  ;;  %v11333_v56 = vpack.c.bf16 %v5174_v25, %v5174_v25  ;;  %v5083_v59 = vadd.f32 %v12102_v42, %v16658_v40  ;;  %v4850_v45 = vpop.f32.mrb[5].mxu0  ;;  %v19785_v25 = vld [vmem:[#allocation25_spill] sm:$0xff] }
 0x454   : >> { %5407 = vst.msk [vmem:[#allocation2 + $0x10] sm:$0xf] %vm199_vm2, %v11330_v44  ;;  %v11331_v39 = vpack.c.bf16 %v5172_v52, %v5172_v52  ;;  %v5081_v27 = vadd.f32 %v16658_v40, %v4850_v45  ;;  %v12103_v58 = vpop.f32.mrb[6].mxu0 }
 0x455   : >> { %5410 = vst.msk [vmem:[#allocation2 + $0x1c] sm:$0xf] %vm199_vm2, %v11333_v56  ;;  %v5130_v63 = vmax.f32 %v5083_v59, 0.0  ;;  %v5084_v46 = vadd.f32 %v12103_v58, %v16658_v40  ;;  %v4853_v41 = vpop.f32.mrb[7].mxu0  ;;  %v19786_v59 = vld [vmem:[#allocation18_spill] sm:$0xff] }
 0x456   : >> { %5408 = vst.msk [vmem:[#allocation2 + $0x14] sm:$0xf] %vm199_vm2, %v11331_v39  ;;  %v5128_v28 = vmax.f32 %v5081_v27, 0.0  ;;  %v5082_v3 = vadd.f32 %v16658_v40, %v4853_v41 }
 0x457   : >> { %v5177_v22 = vmul.f32 %v5130_v63, %v19781_v32  ;;  %v5131_v18 = vmax.f32 %v5084_v46, 0.0  ;;  %v19787_v46 = vld [vmem:[#allocation27_spill] sm:$0xff] }
 0x458   : >> { %v5175_v33 = vmul.f32 %v5128_v28, %v19782_v48  ;;  %v5129_v20 = vmax.f32 %v5082_v3, 0.0  ;;  %v19788_v3 = vld [vmem:[#allocation22_spill] sm:$0xff]  ;;  %v19825_v32 = vld [vmem:[#allocation47_spill] sm:$0xff] }
 0x459   : >> { %v11336_v55 = vpack.c.bf16 %v5177_v22, %v5177_v22  ;;  %v5178_v1 = vmul.f32 %v5131_v18, %v19783_v9 }
 0x45a   : >> { %v11334_v4 = vpack.c.bf16 %v5175_v33, %v5175_v33  ;;  %v5176_v34 = vmul.f32 %v5129_v20, %v19784_v19  ;;  %v12106_v47 = vpop.f32.mrb[8].mxu0  ;;  %v16692_v50 = vld [vmem:[#allocation2 + $0x18] sm:$0xf] }
 0x45b   : >> { %5413 = vst.msk [vmem:[#allocation2 + $0x28] sm:$0xf] %vm199_vm2, %v11336_v55  ;;  %v11337_v16 = vpack.c.bf16 %v5178_v1, %v5178_v1  ;;  %v5087_v26 = vadd.f32 %v12106_v47, %v16658_v40  ;;  %v4866_v36 = vpop.f32.mrb[9].mxu0  ;;  %v16687_v29 = vld [vmem:[#allocation2 + $0x10] sm:$0xf] }
 0x45c   : >> { %5411 = vst.msk [vmem:[#allocation2 + $0x20] sm:$0xf] %vm199_vm2, %v11334_v4  ;;  %v11335_v14 = vpack.c.bf16 %v5176_v34, %v5176_v34  ;;  %v5085_v37 = vadd.f32 %v16658_v40, %v4866_v36  ;;  %v12107_v31 = vpop.f32.mrb[10].mxu0  ;;  %v16695_v0 = vcombine.low %v5499_v21, %v16687_v29  ;;  %v16697_v49 = vld [vmem:[#allocation2 + $0x1c] sm:$0xf]  ;;  %v13429_v4 = vld [vmem:[%s15851_s17 + $0x160] sm:$0xff]  }
 0x45d   : >> { %5414 = vst.msk [vmem:[#allocation2 + $0x2c] sm:$0xf] %vm199_vm2, %v11337_v16  ;;  %v5134_v13 = vmax.f32 %v5087_v26, 0.0  ;;  %v5088_v60 = vadd.f32 %v12107_v31, %v16658_v40  ;;  %v4869_v38 = vpop.f32.mrb[11].mxu0  ;;  %v16701_v61 = vld [vmem:[#allocation2 + $0x14] sm:$0xf]  ;;  %12148 = vmatprep.subr.bf16.mxu1 %v13429_v4 }
 0x45e   : >> { %5412 = vst.msk [vmem:[#allocation2 + $0x24] sm:$0xf] %vm199_vm2, %v11335_v14  ;;  %v5132_v7 = vmax.f32 %v5085_v37, 0.0  ;;  %v5086_v57 = vadd.f32 %v16658_v40, %v4869_v38  ;;  %v16711_v30 = vcombine.low %v16701_v61, %v16692_v50  ;;  %v6013_v54 = vrot.slane %v16695_v0, 5  ;;  %v13430_v34 = vld [vmem:[%s15851_s17 + $0x168] sm:$0xff]   ;;  %12149 = vmatpush3.bf16.msra.mxu1 %v13429_v4 }
 0x45f   : >> { %v5181_v44 = vmul.f32 %v5134_v13, %v19785_v25  ;;  %v5135_v52 = vmax.f32 %v5088_v60, 0.0  ;;  %v5722_v42 = vshrl.u32 %v16695_v0, 16  ;;  %v5725_v56 = vshll.u32 %v16695_v0, 16  ;;  %12150 = vmatprep.subr.bf16.mxu1 %v13430_v34 }
 0x460   : >> { %v5179_v45 = vmul.f32 %v5132_v7, %v19786_v59  ;;  %v5133_v39 = vmax.f32 %v5086_v57, 0.0  ;;  %v6015_v27 = vrot.slane %v16711_v30, 5  ;;  %v5731_v58 = vshrl.u32 %v16711_v30, 16 }
 0x461   : >> { %v11340_v63 = vpack.c.bf16 %v5181_v44, %v5181_v44  ;;  %v5182_v41 = vmul.f32 %v5135_v52, %v19787_v46  ;;  %v5724_v10 = vrot.slane %v5722_v42, 4  ;;  %v5727_v15 = vrot.slane %v5725_v56, 5  ;;  %v19810_v46 = vld [vmem:[#allocation17_spill] sm:$0xff] }
 0x462   : >> { %v11338_v28 = vpack.c.bf16 %v5179_v45, %v5179_v45  ;;  %v5180_v22 = vmul.f32 %v5133_v39, %v19788_v3  ;;  %v12110_v18 = vpop.f32.mrb[12].mxu0  ;;  %v6016_v2 = vsel %vm809_vm0, %v6013_v54, %v6015_v27  ;;  %v5733_v33 = vrot.slane %v5731_v58, 4  ;;  %v19790_v39 = vld [vmem:[#allocation23_spill] sm:$0xff]  ;;  %12151 = vmatpush3.bf16.msra.mxu1 %v13430_v34 }
 0x463   : >> { %5417 = vst.msk [vmem:[#allocation2 + $0x38] sm:$0xf] %vm199_vm2, %v11340_v63  ;;  %v11341_v20 = vpack.c.bf16 %v5182_v41, %v5182_v41  ;;  %v5091_v55 = vadd.f32 %v12110_v18, %v16658_v40  ;;  %6069 = vrot.lane.b32.xlu0 %v6016_v2, %s13933_s18  ;;  %v4882_v1 = vpop.f32.mrb[13].mxu0  ;;  %v5728_v21 = vor.u32 %v5727_v15, %v5724_v10  ;;  %v5734_v12 = vshll.u32 %v16711_v30, 16  ;;  %v16727_v11 = vld [vmem:[#allocation2 + $0x20] sm:$0xf] }
 0x464   : >> { %5415 = vst.msk [vmem:[#allocation2 + $0x30] sm:$0xf] %vm199_vm2, %v11338_v28  ;;  %v11339_v47 = vpack.c.bf16 %v5180_v22, %v5180_v22  ;;  %v5089_v16 = vadd.f32 %v16658_v40, %v4882_v1  ;;  %v12111_v26 = vpop.f32.mrb[14].mxu0  ;;  %v16735_v36 = vcombine.low %v16697_v49, %v16727_v11  ;;  %v19789_v30 = vld [vmem:[#allocation36_spill] sm:$0xff]  ;;  %v16755_v10 = vsel %vm809_vm0, %v19503_v43, %v6013_v54  ;;  %v19791_v22 = vld [vmem:[#allocation30_spill] sm:$0xff]  ;;  %v19792_v1 = vld [vmem:[#allocation35_spill] sm:$0xff] }
 0x465   : >> { %5418 = vst.msk [vmem:[#allocation2 + $0x3c] sm:$0xf] %vm199_vm2, %v11341_v20  ;;  %v5138_v14 = vmax.f32 %v5091_v55, 0.0  ;;  %v5092_v37 = vadd.f32 %v12111_v26, %v16658_v40  ;;  %v5729_v31 = vsel %vm509_vm1, %v16703_v24, %v5728_v21  ;;  %v4885_v0 = vpop.f32.mrb[15].mxu0  ;;  %v5736_v13 = vrot.slane %v5734_v12, 5  ;;  %v13431_v15 = vld [vmem:[%s15851_s17 + $0x170] sm:$0xff]  }
 0x466   : >> { %5416 = vst.msk [vmem:[#allocation2 + $0x34] sm:$0xf] %vm199_vm2, %v11339_v47  ;;  %v5136_v60 = vmax.f32 %v5089_v16, 0.0  ;;  %5957 = vrot.lane.b32.xlu1 %v5729_v31, %s13934_s19  ;;  %v5090_v38 = vadd.f32 %v16658_v40, %v4885_v0  ;;  %v6017_v7 = vrot.slane %v16735_v36, 5  ;;  %v5740_v57 = vshrl.u32 %v16735_v36, 16  ;;  %12152 = vmatprep.subr.bf16.mxu1 %v13431_v15 }
 0x467   : >> { %v5185_v44 = vmul.f32 %v5138_v14, %v19789_v30  ;;  %v5139_v52 = vmax.f32 %v5092_v37, 0.0  ;;  %v5737_v42 = vor.u32 %v5736_v13, %v5733_v33  ;;  %v5743_v56 = vshll.u32 %v16735_v36, 16  ;;  %v16749_v45 = vld [vmem:[#allocation2 + $0x24] sm:$0xf]  ;;  %v16760_v20 = vld [vmem:[#allocation2 + $0x28] sm:$0xf]  ;;  %12153 = vmatpush3.bf16.msra.mxu1 %v13431_v15 }
 0x468   : >> { %v5183_v58 = vmul.f32 %v5136_v60, %v19790_v39  ;;  %v5137_v63 = vmax.f32 %v5090_v38, 0.0  ;;  %v5742_v41 = vrot.slane %v5740_v57, 4  ;;  %v6018_v47 = vsel %vm809_vm0, %v6015_v27, %v6017_v7 }
 0x469   : >> { %v11344_v28 = vpack.c.bf16 %v5185_v44, %v5185_v44  ;;  %v5186_v18 = vmul.f32 %v5139_v52, %v19791_v22  ;;  %v5738_v2 = vsel %vm509_vm1, %v5728_v21, %v5737_v42  ;;  %v5745_v33 = vrot.slane %v5743_v56, 5 }
 0x46a   : >> { %v11342_v55 = vpack.c.bf16 %v5183_v58, %v5183_v58  ;;  %v5184_v12 = vmul.f32 %v5137_v63, %v19792_v1  ;;  %5959 = vrot.lane.b32.xlu0 %v5738_v2, %s13934_s19  ;;  %v12114_v4 = vpop.f32.mrb[16].mxu0  ;;  %v16767_v54 = vcombine.low %v16749_v45, %v16760_v20  ;;  %v19794_v2 = vld [vmem:[#allocation33_spill] sm:$0xff] }
 0x46b   : >> { %5421 = vst.msk [vmem:[#allocation2 + $0x48] sm:$0xf] %vm199_vm2, %v11344_v28  ;;  %v11345_v16 = vpack.c.bf16 %v5186_v18, %v5186_v18  ;;  %v5095_v21 = vadd.f32 %v12114_v4, %v16658_v40  ;;  %v4898_v26 = vpop.f32.mrb[17].mxu0  ;;  %v5746_v36 = vor.u32 %v5745_v33, %v5742_v41  ;;  %v5508_v60 = vld [vmem:[#allocation2 + $0x30] sm:$0xf] }
 0x46c   : >> { %5419 = vst.msk [vmem:[#allocation2 + $0x40] sm:$0xf] %vm199_vm2, %v11342_v55  ;;  %v11343_v37 = vpack.c.bf16 %v5184_v12, %v5184_v12  ;;  %v5093_v27 = vadd.f32 %v16658_v40, %v4898_v26  ;;  %v12115_v31 = vpop.f32.mrb[18].mxu0  ;;  %v5749_v0 = vshrl.u32 %v16767_v54, 16  ;;  %v5752_v13 = vshll.u32 %v16767_v54, 16 }
 0x46d   : >> { %5422 = vst.msk [vmem:[#allocation2 + $0x4c] sm:$0xf] %vm199_vm2, %v11345_v16  ;;  %v5142_v38 = vmax.f32 %v5095_v21, 0.0  ;;  %v5096_v57 = vadd.f32 %v12115_v31, %v16658_v40  ;;  %v5747_v44 = vsel %vm509_vm1, %v5737_v42, %v5746_v36  ;;  %v4901_v34 = vpop.f32.mrb[19].mxu0  ;;  %v6019_v52 = vrot.slane %v16767_v54, 5  ;;  %v19795_v16 = vld [vmem:[#allocation31_spill] sm:$0xff] }
 0x46e   : >> { %v5509_v56 = vld [vmem:[#allocation2 + $0x34] sm:$0xf]  ;;  %5420 = vst.msk [vmem:[#allocation2 + $0x44] sm:$0xf] %vm199_vm2, %v11343_v37  ;;  %6071 = vrot.lane.b32.xlu0 %v6018_v47, %s13933_s18  ;;  %v5140_v58 = vmax.f32 %v5093_v27, 0.0  ;;  %5961 = vrot.lane.b32.xlu1 %v5747_v44, %s13934_s19  ;;  %v5094_v63 = vadd.f32 %v16658_v40, %v4901_v34  ;;  %v5751_v41 = vrot.slane %v5749_v0, 4 }
 0x46f   : >> { %v5754_v28 = vrot.slane %v5752_v13, 5  ;;  %v16785_v18 = vld [vmem:[#allocation2 + $0x2c] sm:$0xf]  ;;  %v5189_v42 = vmul.f32 %v5142_v38, %v19794_v2  ;;  %v5143_v33 = vmax.f32 %v5096_v57, 0.0  ;;  %v6020_v55 = vsel %vm809_vm0, %v6017_v7, %v6019_v52  ;;  %v5510_v4 = vld [vmem:[#allocation2 + $0x38] sm:$0xf] }
 0x470   : >> { %19793 = vst [vmem:[#allocation99_spill] sm:$0xff] %v16785_v18  ;;  %v10937_v12 = vcombine.low %v16785_v18, %v5508_v60  ;;  %v13432_v47 = vld [vmem:[%s15851_s17 + $0x178] sm:$0xff]   ;;  %v5187_v21 = vmul.f32 %v5140_v58, %v19795_v16  ;;  %v5141_v26 = vmax.f32 %v5094_v63, 0.0  ;;  %v16794_v27 = vcombine.low %v5509_v56, %v5510_v4  ;;  %v19796_v0 = vld [vmem:[#allocation38_spill] sm:$0xff] }
 0x471   : >> { %v5755_v37 = vor.u32 %v5754_v28, %v5751_v41  ;;  %v11348_v31 = vpack.c.bf16 %v5189_v42, %v5189_v42  ;;  %v5190_v13 = vmul.f32 %v5143_v33, %v19796_v0  ;;  %12154 = vmatprep.subr.bf16.mxu1 %v13432_v47  ;;  %v19797_v34 = vld [vmem:[#allocation37_spill] sm:$0xff]  ;;  %v19808_v16 = vld [vmem:[#allocation12_spill] sm:$0xff] }
 0x472   : >> { %v5758_v38 = vshrl.u32 %v10937_v12, 16  ;;  %v5761_v57 = vshll.u32 %v10937_v12, 16  ;;  %v11346_v44 = vpack.c.bf16 %v5187_v21, %v5187_v21  ;;  %v5188_v7 = vmul.f32 %v5141_v26, %v19797_v34  ;;  %6067 = vrot.lane.b32.xlu1 %v16755_v10, %s13933_s18  ;;  %v12118_v15 = vpop.f32.mrb[20].mxu0  ;;  %12155 = vmatpush3.bf16.msra.mxu1 %v13432_v47  ;;  %v13433_v26 = vld [vmem:[%s15851_s17 + $0x120] sm:$0xff]  }
 0x473   : >> { %v5756_v60 = vsel %vm509_vm1, %v5746_v36, %v5755_v37  ;;  %v5767_v58 = vshrl.u32 %v16794_v27, 16  ;;  %5425 = vst.msk [vmem:[#allocation2 + $0x58] sm:$0xf] %vm199_vm2, %v11348_v31  ;;  %v11349_v56 = vpack.c.bf16 %v5190_v13, %v5190_v13  ;;  %v5099_v63 = vadd.f32 %v12118_v15, %v16658_v40  ;;  %v4914_v41 = vpop.f32.mrb[21].mxu0  ;;  %12204 = vmatprep.subr.bf16.mxu1 %v13433_v26 }
 0x474   : >> { %5963 = vrot.lane.b32.xlu0 %v5756_v60, %s13934_s19  ;;  %v5760_v28 = vrot.slane %v5758_v38, 4  ;;  %v5763_v42 = vrot.slane %v5761_v57, 5  ;;  %5423 = vst.msk [vmem:[#allocation2 + $0x50] sm:$0xf] %vm199_vm2, %v11346_v44  ;;  %v11347_v36 = vpack.c.bf16 %v5188_v7, %v5188_v7  ;;  %v5097_v10 = vadd.f32 %v16658_v40, %v4914_v41  ;;  %v12119_v33 = vpop.f32.mrb[22].mxu0 }
 0x475   : >> { %v5769_v4 = vrot.slane %v5767_v58, 4  ;;  %v5770_v21 = vshll.u32 %v16794_v27, 16  ;;  %5426 = vst.msk [vmem:[#allocation2 + $0x5c] sm:$0xf] %vm199_vm2, %v11349_v56  ;;  %v5146_v31 = vmax.f32 %v5099_v63, 0.0  ;;  %v5100_v13 = vadd.f32 %v12119_v33, %v16658_v40  ;;  %v4917_v15 = vpop.f32.mrb[23].mxu0 }
 0x476   : >> { %v5764_v60 = vor.u32 %v5763_v42, %v5760_v28  ;;  %v6021_v38 = vrot.slane %v10937_v12, 5  ;;  %v16811_v57 = vld [vmem:[#allocation2 + $0x40] sm:$0xf]  ;;  %5424 = vst.msk [vmem:[#allocation2 + $0x54] sm:$0xf] %vm199_vm2, %v11347_v36  ;;  %v5144_v47 = vmax.f32 %v5097_v10, 0.0  ;;  %v5098_v44 = vadd.f32 %v16658_v40, %v4917_v15 }
 0x477   : >> { %v5772_v7 = vrot.slane %v5770_v21, 5  ;;  %v19504_v58 = vrot.slane %v16794_v27, 5  ;;  %v16816_v41 = vld [vmem:[#allocation2 + $0x44] sm:$0xf]  ;;  %v19798_v56 = vld [vmem:[#allocation4_spill] sm:$0xff]  ;;  %v5147_v28 = vmax.f32 %v5100_v13, 0.0 }
 0x478   : >> { %v5193_v63 = vmul.f32 %v5146_v31, %v19798_v56  ;;  %6073 = vrot.lane.b32.xlu0 %v6020_v55, %s13933_s18  ;;  %v5765_v12 = vsel %vm509_vm1, %v5755_v37, %v5764_v60  ;;  %v6022_v42 = vsel %vm809_vm0, %v6019_v52, %v6021_v38  ;;  %v19799_v36 = vld [vmem:[#allocation34_spill] sm:$0xff]  ;;  %v5145_v33 = vmax.f32 %v5098_v44, 0.0  ;;  %v5511_v31 = vld [vmem:[#allocation2 + $0x3c] sm:$0xf] }
 0x479   : >> { %v5191_v10 = vmul.f32 %v5144_v47, %v19799_v36  ;;  %5965 = vrot.lane.b32.xlu1 %v5765_v12, %s13934_s19  ;;  %v5773_v21 = vor.u32 %v5772_v7, %v5769_v4  ;;  %v6024_v26 = vsel %vm809_vm0, %v6021_v38, %v19504_v58  ;;  %v16829_v15 = vld [vmem:[#allocation2 + $0x48] sm:$0xf]  ;;  %v10939_v54 = vcombine.low %v5511_v31, %v16811_v57  ;;  %v19801_v12 = vld [vmem:[#allocation5_spill] sm:$0xff] }
 0x47a   : >> { %v11352_v55 = vpack.c.bf16 %v5193_v63, %v5193_v63  ;;  %v19800_v13 = vld [vmem:[#allocation6_spill] sm:$0xff]  ;;  %v16835_v52 = vcombine.low %v16816_v41, %v16829_v15  ;;  %v5192_v44 = vmul.f32 %v5145_v33, %v19801_v12  ;;  %v12122_v7 = vpop.f32.mrb[24].mxu0  ;;  %v19802_v12 = vld [vmem:[#allocation7_spill] sm:$0xff] }
 0x47b   : >> { %v5194_v37 = vmul.f32 %v5147_v28, %v19800_v13  ;;  %v11350_v47 = vpack.c.bf16 %v5191_v10, %v5191_v10  ;;  %v5774_v4 = vsel %vm509_vm1, %v5764_v60, %v5773_v21  ;;  %v5103_v28 = vadd.f32 %v12122_v7, %v16658_v40  ;;  %v4930_v31 = vpop.f32.mrb[25].mxu0 }
 0x47c   : >> { %5429 = vst.msk [vmem:[#allocation2 + $0x68] sm:$0xf] %vm199_vm2, %v11352_v55  ;;  %5967 = vrot.lane.b32.xlu0 %v5774_v4, %s13934_s19  ;;  %v5776_v51 = vshrl.u32 %v10939_v54, 16  ;;  %v5779_v14 = vshll.u32 %v10939_v54, 16  ;;  %v11351_v10 = vpack.c.bf16 %v5192_v44, %v5192_v44  ;;  %v5101_v60 = vadd.f32 %v16658_v40, %v4930_v31  ;;  %v12123_v33 = vpop.f32.mrb[26].mxu0 }
 0x47d   : >> { %v11353_v63 = vpack.c.bf16 %v5194_v37, %v5194_v37  ;;  %5427 = vst.msk [vmem:[#allocation2 + $0x60] sm:$0xf] %vm199_vm2, %v11350_v47  ;;  %6075 = vrot.lane.b32.xlu1 %v6022_v42, %s13933_s18  ;;  %v5785_v38 = vshrl.u32 %v16835_v52, 16  ;;  %v5788_v55 = vshll.u32 %v16835_v52, 16  ;;  %v5150_v37 = vmax.f32 %v5103_v28, 0.0  ;;  %v4933_v58 = vpop.f32.mrb[27].mxu0 }
 0x47e   : >> { %v5104_v4 = vadd.f32 %v12123_v33, %v16658_v40  ;;  %v5778_v7 = vrot.slane %v5776_v51, 4  ;;  %v5781_v43 = vrot.slane %v5779_v14, 5  ;;  %5428 = vst.msk [vmem:[#allocation2 + $0x64] sm:$0xf] %vm199_vm2, %v11351_v10  ;;  %v5148_v47 = vmax.f32 %v5101_v60, 0.0  ;;  %v19803_v28 = vld [vmem:[#allocation10_spill] sm:$0xff] }
 0x47f   : >> { %5430 = vst.msk [vmem:[#allocation2 + $0x6c] sm:$0xf] %vm199_vm2, %v11353_v63  ;;  %v5102_v42 = vadd.f32 %v16658_v40, %v4933_v58  ;;  %v5787_v44 = vrot.slane %v5785_v38, 4  ;;  %v5790_v31 = vrot.slane %v5788_v55, 5  ;;  %v5197_v13 = vmul.f32 %v5150_v37, %v19802_v12  ;;  %v16859_v10 = vld [vmem:[#allocation2 + $0x50] sm:$0xf] }
 0x480   : >> { %6077 = vrot.lane.b32.xlu0 %v6024_v26, %s13933_s18  ;;  %v5151_v36 = vmax.f32 %v5104_v4, 0.0  ;;  %v5782_v56 = vor.u32 %v5781_v43, %v5778_v7  ;;  %v6025_v63 = vrot.slane %v10939_v54, 5  ;;  %v5195_v34 = vmul.f32 %v5148_v47, %v19803_v28  ;;  %v16861_v60 = vld [vmem:[#allocation2 + $0x54] sm:$0xf]  ;;  %v19804_v38 = vld [vmem:[#allocation13_spill] sm:$0xff] }
 0x481   : >> { %v5149_v33 = vmax.f32 %v5102_v42, 0.0  ;;  %v16856_v51 = vor.u32 %v5790_v31, %v5787_v44  ;;  %v19505_v14 = vrot.slane %v16835_v52, 5  ;;  %v11356_v58 = vpack.c.bf16 %v5197_v13, %v5197_v13  ;;  %v19806_v4 = vld [vmem:[#allocation8_spill] sm:$0xff] }
 0x482   : >> { %v5198_v55 = vmul.f32 %v5151_v36, %v19804_v38  ;;  %v5783_v37 = vsel %vm509_vm1, %v5773_v21, %v5782_v56  ;;  %v19805_v26 = vrot.slane %v16794_v27, 5  ;;  %v11354_v54 = vpack.c.bf16 %v5195_v34, %v5195_v34  ;;  %v12126_v42 = vpop.f32.mrb[28].mxu0  ;;  %v16875_v36 = vld [vmem:[#allocation2 + $0x4c] sm:$0xf]  ;;  %v16877_v21 = vld [vmem:[#allocation2 + $0x58] sm:$0xf] }
 0x483   : >> { %5969 = vrot.lane.b32.xlu1 %v5783_v37, %s13934_s19  ;;  %v5196_v7 = vmul.f32 %v5149_v33, %v19806_v4  ;;  %v5792_v47 = vsel %vm509_vm1, %v5782_v56, %v16856_v51  ;;  %v6028_v13 = vsel %vm809_vm0, %v6025_v63, %v19505_v14  ;;  %5433 = vst.msk [vmem:[#allocation2 + $0x78] sm:$0xf] %vm199_vm2, %v11356_v58  ;;  %v4946_v44 = vpop.f32.mrb[29].mxu0 }
 0x484   : >> { %v6026_v43 = vsel %vm809_vm0, %v19805_v26, %v6025_v63  ;;  %v11357_v27 = vpack.c.bf16 %v5198_v55, %v5198_v55  ;;  %5971 = vrot.lane.b32.xlu0 %v5792_v47, %s13934_s19  ;;  %v5107_v34 = vadd.f32 %v12126_v42, %v16658_v40  ;;  %v10941_v56 = vcombine.low %v16875_v36, %v16859_v10  ;;  %v16888_v63 = vld [vmem:[#allocation2 + $0x5c] sm:$0xf]  ;;  %v16890_v33 = vld [vmem:[#allocation2 + $0x60] sm:$0xf]  ;;  %v12127_v37 = vpop.f32.mrb[30].mxu0  ;;  %v19807_v47 = vld [vmem:[#allocation16_spill] sm:$0xff] }
 0x485   : >> { %v16886_v31 = vcombine.low %v16861_v60, %v16877_v21  ;;  %5431 = vst.msk [vmem:[#allocation2 + $0x70] sm:$0xf] %vm199_vm2, %v11354_v54  ;;  %v11355_v58 = vpack.c.bf16 %v5196_v7, %v5196_v7  ;;  %v5105_v55 = vadd.f32 %v16658_v40, %v4946_v44  ;;  %v16896_v26 = vcombine.low %v16888_v63, %v16890_v33  ;;  %v4949_v28 = vpop.f32.mrb[31].mxu0 }
 0x486   : >> { %5434 = vst.msk [vmem:[#allocation2 + $0x7c] sm:$0xf] %vm199_vm2, %v11357_v27  ;;  %v5154_v42 = vmax.f32 %v5107_v34, 0.0  ;;  %v5108_v14 = vadd.f32 %v12127_v37, %v16658_v40  ;;  %v5794_v4 = vshrl.u32 %v10941_v56, 16  ;;  %v5797_v38 = vshll.u32 %v10941_v56, 16 }
 0x487   : >> { %5432 = vst.msk [vmem:[#allocation2 + $0x74] sm:$0xf] %vm199_vm2, %v11355_v58  ;;  %6079 = vrot.lane.b32.xlu1 %v6026_v43, %s13933_s18  ;;  %v5152_v54 = vmax.f32 %v5105_v55, 0.0  ;;  %v5106_v7 = vadd.f32 %v16658_v40, %v4949_v28  ;;  %v5803_v44 = vshrl.u32 %v16886_v31, 16  ;;  %v5806_v12 = vshll.u32 %v16886_v31, 16  ;;  %v19809_v55 = vld [vmem:[#allocation15_spill] sm:$0xff] }
 0x488   : >> { %v5201_v0 = vmul.f32 %v5154_v42, %v19807_v47  ;;  %6081 = vrot.lane.b32.xlu0 %v6028_v13, %s13933_s18  ;;  %v5155_v27 = vmax.f32 %v5108_v14, 0.0  ;;  %v5796_v34 = vrot.slane %v5794_v4, 4  ;;  %v5799_v37 = vrot.slane %v5797_v38, 5 }
 0x489   : >> { %v5199_v2 = vmul.f32 %v5152_v54, %v19808_v16  ;;  %v5153_v1 = vmax.f32 %v5106_v7, 0.0  ;;  %v5805_v58 = vrot.slane %v5803_v44, 4  ;;  %v5808_v22 = vrot.slane %v5806_v12, 5 }
 0x48a   : >> { %v11360_v43 = vpack.c.bf16 %v5201_v0, %v5201_v0  ;;  %v5202_v39 = vmul.f32 %v5155_v27, %v19809_v55  ;;  %v5800_v28 = vor.u32 %v5799_v37, %v5796_v34  ;;  %v6029_v30 = vrot.slane %v10941_v56, 5  ;;  %v12130_v42 = vpop.f32.mrb[32].mxu0  ;;  %v19819_v55 = vld [vmem:[#allocation45_spill] sm:$0xff] }
 0x48b   : >> { %v11358_v3 = vpack.c.bf16 %v5199_v2, %v5199_v2  ;;  %v5200_v59 = vmul.f32 %v5153_v1, %v19810_v46  ;;  %v5809_v25 = vor.u32 %v5808_v22, %v5805_v58  ;;  %v6031_v13 = vrot.slane %v16886_v31, 5  ;;  %v4962_v56 = vpop.f32.mrb[33].mxu0  ;;  %v16920_v2 = vld [vmem:[#allocation2 + $0x64] sm:$0xf]  ;;  %v19812_v58 = vld [vmem:[#allocation24_spill] sm:$0xff] }
 0x48c   : >> { %5437 = vst.msk [vmem:[#allocation2 + $0x88] sm:$0xf] %vm199_vm2, %v11360_v43  ;;  %v11361_v14 = vpack.c.bf16 %v5202_v39, %v5202_v39  ;;  %v5801_v38 = vsel %vm509_vm1, %v16856_v51, %v5800_v28  ;;  %v19811_v12 = vrot.slane %v16835_v52, 5  ;;  %v5111_v4 = vadd.f32 %v12130_v42, %v16658_v40  ;;  %v12131_v31 = vpop.f32.mrb[34].mxu0 }
 0x48d   : >> { %5435 = vst.msk [vmem:[#allocation2 + $0x80] sm:$0xf] %vm199_vm2, %v11358_v3  ;;  %5973 = vrot.lane.b32.xlu1 %v5801_v38, %s13934_s19  ;;  %v11359_v22 = vpack.c.bf16 %v5200_v59, %v5200_v59  ;;  %v5810_v1 = vsel %vm509_vm1, %v5800_v28, %v5809_v25  ;;  %v6032_v39 = vsel %vm809_vm0, %v6029_v30, %v6031_v13  ;;  %v5812_v7 = vshrl.u32 %v16896_v26, 16  ;;  %v4965_v44 = vpop.f32.mrb[35].mxu0  ;;  %v16932_v59 = vld [vmem:[#allocation2 + $0x68] sm:$0xf] }
 0x48e   : >> { %v6030_v0 = vsel %vm809_vm0, %v19811_v12, %v6029_v30  ;;  %v5109_v51 = vadd.f32 %v16658_v40, %v4962_v56  ;;  %5438 = vst.msk [vmem:[#allocation2 + $0x8c] sm:$0xf] %vm199_vm2, %v11361_v14  ;;  %5975 = vrot.lane.b32.xlu0 %v5810_v1, %s13934_s19  ;;  %v5158_v52 = vmax.f32 %v5111_v4, 0.0  ;;  %v5112_v54 = vadd.f32 %v12131_v31, %v16658_v40  ;;  %v19813_v38 = vld [vmem:[#allocation14_spill] sm:$0xff] }
 0x48f   : >> { %v5815_v3 = vshll.u32 %v16896_v26, 16  ;;  %5436 = vst.msk [vmem:[#allocation2 + $0x84] sm:$0xf] %vm199_vm2, %v11359_v22  ;;  %v5110_v27 = vadd.f32 %v16658_v40, %v4965_v44  ;;  %v16938_v34 = vcombine.low %v16920_v2, %v16932_v59  ;;  %v6033_v37 = vrot.slane %v16896_v26, 5 }
 0x490   : >> { %v5156_v30 = vmax.f32 %v5109_v51, 0.0  ;;  %v5205_v43 = vmul.f32 %v5158_v52, %v19812_v58  ;;  %v5159_v28 = vmax.f32 %v5112_v54, 0.0  ;;  %v5814_v42 = vrot.slane %v5812_v7, 4  ;;  %v19814_v51 = vld [vmem:[#allocation41_spill] sm:$0xff]  ;;  %v16949_v54 = vld [vmem:[#allocation2 + $0x70] sm:$0xf] }
 0x491   : >> { %v5817_v14 = vrot.slane %v5815_v3, 5  ;;  %6083 = vrot.lane.b32.xlu1 %v6030_v0, %s13933_s18  ;;  %v5157_v4 = vmax.f32 %v5110_v27, 0.0  ;;  %v5821_v56 = vshrl.u32 %v16938_v34, 16  ;;  %v5824_v22 = vshll.u32 %v16938_v34, 16  ;;  %v19815_v3 = vld [vmem:[#allocation39_spill] sm:$0xff] }
 0x492   : >> { %v5203_v12 = vmul.f32 %v5156_v30, %v19813_v38  ;;  %v11364_v1 = vpack.c.bf16 %v5205_v43, %v5205_v43  ;;  %6085 = vrot.lane.b32.xlu0 %v6032_v39, %s13933_s18  ;;  %v5206_v31 = vmul.f32 %v5159_v28, %v19814_v51  ;;  %v6034_v52 = vsel %vm809_vm0, %v6031_v13, %v6033_v37  ;;  %v12134_v27 = vpop.f32.mrb[36].mxu0  ;;  %v16952_v38 = vld [vmem:[#allocation2 + $0x74] sm:$0xf] }
 0x493   : >> { %v5818_v26 = vor.u32 %v5817_v14, %v5814_v42  ;;  %v5204_v0 = vmul.f32 %v5157_v4, %v19815_v3  ;;  %v5823_v44 = vrot.slane %v5821_v56, 4  ;;  %v5826_v30 = vrot.slane %v5824_v22, 5  ;;  %19816 = vst [vmem:[#allocation100_spill] sm:$0xff] %v16952_v38  ;;  %v4978_v13 = vpop.f32.mrb[37].mxu0  ;;  %v16958_v14 = vld [vmem:[#allocation2 + $0x6c] sm:$0xf] }
 0x494   : >> { %v11362_v7 = vpack.c.bf16 %v5203_v12, %v5203_v12  ;;  %5441 = vst.msk [vmem:[#allocation2 + $0x98] sm:$0xf] %vm199_vm2, %v11364_v1  ;;  %v11365_v43 = vpack.c.bf16 %v5206_v31, %v5206_v31  ;;  %v5115_v28 = vadd.f32 %v12134_v27, %v16658_v40  ;;  %v6035_v42 = vrot.slane %v16938_v34, 5  ;;  %v12135_v22 = vpop.f32.mrb[38].mxu0  ;;  %v19818_v51 = vld [vmem:[#allocation40_spill] sm:$0xff] }
 0x495   : >> { %v5819_v39 = vsel %vm509_vm1, %v5809_v25, %v5818_v26  ;;  %v11363_v12 = vpack.c.bf16 %v5204_v0, %v5204_v0  ;;  %v5827_v4 = vor.u32 %v5826_v30, %v5823_v44  ;;  %v5113_v56 = vadd.f32 %v16658_v40, %v4978_v13  ;;  %v16965_v25 = vld [vmem:[#allocation2 + $0x78] sm:$0xf] }
 0x496   : >> { %5439 = vst.msk [vmem:[#allocation2 + $0x90] sm:$0xf] %vm199_vm2, %v11362_v7  ;;  %5977 = vrot.lane.b32.xlu1 %v5819_v39, %s13934_s19  ;;  %v10945_v1 = vcombine.low %v16958_v14, %v16949_v54  ;;  %5442 = vst.msk [vmem:[#allocation2 + $0x9c] sm:$0xf] %vm199_vm2, %v11365_v43  ;;  %v5162_v34 = vmax.f32 %v5115_v28, 0.0  ;;  %v6036_v31 = vsel %vm809_vm0, %v6033_v37, %v6035_v42  ;;  %v4981_v7 = vpop.f32.mrb[39].mxu0 }
 0x497   : >> { %v5116_v27 = vadd.f32 %v12135_v22, %v16658_v40  ;;  %v16972_v0 = vcombine.low %v16952_v38, %v16965_v25  ;;  %5440 = vst.msk [vmem:[#allocation2 + $0x94] sm:$0xf] %vm199_vm2, %v11363_v12  ;;  %v5828_v44 = vsel %vm509_vm1, %v5818_v26, %v5827_v4  ;;  %v5160_v30 = vmax.f32 %v5113_v56, 0.0  ;;  %v19817_v43 = vld [vmem:[#allocation42_spill] sm:$0xff] }
 0x498   : >> { %v5830_v39 = vshrl.u32 %v10945_v1, 16  ;;  %v5833_v13 = vshll.u32 %v10945_v1, 16  ;;  %5979 = vrot.lane.b32.xlu0 %v5828_v44, %s13934_s19  ;;  %v5209_v28 = vmul.f32 %v5162_v34, %v19817_v43  ;;  %v5114_v37 = vadd.f32 %v16658_v40, %v4981_v7 }
 0x499   : >> { %v5163_v3 = vmax.f32 %v5116_v27, 0.0  ;;  %v5839_v22 = vshrl.u32 %v16972_v0, 16  ;;  %v5207_v58 = vmul.f32 %v5160_v30, %v19818_v51  ;;  %v5842_v26 = vshll.u32 %v16972_v0, 16  ;;  %v19820_v30 = vld [vmem:[#allocation43_spill] sm:$0xff] }
 0x49a   : >> { %6087 = vrot.lane.b32.xlu1 %v6034_v52, %s13933_s18  ;;  %v5832_v46 = vrot.slane %v5830_v39, 4  ;;  %v5835_v12 = vrot.slane %v5833_v13, 5  ;;  %v11368_v56 = vpack.c.bf16 %v5209_v28, %v5209_v28  ;;  %v5161_v47 = vmax.f32 %v5114_v37, 0.0  ;;  %v12138_v7 = vpop.f32.mrb[40].mxu0 }
 0x49b   : >> { %v5210_v16 = vmul.f32 %v5163_v3, %v19819_v55  ;;  %v5841_v44 = vrot.slane %v5839_v22, 4  ;;  %v11366_v19 = vpack.c.bf16 %v5207_v58, %v5207_v58  ;;  %v5844_v27 = vrot.slane %v5842_v26, 5  ;;  %v4994_v51 = vpop.f32.mrb[41].mxu0  ;;  %v16989_v3 = vld [vmem:[#allocation2 + $0x80] sm:$0xf] }
 0x49c   : >> { %v5836_v34 = vor.u32 %v5835_v12, %v5832_v46  ;;  %v6037_v43 = vrot.slane %v10945_v1, 5  ;;  %5445 = vst.msk [vmem:[#allocation2 + $0xa8] sm:$0xf] %vm199_vm2, %v11368_v56  ;;  %6089 = vrot.lane.b32.xlu0 %v6036_v31, %s13933_s18  ;;  %v5208_v39 = vmul.f32 %v5161_v47, %v19820_v30  ;;  %v5119_v13 = vadd.f32 %v12138_v7, %v16658_v40  ;;  %v12139_v31 = vpop.f32.mrb[42].mxu0  ;;  %v17013_v7 = vld [vmem:[#allocation2 + $0x88] sm:$0xf] }
 0x49d   : >> { %v11369_v52 = vpack.c.bf16 %v5210_v16, %v5210_v16  ;;  %v19506_v28 = vrot.slane %v16972_v0, 5  ;;  %5443 = vst.msk [vmem:[#allocation2 + $0xa0] sm:$0xf] %vm199_vm2, %v11366_v19  ;;  %v5845_v58 = vor.u32 %v5844_v27, %v5841_v44  ;;  %v5117_v37 = vadd.f32 %v16658_v40, %v4994_v51  ;;  %v16995_v16 = vld [vmem:[#allocation2 + $0x84] sm:$0xf]  ;;  %v4997_v51 = vpop.f32.mrb[43].mxu0 }
 0x49e   : >> { %v5837_v46 = vsel %vm509_vm1, %v5827_v4, %v5836_v34  ;;  %v6038_v1 = vsel %vm809_vm0, %v6035_v42, %v6037_v43  ;;  %v16997_v47 = vld [vmem:[#allocation2 + $0x90] sm:$0xf]  ;;  %v11367_v22 = vpack.c.bf16 %v5208_v39, %v5208_v39  ;;  %v5166_v12 = vmax.f32 %v5119_v13, 0.0  ;;  %v17005_v42 = vld [vmem:[#allocation2 + $0x7c] sm:$0xf] }
 0x49f   : >> { %5446 = vst.msk [vmem:[#allocation2 + $0xac] sm:$0xf] %vm199_vm2, %v11369_v52  ;;  %5981 = vrot.lane.b32.xlu1 %v5837_v46, %s13934_s19  ;;  %v6040_v19 = vsel %vm809_vm0, %v6037_v43, %v19506_v28  ;;  %v5120_v4 = vadd.f32 %v12139_v31, %v16658_v40  ;;  %19821 = vst [vmem:[#allocation101_spill] sm:$0xff] %v17005_v42  ;;  %v5846_v26 = vsel %vm509_vm1, %v5836_v34, %v5845_v58  ;;  %v17015_v52 = vld [vmem:[#allocation2 + $0x8c] sm:$0xf]  ;;  %v19822_v43 = vld [vmem:[#allocation46_spill] sm:$0xff] }
 0x4a0   : >> { %v5164_v56 = vmax.f32 %v5117_v37, 0.0  ;;  %v17010_v44 = vcombine.low %v17005_v42, %v16989_v3  ;;  %v5118_v27 = vadd.f32 %v16658_v40, %v4997_v51  ;;  %5444 = vst.msk [vmem:[#allocation2 + $0xa4] sm:$0xf] %vm199_vm2, %v11367_v22  ;;  %5983 = vrot.lane.b32.xlu0 %v5846_v26, %s13934_s19  ;;  %v5213_v39 = vmul.f32 %v5166_v12, %v19822_v43  ;;  %v19823_v37 = vld [vmem:[#allocation44_spill] sm:$0xff]  ;;  %v19824_v12 = vld [vmem:[#allocation49_spill] sm:$0xff] }
 0x4a1   : >> { %v5167_v13 = vmax.f32 %v5120_v4, 0.0  ;;  %v17022_v34 = vcombine.low %v16995_v16, %v17013_v7  ;;  %v17026_v46 = vcombine.low %v17015_v52, %v16997_v47  ;;  %v17180_v42 = vld [vmem:[#allocation2 + $0xcc] sm:$0xf] }
 0x4a2   : >> { %v5211_v31 = vmul.f32 %v5164_v56, %v19823_v37  ;;  %v5848_v51 = vshrl.u32 %v17010_v44, 16  ;;  %v5851_v28 = vshll.u32 %v17010_v44, 16  ;;  %v5165_v22 = vmax.f32 %v5118_v27, 0.0  ;;  %v12142_v56 = vpop.f32.mrb[52].mxu0  ;;  %19832 = vst [vmem:[#allocation104_spill] sm:$0xff] %v17180_v42 }
 0x4a3   : >> { %6091 = vrot.lane.b32.xlu1 %v6038_v1, %s13933_s18  ;;  %v11372_v26 = vpack.c.bf16 %v5213_v39, %v5213_v39  ;;  %v5214_v4 = vmul.f32 %v5167_v13, %v19824_v12  ;;  %v5857_v43 = vshrl.u32 %v17022_v34, 16  ;;  %v5860_v30 = vshll.u32 %v17022_v34, 16  ;;  %v5010_v39 = vpop.f32.mrb[53].mxu0 }
 0x4a4   : >> { %v11370_v55 = vpack.c.bf16 %v5211_v31, %v5211_v31  ;;  %v5850_v9 = vrot.slane %v5848_v51, 4  ;;  %v5853_v48 = vrot.slane %v5851_v28, 5  ;;  %v5212_v17 = vmul.f32 %v5165_v22, %v19825_v32  ;;  %6093 = vrot.lane.b32.xlu0 %v6040_v19, %s13933_s18  ;;  %v12143_v28 = vpop.f32.mrb[54].mxu0 }
 0x4a5   : >> { %5449 = vst.msk [vmem:[#allocation2 + $0xb8] sm:$0xf] %vm199_vm2, %v11372_v26  ;;  %v11373_v27 = vpack.c.bf16 %v5214_v4, %v5214_v4  ;;  %v5859_v37 = vrot.slane %v5857_v43, 4  ;;  %v5862_v1 = vrot.slane %v5860_v30, 5  ;;  %v6041_v35 = vrot.slane %v17010_v44, 5  ;;  %v5013_v43 = vpop.f32.mrb[55].mxu0 }
 0x4a6   : >> { %5447 = vst.msk [vmem:[#allocation2 + $0xb0] sm:$0xf] %vm199_vm2, %v11370_v55  ;;  %v5854_v13 = vor.u32 %v5853_v48, %v5850_v9  ;;  %v11371_v12 = vpack.c.bf16 %v5212_v17, %v5212_v17  ;;  %v5070_v31 = vadd.f32 %v12142_v56, %v16646_v62  ;;  %v5068_v22 = vadd.f32 %v5010_v39, %v16648_v5  ;;  %v17044_v30 = vld [vmem:[#allocation2 + $0x94] sm:$0xf]  ;;  %v17051_v9 = vld [vmem:[#allocation2 + $0xa0] sm:$0xf] }
 0x4a7   : >> { %5450 = vst.msk [vmem:[#allocation2 + $0xbc] sm:$0xf] %vm199_vm2, %v11373_v27  ;;  %v5863_v51 = vor.u32 %v5862_v1, %v5859_v37  ;;  %v5866_v19 = vshrl.u32 %v17026_v46, 16  ;;  %v6043_v62 = vrot.slane %v17022_v34, 5  ;;  %v5869_v48 = vshll.u32 %v17026_v46, 16 }
 0x4a8   : >> { %v5855_v55 = vsel %vm509_vm1, %v5845_v58, %v5854_v13  ;;  %5448 = vst.msk [vmem:[#allocation2 + $0xb4] sm:$0xf] %vm199_vm2, %v11371_v12  ;;  %v5123_v17 = vadd.f32 %v16658_v40, %v5070_v31  ;;  %v17053_v44 = vld [vmem:[#allocation2 + $0xa4] sm:$0xf]  ;;  %v13471_v37 = vld [vmem:[%s16653_s24 + $0x1] ss:$0 sm:$0xff]  ;;  %v5069_v58 = vadd.f32 %v5013_v43, %v16655_v8 }
 0x4a9   : >> { %5985 = vrot.lane.b32.xlu1 %v5855_v55, %s13934_s19  ;;  %v5864_v5 = vsel %vm509_vm1, %v5854_v13, %v5863_v51  ;;  %v5121_v26 = vadd.f32 %v13471_v37, %v5068_v22  ;;  %v5868_v4 = vrot.slane %v5866_v19, 4  ;;  %v17059_v12 = vld [vmem:[#allocation2 + $0x98] sm:$0xf]  ;;  %v19826_v40 = vrot.slane %v16972_v0, 5  ;;  %v17069_v39 = vld [vmem:[#allocation2 + $0x9c] sm:$0xf] }
 0x4aa   : >> { %5987 = vrot.lane.b32.xlu0 %v5864_v5, %s13934_s19  ;;  %v5170_v56 = vmax.f32 %v5123_v17, 0.0  ;;  %v5871_v27 = vrot.slane %v5869_v48, 5  ;;  %v17067_v1 = vcombine.low %v17044_v30, %v17059_v12  ;;  %v17071_v13 = vld [vmem:[#allocation2 + $0xa8] sm:$0xf]  ;;  %v5122_v8 = vadd.f32 %v13471_v37, %v5069_v58  ;;  %v19828_v5 = vld [vmem:[#allocation48_spill] sm:$0xff] }
 0x4ab   : >> { %v6042_v34 = vsel %vm809_vm0, %v19826_v40, %v6041_v35  ;;  %v5168_v31 = vmax.f32 %v5121_v26, 0.0  ;;  %v17075_v28 = vcombine.low %v17069_v39, %v17051_v9  ;;  %v17079_v0 = vcombine.low %v17053_v44, %v17071_v13  ;;  %v19827_v22 = vld [vmem:[#allocation50_spill] sm:$0xff] }
 0x4ac   : >> { %v5217_v19 = vmul.f32 %v5170_v56, %v19827_v22  ;;  %v5872_v43 = vor.u32 %v5871_v27, %v5868_v4  ;;  %v5875_v55 = vshrl.u32 %v17067_v1, 16  ;;  %v5878_v17 = vshll.u32 %v17067_v1, 16  ;;  %v19829_v4 = vld [vmem:[#allocation51_spill] sm:$0xff] }
 0x4ad   : >> { %6095 = vrot.lane.b32.xlu1 %v6042_v34, %s13933_s18  ;;  %v6044_v48 = vsel %vm809_vm0, %v6041_v35, %v6043_v62  ;;  %v5215_v37 = vmul.f32 %v5168_v31, %v19828_v5  ;;  %v5169_v26 = vmax.f32 %v5122_v8, 0.0  ;;  %v6045_v22 = vrot.slane %v17026_v46, 5  ;;  %v17092_v34 = vld [vmem:[#allocation2 + $0xb0] sm:$0xf] }
 0x4ae   : >> { %v11376_v58 = vpack.c.bf16 %v5217_v19, %v5217_v19  ;;  %6097 = vrot.lane.b32.xlu0 %v6044_v48, %s13933_s18  ;;  %v5873_v40 = vsel %vm509_vm1, %v5863_v51, %v5872_v43  ;;  %v5877_v32 = vrot.slane %v5875_v55, 4  ;;  %v5880_v53 = vrot.slane %v5878_v17, 5  ;;  %v17103_v48 = vld [vmem:[#allocation2 + $0xac] sm:$0xf] }
 0x4af   : >> { %v11374_v56 = vpack.c.bf16 %v5215_v37, %v5215_v37  ;;  %v5216_v27 = vmul.f32 %v5169_v26, %v19829_v4  ;;  %v5884_v23 = vshrl.u32 %v17075_v28, 16  ;;  %v5887_v31 = vshll.u32 %v17075_v28, 16  ;;  %v17098_v19 = vld [vmem:[#allocation2 + $0xb4] sm:$0xf]  ;;  %v17129_v4 = vld [vmem:[#allocation2 + $0xbc] sm:$0xf] }
 0x4b0   : >> { %5453 = vst.msk [vmem:[#allocation2 + $0xc8] sm:$0xf] %vm199_vm2, %v11376_v58  ;;  %v5881_v35 = vor.u32 %v5880_v53, %v5877_v32  ;;  %v5893_v8 = vshrl.u32 %v17079_v0, 16  ;;  %v5896_v51 = vshll.u32 %v17079_v0, 16  ;;  %v6047_v55 = vrot.slane %v17067_v1, 5 }
 0x4b1   : >> { %5451 = vst.msk [vmem:[#allocation2 + $0xc0] sm:$0xf] %vm199_vm2, %v11374_v56  ;;  %5989 = vrot.lane.b32.xlu1 %v5873_v40, %s13934_s19  ;;  %v11375_v46 = vpack.c.bf16 %v5216_v27, %v5216_v27  ;;  %v5886_v17 = vrot.slane %v5884_v23, 4  ;;  %v5889_v32 = vrot.slane %v5887_v31, 5  ;;  %v17106_v58 = vld [vmem:[#allocation2 + $0xb8] sm:$0xf]  ;;  %v17112_v40 = vcombine.low %v17103_v48, %v17092_v34 }
 0x4b2   : >> { %v5882_v53 = vsel %vm509_vm1, %v5872_v43, %v5881_v35  ;;  %v5895_v37 = vrot.slane %v5893_v8, 4  ;;  %v5898_v26 = vrot.slane %v5896_v51, 5  ;;  %v17116_v23 = vcombine.low %v17098_v19, %v17106_v58 }
 0x4b3   : >> { %5452 = vst.msk [vmem:[#allocation2 + $0xc4] sm:$0xf] %vm199_vm2, %v11375_v46  ;;  %5991 = vrot.lane.b32.xlu0 %v5882_v53, %s13934_s19  ;;  %v6046_v1 = vsel %vm809_vm0, %v6043_v62, %v6045_v22  ;;  %v5890_v43 = vor.u32 %v5889_v32, %v5886_v17  ;;  %v5902_v27 = vshrl.u32 %v17112_v40, 16  ;;  %v5905_v31 = vshll.u32 %v17112_v40, 16 }
 0x4b4   : >> { %v5899_v56 = vor.u32 %v5898_v26, %v5895_v37  ;;  %v5911_v8 = vshrl.u32 %v17116_v23, 16  ;;  %v5914_v51 = vshll.u32 %v17116_v23, 16  ;;  %v6048_v46 = vsel %vm809_vm0, %v6045_v22, %v6047_v55  ;;  %v17165_v22 = vld [vmem:[#allocation2 + $0xd0] sm:$0xf] }
 0x4b5   : >> { %6099 = vrot.lane.b32.xlu1 %v6046_v1, %s13933_s18  ;;  %v5891_v53 = vsel %vm509_vm1, %v5881_v35, %v5890_v43  ;;  %v6049_v17 = vrot.slane %v17075_v28, 5  ;;  %v5904_v32 = vrot.slane %v5902_v27, 4  ;;  %v5907_v37 = vrot.slane %v5905_v31, 5  ;;  %19831 = vst [vmem:[#allocation103_spill] sm:$0xff] %v17165_v22 }
 0x4b6   : >> { %v5900_v62 = vsel %vm509_vm1, %v5890_v43, %v5899_v56  ;;  %v5913_v26 = vrot.slane %v5911_v8, 4  ;;  %v5916_v1 = vrot.slane %v5914_v51, 5  ;;  %v6051_v35 = vrot.slane %v17079_v0, 5 }
 0x4b7   : >> { %6101 = vrot.lane.b32.xlu0 %v6048_v46, %s13933_s18  ;;  %v5908_v43 = vor.u32 %v5907_v37, %v5904_v32  ;;  %v17159_v27 = vld [vmem:[#allocation2 + $0xc8] sm:$0xf] }
 0x4b8   : >> { %v17131_v5 = vld [vmem:[#allocation2 + $0xc0] sm:$0xf]  ;;  %19830 = vst [vmem:[#allocation102_spill] sm:$0xff] %v17159_v27  ;;  %v5917_v8 = vor.u32 %v5916_v1, %v5913_v26  ;;  %v6053_v1 = vrot.slane %v17112_v40, 5 }
 0x4b9   : >> { %5993 = vrot.lane.b32.xlu1 %v5891_v53, %s13934_s19  ;;  %v17141_v28 = vcombine.low %v17129_v4, %v17131_v5  ;;  %v6050_v53 = vsel %vm809_vm0, %v6047_v55, %v6049_v17  ;;  %v6052_v55 = vsel %vm809_vm0, %v6049_v17, %v6051_v35  ;;  %v5909_v46 = vsel %vm509_vm1, %v5899_v56, %v5908_v43 }
 0x4ba   : >> { %v17145_v31 = vld [vmem:[#allocation2 + $0xc4] sm:$0xf]  ;;  %v10957_v17 = vcombine.low %v17180_v42, %v17165_v22 }
 0x4bb   : >> { %5995 = vrot.lane.b32.xlu0 %v5900_v62, %s13934_s19  ;;  %v5920_v32 = vshrl.u32 %v17141_v28, 16  ;;  %v5923_v37 = vshll.u32 %v17141_v28, 16  ;;  %v17163_v51 = vcombine.low %v17145_v31, %v17159_v27 }
 0x4bc   : >> { %v5941_v40 = vshll.u32 %v10957_v17, 16 }
 0x4bd   : >> { %6103 = vrot.lane.b32.xlu1 %v6050_v53, %s13933_s18  ;;  %v5922_v18 = vrot.slane %v5920_v32, 4  ;;  %v5925_v27 = vrot.slane %v5923_v37, 5  ;;  %v5929_v38 = vshrl.u32 %v17163_v51, 16  ;;  %v5932_v0 = vshll.u32 %v17163_v51, 16 }
 0x4be   : >> { %v5918_v37 = vsel %vm509_vm1, %v5908_v43, %v5917_v8  ;;  %v6055_v32 = vrot.slane %v17116_v23, 5 }
 0x4bf   : >> { %6105 = vrot.lane.b32.xlu0 %v6052_v55, %s13933_s18  ;;  %v5931_v26 = vrot.slane %v5929_v38, 4  ;;  %v5934_v62 = vrot.slane %v5932_v0, 5  ;;  %v17194_v55 = vld [vmem:[#allocation2 + $0xd4] sm:$0xf]  ;;  %v5926_v43 = vor.u32 %v5925_v27, %v5922_v18  ;;  %v5938_v38 = vshrl.u32 %v10957_v17, 16 }
 0x4c0   : >> { %v10958_v42 = vcombine.low %v17194_v55, %v17194_v55  ;;  %v6056_v56 = vsel %vm809_vm0, %v6053_v1, %v6055_v32  ;;  %v5943_v18 = vrot.slane %v5941_v40, 5 }
 0x4c1   : >> { %5997 = vrot.lane.b32.xlu1 %v5909_v46, %s13934_s19  ;;  %v6054_v46 = vsel %vm809_vm0, %v6051_v35, %v6053_v1  ;;  %v5935_v0 = vor.u32 %v5934_v62, %v5931_v26  ;;  %v5927_v22 = vsel %vm509_vm1, %v5917_v8, %v5926_v43  ;;  %v5940_v23 = vrot.slane %v5938_v38, 4 }
 0x4c2   : >> { %v5947_v53 = vshrl.u32 %v10958_v42, 16  ;;  %v5950_v35 = vshll.u32 %v10958_v42, 16  ;;  %v6059_v62 = vrot.slane %v17163_v51, 5 }
 0x4c3   : >> { %5999 = vrot.lane.b32.xlu0 %v5918_v37, %s13934_s19  ;;  %v5936_v27 = vsel %vm509_vm1, %v5926_v43, %v5935_v0  ;;  %v6057_v37 = vrot.slane %v17141_v28, 5  ;;  %v5944_v1 = vor.u32 %v5943_v18, %v5940_v23  ;;  %v5550_v28 = vld [vmem:[#allocation2 + $0xd8] sm:$0x1]  ;;  %v6061_v43 = vrot.slane %v10957_v17, 5 }
 0x4c4   : >> { %v5949_v8 = vrot.slane %v5947_v53, 4  ;;  %v10959_v51 = vcombine.low %v17194_v55, %v5550_v28  ;;  %v19833_v17 = vrot.slane %v16667_v6, 5  ;;  %v19834_v18 = vcombine.low %v16687_v29, %v16701_v61 }
 0x4c5   : >> { %6107 = vrot.lane.b32.xlu1 %v6054_v46, %s13933_s18  ;;  %v6058_v26 = vsel %vm809_vm0, %v6055_v32, %v6057_v37  ;;  %v5952_v46 = vrot.slane %v5950_v35, 5  ;;  %v5945_v42 = vsel %vm509_vm1, %v5935_v0, %v5944_v1  ;;  %v6062_v53 = vsel %vm809_vm0, %v6059_v62, %v6061_v43 }
 0x4c6   : >> { %v6063_v38 = vrot.slane %v10959_v51, 5 }
 0x4c7   : >> { %6109 = vrot.lane.b32.xlu0 %v6056_v56, %s13933_s18  ;;  %v6060_v56 = vsel %vm809_vm0, %v6057_v37, %v6059_v62 }
 0x4c8   : >> { %v6064_v0 = vsel %vm809_vm0, %v6061_v43, %v6063_v38 }
 0x4c9   : >> { %6001 = vrot.lane.b32.xlu1 %v5927_v22, %s13934_s19  ;;  %v5953_v22 = vor.u32 %v5952_v46, %v5949_v8 }
 0x4cb   : >> { %6003 = vrot.lane.b32.xlu0 %v5936_v27, %s13934_s19  ;;  %v5954_v32 = vsel %vm509_vm1, %v5944_v1, %v5953_v22  ;;  %v13473_v1 = vld [vmem:[#allocation2 + $0xc] sm:$0xf] }
 0x4cd   : >> { %6111 = vrot.lane.b32.xlu1 %v6058_v26, %s13933_s18  ;;  %v13472_v26 = vld [vmem:[#allocation2 + $0x8] sm:$0xf] }
 0x4ce   : >> { %v10906_v8 = vcombine.low %v13472_v26, %v13473_v1 }
 0x4cf   : >> { %6113 = vrot.lane.b32.xlu0 %v6060_v56, %s13933_s18 }
 0x4d1   : >> { %6005 = vrot.lane.b32.xlu1 %v5945_v42, %s13934_s19  ;;  %v19835_v42 = vcombine.low %v16692_v50, %v16697_v49 }
 0x4d3   : >> { %5955 = vrot.lane.b32.xlu0 %v16703_v24, %s13934_s19 }
 0x4d5   : >> { %6115 = vrot.lane.b32.xlu1 %v6062_v53, %s13933_s18  ;;  %v6070_v40 = vpop.permute.xlu0 %6069 }
 0x4d7   : >> { %6007 = vrot.lane.b32.xlu0 %v5954_v32, %s13934_s19 }
 0x4d8   : >> { %v5958_v23 = vpop.permute.xlu1 %5957 }
 0x4d9   : >> { %6065 = vrot.lane.b32.xlu1 %v19833_v17, %s13933_s18  ;;  %v6124_v53 = vsel %vm917_vm3, %v10906_v8, %v5958_v23  ;;  %v19836_v23 = vcombine.low %v16727_v11, %v16749_v45 }
 0x4dc   : >> { %v5960_v24 = vpop.permute.xlu0 %5959 }
 0x4dd   : >> { %6117 = vrot.lane.b32.xlu1 %v6064_v0, %s13933_s18  ;;  %v6127_v27 = vsel %vm917_vm3, %v19834_v18, %v5960_v24 }
 0x4de   : >> { %v6205_v37 = vsel %vm999_vm4, %v6127_v27, %v6070_v40 }
 0x4df   : >> { %v6257_v35 = vshrl.u32 %v6205_v37, 16  ;;  %v6260_v62 = vshll.u32 %v6205_v37, 16 }
 0x4e0   : >> { %v6072_v6 = vpop.permute.xlu0 %6071  ;;  %v5962_v46 = vpop.permute.xlu1 %5961 }
 0x4e1   : >> { %v6770_v56 = vrot.slane %v6257_v35, 3  ;;  %v6771_v28 = vrot.slane %v6260_v62, 4  ;;  %v6130_v43 = vsel %vm917_vm3, %v19835_v42, %v5962_v46  ;;  %v6259_v38 = vrot.slane %v6257_v35, 7 }
 0x4e2   : >> { %v6207_v29 = vsel %vm999_vm4, %v6130_v43, %v6072_v6 }
 0x4e3   : >> { %v6772_v61 = vor.u32 %v6771_v28, %v6770_v56  ;;  %v6264_v22 = vshrl.u32 %v6207_v29, 16  ;;  %v6267_v51 = vshll.u32 %v6207_v29, 16  ;;  %v6262_v46 = vor.u32 %v6260_v62, %v6259_v38 }
 0x4e4   : >> { %v6068_v32 = vpop.permute.xlu1 %6067 }
 0x4e5   : >> { %v6266_v40 = vrot.slane %v6264_v22, 7  ;;  %v6774_v17 = vrot.slane %v6264_v22, 3  ;;  %v6775_v0 = vrot.slane %v6267_v51, 4  ;;  %v6203_v18 = vsel %vm999_vm4, %v6124_v53, %v6068_v32  ;;  %v13434_v22 = vld [vmem:[%s15851_s17 + $0x128] sm:$0xff]  }
 0x4e6   : >> { %v5964_v24 = vpop.permute.xlu0 %5963  ;;  %v6254_v27 = vshrl.u32 %v6203_v18, 16  ;;  %v6765_v50 = vshll.u32 %v6203_v18, 16 }
 0x4e7   : >> { %v6269_v49 = vor.u32 %v6267_v51, %v6266_v40  ;;  %v6776_v37 = vor.u32 %v6775_v0, %v6774_v17  ;;  %v6133_v35 = vsel %vm917_vm3, %v19836_v23, %v5964_v24  ;;  %v13474_v0 = vld [vmem:[%s15851_s17 + $0x120] sm:$0xff]   ;;  %v19837_v24 = vld [vmem:[#allocation99_spill] sm:$0xff] }
 0x4e8   : >> { %v6764_v26 = vrot.slane %v6254_v27, 3  ;;  %v6767_v1 = vrot.slane %v6765_v50, 4  ;;  %v6256_v6 = vrot.slane %v6254_v27, 7  ;;  %v19838_v18 = vcombine.low %v16760_v20, %v19837_v24 }
 0x4e9   : >> { %v6270_v56 = vsel %vm1054_vm5, %v6259_v38, %v6269_v49  ;;  %v17252_v28 = vsel %vm1559_vm7, %v6772_v61, %v6776_v37  ;;  %v13435_v49 = vld [vmem:[%s15851_s17 + $0x130] sm:$0xff]  }
 0x4ea   : >> { %v6074_v8 = vpop.permute.xlu0 %6073  ;;  %v6263_v29 = vsel %vm1054_vm5, %v6256_v6, %v6262_v46  ;;  %v17257_v62 = vor.u32 %v6767_v1, %v6764_v26  ;;  %v13475_v1 = vld [vmem:[#allocation2 + $0x30] sm:$0xf]  ;;  %v13476_v6 = vld [vmem:[#allocation2 + $0x34] sm:$0xf] }
 0x4eb   : >> { %v6209_v42 = vsel %vm999_vm4, %v6133_v35, %v6074_v8  ;;  %v5966_v43 = vpop.permute.xlu1 %5965  ;;  %12156 = vmatprep.mubr.msk.bf16.mxu1 %vm1262_vm6, %v6263_v29  ;;  %v10911_v46 = vcombine.low %v13475_v1, %v13476_v6  ;;  %v13478_v1 = vld [vmem:[#allocation2 + $0x3c] sm:$0xf] }
 0x4ec   : >> { %v6271_v51 = vshrl.u32 %v6209_v42, 16  ;;  %v6274_v11 = vshll.u32 %v6209_v42, 16  ;;  %12157 = vmatmul.mubr.msk.bf16.vlgmr.msra.gmra.mrb[0].mxu1 %vm1262_vm6, %v6270_v56  ;;  %v17263_v45 = vsel %vm1559_vm7, %v17257_v62, %v6772_v61  ;;  %v6136_v27 = vsel %vm917_vm3, %v19838_v18, %v5966_v43 }
 0x4ed   : >> { %12205 = vmatpush3.bf16.msra.mxu1 %v13474_v0 }
 0x4ee   : >> { %v6273_v53 = vrot.slane %v6271_v51, 7  ;;  %v6778_v32 = vrot.slane %v6271_v51, 3  ;;  %v6779_v38 = vrot.slane %v6274_v11, 4  ;;  %v5968_v17 = vpop.permute.xlu0 %5967  ;;  %12206 = vmatprep.subr.bf16.mxu1 %v13434_v22 }
 0x4ef   : >> { %v6076_v50 = vpop.permute.xlu1 %6075  ;;  %v6139_v56 = vsel %vm917_vm3, %v10911_v46, %v5968_v17 }
 0x4f0   : >> { %v6276_v26 = vor.u32 %v6274_v11, %v6273_v53  ;;  %v6211_v61 = vsel %vm999_vm4, %v6136_v27, %v6076_v50  ;;  %v6780_v23 = vor.u32 %v6779_v38, %v6778_v32  ;;  %v13436_v32 = vld [vmem:[%s15851_s17 + $0x138] sm:$0xff]  }
 0x4f1   : >> { %v6278_v35 = vshrl.u32 %v6211_v61, 16  ;;  %v6281_v8 = vshll.u32 %v6211_v61, 16  ;;  %12207 = vmatpush3.bf16.msra.mxu1 %v13434_v22  ;;  %v13441_v61 = vld [vmem:[%s15851_s17 + $0x140] sm:$0xff]  }
 0x4f2   : >> { %v6078_v42 = vpop.permute.xlu0 %6077  ;;  %v6277_v20 = vsel %vm1054_vm5, %v6266_v40, %v6276_v26  ;;  %v17275_v43 = vsel %vm1559_vm7, %v6776_v37, %v6780_v23  ;;  %12208 = vmatprep.subr.bf16.mxu1 %v13435_v49  ;;  %v13477_v26 = vld [vmem:[#allocation2 + $0x38] sm:$0xf] }
 0x4f3   : >> { %v6280_v29 = vrot.slane %v6278_v35, 7  ;;  %v6782_v51 = vrot.slane %v6278_v35, 3  ;;  %v6783_v11 = vrot.slane %v6281_v8, 4  ;;  %v6213_v0 = vsel %vm999_vm4, %v6139_v56, %v6078_v42  ;;  %12160 = vmatprep.mubr.msk.bf16.mxu1 %vm1262_vm6, %v6277_v20 }
 0x4f4   : >> { %v6285_v38 = vshrl.u32 %v6213_v0, 16  ;;  %v6288_v24 = vshll.u32 %v6213_v0, 16  ;;  %v10912_v6 = vcombine.low %v13477_v26, %v13478_v1 }
 0x4f5   : >> { %v6283_v17 = vor.u32 %v6281_v8, %v6280_v29  ;;  %v5970_v18 = vpop.permute.xlu1 %5969  ;;  %v6784_v27 = vor.u32 %v6783_v11, %v6782_v51  ;;  %12209 = vmatpush3.bf16.msra.mxu1 %v13435_v49  ;;  %v19839_v49 = vcombine.low %v16811_v57, %v16816_v41 }
 0x4f6   : >> { %v6287_v40 = vrot.slane %v6285_v38, 7  ;;  %v6786_v22 = vrot.slane %v6285_v38, 3  ;;  %v6787_v50 = vrot.slane %v6288_v24, 4  ;;  %v5972_v37 = vpop.permute.xlu0 %5971  ;;  %12210 = vmatprep.subr.bf16.mxu1 %v13436_v32  ;;  %v6142_v42 = vsel %vm917_vm3, %v10912_v6, %v5970_v18  ;;  %v13445_v18 = vld [vmem:[%s15851_s17 + $0x148] sm:$0xff]  }
 0x4f7   : >> { %v6284_v46 = vsel %vm1054_vm5, %v6273_v53, %v6283_v17  ;;  %v17283_v35 = vsel %vm1559_vm7, %v6780_v23, %v6784_v27  ;;  %v6145_v51 = vsel %vm917_vm3, %v19839_v49, %v5972_v37 }
 0x4f8   : >> { %v6290_v56 = vor.u32 %v6288_v24, %v6287_v40  ;;  %12161 = vmatmul.mubr.msk.bf16.gmra.mrb[4].mxu1 %vm1262_vm6, %v6284_v46  ;;  %v6788_v8 = vor.u32 %v6787_v50, %v6786_v22 }
 0x4f9   : >> { %v6080_v20 = vpop.permute.xlu1 %6079  ;;  %12211 = vmatpush3.bf16.msra.mxu1 %v13436_v32 }
 0x4fa   : >> { %v6215_v53 = vsel %vm999_vm4, %v6142_v42, %v6080_v20  ;;  %v6082_v11 = vpop.permute.xlu0 %6081  ;;  %v6291_v0 = vsel %vm1054_vm5, %v6280_v29, %v6290_v56  ;;  %v17294_v23 = vsel %vm1559_vm7, %v6784_v27, %v6788_v8  ;;  %12212 = vmatprep.subr.bf16.mxu1 %v13441_v61  ;;  %v17300_v42 = vld [vmem:[%s15851_s17 + $0x180] sm:$0xff]  }
 0x4fb   : >> { %v6292_v38 = vshrl.u32 %v6215_v53, 16  ;;  %v6295_v24 = vshll.u32 %v6215_v53, 16  ;;  %v6217_v17 = vsel %vm999_vm4, %v6145_v51, %v6082_v11  ;;  %12164 = vmatprep.mubr.msk.bf16.mxu1 %vm1262_vm6, %v6291_v0  ;;  %v19840_v11 = vcombine.low %v16829_v15, %v16875_v36 }
 0x4fc   : >> { %v6299_v57 = vshrl.u32 %v6217_v17, 16  ;;  %v6302_v41 = vshll.u32 %v6217_v17, 16 }
 0x4fd   : >> { %v6294_v22 = vrot.slane %v6292_v38, 7  ;;  %v6790_v50 = vrot.slane %v6292_v38, 3  ;;  %v6791_v37 = vrot.slane %v6295_v24, 4  ;;  %12213 = vmatpush3.bf16.msra.mxu1 %v13441_v61 }
 0x4fe   : >> { %v6301_v26 = vrot.slane %v6299_v57, 7  ;;  %v6794_v29 = vrot.slane %v6299_v57, 3  ;;  %v6795_v32 = vrot.slane %v6302_v41, 4  ;;  %12214 = vmatprep.subr.bf16.mxu1 %v13445_v18 }
 0x4ff   : >> { %v6297_v27 = vor.u32 %v6295_v24, %v6294_v22  ;;  %v5974_v1 = vpop.permute.xlu1 %5973  ;;  %v6792_v6 = vor.u32 %v6791_v37, %v6790_v50 }
 0x500   : >> { %v6304_v46 = vor.u32 %v6302_v41, %v6301_v26  ;;  %v5976_v56 = vpop.permute.xlu0 %5975  ;;  %v6796_v20 = vor.u32 %v6795_v32, %v6794_v29  ;;  %v6148_v0 = vsel %vm917_vm3, %v19840_v11, %v5974_v1 }
 0x501   : >> { %v6298_v49 = vsel %vm1054_vm5, %v6287_v40, %v6297_v27  ;;  %v17304_v51 = vsel %vm1559_vm7, %v6788_v8, %v6792_v6  ;;  %12215 = vmatpush3.bf16.msra.mxu1 %v13445_v18  ;;  %v19841_v40 = vcombine.low %v16859_v10, %v16861_v60 }
 0x502   : >> { %12165 = vmatmul.mubr.msk.bf16.gmra.mrb[8].mxu1 %vm1262_vm6, %v6298_v49  ;;  %v6305_v53 = vsel %vm1054_vm5, %v6294_v22, %v6304_v46  ;;  %v17309_v61 = vsel %vm1559_vm7, %v6792_v6, %v6796_v20  ;;  %12264 = vmatprep.subr.bf16.mxu1 %v17300_v42  ;;  %v19842_v49 = vcombine.low %v16877_v21, %v16888_v63 }
 0x503   : >> { %v6084_v38 = vpop.permute.xlu1 %6083  ;;  %12168 = vmatprep.mubr.msk.bf16.mxu1 %vm1262_vm6, %v6305_v53  ;;  %v6151_v8 = vsel %vm917_vm3, %v19841_v40, %v5976_v56  ;;  %v19843_v21 = vcombine.low %v16890_v33, %v16920_v2 }
 0x504   : >> { %v6219_v24 = vsel %vm999_vm4, %v6148_v0, %v6084_v38  ;;  %v6086_v17 = vpop.permute.xlu0 %6085 }
 0x505   : >> { %v6306_v57 = vshrl.u32 %v6219_v24, 16  ;;  %v6309_v41 = vshll.u32 %v6219_v24, 16  ;;  %v6221_v15 = vsel %vm999_vm4, %v6151_v8, %v6086_v17 }
 0x506   : >> { %v6313_v36 = vshrl.u32 %v6221_v15, 16  ;;  %v6316_v22 = vshll.u32 %v6221_v15, 16 }
 0x507   : >> { %v6308_v50 = vrot.slane %v6306_v57, 7  ;;  %v6798_v37 = vrot.slane %v6306_v57, 3  ;;  %v6799_v29 = vrot.slane %v6309_v41, 4 }
 0x508   : >> { %v5978_v18 = vpop.permute.xlu1 %5977  ;;  %v6315_v32 = vrot.slane %v6313_v36, 7  ;;  %v6802_v27 = vrot.slane %v6313_v36, 3  ;;  %v6803_v10 = vrot.slane %v6316_v22, 4 }
 0x509   : >> { %v6311_v60 = vor.u32 %v6309_v41, %v6308_v50  ;;  %v6800_v1 = vor.u32 %v6799_v29, %v6798_v37  ;;  %v6154_v53 = vsel %vm917_vm3, %v19842_v49, %v5978_v18 }
 0x50a   : >> { %v6318_v6 = vor.u32 %v6316_v22, %v6315_v32  ;;  %v5980_v46 = vpop.permute.xlu0 %5979  ;;  %v6804_v56 = vor.u32 %v6803_v10, %v6802_v27 }
 0x50b   : >> { %v6312_v0 = vsel %vm1054_vm5, %v6301_v26, %v6311_v60  ;;  %v17329_v38 = vsel %vm1559_vm7, %v6796_v20, %v6800_v1  ;;  %v6157_v63 = vsel %vm917_vm3, %v19843_v21, %v5980_v46  ;;  %v19844_v46 = vcombine.low %v16932_v59, %v16958_v14 }
 0x50c   : >> { %v6088_v11 = vpop.permute.xlu1 %6087  ;;  %12169 = vmatmul.mubr.msk.bf16.gmra.mrb[12].mxu1 %vm1262_vm6, %v6312_v0  ;;  %v6319_v8 = vsel %vm1054_vm5, %v6308_v50, %v6318_v6  ;;  %v17335_v24 = vsel %vm1559_vm7, %v6800_v1, %v6804_v56  ;;  %v19845_v0 = vld [vmem:[#allocation100_spill] sm:$0xff] }
 0x50d   : >> { %v6223_v40 = vsel %vm999_vm4, %v6154_v53, %v6088_v11  ;;  %12172 = vmatprep.mubr.msk.bf16.mxu1 %vm1262_vm6, %v6319_v8 }
 0x50e   : >> { %v6320_v17 = vshrl.u32 %v6223_v40, 16  ;;  %v6323_v57 = vshll.u32 %v6223_v40, 16  ;;  %v6090_v26 = vpop.permute.xlu0 %6089  ;;  %v19846_v40 = vcombine.low %v16949_v54, %v19845_v0 }
 0x50f   : >> { %v6225_v36 = vsel %vm999_vm4, %v6157_v63, %v6090_v26 }
 0x510   : >> { %v6322_v20 = vrot.slane %v6320_v17, 7  ;;  %v6806_v41 = vrot.slane %v6320_v17, 3  ;;  %v6807_v15 = vrot.slane %v6323_v57, 4  ;;  %v6327_v22 = vshrl.u32 %v6225_v36, 16 }
 0x511   : >> { %v6330_v50 = vshll.u32 %v6225_v36, 16  ;;  %v5982_v37 = vpop.permute.xlu1 %5981 }
 0x512   : >> { %v6325_v29 = vor.u32 %v6323_v57, %v6322_v20  ;;  %v6808_v18 = vor.u32 %v6807_v15, %v6806_v41  ;;  %v6329_v27 = vrot.slane %v6327_v22, 7  ;;  %v6810_v10 = vrot.slane %v6327_v22, 3  ;;  %v5984_v1 = vpop.permute.xlu0 %5983 }
 0x513   : >> { %v6811_v60 = vrot.slane %v6330_v50, 4  ;;  %v6160_v49 = vsel %vm917_vm3, %v19844_v46, %v5982_v37  ;;  %v6163_v8 = vsel %vm917_vm3, %v19846_v40, %v5984_v1  ;;  %v19849_v40 = vcombine.low %v16989_v3, %v16995_v16 }
 0x514   : >> { %v6326_v6 = vsel %vm1054_vm5, %v6315_v32, %v6325_v29  ;;  %v17345_v33 = vsel %vm1559_vm7, %v6804_v56, %v6808_v18  ;;  %v6332_v2 = vor.u32 %v6330_v50, %v6329_v27 }
 0x515   : >> { %v6092_v53 = vpop.permute.xlu1 %6091  ;;  %12173 = vmatmul.mubr.msk.bf16.gmra.mrb[16].mxu1 %vm1262_vm6, %v6326_v6  ;;  %v6812_v11 = vor.u32 %v6811_v60, %v6810_v10 }
 0x516   : >> { %v6227_v32 = vsel %vm999_vm4, %v6160_v49, %v6092_v53  ;;  %v6094_v57 = vpop.permute.xlu0 %6093  ;;  %v6333_v21 = vsel %vm1054_vm5, %v6322_v20, %v6332_v2  ;;  %v19847_v2 = vld [vmem:[#allocation101_spill] sm:$0xff] }
 0x517   : >> { %v6334_v17 = vshrl.u32 %v6227_v32, 16  ;;  %v6337_v56 = vshll.u32 %v6227_v32, 16  ;;  %v17359_v59 = vsel %vm1559_vm7, %v6808_v18, %v6812_v11  ;;  %v6229_v14 = vsel %vm999_vm4, %v6163_v8, %v6094_v57  ;;  %12176 = vmatprep.mubr.msk.bf16.mxu1 %vm1262_vm6, %v6333_v21 }
 0x518   : >> { %v6341_v54 = vshrl.u32 %v6229_v14, 16  ;;  %v6344_v15 = vshll.u32 %v6229_v14, 16  ;;  %v19848_v46 = vcombine.low %v16965_v25, %v19847_v2 }
 0x519   : >> { %v6336_v63 = vrot.slane %v6334_v17, 7  ;;  %v6814_v26 = vrot.slane %v6334_v17, 3  ;;  %v6815_v41 = vrot.slane %v6337_v56, 4 }
 0x51a   : >> { %v6343_v22 = vrot.slane %v6341_v54, 7  ;;  %v6818_v50 = vrot.slane %v6341_v54, 3  ;;  %v6819_v10 = vrot.slane %v6344_v15, 4 }
 0x51b   : >> { %v6339_v36 = vor.u32 %v6337_v56, %v6336_v63  ;;  %v5986_v37 = vpop.permute.xlu1 %5985  ;;  %v6816_v29 = vor.u32 %v6815_v41, %v6814_v26 }
 0x51c   : >> { %v5988_v60 = vpop.permute.xlu0 %5987  ;;  %v6346_v20 = vor.u32 %v6344_v15, %v6343_v22  ;;  %v6820_v6 = vor.u32 %v6819_v10, %v6818_v50  ;;  %v6166_v49 = vsel %vm917_vm3, %v19848_v46, %v5986_v37 }
 0x51d   : >> { %v6340_v18 = vsel %vm1054_vm5, %v6329_v27, %v6339_v36  ;;  %v17365_v1 = vsel %vm1559_vm7, %v6812_v11, %v6816_v29  ;;  %v6169_v8 = vsel %vm917_vm3, %v19849_v40, %v5988_v60 }
 0x51e   : >> { %12177 = vmatmul.mubr.msk.bf16.gmra.mrb[20].mxu1 %vm1262_vm6, %v6340_v18  ;;  %v6347_v0 = vsel %vm1054_vm5, %v6336_v63, %v6346_v20  ;;  %v17380_v32 = vsel %vm1559_vm7, %v6816_v29, %v6820_v6  ;;  %v19850_v29 = vcombine.low %v17013_v7, %v17015_v52  ;;  %v19851_v7 = vcombine.low %v16997_v47, %v17044_v30 }
 0x51f   : >> { %v6096_v53 = vpop.permute.xlu1 %6095  ;;  %12180 = vmatprep.mubr.msk.bf16.mxu1 %vm1262_vm6, %v6347_v0 }
 0x520   : >> { %v6231_v27 = vsel %vm999_vm4, %v6166_v49, %v6096_v53  ;;  %v6098_v11 = vpop.permute.xlu0 %6097 }
 0x521   : >> { %v6348_v17 = vshrl.u32 %v6231_v27, 16  ;;  %v6351_v25 = vshll.u32 %v6231_v27, 16  ;;  %v6233_v56 = vsel %vm999_vm4, %v6169_v8, %v6098_v11 }
 0x522   : >> { %v6355_v57 = vshrl.u32 %v6233_v56, 16  ;;  %v6358_v21 = vshll.u32 %v6233_v56, 16 }
 0x523   : >> { %v6350_v14 = vrot.slane %v6348_v17, 7  ;;  %v6822_v63 = vrot.slane %v6348_v17, 3  ;;  %v6823_v26 = vrot.slane %v6351_v25, 4  ;;  %v5990_v3 = vpop.permute.xlu1 %5989 }
 0x524   : >> { %v6357_v16 = vrot.slane %v6355_v57, 7  ;;  %v6826_v41 = vrot.slane %v6355_v57, 3  ;;  %v6827_v54 = vrot.slane %v6358_v21, 4  ;;  %v6172_v60 = vsel %vm917_vm3, %v19850_v29, %v5990_v3 }
 0x525   : >> { %v6353_v15 = vor.u32 %v6351_v25, %v6350_v14  ;;  %v5992_v36 = vpop.permute.xlu0 %5991  ;;  %v6824_v50 = vor.u32 %v6823_v26, %v6822_v63  ;;  %v19852_v3 = vcombine.low %v17059_v12, %v17069_v39  ;;  %v19853_v29 = vcombine.low %v17051_v9, %v17053_v44 }
 0x526   : >> { %v6360_v37 = vor.u32 %v6358_v21, %v6357_v16  ;;  %v6828_v10 = vor.u32 %v6827_v54, %v6826_v41  ;;  %v6175_v52 = vsel %vm917_vm3, %v19851_v7, %v5992_v36 }
 0x527   : >> { %v6100_v20 = vpop.permute.xlu1 %6099  ;;  %v6354_v18 = vsel %vm1054_vm5, %v6343_v22, %v6353_v15  ;;  %v17389_v2 = vsel %vm1559_vm7, %v6820_v6, %v6824_v50 }
 0x528   : >> { %v6235_v46 = vsel %vm999_vm4, %v6172_v60, %v6100_v20  ;;  %12181 = vmatmul.mubr.msk.bf16.gmra.mrb[24].mxu1 %vm1262_vm6, %v6354_v18  ;;  %v6361_v49 = vsel %vm1054_vm5, %v6350_v14, %v6360_v37  ;;  %v17395_v53 = vsel %vm1559_vm7, %v6824_v50, %v6828_v10 }
 0x529   : >> { %v6362_v0 = vshrl.u32 %v6235_v46, 16  ;;  %v6365_v40 = vshll.u32 %v6235_v46, 16  ;;  %v6102_v22 = vpop.permute.xlu0 %6101  ;;  %12184 = vmatprep.mubr.msk.bf16.mxu1 %vm1262_vm6, %v6361_v49 }
 0x52a   : >> { %v6237_v6 = vsel %vm999_vm4, %v6175_v52, %v6102_v22 }
 0x52b   : >> { %v6364_v8 = vrot.slane %v6362_v0, 7  ;;  %v6830_v27 = vrot.slane %v6362_v0, 3  ;;  %v6831_v11 = vrot.slane %v6365_v40, 4  ;;  %v6369_v17 = vshrl.u32 %v6237_v6, 16  ;;  %v5994_v25 = vpop.permute.xlu1 %5993 }
 0x52c   : >> { %v6372_v56 = vshll.u32 %v6237_v6, 16  ;;  %v6178_v41 = vsel %vm917_vm3, %v19852_v3, %v5994_v25 }
 0x52d   : >> { %v6367_v57 = vor.u32 %v6365_v40, %v6364_v8  ;;  %v6371_v21 = vrot.slane %v6369_v17, 7  ;;  %v6834_v14 = vrot.slane %v6369_v17, 3  ;;  %v5996_v63 = vpop.permute.xlu0 %5995  ;;  %v6832_v47 = vor.u32 %v6831_v11, %v6830_v27 }
 0x52e   : >> { %v6835_v30 = vrot.slane %v6372_v56, 4  ;;  %v6181_v60 = vsel %vm917_vm3, %v19853_v29, %v5996_v63  ;;  %v19854_v17 = vcombine.low %v17071_v13, %v17103_v48 }
 0x52f   : >> { %v6374_v26 = vor.u32 %v6372_v56, %v6371_v21  ;;  %v6104_v54 = vpop.permute.xlu1 %6103  ;;  %v6368_v15 = vsel %vm1054_vm5, %v6357_v16, %v6367_v57  ;;  %v17409_v36 = vsel %vm1559_vm7, %v6828_v10, %v6832_v47 }
 0x530   : >> { %v6239_v50 = vsel %vm999_vm4, %v6178_v41, %v6104_v54  ;;  %12185 = vmatmul.mubr.msk.bf16.gmra.mrb[28].mxu1 %vm1262_vm6, %v6368_v15  ;;  %v6836_v37 = vor.u32 %v6835_v30, %v6834_v14  ;;  %v19855_v30 = vcombine.low %v17092_v34, %v17098_v19 }
 0x531   : >> { %v6376_v20 = vshrl.u32 %v6239_v50, 16  ;;  %v6379_v12 = vshll.u32 %v6239_v50, 16  ;;  %v6106_v39 = vpop.permute.xlu0 %6105  ;;  %v6375_v18 = vsel %vm1054_vm5, %v6364_v8, %v6374_v26 }
 0x532   : >> { %v6241_v16 = vsel %vm999_vm4, %v6181_v60, %v6106_v39  ;;  %12188 = vmatprep.mubr.msk.bf16.mxu1 %vm1262_vm6, %v6375_v18  ;;  %v17421_v10 = vsel %vm1559_vm7, %v6832_v47, %v6836_v37 }
 0x533   : >> { %v6378_v46 = vrot.slane %v6376_v20, 7  ;;  %v6838_v49 = vrot.slane %v6376_v20, 3  ;;  %v6839_v7 = vrot.slane %v6379_v12, 4  ;;  %v6383_v52 = vshrl.u32 %v6241_v16, 16  ;;  %v5998_v0 = vpop.permute.xlu1 %5997 }
 0x534   : >> { %v6386_v9 = vshll.u32 %v6241_v16, 16  ;;  %v6184_v25 = vsel %vm917_vm3, %v19854_v17, %v5998_v0 }
 0x535   : >> { %v6381_v44 = vor.u32 %v6379_v12, %v6378_v46  ;;  %v6385_v40 = vrot.slane %v6383_v52, 7  ;;  %v6842_v22 = vrot.slane %v6383_v52, 3  ;;  %v6000_v6 = vpop.permute.xlu0 %5999  ;;  %v6840_v27 = vor.u32 %v6839_v7, %v6838_v49 }
 0x536   : >> { %v6843_v11 = vrot.slane %v6386_v9, 4  ;;  %v6187_v26 = vsel %vm917_vm3, %v19855_v30, %v6000_v6  ;;  %v19856_v49 = vcombine.low %v17106_v58, %v17129_v4  ;;  %v19857_v6 = vcombine.low %v17131_v5, %v17145_v31  ;;  %v19858_v30 = vld [vmem:[#allocation104_spill] sm:$0xff] }
 0x537   : >> { %v6388_v8 = vor.u32 %v6386_v9, %v6385_v40  ;;  %v6108_v56 = vpop.permute.xlu1 %6107  ;;  %v6382_v57 = vsel %vm1054_vm5, %v6371_v21, %v6381_v44  ;;  %v17429_v14 = vsel %vm1559_vm7, %v6836_v37, %v6840_v27 }
 0x538   : >> { %v6243_v63 = vsel %vm999_vm4, %v6184_v25, %v6108_v56  ;;  %12189 = vmatmul.mubr.msk.bf16.gmra.mrb[32].mxu1 %vm1262_vm6, %v6382_v57  ;;  %v6844_v47 = vor.u32 %v6843_v11, %v6842_v22 }
 0x539   : >> { %v6390_v3 = vshrl.u32 %v6243_v63, 16  ;;  %v6393_v13 = vshll.u32 %v6243_v63, 16  ;;  %v6110_v48 = vpop.permute.xlu0 %6109  ;;  %v6389_v41 = vsel %vm1054_vm5, %v6378_v46, %v6388_v8  ;;  %v5496_v8 = vld [vmem:[#allocation2] sm:$0x8] }
 0x53a   : >> { %v6245_v21 = vsel %vm999_vm4, %v6187_v26, %v6110_v48  ;;  %12192 = vmatprep.mubr.msk.bf16.mxu1 %vm1262_vm6, %v6389_v41  ;;  %v17441_v54 = vsel %vm1559_vm7, %v6840_v27, %v6844_v47  ;;  %v19859_v26 = vld [vmem:[#allocation102_spill] sm:$0xff] }
 0x53b   : >> { %v6392_v15 = vrot.slane %v6390_v3, 7  ;;  %v6846_v50 = vrot.slane %v6390_v3, 3  ;;  %v6847_v37 = vrot.slane %v6393_v13, 4  ;;  %v6397_v29 = vshrl.u32 %v6245_v21, 16  ;;  %v6002_v60 = vpop.permute.xlu1 %6001 }
 0x53c   : >> { %v6400_v34 = vshll.u32 %v6245_v21, 16  ;;  %v6190_v7 = vsel %vm917_vm3, %v19856_v49, %v6002_v60  ;;  %v10930_v3 = vcombine.low %v19859_v26, %v19858_v30 }
 0x53d   : >> { %v6395_v19 = vor.u32 %v6393_v13, %v6392_v15  ;;  %v6399_v20 = vrot.slane %v6397_v29, 7  ;;  %v6850_v12 = vrot.slane %v6397_v29, 3  ;;  %v6004_v39 = vpop.permute.xlu0 %6003  ;;  %v6848_v18 = vor.u32 %v6847_v37, %v6846_v50  ;;  %v13479_v13 = vld [vmem:[#allocation2 + $0x4] sm:$0xf] }
 0x53e   : >> { %v6851_v16 = vrot.slane %v6400_v34, 4  ;;  %v6193_v27 = vsel %vm917_vm3, %v19857_v6, %v6004_v39  ;;  %v10905_v48 = vcombine.low %v5496_v8, %v13479_v13 }
 0x53f   : >> { %v6402_v46 = vor.u32 %v6400_v34, %v6399_v20  ;;  %v6396_v52 = vsel %vm1054_vm5, %v6385_v40, %v6395_v19  ;;  %v6112_v0 = vpop.permute.xlu1 %6111  ;;  %v17449_v9 = vsel %vm1559_vm7, %v6844_v47, %v6848_v18 }
 0x540   : >> { %12193 = vmatmul.mubr.msk.bf16.gmra.mrb[36].mxu1 %vm1262_vm6, %v6396_v52  ;;  %v6247_v44 = vsel %vm999_vm4, %v6190_v7, %v6112_v0  ;;  %v17453_v22 = vor.u32 %v6851_v16, %v6850_v12 }
 0x541   : >> { %v6404_v4 = vshrl.u32 %v6247_v44, 16  ;;  %v6407_v58 = vshll.u32 %v6247_v44, 16  ;;  %v6403_v11 = vsel %vm1054_vm5, %v6392_v15, %v6402_v46  ;;  %v6114_v40 = vpop.permute.xlu0 %6113 }
 0x542   : >> { %12196 = vmatprep.mubr.msk.bf16.mxu1 %vm1262_vm6, %v6403_v11  ;;  %v6249_v17 = vsel %vm999_vm4, %v6193_v27, %v6114_v40  ;;  %v17464_v25 = vsel %vm1559_vm7, %v6848_v18, %v17453_v22 }
 0x543   : >> { %v6406_v56 = vrot.slane %v6404_v4, 7  ;;  %v6854_v57 = vrot.slane %v6404_v4, 3  ;;  %v6855_v63 = vrot.slane %v6407_v58, 4  ;;  %v6411_v5 = vshrl.u32 %v6249_v17, 16  ;;  %v6006_v31 = vpop.permute.xlu1 %6005 }
 0x544   : >> { %v6414_v47 = vshll.u32 %v6249_v17, 16  ;;  %v6196_v34 = vsel %vm917_vm3, %v10930_v3, %v6006_v31  ;;  %v13449_v31 = vld [vmem:[%s15851_s17 + $0x190] sm:$0xff]   ;;  %v17606_v3 = vld [vmem:[%s16653_s24 + $0x2] ss:$0 sm:$0xff] }
 0x545   : >> { %v6409_v41 = vor.u32 %v6407_v58, %v6406_v56  ;;  %v17468_v21 = vor.u32 %v6855_v63, %v6854_v57  ;;  %v6413_v15 = vrot.slane %v6411_v5, 7  ;;  %v7190_v50 = vrot.slane %v6411_v5, 3  ;;  %v5956_v29 = vpop.permute.xlu0 %5955  ;;  %v13448_v5 = vld [vmem:[%s15851_s17 + $0x188] sm:$0xff]  }
 0x546   : >> { %v7191_v37 = vrot.slane %v6414_v47, 4  ;;  %v6121_v49 = vsel %vm917_vm3, %v10905_v48, %v5956_v29 }
 0x547   : >> { %v6416_v60 = vor.u32 %v6414_v47, %v6413_v15  ;;  %v6116_v19 = vpop.permute.xlu1 %6115  ;;  %v6410_v12 = vsel %vm1054_vm5, %v6399_v20, %v6409_v41  ;;  %v13450_v47 = vld [vmem:[%s15851_s17 + $0x198] sm:$0xff]  }
 0x548   : >> { %v6251_v39 = vsel %vm999_vm4, %v6196_v34, %v6116_v19  ;;  %12197 = vmatmul.mubr.msk.bf16.gmra.mrb[40].mxu1 %vm1262_vm6, %v6410_v12  ;;  %v17474_v18 = vor.u32 %v7191_v37, %v7190_v50  ;;  %v19861_v50 = vld [vmem:[#allocation9_spill] sm:$0xff]  ;;  %v19862_v34 = vld [vmem:[#allocation28_spill] sm:$0xff] }
 0x549   : >> { %v6418_v16 = vshrl.u32 %v6251_v39, 16  ;;  %v6421_v46 = vshll.u32 %v6251_v39, 16  ;;  %v6417_v7 = vsel %vm1054_vm5, %v6406_v56, %v6416_v60  ;;  %v19863_v39 = vld [vmem:[#allocation96_spill] sm:$0xff] }
 0x54a   : >> { %12200 = vmatprep.mubr.msk.bf16.mxu1 %vm1262_vm6, %v6417_v7  ;;  %v19868_v7 = vld [vmem:[#allocation11_spill] sm:$0xff] }
 0x54b   : >> { %v6420_v52 = vrot.slane %v6418_v16, 7  ;;  %v7194_v0 = vrot.slane %v6418_v16, 3  ;;  %v7195_v44 = vrot.slane %v6421_v46, 4  ;;  %v6066_v6 = vpop.permute.xlu1 %6065 }
 0x54c   : >> { %v6201_v20 = vsel %vm999_vm4, %v6121_v49, %v6066_v6  ;;  %v19866_v49 = vld [vmem:[#allocation98_spill] sm:$0xff] }
 0x54d   : >> { %v6423_v27 = vor.u32 %v6421_v46, %v6420_v52  ;;  %v6757_v4 = vshrl.u32 %v6201_v20, 16  ;;  %v6760_v58 = vshll.u32 %v6201_v20, 16  ;;  %v17480_v11 = vor.u32 %v7195_v44, %v7194_v0  ;;  %v19869_v0 = vld [vmem:[#allocation95_spill] sm:$0xff]  ;;  %v19871_v20 = vld [vmem:[#allocation97_spill] sm:$0xff] }
 0x54f   : >> { %v6759_v40 = vrot.slane %v6757_v4, 3  ;;  %v6762_v8 = vrot.slane %v6760_v58, 4  ;;  %v6424_v17 = vsel %vm1054_vm5, %v6413_v15, %v6423_v27  ;;  %v17486_v56 = vsel %vm1559_vm7, %v17474_v18, %v17480_v11 }
 0x550   : >> { %12201 = vmatmul.mubr.msk.bf16.gmra.mrb[44].mxu1 %vm1262_vm6, %v6424_v17 }
 0x551   : >> { %v6763_v57 = vor.u32 %v6762_v8, %v6759_v40 }
 0x553   : >> { %v6769_v63 = vsel %vm1559_vm7, %v6763_v57, %v17257_v62  ;;  %v13451_v62 = vld [vmem:[%s15851_s17 + $0x1a0] sm:$0xff]  }
 0x554   : >> { %12216 = vmatprep.mubr.msk.bf16.mxu1 %vm1262_vm6, %v6769_v63 }
 0x558   : >> { %12217 = vmatmul.mubr.msk.bf16.vlgmr.msra.gmra.mrb[0].mxu1 %vm1262_vm6, %v17263_v45  ;;  %v13452_v45 = vld [vmem:[%s15851_s17 + $0x1a8] sm:$0xff]  }
 0x559   : >> { %12265 = vmatpush3.bf16.msra.mxu1 %v17300_v42  ;;  %12220 = vmatprep.mubr.msk.bf16.mxu1 %vm1262_vm6, %v17252_v28  ;;  %v6857_v28 = vsel %vm1559_vm7, %v17453_v22, %v17468_v21 }
 0x55a   : >> { %12266 = vmatprep.subr.bf16.mxu1 %v13448_v5 }
 0x55d   : >> { %12267 = vmatpush3.bf16.msra.mxu1 %v13448_v5 }
 0x55e   : >> { %12268 = vmatprep.subr.bf16.mxu1 %v13449_v31 }
 0x560   : >> { %12221 = vmatmul.mubr.msk.bf16.gmra.mrb[4].mxu1 %vm1262_vm6, %v17275_v43 }
 0x561   : >> { %12224 = vmatprep.mubr.msk.bf16.mxu1 %vm1262_vm6, %v17283_v35  ;;  %12269 = vmatpush3.bf16.msra.mxu1 %v13449_v31  ;;  %v19874_v31 = vld [vmem:[#allocation29_spill] sm:$0xff] }
 0x562   : >> { %12270 = vmatprep.subr.bf16.mxu1 %v13450_v47 }
 0x565   : >> { %12271 = vmatpush3.bf16.msra.mxu1 %v13450_v47 }
 0x566   : >> { %12272 = vmatprep.subr.bf16.mxu1 %v13451_v62 }
 0x568   : >> { %12225 = vmatmul.mubr.msk.bf16.gmra.mrb[8].mxu1 %vm1262_vm6, %v17294_v23 }
 0x569   : >> { %12228 = vmatprep.mubr.msk.bf16.mxu1 %vm1262_vm6, %v17304_v51  ;;  %12273 = vmatpush3.bf16.msra.mxu1 %v13451_v62 }
 0x56a   : >> { %12274 = vmatprep.subr.bf16.mxu1 %v13452_v45 }
 0x56d   : >> { %12275 = vmatpush3.bf16.msra.mxu1 %v13452_v45  ;;  %v19875_v45 = vld [vmem:[#allocation92_spill] sm:$0xff] }
 0x570   : >> { %12229 = vmatmul.mubr.msk.bf16.gmra.mrb[12].mxu1 %vm1262_vm6, %v17309_v61 }
 0x571   : >> { %12232 = vmatprep.mubr.msk.bf16.mxu1 %vm1262_vm6, %v17329_v38 }
 0x578   : >> { %12233 = vmatmul.mubr.msk.bf16.gmra.mrb[16].mxu1 %vm1262_vm6, %v17335_v24 }
 0x579   : >> { %12236 = vmatprep.mubr.msk.bf16.mxu1 %vm1262_vm6, %v17345_v33 }
 0x580   : >> { %12237 = vmatmul.mubr.msk.bf16.gmra.mrb[20].mxu1 %vm1262_vm6, %v17359_v59 }
 0x581   : >> { %12240 = vmatprep.mubr.msk.bf16.mxu1 %vm1262_vm6, %v17365_v1 }
 0x588   : >> { %12241 = vmatmul.mubr.msk.bf16.gmra.mrb[24].mxu1 %vm1262_vm6, %v17380_v32 }
 0x589   : >> { %12244 = vmatprep.mubr.msk.bf16.mxu1 %vm1262_vm6, %v17389_v2 }
 0x590   : >> { %12245 = vmatmul.mubr.msk.bf16.gmra.mrb[28].mxu1 %vm1262_vm6, %v17395_v53 }
 0x591   : >> { %12248 = vmatprep.mubr.msk.bf16.mxu1 %vm1262_vm6, %v17409_v36 }
 0x598   : >> { %12249 = vmatmul.mubr.msk.bf16.gmra.mrb[32].mxu1 %vm1262_vm6, %v17421_v10 }
 0x599   : >> { %12252 = vmatprep.mubr.msk.bf16.mxu1 %vm1262_vm6, %v17429_v14 }
 0x5a0   : >> { %12253 = vmatmul.mubr.msk.bf16.gmra.mrb[36].mxu1 %vm1262_vm6, %v17441_v54 }
 0x5a1   : >> { %12256 = vmatprep.mubr.msk.bf16.mxu1 %vm1262_vm6, %v17449_v9 }
 0x5a8   : >> { %12257 = vmatmul.mubr.msk.bf16.gmra.mrb[40].mxu1 %vm1262_vm6, %v17464_v25 }
 0x5a9   : >> { %12260 = vmatprep.mubr.msk.bf16.mxu1 %vm1262_vm6, %v6857_v28 }
 0x5b0   : >> { %12261 = vmatmul.mubr.msk.bf16.gmra.mrb[48].mxu1 %vm1262_vm6, %v17468_v21 }
 0x5b1   : >> { %12276 = vmatprep.mubr.msk.bf16.mxu1 %vm1262_vm6, %v17275_v43  ;;  %v19860_v43 = vld [vmem:[#allocation103_spill] sm:$0xff] }
 0x5b8   : >> { %12277 = vmatmul.mubr.msk.bf16.vlgmr.msra.gmra.mrb[0].mxu1 %vm1262_vm6, %v17283_v35  ;;  %v10931_v35 = vcombine.low %v19860_v43, %v17194_v55  ;;  %v7193_v55 = vsel %vm1559_vm7, %v17468_v21, %v17474_v18  ;;  %v19865_v18 = vld [vmem:[#allocation21_spill] sm:$0xff] }
 0x5b9   : >> { %12280 = vmatprep.mubr.msk.bf16.mxu1 %vm1262_vm6, %v17294_v23  ;;  %v6008_v23 = vpop.permute.xlu0 %6007 }
 0x5ba   : >> { %v6199_v42 = vsel %vm917_vm3, %v10931_v35, %v6008_v23  ;;  %v19878_v23 = vld [vmem:[#allocation94_spill] sm:$0xff] }
 0x5c0   : >> { %12281 = vmatmul.mubr.msk.bf16.gmra.mrb[4].mxu1 %vm1262_vm6, %v17304_v51  ;;  %v6118_v51 = vpop.permute.xlu1 %6117 }
 0x5c1   : >> { %12284 = vmatprep.mubr.msk.bf16.mxu1 %vm1262_vm6, %v17309_v61  ;;  %v6253_v61 = vsel %vm999_vm4, %v6199_v42, %v6118_v51  ;;  %v19880_v42 = vld [vmem:[#allocation19_spill] sm:$0xff] }
 0x5c8   : >> { %12285 = vmatmul.mubr.msk.bf16.gmra.mrb[8].mxu1 %vm1262_vm6, %v17329_v38  ;;  %v7198_v38 = vshrl.u32 %v6253_v61, 16 }
 0x5c9   : >> { %12288 = vmatprep.mubr.msk.bf16.mxu1 %vm1262_vm6, %v17335_v24  ;;  %v7201_v24 = vshll.u32 %v6253_v61, 16 }
 0x5d0   : >> { %12289 = vmatmul.mubr.msk.bf16.gmra.mrb[12].mxu1 %vm1262_vm6, %v17345_v33  ;;  %v7200_v33 = vrot.slane %v7198_v38, 3  ;;  %v19881_v38 = vld [vmem:[#allocation91_spill] sm:$0xff] }
 0x5d1   : >> { %12292 = vmatprep.mubr.msk.bf16.mxu1 %vm1262_vm6, %v17359_v59  ;;  %v7203_v59 = vrot.slane %v7201_v24, 4 }
 0x5d8   : >> { %12293 = vmatmul.mubr.msk.bf16.gmra.mrb[16].mxu1 %vm1262_vm6, %v17365_v1  ;;  %v7204_v1 = vor.u32 %v7203_v59, %v7200_v33  ;;  %v19883_v59 = vld [vmem:[#allocation93_spill] sm:$0xff] }
 0x5d9   : >> { %12296 = vmatprep.mubr.msk.bf16.mxu1 %vm1262_vm6, %v17380_v32 }
 0x5da   : >> { %v7205_v32 = vsel %vm1559_vm7, %v17480_v11, %v7204_v1 }
 0x5e0   : >> { %12297 = vmatmul.mubr.msk.bf16.gmra.mrb[20].mxu1 %vm1262_vm6, %v17389_v2 }
 0x5e1   : >> { %12300 = vmatprep.mubr.msk.bf16.mxu1 %vm1262_vm6, %v17395_v53 }
 0x5e8   : >> { %12301 = vmatmul.mubr.msk.bf16.gmra.mrb[24].mxu1 %vm1262_vm6, %v17409_v36 }
 0x5e9   : >> { %12304 = vmatprep.mubr.msk.bf16.mxu1 %vm1262_vm6, %v17421_v10 }
 0x5f0   : >> { %12305 = vmatmul.mubr.msk.bf16.gmra.mrb[28].mxu1 %vm1262_vm6, %v17429_v14 }
 0x5f1   : >> { %12308 = vmatprep.mubr.msk.bf16.mxu1 %vm1262_vm6, %v17441_v54 }
 0x5f8   : >> { %12309 = vmatmul.mubr.msk.bf16.gmra.mrb[32].mxu1 %vm1262_vm6, %v17449_v9 }
 0x5f9   : >> { %12312 = vmatprep.mubr.msk.bf16.mxu1 %vm1262_vm6, %v17464_v25 }
 0x600   : >> { %12313 = vmatmul.mubr.msk.bf16.gmra.mrb[36].mxu1 %vm1262_vm6, %v6857_v28 }
 0x601   : >> { %12316 = vmatprep.mubr.msk.bf16.mxu1 %vm1262_vm6, %v7193_v55 }
 0x608   : >> { %12317 = vmatmul.mubr.msk.bf16.gmra.mrb[40].mxu1 %vm1262_vm6, %v17486_v56  ;;  %v19873_v56 = vld [vmem:[#allocation20_spill] sm:$0xff] }
 0x609   : >> { %12320 = vmatprep.mubr.msk.bf16.mxu1 %vm1262_vm6, %v7205_v32 }
 0x610   : >> { %12321 = vmatmul.mubr.msk.bf16.gmra.mrb[52].mxu1 %vm1262_vm6, %v7204_v1 }
 0x623   : >> { %v12202_v2 = vpop.f32.mrb[44].mxu1 }
 0x624   : >> { %v6743_v53 = vpop.f32.mrb[45].mxu1 }
 0x625   : >> { %v12203_v36 = vpop.f32.mrb[46].mxu1 }
 0x626   : >> { %v6746_v10 = vpop.f32.mrb[47].mxu1 }
 0x683   : >> { %v12262_v14 = vpop.f32.mrb[48].mxu1 }
 0x684   : >> { %v17599_v54 = vadd.f32 %v12262_v14, %v12202_v2  ;;  %v7176_v9 = vpop.f32.mrb[49].mxu1 }
 0x685   : >> { %v17601_v22 = vadd.f32 %v7176_v9, %v6743_v53  ;;  %v12263_v25 = vpop.f32.mrb[50].mxu1  ;;  %v19885_v53 = vld [vmem:[#allocation25_spill] sm:$0xff]  ;;  %v19886_v9 = vld [vmem:[#allocation18_spill] sm:$0xff] }
 0x686   : >> { %v7179_v30 = vpop.f32.mrb[51].mxu1 }
 0x687   : >> { %v17603_v26 = vadd.f32 %v7179_v30, %v6746_v10 }
 0x68b   : >> { %v12278_v13 = vpop.f32.mrb[0].mxu1 }
 0x68c   : >> { %v7533_v48 = vadd.f32 %v12278_v13, %v17606_v3  ;;  %v7288_v41 = vpop.f32.mrb[1].mxu1 }
 0x68d   : >> { %v7531_v21 = vadd.f32 %v17606_v3, %v7288_v41  ;;  %v12279_v15 = vpop.f32.mrb[2].mxu1  ;;  %v19889_v41 = vld [vmem:[#allocation27_spill] sm:$0xff] }
 0x68e   : >> { %v7580_v37 = vmul.f32 %v7533_v48, %v19861_v50  ;;  %v7534_v29 = vadd.f32 %v12279_v15, %v17606_v3  ;;  %v7291_v60 = vpop.f32.mrb[3].mxu1  ;;  %v19890_v50 = vld [vmem:[#allocation90_spill] sm:$0xff] }
 0x68f   : >> { %v7578_v19 = vmul.f32 %v7531_v21, %v19862_v34  ;;  %v7532_v12 = vadd.f32 %v17606_v3, %v7291_v60  ;;  %v19893_v34 = vld [vmem:[#allocation87_spill] sm:$0xff] }
 0x690   : >> { %v17615_v17 = vadd.f32 %v19863_v39, %v7580_v37   ;;  %v7581_v46 = vmul.f32 %v7534_v29, %v19865_v18  ;;  %v19892_v29 = vld [vmem:[#allocation22_spill] sm:$0xff] }
 0x691   : >> { %v17619_v43 = vadd.f32 %v19866_v49, %v7578_v19   ;;  %v7579_v52 = vmul.f32 %v7532_v12, %v19868_v7  ;;  %v19895_v19 = vld [vmem:[#allocation89_spill] sm:$0xff] }
 0x692   : >> { %19864 = vst [vmem:[#allocation32_spill] sm:$0xff] %v17615_v17  ;;  %v17623_v48 = vadd.f32 %v19869_v0, %v7581_v46  }
 0x693   : >> { %19867 = vst [vmem:[#allocation105_spill] sm:$0xff] %v17619_v43  ;;  %v17626_v27 = vadd.f32 %v19871_v20, %v7579_v52   ;;  %v12282_v4 = vpop.f32.mrb[4].mxu1  ;;  %v19877_v43 = vld [vmem:[#allocation26_spill] sm:$0xff] }
 0x694   : >> { %19870 = vst [vmem:[#allocation106_spill] sm:$0xff] %v17623_v48  ;;  %v7537_v58 = vadd.f32 %v12282_v4, %v17606_v3  ;;  %v7304_v11 = vpop.f32.mrb[5].mxu1  ;;  %v19887_v48 = vld [vmem:[#allocation88_spill] sm:$0xff] }
 0x695   : >> { %19872 = vst [vmem:[#allocation107_spill] sm:$0xff] %v17626_v27  ;;  %v7535_v8 = vadd.f32 %v17606_v3, %v7304_v11  ;;  %v12283_v17 = vpop.f32.mrb[6].mxu1 }
 0x696   : >> { %v7584_v57 = vmul.f32 %v7537_v58, %v19873_v56  ;;  %v7538_v63 = vadd.f32 %v12283_v17, %v17606_v3  ;;  %v7307_v5 = vpop.f32.mrb[7].mxu1  ;;  %v19898_v58 = vld [vmem:[#allocation23_spill] sm:$0xff]  ;;  %v19899_v17 = vld [vmem:[#allocation84_spill] sm:$0xff] }
 0x697   : >> { %v7582_v47 = vmul.f32 %v7535_v8, %v19874_v31  ;;  %v7536_v62 = vadd.f32 %v17606_v3, %v7307_v5 }
 0x698   : >> { %v17635_v61 = vadd.f32 %v19875_v45, %v7584_v57   ;;  %v7585_v35 = vmul.f32 %v7538_v63, %v19877_v43  ;;  %v19902_v57 = vld [vmem:[#allocation86_spill] sm:$0xff]  ;;  %v19905_v43 = vld [vmem:[#allocation83_spill] sm:$0xff] }
 0x699   : >> { %v17639_v49 = vadd.f32 %v19878_v23, %v7582_v47   ;;  %v7583_v51 = vmul.f32 %v7536_v62, %v19880_v42  ;;  %v19904_v62 = vld [vmem:[#allocation35_spill] sm:$0xff] }
 0x69a   : >> { %19876 = vst [vmem:[#allocation108_spill] sm:$0xff] %v17635_v61  ;;  %v17643_v60 = vadd.f32 %v19881_v38, %v7585_v35   ;;  %v19907_v35 = vld [vmem:[#allocation85_spill] sm:$0xff] }
 0x69b   : >> { %19879 = vst [vmem:[#allocation109_spill] sm:$0xff] %v17639_v49  ;;  %v17646_v7 = vadd.f32 %v19883_v59, %v7583_v51   ;;  %v12286_v55 = vpop.f32.mrb[8].mxu1  ;;  %v19909_v59 = vld [vmem:[#allocation33_spill] sm:$0xff] }
 0x69c   : >> { %19882 = vst [vmem:[#allocation110_spill] sm:$0xff] %v17643_v60  ;;  %v7541_v1 = vadd.f32 %v12286_v55, %v17606_v3  ;;  %v7320_v32 = vpop.f32.mrb[9].mxu1 }
 0x69d   : >> { %19884 = vst [vmem:[#allocation111_spill] sm:$0xff] %v17646_v7  ;;  %v7539_v2 = vadd.f32 %v17606_v3, %v7320_v32  ;;  %v12287_v61 = vpop.f32.mrb[10].mxu1  ;;  %v19897_v7 = vld [vmem:[#allocation36_spill] sm:$0xff] }
 0x69e   : >> { %v7588_v36 = vmul.f32 %v7541_v1, %v19885_v53  ;;  %v7542_v10 = vadd.f32 %v12287_v61, %v17606_v3  ;;  %v7323_v14 = vpop.f32.mrb[11].mxu1 }
 0x69f   : >> { %v7586_v25 = vmul.f32 %v7539_v2, %v19886_v9  ;;  %v7540_v13 = vadd.f32 %v17606_v3, %v7323_v14  ;;  %v19910_v2 = vld [vmem:[#allocation31_spill] sm:$0xff] }
 0x6a0   : >> { %v17655_v55 = vadd.f32 %v19887_v48, %v7588_v36   ;;  %v7589_v21 = vmul.f32 %v7542_v10, %v19889_v41  ;;  %v19911_v10 = vld [vmem:[#allocation80_spill] sm:$0xff]  ;;  %v19914_v9 = vld [vmem:[#allocation82_spill] sm:$0xff]  ;;  %v19917_v41 = vld [vmem:[#allocation79_spill] sm:$0xff] }
 0x6a1   : >> { %v17659_v53 = vadd.f32 %v19890_v50, %v7586_v25   ;;  %v7587_v60 = vmul.f32 %v7540_v13, %v19892_v29 }
 0x6a2   : >> { %19888 = vst [vmem:[#allocation112_spill] sm:$0xff] %v17655_v55  ;;  %v17663_v25 = vadd.f32 %v19893_v34, %v7589_v21   ;;  %v19919_v21 = vld [vmem:[#allocation81_spill] sm:$0xff] }
 0x6a3   : >> { %19891 = vst [vmem:[#allocation113_spill] sm:$0xff] %v17659_v53  ;;  %v17666_v4 = vadd.f32 %v19895_v19, %v7587_v60   ;;  %v12290_v12 = vpop.f32.mrb[12].mxu1 }
 0x6a4   : >> { %19894 = vst [vmem:[#allocation114_spill] sm:$0xff] %v17663_v25  ;;  %v7545_v39 = vadd.f32 %v12290_v12, %v17606_v3  ;;  %v7336_v18 = vpop.f32.mrb[13].mxu1  ;;  %v19916_v25 = vld [vmem:[#allocation37_spill] sm:$0xff] }
 0x6a5   : >> { %19896 = vst [vmem:[#allocation115_spill] sm:$0xff] %v17666_v4  ;;  %v7543_v46 = vadd.f32 %v17606_v3, %v7336_v18  ;;  %v12291_v49 = vpop.f32.mrb[14].mxu1  ;;  %v19901_v4 = vld [vmem:[#allocation30_spill] sm:$0xff] }
 0x6a6   : >> { %v7592_v52 = vmul.f32 %v7545_v39, %v19897_v7  ;;  %v7546_v0 = vadd.f32 %v12291_v49, %v17606_v3  ;;  %v7339_v27 = vpop.f32.mrb[15].mxu1  ;;  %v19921_v39 = vld [vmem:[#allocation4_spill] sm:$0xff]  ;;  %v19922_v49 = vld [vmem:[#allocation34_spill] sm:$0xff] }
 0x6a7   : >> { %v7590_v11 = vmul.f32 %v7543_v46, %v19898_v58  ;;  %v7544_v8 = vadd.f32 %v17606_v3, %v7339_v27  ;;  %v19925_v27 = vld [vmem:[#allocation6_spill] sm:$0xff] }
 0x6a8   : >> { %v17675_v31 = vadd.f32 %v19899_v17, %v7592_v52   ;;  %v7593_v56 = vmul.f32 %v7546_v0, %v19901_v4  ;;  %v19923_v0 = vld [vmem:[#allocation76_spill] sm:$0xff]  ;;  %v19929_v4 = vld [vmem:[#allocation75_spill] sm:$0xff] }
 0x6a9   : >> { %v17679_v12 = vadd.f32 %v19902_v57, %v7590_v11   ;;  %v7591_v45 = vmul.f32 %v7544_v8, %v19904_v62  ;;  %v19926_v11 = vld [vmem:[#allocation78_spill] sm:$0xff]  ;;  %v19928_v8 = vld [vmem:[#allocation5_spill] sm:$0xff] }
 0x6aa   : >> { %19900 = vst [vmem:[#allocation116_spill] sm:$0xff] %v17675_v31  ;;  %v17683_v62 = vadd.f32 %v19905_v43, %v7593_v56  }
 0x6ab   : >> { %19903 = vst [vmem:[#allocation117_spill] sm:$0xff] %v17679_v12  ;;  %v17686_v36 = vadd.f32 %v19907_v35, %v7591_v45   ;;  %v12294_v23 = vpop.f32.mrb[16].mxu1 }
 0x6ac   : >> { %19906 = vst [vmem:[#allocation118_spill] sm:$0xff] %v17683_v62  ;;  %v7549_v42 = vadd.f32 %v12294_v23, %v17606_v3  ;;  %v7352_v51 = vpop.f32.mrb[17].mxu1 }
 0x6ad   : >> { %19908 = vst [vmem:[#allocation119_spill] sm:$0xff] %v17686_v36  ;;  %v7547_v38 = vadd.f32 %v17606_v3, %v7352_v51  ;;  %v12295_v31 = vpop.f32.mrb[18].mxu1  ;;  %v19913_v36 = vld [vmem:[#allocation38_spill] sm:$0xff] }
 0x6ae   : >> { %v7596_v55 = vmul.f32 %v7549_v42, %v19909_v59  ;;  %v7550_v1 = vadd.f32 %v12295_v31, %v17606_v3  ;;  %v7355_v32 = vpop.f32.mrb[19].mxu1  ;;  %v19933_v42 = vld [vmem:[#allocation7_spill] sm:$0xff] }
 0x6af   : >> { %v7594_v61 = vmul.f32 %v7547_v38, %v19910_v2  ;;  %v7548_v53 = vadd.f32 %v17606_v3, %v7355_v32 }
 0x6b0   : >> { %v17695_v35 = vadd.f32 %v19911_v10, %v7596_v55   ;;  %v7597_v14 = vmul.f32 %v7550_v1, %v19913_v36 }
 0x6b1   : >> { %v17699_v34 = vadd.f32 %v19914_v9, %v7594_v61   ;;  %v7595_v48 = vmul.f32 %v7548_v53, %v19916_v25  ;;  %v19938_v53 = vld [vmem:[#allocation74_spill] sm:$0xff]  ;;  %v19943_v25 = vld [vmem:[#allocation73_spill] sm:$0xff] }
 0x6b2   : >> { %19912 = vst [vmem:[#allocation120_spill] sm:$0xff] %v17695_v35  ;;  %v17703_v10 = vadd.f32 %v19917_v41, %v7597_v14   ;;  %v19941_v14 = vld [vmem:[#allocation71_spill] sm:$0xff] }
 0x6b3   : >> { %19915 = vst [vmem:[#allocation121_spill] sm:$0xff] %v17699_v34  ;;  %v17706_v56 = vadd.f32 %v19919_v21, %v7595_v48   ;;  %v12298_v50 = vpop.f32.mrb[20].mxu1 }
 0x6b4   : >> { %19918 = vst [vmem:[#allocation122_spill] sm:$0xff] %v17703_v10  ;;  %v7553_v29 = vadd.f32 %v12298_v50, %v17606_v3  ;;  %v7368_v60 = vpop.f32.mrb[21].mxu1  ;;  %v19940_v10 = vld [vmem:[#allocation8_spill] sm:$0xff] }
 0x6b5   : >> { %19920 = vst [vmem:[#allocation123_spill] sm:$0xff] %v17706_v56  ;;  %v7551_v19 = vadd.f32 %v17606_v3, %v7368_v60  ;;  %v12299_v12 = vpop.f32.mrb[22].mxu1  ;;  %v19931_v56 = vld [vmem:[#allocation77_spill] sm:$0xff] }
 0x6b6   : >> { %v7600_v18 = vmul.f32 %v7553_v29, %v19921_v39  ;;  %v7554_v46 = vadd.f32 %v12299_v12, %v17606_v3  ;;  %v7371_v34 = vpop.f32.mrb[23].mxu1 }
 0x6b7   : >> { %v7598_v7 = vmul.f32 %v7551_v19, %v19922_v49  ;;  %v7552_v52 = vadd.f32 %v17606_v3, %v7371_v34  ;;  %v19945_v19 = vld [vmem:[#allocation16_spill] sm:$0xff]  ;;  %v19947_v49 = vld [vmem:[#allocation68_spill] sm:$0xff] }
 0x6b8   : >> { %v17715_v2 = vadd.f32 %v19923_v0, %v7600_v18   ;;  %v7601_v58 = vmul.f32 %v7554_v46, %v19925_v27  ;;  %v19946_v18 = vld [vmem:[#allocation12_spill] sm:$0xff]  ;;  %v19950_v0 = vld [vmem:[#allocation70_spill] sm:$0xff] }
 0x6b9   : >> { %v17719_v59 = vadd.f32 %v19926_v11, %v7598_v7   ;;  %v7599_v17 = vmul.f32 %v7552_v52, %v19928_v8  ;;  %v19953_v11 = vld [vmem:[#allocation67_spill] sm:$0xff] }
 0x6ba   : >> { %19924 = vst [vmem:[#allocation124_spill] sm:$0xff] %v17715_v2  ;;  %v17723_v1 = vadd.f32 %v19929_v4, %v7601_v58   ;;  %v19937_v2 = vld [vmem:[#allocation13_spill] sm:$0xff] }
 0x6bb   : >> { %19927 = vst [vmem:[#allocation125_spill] sm:$0xff] %v17719_v59  ;;  %v17726_v27 = vadd.f32 %v19931_v56, %v7599_v17   ;;  %v12302_v57 = vpop.f32.mrb[24].mxu1  ;;  %v19934_v59 = vld [vmem:[#allocation10_spill] sm:$0xff] }
 0x6bc   : >> { %19930 = vst [vmem:[#allocation126_spill] sm:$0xff] %v17723_v1  ;;  %v7557_v62 = vadd.f32 %v12302_v57, %v17606_v3  ;;  %v7384_v43 = vpop.f32.mrb[25].mxu1  ;;  %v19935_v1 = vld [vmem:[#allocation72_spill] sm:$0xff]  ;;  %v19956_v17 = vld [vmem:[#allocation69_spill] sm:$0xff] }
 0x6bd   : >> { %19932 = vst [vmem:[#allocation127_spill] sm:$0xff] %v17726_v27  ;;  %v7555_v35 = vadd.f32 %v17606_v3, %v7384_v43  ;;  %v12303_v23 = vpop.f32.mrb[26].mxu1  ;;  %v19952_v27 = vld [vmem:[#allocation17_spill] sm:$0xff] }
 0x6be   : >> { %v7604_v51 = vmul.f32 %v7557_v62, %v19933_v42  ;;  %v7558_v38 = vadd.f32 %v12303_v23, %v17606_v3  ;;  %v7387_v31 = vpop.f32.mrb[27].mxu1  ;;  %v19958_v23 = vld [vmem:[#allocation24_spill] sm:$0xff] }
 0x6bf   : >> { %v7602_v55 = vmul.f32 %v7555_v35, %v19934_v59  ;;  %v7556_v32 = vadd.f32 %v17606_v3, %v7387_v31 }
 0x6c0   : >> { %v17735_v42 = vadd.f32 %v19935_v1, %v7604_v51   ;;  %v7605_v61 = vmul.f32 %v7558_v38, %v19937_v2  ;;  %v19964_v1 = vld [vmem:[#allocation66_spill] sm:$0xff] }
 0x6c1   : >> { %v17739_v9 = vadd.f32 %v19938_v53, %v7602_v55   ;;  %v7603_v36 = vmul.f32 %v7556_v32, %v19940_v10  ;;  %v19963_v55 = vld [vmem:[#allocation41_spill] sm:$0xff]  ;;  %v19967_v2 = vld [vmem:[#allocation39_spill] sm:$0xff]  ;;  %v19968_v53 = vld [vmem:[#allocation63_spill] sm:$0xff] }
 0x6c2   : >> { %19936 = vst [vmem:[#allocation128_spill] sm:$0xff] %v17735_v42  ;;  %v17743_v38 = vadd.f32 %v19941_v14, %v7605_v61   ;;  %v19971_v10 = vld [vmem:[#allocation65_spill] sm:$0xff] }
 0x6c3   : >> { %19939 = vst [vmem:[#allocation129_spill] sm:$0xff] %v17739_v9  ;;  %v17746_v41 = vadd.f32 %v19943_v25, %v7603_v36   ;;  %v12306_v48 = vpop.f32.mrb[28].mxu1 }
 0x6c4   : >> { %19942 = vst [vmem:[#allocation130_spill] sm:$0xff] %v17743_v38  ;;  %v7561_v21 = vadd.f32 %v12306_v48, %v17606_v3  ;;  %v7400_v50 = vpop.f32.mrb[29].mxu1  ;;  %v19959_v38 = vld [vmem:[#allocation14_spill] sm:$0xff] }
 0x6c5   : >> { %19944 = vst [vmem:[#allocation131_spill] sm:$0xff] %v17746_v41  ;;  %v7559_v29 = vadd.f32 %v17606_v3, %v7400_v50  ;;  %v12307_v60 = vpop.f32.mrb[30].mxu1  ;;  %v19949_v41 = vld [vmem:[#allocation15_spill] sm:$0xff] }
 0x6c6   : >> { %v7608_v12 = vmul.f32 %v7561_v21, %v19945_v19  ;;  %v7562_v39 = vadd.f32 %v12307_v60, %v17606_v3  ;;  %v7403_v9 = vpop.f32.mrb[31].mxu1  ;;  %v19974_v60 = vld [vmem:[#allocation42_spill] sm:$0xff] }
 0x6c7   : >> { %v7606_v46 = vmul.f32 %v7559_v29, %v19946_v18  ;;  %v7560_v34 = vadd.f32 %v17606_v3, %v7403_v9 }
 0x6c8   : >> { %v17755_v7 = vadd.f32 %v19947_v49, %v7608_v12   ;;  %v7609_v52 = vmul.f32 %v7562_v39, %v19949_v41  ;;  %v19975_v39 = vld [vmem:[#allocation40_spill] sm:$0xff] }
 0x6c9   : >> { %v17759_v8 = vadd.f32 %v19950_v0, %v7606_v46   ;;  %v7607_v58 = vmul.f32 %v7560_v34, %v19952_v27  ;;  %v19979_v34 = vld [vmem:[#allocation45_spill] sm:$0xff]  ;;  %v19984_v27 = vld [vmem:[#allocation59_spill] sm:$0xff] }
 0x6ca   : >> { %v19948_v47 = vmov %v17755_v7  ;;  %v17763_v57 = vadd.f32 %v19953_v11, %v7609_v52   ;;  %v19980_v7 = vld [vmem:[#allocation62_spill] sm:$0xff] }
 0x6cb   : >> { %19951 = vst [vmem:[#allocation132_spill] sm:$0xff] %v17759_v8  ;;  %v17766_v29 = vadd.f32 %v19956_v17, %v7607_v58   ;;  %v12310_v4 = vpop.f32.mrb[32].mxu1  ;;  %v19983_v52 = vld [vmem:[#allocation43_spill] sm:$0xff]  ;;  %v19987_v58 = vld [vmem:[#allocation61_spill] sm:$0xff] }
 0x6cc   : >> { %19954 = vst [vmem:[#allocation133_spill] sm:$0xff] %v17763_v57  ;;  %v19955_v5 = vmov %v17763_v57  ;;  %v7565_v56 = vadd.f32 %v12310_v4, %v17606_v3  ;;  %v7416_v62 = vpop.f32.mrb[33].mxu1  ;;  %v19960_v57 = vld [vmem:[#allocation64_spill] sm:$0xff] }
 0x6cd   : >> { %19957 = vst [vmem:[#allocation134_spill] sm:$0xff] %v17766_v29  ;;  %v7563_v43 = vadd.f32 %v17606_v3, %v7416_v62  ;;  %v12311_v35 = vpop.f32.mrb[34].mxu1 }
 0x6ce   : >> { %v7612_v42 = vmul.f32 %v7565_v56, %v19958_v23  ;;  %v7566_v51 = vadd.f32 %v12311_v35, %v17606_v3  ;;  %v7419_v8 = vpop.f32.mrb[35].mxu1 }
 0x6cf   : >> { %v7610_v31 = vmul.f32 %v7563_v43, %v19959_v38  ;;  %v7564_v59 = vadd.f32 %v17606_v3, %v7419_v8  ;;  %v19990_v43 = vld [vmem:[#allocation46_spill] sm:$0xff] }
 0x6d0   : >> { %v17775_v46 = vadd.f32 %v19960_v57, %v7612_v42   ;;  %v7613_v32 = vmul.f32 %v7566_v51, %v19963_v55  ;;  %v19991_v51 = vld [vmem:[#allocation44_spill] sm:$0xff]  ;;  %v19996_v55 = vld [vmem:[#allocation58_spill] sm:$0xff] }
 0x6d1   : >> { %v17779_v21 = vadd.f32 %v19964_v1, %v7610_v31   ;;  %v7611_v61 = vmul.f32 %v7564_v59, %v19967_v2  ;;  %v19992_v31 = vld [vmem:[#allocation56_spill] sm:$0xff]  ;;  %v20000_v2 = vld [vmem:[#allocation55_spill] sm:$0xff] }
 0x6d2   : >> { %19961 = vst [vmem:[#allocation135_spill] sm:$0xff] %v17775_v46  ;;  %v19962_v40 = vmov %v17775_v46  ;;  %v17783_v0 = vadd.f32 %v19968_v53, %v7613_v32   ;;  %v19976_v46 = vld [vmem:[#allocation60_spill] sm:$0xff] }
 0x6d3   : >> { %19965 = vst [vmem:[#allocation136_spill] sm:$0xff] %v17779_v21  ;;  %v19966_v6 = vmov %v17779_v21  ;;  %v17786_v36 = vadd.f32 %v19971_v10, %v7611_v61   ;;  %v12314_v14 = vpop.f32.mrb[36].mxu1  ;;  %v19995_v59 = vld [vmem:[#allocation49_spill] sm:$0xff]  ;;  %v20003_v61 = vld [vmem:[#allocation57_spill] sm:$0xff] }
 0x6d4   : >> { %19969 = vst [vmem:[#allocation137_spill] sm:$0xff] %v17783_v0  ;;  %v19970_v45 = vmov %v17783_v0  ;;  %v7569_v25 = vadd.f32 %v12314_v14, %v17606_v3  ;;  %v7432_v48 = vpop.f32.mrb[37].mxu1 }
 0x6d5   : >> { %19972 = vst [vmem:[#allocation138_spill] sm:$0xff] %v17786_v36  ;;  %v19973_v16 = vmov %v17786_v36  ;;  %v7567_v50 = vadd.f32 %v17606_v3, %v7432_v48  ;;  %v12315_v29 = vpop.f32.mrb[38].mxu1 }
 0x6d6   : >> { %v7616_v19 = vmul.f32 %v7569_v25, %v19974_v60  ;;  %v7570_v12 = vadd.f32 %v12315_v29, %v17606_v3  ;;  %v7435_v21 = vpop.f32.mrb[39].mxu1 }
 0x6d7   : >> { %v7614_v9 = vmul.f32 %v7567_v50, %v19975_v39  ;;  %v7568_v18 = vadd.f32 %v17606_v3, %v7435_v21  ;;  %v20007_v21 = vld [vmem:[#allocation48_spill] sm:$0xff] }
 0x6d8   : >> { %v17795_v32 = vadd.f32 %v19976_v46, %v7616_v19   ;;  %v7617_v49 = vmul.f32 %v7570_v12, %v19979_v34  ;;  %v20011_v46 = vld [vmem:[#allocation54_spill] sm:$0xff] }
 0x6d9   : >> { %v17799_v41 = vadd.f32 %v19980_v7, %v7614_v9   ;;  %v7615_v0 = vmul.f32 %v7568_v18, %v19983_v52  ;;  %v20008_v18 = vld [vmem:[#allocation52_spill] sm:$0xff]  ;;  %v20014_v34 = vld [vmem:[#allocation51_spill] sm:$0xff]  ;;  %v20015_v7 = vld [vmem:[#allocation53_spill] sm:$0xff] }
 0x6da   : >> { %19977 = vst [vmem:[#allocation139_spill] sm:$0xff] %v17795_v32  ;;  %v19978_v30 = vmov %v17795_v32  ;;  %v17803_v19 = vadd.f32 %v19984_v27, %v7617_v49   ;;  %v19999_v32 = vld [vmem:[#allocation47_spill] sm:$0xff]  ;;  %v20046_v27 = vld [vmem:[#allocation127_spill] sm:$0xff] }
 0x6db   : >> { %19981 = vst [vmem:[#allocation140_spill] sm:$0xff] %v17799_v41  ;;  %v19982_v33 = vmov %v17799_v41  ;;  %v17806_v50 = vadd.f32 %v19987_v58, %v7615_v0   ;;  %v12318_v11 = vpop.f32.mrb[40].mxu1  ;;  %v20032_v0 = vmov %v19970_v45  ;;  %v20042_v41 = vld [vmem:[#allocation131_spill] sm:$0xff] }
 0x6dc   : >> { %19985 = vst [vmem:[#allocation141_spill] sm:$0xff] %v17803_v19  ;;  %v19986_v24 = vmov %v17803_v19  ;;  %v7573_v17 = vadd.f32 %v12318_v11, %v17606_v3  ;;  %v7448_v4 = vpop.f32.mrb[41].mxu1  ;;  %v20006_v19 = vld [vmem:[#allocation50_spill] sm:$0xff] }
 0x6dd   : >> { %19988 = vst [vmem:[#allocation142_spill] sm:$0xff] %v17806_v50  ;;  %v19989_v28 = vmov %v17806_v50  ;;  %v7571_v56 = vadd.f32 %v17606_v3, %v7448_v4  ;;  %v12319_v62 = vpop.f32.mrb[42].mxu1  ;;  %v20058_v4 = vld [vmem:[#allocation115_spill] sm:$0xff] }
 0x6de   : >> { %v7620_v35 = vmul.f32 %v7573_v17, %v19990_v43  ;;  %v7574_v23 = vadd.f32 %v12319_v62, %v17606_v3  ;;  %v7451_v42 = vpop.f32.mrb[43].mxu1  ;;  %v20052_v62 = vld [vmem:[#allocation118_spill] sm:$0xff]  ;;  %v20065_v17 = vld [vmem:[#allocation32_spill] sm:$0xff]  ;;  %v7682_v4 = vld [vmem:[#allocation3 + $0x50] sm:$0xff] (%p17849_p4) }
 0x6df   : >> { %v7618_v8 = vmul.f32 %v7571_v56, %v19991_v51  ;;  %v7572_v38 = vadd.f32 %v17606_v3, %v7451_v42  ;;  %v20041_v42 = vld [vmem:[#allocation128_spill] sm:$0xff]  ;;  %v20050_v56 = vld [vmem:[#allocation123_spill] sm:$0xff]  ;;  %v20067_v43 = vld [vmem:[#allocation105_spill] sm:$0xff] }
 0x6e0   : >> { %v17815_v52 = vadd.f32 %v19992_v31, %v7620_v35   ;;  %v7621_v57 = vmul.f32 %v7574_v23, %v19995_v59  ;;  %v20047_v59 = vld [vmem:[#allocation125_spill] sm:$0xff]  ;;  %v20049_v35 = vld [vmem:[#allocation120_spill] sm:$0xff]  ;;  %v7676_v43 = vld [vmem:[#allocation3 + $0x20] sm:$0xff] (%p17849_p4) }
 0x6e1   : >> { %v17819_v58 = vadd.f32 %v19996_v55, %v7618_v8   ;;  %v7619_v1 = vmul.f32 %v7572_v38, %v19999_v32  ;;  %v20029_v32 = vmov %v19978_v30  ;;  %v20039_v8 = vld [vmem:[#allocation132_spill] sm:$0xff]  ;;  %v20040_v38 = vld [vmem:[#allocation130_spill] sm:$0xff]  ;;  %v20070_v30 = vld [vmem:[#allocation107_spill] sm:$0xff] (%p17849_p4) }
 0x6e2   : >> { %19993 = vst [vmem:[#allocation143_spill] sm:$0xff] %v17815_v52  ;;  %v17823_v11 = vadd.f32 %v20000_v2, %v7621_v57   ;;  %v20024_v63 = vmov %v17815_v52  ;;  %v20036_v57 = vmov %v19955_v5  ;;  %v20045_v2 = vld [vmem:[#allocation124_spill] sm:$0xff]  ;;  %v20077_v56 = vld [vmem:[#allocation113_spill] sm:$0xff] (%p17849_p4)  ;;  %v7684_v35 = vld [vmem:[#allocation3 + $0x60] sm:$0xff] (%p17849_p4) }
 0x6e3   : >> { %19997 = vst [vmem:[#allocation144_spill] sm:$0xff] %v17819_v58  ;;  %v19998_v20 = vmov %v17819_v58  ;;  %v17826_v51 = vadd.f32 %v20003_v61, %v7619_v1   ;;  %v12322_v53 = vpop.f32.mrb[52].mxu1  ;;  %v20025_v52 = vmov %v20024_v63  ;;  %v20044_v1 = vld [vmem:[#allocation126_spill] sm:$0xff]  ;;  %v20053_v31 = vld [vmem:[#allocation116_spill] sm:$0xff]  ;;  %v7673_v63 = vld [vmem:[#allocation3 + $0x8] sm:$0xff] (%p17849_p4) }
 0x6e4   : >> { %20001 = vst [vmem:[#allocation145_spill] sm:$0xff] %v17823_v11  ;;  %v7524_v10 = vadd.f32 %v12322_v53, %v17599_v54  ;;  %v7464_v36 = vpop.f32.mrb[53].mxu1  ;;  %v20022_v37 = vmov %v17823_v11  ;;  %v20027_v58 = vmov %v19998_v20  ;;  %v20057_v55 = vld [vmem:[#allocation112_spill] sm:$0xff]  ;;  %v20059_v53 = vld [vmem:[#allocation113_spill] sm:$0xff]  ;;  %v20078_v38 = vld [vmem:[#allocation115_spill] sm:$0xff] (%p17849_p4) }
 0x6e5   : >> { %20004 = vst [vmem:[#allocation146_spill] sm:$0xff] %v17826_v51  ;;  %v20005_v15 = vmov %v17826_v51  ;;  %v7522_v14 = vadd.f32 %v7464_v36, %v17601_v22  ;;  %v12323_v25 = vpop.f32.mrb[54].mxu1  ;;  %v20023_v11 = vmov %v20022_v37  ;;  %v20054_v36 = vld [vmem:[#allocation119_spill] sm:$0xff]  ;;  %v20061_v61 = vld [vmem:[#allocation108_spill] sm:$0xff]  ;;  %v20069_v20 = vld [vmem:[#allocation105_spill] sm:$0xff] (%p17849_p4) }
 0x6e6   : >> { %v7577_v48 = vadd.f32 %v17606_v3, %v7524_v10  ;;  %v7467_v50 = vpop.f32.mrb[55].mxu1  ;;  %v20026_v51 = vmov %v20005_v15  ;;  %v20048_v10 = vld [vmem:[#allocation122_spill] sm:$0xff]  ;;  %v7674_v15 = vld [vmem:[#allocation3 + $0x10] sm:$0xff] (%p17849_p4)  ;;  %v20074_v58 = vld [vmem:[#allocation111_spill] sm:$0xff] (%p17849_p4) }
 0x6e7   : >> { %v7575_v29 = vadd.f32 %v17606_v3, %v7522_v14  ;;  %v7523_v60 = vadd.f32 %v7467_v50, %v17603_v26  ;;  %v20030_v50 = vmov %v19989_v28  ;;  %v20056_v25 = vld [vmem:[#allocation114_spill] sm:$0xff]  ;;  %v20066_v26 = vld [vmem:[#allocation107_spill] sm:$0xff]  ;;  %v7720_v28 = vadd.f32 (%p17849_p4), %v7673_v63, %v20070_v30  ;;  %v20073_v30 = vld [vmem:[#allocation109_spill] sm:$0xff] (%p17849_p4) }
 0x6e8   : >> { %v7624_v12 = vmul.f32 %v7577_v48, %v20006_v19  ;;  %v20028_v19 = vmov %v19986_v24  ;;  %v20064_v48 = vld [vmem:[#allocation106_spill] sm:$0xff]  ;;  %v7723_v63 = vadd.f32 (%p17849_p4), %v7676_v43, %v20073_v30  ;;  %v20075_v11 = vld [vmem:[#allocation108_spill] sm:$0xff] (%p17849_p4)  ;;  %v7687_v59 = vld [vmem:[#allocation3 + $0x78] sm:$0xff] (%p17849_p4) }
 0x6e9   : >> { %v7622_v39 = vmul.f32 %v7575_v29, %v20007_v21  ;;  %v7576_v9 = vadd.f32 %v17606_v3, %v7523_v60  ;;  %v20034_v3 = vmov %v19973_v16  ;;  %v20035_v21 = vmov %v19966_v6  ;;  %v20038_v29 = vld [vmem:[#allocation134_spill] sm:$0xff]  ;;  %v7677_v16 = vld [vmem:[#allocation3 + $0x28] sm:$0xff] (%p17849_p4)  ;;  %v7686_v42 = vld [vmem:[#allocation3 + $0x70] sm:$0xff] (%p17849_p4) }
 0x6ea   : >> { %v17837_v54 = vadd.f32 %v20008_v18, %v7624_v12   ;;  %v20031_v18 = vmov %v19982_v33  ;;  %v20055_v12 = vld [vmem:[#allocation117_spill] sm:$0xff]  ;;  %v20060_v60 = vld [vmem:[#allocation110_spill] sm:$0xff]  ;;  %2714 = sbr.rel (!%p17849_p4) target bundleno = 524 (0x20c), region = 79  ;;  %v7678_v3 = vld [vmem:[#allocation3 + $0x30] sm:$0xff] (%p17849_p4)  ;;  %v11378_v41 = vpack.c.bf16 (%p17849_p4), %v7720_v28, %v7720_v28 }
 0x6eb   : >> { %v17840_v23 = vadd.f32 %v20011_v46, %v7622_v39   ;;  %v7623_v49 = vmul.f32 %v7576_v9, %v20014_v34  ;;  %v20033_v46 = vmov %v19962_v40  ;;  %v20037_v39 = vmov %v19948_v47  ;;  %v20043_v9 = vld [vmem:[#allocation129_spill] sm:$0xff]  ;;  %v7688_v57 = vld [vmem:[#allocation3 + $0x80] sm:$0xff] (%p17849_p4)  ;;  %v20079_v1 = vld [vmem:[#allocation112_spill] sm:$0xff] (%p17849_p4) }
 0x6ec   : >> { %20009 = vst [vmem:[#allocation147_spill] sm:$0xff] %v17837_v54  ;;  %v20010_v44 = vmov %v17837_v54  ;;  %v20051_v34 = vld [vmem:[#allocation121_spill] sm:$0xff]  ;;  %v7725_v17 = vadd.f32 (%p17849_p4), %v7678_v3, %v20075_v11  ;;  %7956 = vst.msk [vmem:[#allocation2 + $0x14] sm:$0xf] (%p17849_p4), %vm199_vm2, %v11378_v41  ;;  %v7729_v2 = vadd.f32 (%p17849_p4), %v7682_v4, %v20079_v1  ;;  %v20080_v61 = vld [vmem:[#allocation114_spill] sm:$0xff] (%p17849_p4) }
 0x6ed   : >> { %20012 = vst [vmem:[#allocation148_spill] sm:$0xff] %v17840_v23  ;;  %v20013_v22 = vmov %v17840_v23  ;;  %v17844_v14 = vadd.f32 %v20015_v7, %v7623_v49   ;;  %v20019_v54 = vmov %v20010_v44  ;;  %v20062_v7 = vld [vmem:[#allocation111_spill] sm:$0xff]  ;;  %v20063_v49 = vld [vmem:[#allocation109_spill] sm:$0xff]  ;;  %v20083_v29 = vld [vmem:[#allocation116_spill] sm:$0xff] (%p17849_p4) }
 0x6ee   : >> { %v20021_v23 = vmov %v20013_v22  ;;  %v8042_v44 = vld [vmem:[#allocation2 + $0x4] sm:$0xf] (%p17849_p4)  ;;  %v7672_v22 = vld [vmem:[#allocation3] sm:$0xff] (%p17849_p4)  ;;  %v20071_v33 = vld [vmem:[#allocation32_spill] sm:$0xff] (%p17849_p4)  ;;  %v11383_v8 = vpack.c.bf16 (%p17849_p4), %v7725_v17, %v7725_v17  ;;  %v7733_v60 = vadd.f32 (%p17849_p4), %v7686_v42, %v20083_v29  ;;  %v11387_v39 = vpack.c.bf16 (%p17849_p4), %v7729_v2, %v7729_v2 }
 0x6ef   : >> { %20016 = vst [vmem:[#allocation149_spill] sm:$0xff] %v17844_v14  ;;  %v20017_v13 = vmov %v17844_v14  ;;  %v7719_v24 = vadd.f32 (%p17849_p4), %v7672_v22, %v20069_v20  ;;  %v7721_v45 = vadd.f32 (%p17849_p4), %v7674_v15, %v20071_v33  ;;  %v7675_v40 = vld [vmem:[#allocation3 + $0x18] sm:$0xff] (%p17849_p4)  ;;  %v20072_v20 = vld [vmem:[#allocation106_spill] sm:$0xff] (%p17849_p4)  ;;  %v7681_v33 = vld [vmem:[#allocation3 + $0x48] sm:$0xff] (%p17849_p4) }
 0x6f0   : >> { %v20020_v14 = vmov %v20017_v13  ;;  %v8043_v13 = vld [vmem:[#allocation2 + $0x8] sm:$0xf] (%p17849_p4)  ;;  %v7722_v0 = vadd.f32 (%p17849_p4), %v7675_v40, %v20072_v20  ;;  %v7683_v28 = vld [vmem:[#allocation3 + $0x58] sm:$0xff] (%p17849_p4)  ;;  %v7728_v31 = vadd.f32 (%p17849_p4), %v7681_v33, %v20078_v38  ;;  %7961 = vst.msk [vmem:[#allocation2 + $0x28] sm:$0xf] (%p17849_p4), %vm199_vm2, %v11383_v8  ;;  %v7690_v19 = vld [vmem:[#allocation3 + $0x90] sm:$0xff] (%p17849_p4) }
 0x6f1   : > { %v18000_v37 = vcombine.low %v8042_v44, %v8043_v13  ;;  %v11377_v26 = vpack.c.bf16 %v7719_v24, %v7719_v24  ;;  %v7679_v44 = vld [vmem:[#allocation3 + $0x38] sm:$0xff]  ;;  %v7680_v13 = vld [vmem:[#allocation3 + $0x40] sm:$0xff]  ;;  %v11379_v52 = vpack.c.bf16 %v7721_v45, %v7721_v45  ;;  %v7724_v24 = vadd.f32 %v7677_v16, %v20074_v58  ;;  %v7685_v23 = vld [vmem:[#allocation3 + $0x68] sm:$0xff]  ;;  %7965 = vst.msk [vmem:[#allocation2 + $0x38] sm:$0xf] %vm199_vm2, %v11387_v39 }
 0x6f2   : > { %v11380_v40 = vpack.c.bf16 %v7722_v0, %v7722_v0  ;;  %v11381_v45 = vpack.c.bf16 %v7723_v63, %v7723_v63  ;;  %v7727_v62 = vadd.f32 %v7680_v13, %v20077_v56  ;;  %v7730_v53 = vadd.f32 %v7683_v28, %v20080_v61  ;;  %v7689_v10 = vld [vmem:[#allocation3 + $0x88] sm:$0xff]  ;;  %v20081_v36 = vld [vmem:[#allocation117_spill] sm:$0xff]  ;;  %v8044_v21 = vld [vmem:[#allocation2 + $0xc] sm:$0xf] }
 0x6f3   : > { %v8259_v6 = vshrl.u32 %v18000_v37, 16  ;;  %v8262_v5 = vshll.u32 %v18000_v37, 16  ;;  %v8557_v54 = vrot.slane %v18000_v37, 5  ;;  %7955 = vst.msk [vmem:[#allocation2 + $0x10] sm:$0xf] %vm199_vm2, %v11377_v26  ;;  %v11382_v16 = vpack.c.bf16 %v7724_v24, %v7724_v24  ;;  %v20082_v48 = vld [vmem:[#allocation119_spill] sm:$0xff] }
 0x6f4   : > { %7957 = vst.msk [vmem:[#allocation2 + $0x18] sm:$0xf] %vm199_vm2, %v11379_v52  ;;  %7958 = vst.msk [vmem:[#allocation2 + $0x1c] sm:$0xf] %vm199_vm2, %v11380_v40  ;;  %v11385_v32 = vpack.c.bf16 %v7727_v62, %v7727_v62  ;;  %v7731_v14 = vadd.f32 %v7684_v35, %v20081_v36  ;;  %v11386_v25 = vpack.c.bf16 %v7728_v31, %v7728_v31  ;;  %v7691_v12 = vld [vmem:[#allocation3 + $0x98] sm:$0xff]  ;;  %v20084_v18 = vld [vmem:[#allocation118_spill] sm:$0xff] }
 0x6f5   : > { %v8261_v15 = vrot.slane %v8259_v6, 4  ;;  %v8264_v27 = vrot.slane %v8262_v5, 5  ;;  %8610 = vrot.lane.b32.xlu0 %v8557_v54, %s13930_s13  ;;  %v20076_v6 = vld [vmem:[#allocation110_spill] sm:$0xff]  ;;  %7959 = vst.msk [vmem:[#allocation2 + $0x20] sm:$0xf] %vm199_vm2, %v11381_v45  ;;  %v7732_v50 = vadd.f32 %v7685_v23, %v20082_v48  ;;  %v11388_v9 = vpack.c.bf16 %v7730_v53, %v7730_v53  ;;  %v20085_v22 = vld [vmem:[#allocation121_spill] sm:$0xff] }
 0x6f6   : > { %v7726_v5 = vadd.f32 %v7679_v44, %v20076_v6  ;;  %7960 = vst.msk [vmem:[#allocation2 + $0x24] sm:$0xf] %vm199_vm2, %v11382_v16  ;;  %7963 = vst.msk [vmem:[#allocation2 + $0x30] sm:$0xf] %vm199_vm2, %v11385_v32  ;;  %v7734_v46 = vadd.f32 %v7687_v59, %v20084_v18  ;;  %v7735_v34 = vadd.f32 %v7688_v57, %v20085_v22  ;;  %v7692_v49 = vld [vmem:[#allocation3 + $0xa0] sm:$0xff]  ;;  %v20086_v3 = vld [vmem:[#allocation123_spill] sm:$0xff] }
 0x6f7   : > { %v18020_v51 = vor.u32 %v8264_v27, %v8261_v15  ;;  %v11389_v7 = vpack.c.bf16 %v7731_v14, %v7731_v14  ;;  %7964 = vst.msk [vmem:[#allocation2 + $0x34] sm:$0xf] %vm199_vm2, %v11386_v25  ;;  %v11390_v43 = vpack.c.bf16 %v7732_v50, %v7732_v50  ;;  %v11391_v26 = vpack.c.bf16 %v7733_v60, %v7733_v60  ;;  %v20087_v20 = vld [vmem:[#allocation120_spill] sm:$0xff]  ;;  %v20088_v30 = vld [vmem:[#allocation122_spill] sm:$0xff]  ;;  %v7693_v33 = vld [vmem:[#allocation3 + $0xa8] sm:$0xff] }
 0x6f8   : > { %v11384_v55 = vpack.c.bf16 %v7726_v5, %v7726_v5  ;;  %v7736_v44 = vadd.f32 %v7689_v10, %v20086_v3  ;;  %7966 = vst.msk [vmem:[#allocation2 + $0x3c] sm:$0xf] %vm199_vm2, %v11388_v9  ;;  %v11392_v41 = vpack.c.bf16 %v7734_v46, %v7734_v46  ;;  %v11393_v52 = vpack.c.bf16 %v7735_v34, %v7735_v34  ;;  %v8046_v15 = vld [vmem:[#allocation2 + $0x14] sm:$0xf]  ;;  %v20090_v35 = vld [vmem:[#allocation127_spill] sm:$0xff] }
 0x6f9   : > { %8500 = vrot.lane.b32.xlu1 %v18020_v51, %s13931_s21  ;;  %v7737_v0 = vadd.f32 %v7690_v19, %v20087_v20  ;;  %v7738_v63 = vadd.f32 %v7691_v12, %v20088_v30  ;;  %7967 = vst.msk [vmem:[#allocation2 + $0x40] sm:$0xf] %vm199_vm2, %v11389_v7  ;;  %7968 = vst.msk [vmem:[#allocation2 + $0x44] sm:$0xf] %vm199_vm2, %v11390_v43  ;;  %v20089_v24 = vld [vmem:[#allocation125_spill] sm:$0xff]  ;;  %v7740_v23 = vadd.f32 %v7693_v33, %v20090_v35 }
 0x6fa   : > { %7962 = vst.msk [vmem:[#allocation2 + $0x2c] sm:$0xf] %vm199_vm2, %v11384_v55  ;;  %v8045_v13 = vld [vmem:[#allocation2 + $0x10] sm:$0xf]  ;;  %7969 = vst.msk [vmem:[#allocation2 + $0x48] sm:$0xf] %vm199_vm2, %v11391_v26  ;;  %v7739_v11 = vadd.f32 %v7692_v49, %v20089_v24  ;;  %v11394_v17 = vpack.c.bf16 %v7736_v44, %v7736_v44 }
 0x6fb   : > { %v8047_v27 = vld [vmem:[#allocation2 + $0x18] sm:$0xf]  ;;  %v18044_v58 = vcombine.low %v8044_v21, %v8045_v13  ;;  %7970 = vst.msk [vmem:[#allocation2 + $0x4c] sm:$0xf] %vm199_vm2, %v11392_v41  ;;  %7971 = vst.msk [vmem:[#allocation2 + $0x50] sm:$0xf] %vm199_vm2, %v11393_v52  ;;  %v11395_v28 = vpack.c.bf16 %v7737_v0, %v7737_v0  ;;  %v11396_v40 = vpack.c.bf16 %v7738_v63, %v7738_v63 }
 0x6fc   : > { %v11164_v4 = vcombine.low %v8046_v15, %v8047_v27  ;;  %v8048_v6 = vld [vmem:[#allocation2 + $0x1c] sm:$0xf]  ;;  %v8049_v5 = vld [vmem:[#allocation2 + $0x20] sm:$0xf]  ;;  %v11397_v62 = vpack.c.bf16 %v7739_v11, %v7739_v11  ;;  %7972 = vst.msk [vmem:[#allocation2 + $0x54] sm:$0xf] %vm199_vm2, %v11394_v17  ;;  %v11398_v21 = vpack.c.bf16 %v7740_v23, %v7740_v23 }
 0x6fd   : > { %v8558_v45 = vrot.slane %v18044_v58, 5  ;;  %v8267_v56 = vshrl.u32 %v18044_v58, 16  ;;  %v18056_v16 = vcombine.low %v8048_v6, %v8049_v5  ;;  %v8270_v8 = vshll.u32 %v18044_v58, 16  ;;  %v8050_v31 = vld [vmem:[#allocation2 + $0x24] sm:$0xf]  ;;  %v7694_v23 = vld [vmem:[#allocation3 + $0xb0] sm:$0xff] }
 0x6fe   : > { %v8560_v42 = vrot.slane %v11164_v4, 5  ;;  %v8276_v38 = vshrl.u32 %v11164_v4, 16  ;;  %7973 = vst.msk [vmem:[#allocation2 + $0x58] sm:$0xf] %vm199_vm2, %v11395_v28  ;;  %7974 = vst.msk [vmem:[#allocation2 + $0x5c] sm:$0xf] %vm199_vm2, %v11396_v40 }
 0x6ff   : > { %v8269_v59 = vrot.slane %v8267_v56, 4  ;;  %v8279_v57 = vshll.u32 %v11164_v4, 16  ;;  %v18061_v55 = vld [vmem:[#allocation2 + $0x28] sm:$0xf]  ;;  %7975 = vst.msk [vmem:[#allocation2 + $0x60] sm:$0xf] %vm199_vm2, %v11397_v62  ;;  %v8559_v52 = vsel %vm809_vm0, %v8557_v54, %v8558_v45 }
 0x700   : > { %v8561_v1 = vsel %vm809_vm0, %v8558_v45, %v8560_v42  ;;  %v8562_v2 = vrot.slane %v18056_v16, 5  ;;  %v8272_v61 = vrot.slane %v8270_v8, 5  ;;  %v8278_v53 = vrot.slane %v8276_v38, 4  ;;  %v18068_v10 = vld [vmem:[#allocation2 + $0x30] sm:$0xf] }
 0x701   : > { %v18063_v32 = vld [vmem:[#allocation2 + $0x2c] sm:$0xf]  ;;  %8614 = vrot.lane.b32.xlu1 %v8561_v1, %s13930_s13  ;;  %v8281_v36 = vrot.slane %v8279_v57, 5  ;;  %v8285_v14 = vshrl.u32 %v18056_v16, 16  ;;  %v8288_v25 = vshll.u32 %v18056_v16, 16  ;;  %v18074_v48 = vcombine.low %v8050_v31, %v18061_v55  ;;  %v7695_v57 = vld [vmem:[#allocation3 + $0xb8] sm:$0xff] }
 0x702   : > { %v8563_v50 = vsel %vm809_vm0, %v8560_v42, %v8562_v2  ;;  %v8273_v29 = vor.u32 %v8272_v61, %v8269_v59  ;;  %v18081_v60 = vcombine.low %v18063_v32, %v18068_v10  ;;  %v18083_v19 = vld [vmem:[#allocation2 + $0x34] sm:$0xf]  ;;  %v18085_v12 = vld [vmem:[#allocation2 + $0x38] sm:$0xf]  ;;  %v18088_v22 = vld [vmem:[#allocation2 + $0x3c] sm:$0xf] }
 0x703   : > { %v8282_v39 = vor.u32 %v8281_v36, %v8278_v53  ;;  %v8287_v9 = vrot.slane %v8285_v14, 4  ;;  %v8290_v18 = vrot.slane %v8288_v25, 5  ;;  %v8294_v46 = vshrl.u32 %v18074_v48, 16  ;;  %v18093_v43 = vld [vmem:[#allocation2 + $0x40] sm:$0xf] }
 0x704   : > { %v8297_v34 = vshll.u32 %v18074_v48, 16  ;;  %v8303_v49 = vshrl.u32 %v18081_v60, 16  ;;  %v8306_v7 = vshll.u32 %v18081_v60, 16  ;;  %7976 = vst.msk [vmem:[#allocation2 + $0x64] sm:$0xf] %vm199_vm2, %v11398_v21  ;;  %v8564_v33 = vrot.slane %v18074_v48, 5 }
 0x705   : > { %8616 = vrot.lane.b32.xlu1 %v8563_v50, %s13930_s13  ;;  %v8283_v26 = vsel %vm509_vm1, %v8273_v29, %v8282_v39  ;;  %v8291_v3 = vor.u32 %v8290_v18, %v8287_v9  ;;  %v8296_v44 = vrot.slane %v8294_v46, 4  ;;  %v18098_v13 = vld [vmem:[#allocation2 + $0x44] sm:$0xf]  ;;  %v18100_v41 = vld [vmem:[#allocation2 + $0x48] sm:$0xf]  ;;  %v18110_v15 = vcombine.low %v18083_v19, %v18085_v12  ;;  %v7696_v14 = vld [vmem:[#allocation3 + $0xc0] sm:$0xff] }
 0x706   : > { %8504 = vrot.lane.b32.xlu0 %v8283_v26, %s13931_s21  ;;  %v8299_v20 = vrot.slane %v8297_v34, 5  ;;  %v8305_v0 = vrot.slane %v8303_v49, 4  ;;  %v8308_v30 = vrot.slane %v8306_v7, 5  ;;  %v18114_v27 = vcombine.low %v18088_v22, %v18093_v43  ;;  %v18119_v54 = vld [vmem:[#allocation2 + $0x4c] sm:$0xf]  ;;  %v13512_v48 = vld [vmem:[%s19303_s1 + $0x430] sm:$0xff]  }
 0x707   : > { %v8292_v63 = vsel %vm509_vm1, %v8282_v39, %v8291_v3  ;;  %v8566_v37 = vrot.slane %v18081_v60, 5  ;;  %v18123_v11 = vcombine.low %v18098_v13, %v18100_v41  ;;  %v8312_v17 = vshrl.u32 %v18110_v15, 16  ;;  %v18130_v45 = vld [vmem:[#allocation2 + $0x50] sm:$0xf]  ;;  %v18138_v62 = vld [vmem:[#allocation2 + $0x54] sm:$0xf] }
 0x708   : > { %v8300_v58 = vor.u32 %v8299_v20, %v8296_v44  ;;  %v18116_v24 = vor.u32 %v8308_v30, %v8305_v0  ;;  %v8315_v4 = vshll.u32 %v18110_v15, 16  ;;  %v8321_v28 = vshrl.u32 %v18114_v27, 16  ;;  %v18140_v35 = vld [vmem:[#allocation2 + $0x58] sm:$0xf]  ;;  %v18142_v59 = vld [vmem:[#allocation2 + $0x5c] sm:$0xf] }
 0x709   : > { %8612 = vrot.lane.b32.xlu1 %v8559_v52, %s13930_s13  ;;  %v8324_v40 = vshll.u32 %v18114_v27, 16  ;;  %v8274_v5 = vsel %vm509_vm1, %v18020_v51, %v8273_v29  ;;  %v8568_v56 = vrot.slane %v18110_v15, 5  ;;  %v8314_v42 = vrot.slane %v8312_v17, 4  ;;  %v18151_v36 = vld [vmem:[#allocation2 + $0x60] sm:$0xf]  ;;  %v20091_v44 = vld [vmem:[#allocation124_spill] sm:$0xff] }
 0x70a   : > { %8506 = vrot.lane.b32.xlu0 %v8292_v63, %s13931_s21  ;;  %v8310_v6 = vsel %vm509_vm1, %v8300_v58, %v18116_v24  ;;  %v8317_v8 = vrot.slane %v8315_v4, 5  ;;  %v8323_v38 = vrot.slane %v8321_v28, 4  ;;  %v19530_v1 = vrot.slane %v18114_v27, 5  ;;  %v13508_v39 = vld [vmem:[%s19303_s1 + $0x420] sm:$0xff]   ;;  %v18178_v20 = vld [vmem:[%s19303_s1 + $0x3f0] sm:$0xff]   ;;  %v13510_v17 = vld [vmem:[%s19303_s1 + $0x428] sm:$0xff]  }
 0x70b   : > { %v8326_v31 = vrot.slane %v8324_v40, 5  ;;  %v18147_v61 = vcombine.low %v18119_v54, %v18130_v45  ;;  %v8330_v51 = vshrl.u32 %v18123_v11, 16  ;;  %v8333_v53 = vshll.u32 %v18123_v11, 16  ;;  %12324 = vmatprep.subr.bf16.mxu1 %v13508_v39  ;;  %20092 = vst [vmem:[#allocation105_spill] sm:$0xff] %v18178_v20  ;;  %v18191_v4 = vld [vmem:[%s19303_s1 + $0x3f8] sm:$0xff]   ;;  %12384 = vmatprep.subr.bf16.mxu0 %v18178_v20 }
 0x70c   : > { %v8567_v25 = vsel %vm809_vm0, %v8564_v33, %v8566_v37  ;;  %v8318_v50 = vor.u32 %v8317_v8, %v8314_v42  ;;  %v8572_v21 = vrot.slane %v18123_v11, 5  ;;  %v8301_v49 = vsel %vm509_vm1, %v8291_v3, %v8300_v58  ;;  %v20093_v3 = vld [vmem:[#allocation126_spill] sm:$0xff]  ;;  %12325 = vmatpush3.bf16.msra.mxu1 %v13508_v39  ;;  %20094 = vst [vmem:[#allocation107_spill] sm:$0xff] %v18191_v4  ;;  %v7697_v42 = vld [vmem:[#allocation3 + $0xc8] sm:$0xff]  ;;  %v7698_v8 = vld [vmem:[#allocation3 + $0xd0] sm:$0xff] }
 0x70d   : > { %8510 = vrot.lane.b32.xlu1 %v8310_v6, %s13931_s21  ;;  %v18159_v29 = vor.u32 %v8326_v31, %v8323_v38  ;;  %v8332_v9 = vrot.slane %v8330_v51, 4  ;;  %v8335_v18 = vrot.slane %v8333_v53, 5  ;;  %v8339_v46 = vshrl.u32 %v18147_v61, 16  ;;  %v7699_v53 = vld [vmem:[#allocation3 + $0xd8] sm:$0xff]  ;;  %12385 = vmatpush3.bf16.msra.mxu0 %v18178_v20 }
 0x70e   : > { %8502 = vrot.lane.b32.xlu0 %v8274_v5, %s13931_s21  ;;  %v8342_v34 = vshll.u32 %v18147_v61, 16  ;;  %v19529_v7 = vrot.slane %v18147_v61, 5  ;;  %v18172_v26 = vcombine.low %v18138_v62, %v18140_v35  ;;  %v7741_v52 = vadd.f32 %v7694_v23, %v20091_v44  ;;  %v20095_v5 = vld [vmem:[#allocation129_spill] sm:$0xff]  ;;  %12326 = vmatprep.subr.bf16.mxu1 %v13510_v17 }
 0x70f   : > { %v8341_v0 = vrot.slane %v8339_v46, 4  ;;  %v18182_v63 = vcombine.low %v18142_v59, %v18151_v36  ;;  %v7742_v58 = vadd.f32 %v7695_v57, %v20093_v3  ;;  %v8328_v28 = vsel %vm509_vm1, %v8318_v50, %v18159_v29  ;;  %v7701_v46 = vld [vmem:[#allocation3 + $0xe8] sm:$0xff]  ;;  %12386 = vmatprep.subr.bf16.mxu0 %v18191_v4  ;;  %v7703_v44 = vld [vmem:[#allocation3 + $0xf8] sm:$0xff]  ;;  %v7706_v3 = vld [vmem:[#allocation3 + $0x110] sm:$0xff] }
 0x710   : > { %v8344_v30 = vrot.slane %v8342_v34, 5  ;;  %v8348_v40 = vshrl.u32 %v18172_v26, 16  ;;  %v8351_v6 = vshll.u32 %v18172_v26, 16  ;;  %v7743_v23 = vadd.f32 %v7696_v14, %v20095_v5  ;;  %v7702_v34 = vld [vmem:[#allocation3 + $0xf0] sm:$0xff]  ;;  %12327 = vmatpush3.bf16.msra.mxu1 %v13510_v17  ;;  %v7708_v5 = vld [vmem:[#allocation3 + $0x120] sm:$0xff] }
 0x711   : > { %8620 = vrot.lane.b32.xlu1 %v8567_v25, %s13930_s13  ;;  %v18201_v38 = vor.u32 %v8335_v18, %v8332_v9  ;;  %v8357_v57 = vshrl.u32 %v18182_v63, 16  ;;  %v8360_v51 = vshll.u32 %v18182_v63, 16  ;;  %v7700_v25 = vld [vmem:[#allocation3 + $0xe0] sm:$0xff]  ;;  %v8565_v14 = vsel %vm809_vm0, %v8562_v2, %v8564_v33  ;;  %12387 = vmatpush3.bf16.msra.mxu0 %v18191_v4 }
 0x712   : > { %8508 = vrot.lane.b32.xlu0 %v8301_v49, %s13931_s21  ;;  %v18203_v31 = vor.u32 %v8344_v30, %v8341_v0  ;;  %v8571_v39 = vsel %vm809_vm0, %v8568_v56, %v19530_v1  ;;  %v8350_v9 = vrot.slane %v8348_v40, 4  ;;  %v8353_v18 = vrot.slane %v8351_v6, 5  ;;  %v7704_v0 = vld [vmem:[#allocation3 + $0x100] sm:$0xff]  ;;  %v7707_v6 = vld [vmem:[#allocation3 + $0x118] sm:$0xff]  ;;  %v7709_v1 = vld [vmem:[#allocation3 + $0x128] sm:$0xff]  ;;  %12328 = vmatprep.subr.bf16.mxu1 %v13512_v48 }
 0x713   : > { %v18227_v16 = vsel %vm809_vm0, %v8566_v37, %v8568_v56  ;;  %v8359_v2 = vrot.slane %v8357_v57, 4  ;;  %v8362_v33 = vrot.slane %v8360_v51, 5  ;;  %v11399_v49 = vpack.c.bf16 %v7741_v52, %v7741_v52  ;;  %v7705_v56 = vld [vmem:[#allocation3 + $0x108] sm:$0xff]  ;;  %v20099_v51 = vld [vmem:[#allocation132_spill] sm:$0xff] }
 0x714   : > { %v8319_v30 = vsel %vm509_vm1, %v18116_v24, %v8318_v50  ;;  %v18237_v60 = vsel %vm809_vm0, %v8572_v21, %v19529_v7  ;;  %v11400_v15 = vpack.c.bf16 %v7742_v58, %v7742_v58  ;;  %v11401_v37 = vpack.c.bf16 %v7743_v23, %v7743_v23  ;;  %v20096_v24 = vld [vmem:[#allocation131_spill] sm:$0xff]  ;;  %v20098_v23 = vld [vmem:[#allocation130_spill] sm:$0xff]  ;;  %12329 = vmatpush3.bf16.msra.mxu1 %v13512_v48 }
 0x715   : > { %8514 = vrot.lane.b32.xlu1 %v8328_v28, %s13931_s21  ;;  %v8346_v52 = vsel %vm509_vm1, %v18201_v38, %v18203_v31  ;;  %7977 = vst.msk [vmem:[#allocation2 + $0x68] sm:$0xf] %vm199_vm2, %v11399_v49  ;;  %v7744_v50 = vadd.f32 %v7697_v42, %v20096_v24  ;;  %v20097_v28 = vld [vmem:[#allocation128_spill] sm:$0xff]  ;;  %v18247_v58 = vor.u32 %v8353_v18, %v8350_v9  ;;  %v20100_v7 = vld [vmem:[#allocation134_spill] sm:$0xff]  ;;  %v7711_v18 = vld [vmem:[#allocation3 + $0x138] sm:$0xff] }
 0x716   : > { %8618 = vrot.lane.b32.xlu0 %v8565_v14, %s13930_s13  ;;  %v7745_v40 = vadd.f32 %v7698_v8, %v20097_v28  ;;  %7978 = vst.msk [vmem:[#allocation2 + $0x6c] sm:$0xf] %vm199_vm2, %v11400_v15  ;;  %7979 = vst.msk [vmem:[#allocation2 + $0x70] sm:$0xf] %vm199_vm2, %v11401_v37  ;;  %v7746_v57 = vadd.f32 %v7699_v53, %v20098_v23  ;;  %v7747_v14 = vadd.f32 %v7700_v25, %v20099_v51  ;;  %v7710_v49 = vld [vmem:[#allocation3 + $0x130] sm:$0xff]  ;;  %v7712_v15 = vld [vmem:[#allocation3 + $0x140] sm:$0xff] }
 0x717   : > { %v7748_v17 = vadd.f32 %v7701_v46, %v20100_v7  ;;  %v18255_v42 = vor.u32 %v8362_v33, %v8359_v2  ;;  %v11402_v8 = vpack.c.bf16 %v7744_v50, %v7744_v50  ;;  %v7749_v9 = vadd.f32 %v7702_v34, %v19948_v47  ;;  %v18261_v53 = vld [vmem:[%s19303_s1 + $0x400] sm:$0xff]   ;;  %v20102_v46 = vld [vmem:[#allocation133_spill] sm:$0xff]  ;;  %v20103_v2 = vld [vmem:[#allocation136_spill] sm:$0xff] }
 0x718   : > { %v11403_v24 = vpack.c.bf16 %v7745_v40, %v7745_v40  ;;  %20101 = vst [vmem:[#allocation32_spill] sm:$0xff] %v18261_v53  ;;  %v11404_v7 = vpack.c.bf16 %v7746_v57, %v7746_v57  ;;  %v11405_v25 = vpack.c.bf16 %v7747_v14, %v7747_v14  ;;  %v7750_v37 = vadd.f32 %v7703_v44, %v20102_v46  ;;  %v7713_v50 = vld [vmem:[#allocation3 + $0x148] sm:$0xff]  ;;  %v20104_v40 = vld [vmem:[#allocation138_spill] sm:$0xff]  ;;  %v20106_v51 = vld [vmem:[#allocation137_spill] sm:$0xff] }
 0x719   : > { %8624 = vrot.lane.b32.xlu1 %v8571_v39, %s13930_s13  ;;  %v7751_v33 = vadd.f32 %v7704_v0, %v20103_v2  ;;  %v18267_v47 = vld [vmem:[#allocation2 + $0x64] sm:$0xf]  ;;  %7980 = vst.msk [vmem:[#allocation2 + $0x74] sm:$0xf] %vm199_vm2, %v11402_v8  ;;  %v11406_v34 = vpack.c.bf16 %v7748_v17, %v7748_v17  ;;  %v11407_v28 = vpack.c.bf16 %v7749_v9, %v7749_v9  ;;  %v20107_v14 = vld [vmem:[#allocation140_spill] sm:$0xff]  ;;  %v7715_v8 = vld [vmem:[#allocation3 + $0x158] sm:$0xff] }
 0x71a   : > { %8512 = vrot.lane.b32.xlu0 %v8319_v30, %s13931_s21  ;;  %7981 = vst.msk [vmem:[#allocation2 + $0x78] sm:$0xf] %vm199_vm2, %v11403_v24  ;;  %v7752_v23 = vadd.f32 %v7705_v56, %v20104_v40  ;;  %v20105_v39 = vld [vmem:[#allocation135_spill] sm:$0xff]  ;;  %7982 = vst.msk [vmem:[#allocation2 + $0x7c] sm:$0xf] %vm199_vm2, %v11404_v7  ;;  %v11408_v44 = vpack.c.bf16 %v7750_v37, %v7750_v37  ;;  %v7754_v30 = vadd.f32 %v7707_v6, %v20106_v51  ;;  %v7714_v2 = vld [vmem:[#allocation3 + $0x150] sm:$0xff] }
 0x71b   : > { %v7753_v57 = vadd.f32 %v7706_v3, %v20105_v39  ;;  %7983 = vst.msk [vmem:[#allocation2 + $0x80] sm:$0xf] %vm199_vm2, %v11405_v25  ;;  %v11409_v0 = vpack.c.bf16 %v7751_v33, %v7751_v33  ;;  %v7755_v46 = vadd.f32 %v7708_v5, %v20107_v14  ;;  %v13514_v17 = vld [vmem:[%s19303_s1 + $0x438] sm:$0xff]   ;;  %7984 = vst.msk [vmem:[#allocation2 + $0x84] sm:$0xf] %vm199_vm2, %v11406_v34  ;;  %v20109_v7 = vld [vmem:[#allocation139_spill] sm:$0xff]  ;;  %12388 = vmatprep.subr.bf16.mxu0 %v18261_v53 }
 0x71c   : > { %7985 = vst.msk [vmem:[#allocation2 + $0x88] sm:$0xf] %vm199_vm2, %v11407_v28  ;;  %v11410_v56 = vpack.c.bf16 %v7752_v23, %v7752_v23  ;;  %v20108_v24 = vld [vmem:[#allocation142_spill] sm:$0xff]  ;;  %v7757_v25 = vadd.f32 %v7710_v49, %v20109_v7  ;;  %v18288_v48 = vld [vmem:[%s19303_s1 + $0x408] sm:$0xff]   ;;  %7986 = vst.msk [vmem:[#allocation2 + $0x8c] sm:$0xf] %vm199_vm2, %v11408_v44  ;;  %v11412_v5 = vpack.c.bf16 %v7754_v30, %v7754_v30  ;;  %12389 = vmatpush3.bf16.msra.mxu0 %v18261_v53 }
 0x71d   : > { %v11411_v3 = vpack.c.bf16 %v7753_v57, %v7753_v57  ;;  %v7756_v9 = vadd.f32 %v7709_v1, %v20108_v24  ;;  %20110 = vst [vmem:[#allocation106_spill] sm:$0xff] %v18288_v48  ;;  %8518 = vrot.lane.b32.xlu1 %v8346_v52, %s13931_s21  ;;  %v18291_v6 = vld [vmem:[#allocation2 + $0x68] sm:$0xf]  ;;  %7987 = vst.msk [vmem:[#allocation2 + $0x90] sm:$0xf] %vm199_vm2, %v11409_v0  ;;  %v11413_v37 = vpack.c.bf16 %v7755_v46, %v7755_v46  ;;  %v20111_v1 = vld [vmem:[#allocation141_spill] sm:$0xff] }
 0x71e   : > { %v7758_v33 = vadd.f32 %v7711_v18, %v20111_v1  ;;  %v20112_v49 = vld [vmem:[#allocation144_spill] sm:$0xff]  ;;  %8622 = vrot.lane.b32.xlu0 %v18227_v16, %s13930_s13  ;;  %v18305_v52 = vcombine.low %v18267_v47, %v18291_v6  ;;  %7988 = vst.msk [vmem:[#allocation2 + $0x94] sm:$0xf] %vm199_vm2, %v11410_v56  ;;  %v11415_v39 = vpack.c.bf16 %v7757_v25, %v7757_v25  ;;  %v20113_v18 = vld [vmem:[#allocation146_spill] sm:$0xff]  ;;  %7990 = vst.msk [vmem:[#allocation2 + $0x9c] sm:$0xf] %vm199_vm2, %v11412_v5 }
 0x71f   : > { %v7759_v34 = vadd.f32 %v7712_v15, %v20112_v49  ;;  %v18299_v28 = vld [vmem:[#allocation2 + $0x6c] sm:$0xf]  ;;  %v18301_v40 = vld [vmem:[#allocation2 + $0x70] sm:$0xf]  ;;  %7989 = vst.msk [vmem:[#allocation2 + $0x98] sm:$0xf] %vm199_vm2, %v11411_v3  ;;  %v11414_v23 = vpack.c.bf16 %v7756_v9, %v7756_v9  ;;  %v7760_v57 = vadd.f32 %v7713_v50, %v20113_v18  ;;  %v8337_v15 = vsel %vm509_vm1, %v18159_v29, %v18201_v38 }
 0x720   : > { %v13516_v16 = vld [vmem:[%s19303_s1 + $0x440] sm:$0xff]   ;;  %v18318_v44 = vcombine.low %v18299_v28, %v18301_v40  ;;  %7991 = vst.msk [vmem:[#allocation2 + $0xa0] sm:$0xf] %vm199_vm2, %v11413_v37  ;;  %v11416_v0 = vpack.c.bf16 %v7758_v33, %v7758_v33  ;;  %v8366_v50 = vshrl.u32 %v18305_v52, 16  ;;  %v8369_v30 = vshll.u32 %v18305_v52, 16  ;;  %v20115_v14 = vld [vmem:[#allocation145_spill] sm:$0xff]  ;;  %12330 = vmatprep.subr.bf16.mxu1 %v13514_v17  ;;  %12390 = vmatprep.subr.bf16.mxu0 %v18288_v48 }
 0x721   : > { %v11417_v51 = vpack.c.bf16 %v7759_v34, %v7759_v34  ;;  %7992 = vst.msk [vmem:[#allocation2 + $0xa4] sm:$0xf] %vm199_vm2, %v11414_v23  ;;  %7993 = vst.msk [vmem:[#allocation2 + $0xa8] sm:$0xf] %vm199_vm2, %v11415_v39  ;;  %v20114_v29 = vld [vmem:[#allocation143_spill] sm:$0xff]  ;;  %v7762_v46 = vadd.f32 %v7715_v8, %v20115_v14  ;;  %v18333_v56 = vld [vmem:[%s19303_s1 + $0x410] sm:$0xff]   ;;  %8628 = vrot.lane.b32.xlu1 %v18237_v60, %s13930_s13  ;;  %12331 = vmatpush3.bf16.msra.mxu1 %v13514_v17 }
 0x722   : > { %v7761_v38 = vadd.f32 %v7714_v2, %v20114_v29  ;;  %20116 = vst [vmem:[#allocation109_spill] sm:$0xff] %v18333_v56  ;;  %v19532_v3 = vrot.slane %v18182_v63, 5  ;;  %v8375_v24 = vshrl.u32 %v18318_v44, 16  ;;  %v8378_v9 = vshll.u32 %v18318_v44, 16  ;;  %v18340_v2 = vld [vmem:[#allocation2 + $0x74] sm:$0xf]  ;;  %8516 = vrot.lane.b32.xlu0 %v8337_v15, %s13931_s21  ;;  %12332 = vmatprep.subr.bf16.mxu1 %v13516_v16 }
 0x723   : > { %20117 = vst [vmem:[#allocation111_spill] sm:$0xff] %v18340_v2  ;;  %7994 = vst.msk [vmem:[#allocation2 + $0xac] sm:$0xf] %vm199_vm2, %v11416_v0  ;;  %v13518_v8 = vld [vmem:[%s19303_s1 + $0x448] sm:$0xff]   ;;  %v8364_v60 = vsel %vm509_vm1, %v18247_v58, %v18255_v42  ;;  %v8368_v7 = vrot.slane %v8366_v50, 4  ;;  %v8371_v25 = vrot.slane %v8369_v30, 5  ;;  %v11418_v1 = vpack.c.bf16 %v7760_v57, %v7760_v57  ;;  %12391 = vmatpush3.bf16.msra.mxu0 %v18288_v48 }
 0x724   : > { %7995 = vst.msk [vmem:[#allocation2 + $0xb0] sm:$0xf] %vm199_vm2, %v11417_v51  ;;  %v18351_v5 = vld [vmem:[#allocation2 + $0x78] sm:$0xf]  ;;  %v18353_v37 = vld [vmem:[#allocation2 + $0x7c] sm:$0xf]  ;;  %v11419_v57 = vpack.c.bf16 %v7761_v38, %v7761_v38  ;;  %v11420_v11 = vpack.c.bf16 %v7762_v46, %v7762_v46  ;;  %12392 = vmatprep.subr.bf16.mxu0 %v18333_v56 }
 0x725   : > { %v20118_v17 = vrot.slane %v18114_v27, 5  ;;  %v8377_v49 = vrot.slane %v8375_v24, 4  ;;  %v8380_v34 = vrot.slane %v8378_v9, 5  ;;  %v18360_v23 = vld [vmem:[#allocation2 + $0x80] sm:$0xf]  ;;  %v18364_v39 = vcombine.low %v18340_v2, %v18351_v5  ;;  %v18376_v27 = vld [vmem:[%s19303_s1 + $0x418] sm:$0xff]   ;;  %8522 = vrot.lane.b32.xlu1 %v8364_v60, %s13931_s21  ;;  %12333 = vmatpush3.bf16.msra.mxu1 %v13516_v16 }
 0x726   : > { %v18369_v18 = vcombine.low %v18353_v37, %v18360_v23  ;;  %7996 = vst.msk [vmem:[#allocation2 + $0xb4] sm:$0xf] %vm199_vm2, %v11418_v1  ;;  %20119 = vst [vmem:[#allocation108_spill] sm:$0xff] %v18376_v27  ;;  %v8372_v50 = vor.u32 %v8371_v25, %v8368_v7  ;;  %v18391_v14 = vld [vmem:[#allocation2 + $0x84] sm:$0xf]  ;;  %12334 = vmatprep.subr.bf16.mxu1 %v13518_v8  ;;  %v8355_v16 = vsel %vm509_vm1, %v18203_v31, %v18247_v58  ;;  %v18410_v7 = vld [vmem:[%s19303_s1 + $0x450] sm:$0xff]  }
 0x727   : > { %v8573_v33 = vsel %vm809_vm0, %v20118_v17, %v8572_v21  ;;  %v20120_v21 = vrot.slane %v18172_v26, 5  ;;  %v8384_v0 = vshrl.u32 %v18364_v39, 16  ;;  %v8387_v51 = vshll.u32 %v18364_v39, 16  ;;  %20121 = vst [vmem:[#allocation110_spill] sm:$0xff] %v18391_v14  ;;  %v18393_v46 = vld [vmem:[#allocation2 + $0x88] sm:$0xf]  ;;  %12393 = vmatpush3.bf16.msra.mxu0 %v18333_v56 }
 0x728   : > { %8626 = vrot.lane.b32.xlu0 %v8573_v33, %s13930_s13  ;;  %v18387_v30 = vor.u32 %v8380_v34, %v8377_v49  ;;  %v8393_v29 = vshrl.u32 %v18369_v18, 16  ;;  %v8396_v38 = vshll.u32 %v18369_v18, 16  ;;  %7997 = vst.msk [vmem:[#allocation2 + $0xb8] sm:$0xf] %vm199_vm2, %v11419_v57  ;;  %7998 = vst.msk [vmem:[#allocation2 + $0xbc] sm:$0xf] %vm199_vm2, %v11420_v11  ;;  %12394 = vmatprep.subr.bf16.mxu0 %v18376_v27 }
 0x729   : > { %v8579_v15 = vsel %vm809_vm0, %v20120_v21, %v19532_v3  ;;  %v18400_v24 = vld [vmem:[#allocation2 + $0x8c] sm:$0xf]  ;;  %v18402_v9 = vld [vmem:[#allocation2 + $0x90] sm:$0xf]  ;;  %v8580_v60 = vrot.slane %v18305_v52, 5  ;;  %20123 = vst [vmem:[#allocation115_spill] sm:$0xff] %v18410_v7  ;;  %v18416_v1 = vcombine.low %v18391_v14, %v18393_v46  ;;  %12335 = vmatpush3.bf16.msra.mxu1 %v13518_v8  ;;  %v20124_v34 = vmov %v20120_v21 }
 0x72a   : > { %20122 = vst [vmem:[#allocation113_spill] sm:$0xff] %v18402_v9  ;;  %8632 = vrot.lane.b32.xlu1 %v8579_v15, %s13930_s13  ;;  %v19531_v25 = vrot.slane %v18318_v44, 5  ;;  %v8386_v31 = vrot.slane %v8384_v0, 4  ;;  %v8389_v58 = vrot.slane %v8387_v51, 5  ;;  %v8382_v52 = vsel %vm509_vm1, %v8372_v50, %v18387_v30  ;;  %12780 = vmatprep.subr.bf16.mxu1 %v18178_v20  ;;  %v18432_v8 = vld [vmem:[#allocation2 + $0x94] sm:$0xf] }
 0x72b   : > { %v8395_v17 = vrot.slane %v8393_v29, 4  ;;  %v8398_v33 = vrot.slane %v8396_v38, 5  ;;  %v18423_v49 = vcombine.low %v18400_v24, %v18402_v9  ;;  %v20125_v57 = vrot.slane %v18147_v61, 5  ;;  %12395 = vmatpush3.bf16.msra.mxu0 %v18376_v27  ;;  %20126 = vst [vmem:[#allocation112_spill] sm:$0xff] %v18432_v8  ;;  %v18440_v26 = vld [vmem:[#allocation2 + $0x98] sm:$0xf] }
 0x72c   : > { %8520 = vrot.lane.b32.xlu0 %v8355_v16, %s13931_s21  ;;  %12444 = vmatprep.subr.bf16.mxu0 %v18410_v7  ;;  %v8583_v21 = vsel %vm809_vm0, %v8580_v60, %v19531_v25  ;;  %v8390_v15 = vor.u32 %v8389_v58, %v8386_v31  ;;  %v8402_v0 = vshrl.u32 %v18416_v1, 16  ;;  %20127 = vst [vmem:[#allocation114_spill] sm:$0xff] %v18440_v26  ;;  %v18442_v61 = vld [vmem:[#allocation2 + $0x9c] sm:$0xf]  ;;  %v8405_v38 = vshll.u32 %v18416_v1, 16  ;;  %v20134_v9 = vld [vmem:[#allocation147_spill] sm:$0xff] }
 0x72d   : > { %v8577_v11 = vsel %vm809_vm0, %v20125_v57, %v20124_v34  ;;  %v7716_v51 = vld [vmem:[#allocation3 + $0x160] sm:$0xff]  ;;  %v18445_v29 = vor.u32 %v8398_v33, %v8395_v17  ;;  %v8411_v16 = vshrl.u32 %v18423_v49, 16  ;;  %v8373_v31 = vsel %vm509_vm1, %v18255_v42, %v8372_v50  ;;  %v20129_v57 = vld [vmem:[#allocation148_spill] sm:$0xff] }
 0x72e   : > { %8526 = vrot.lane.b32.xlu1 %v8382_v52, %s13931_s21  ;;  %v8414_v52 = vshll.u32 %v18423_v49, 16  ;;  %v18450_v34 = vld [vmem:[#allocation2 + $0xa0] sm:$0xf]  ;;  %v18456_v58 = vcombine.low %v18432_v8, %v18440_v26  ;;  %v7763_v25 = vadd.f32 %v7716_v51, %v20129_v57  ;;  %v8584_v17 = vrot.slane %v18364_v39, 5  ;;  %v7717_v51 = vld [vmem:[#allocation3 + $0x168] sm:$0xff]  ;;  %v7718_v33 = vld [vmem:[#allocation3 + $0x170] sm:$0xff] }
 0x72f   : > { %20128 = vst [vmem:[#allocation117_spill] sm:$0xff] %v18450_v34  ;;  %v18464_v3 = vcombine.low %v18442_v61, %v18450_v34  ;;  %v8400_v42 = vsel %vm509_vm1, %v8390_v15, %v18445_v29  ;;  %v8407_v50 = vrot.slane %v8405_v38, 5  ;;  %v8413_v27 = vrot.slane %v8411_v16, 4  ;;  %v18472_v57 = vld [vmem:[#allocation2 + $0xa4] sm:$0xf] }
 0x730   : > { %8630 = vrot.lane.b32.xlu0 %v8577_v11, %s13930_s13  ;;  %v8404_v11 = vrot.slane %v8402_v0, 4  ;;  %v8416_v56 = vrot.slane %v8414_v52, 5  ;;  %20131 = vst [vmem:[#allocation119_spill] sm:$0xff] %v18472_v57  ;;  %v18474_v0 = vld [vmem:[#allocation2 + $0xa8] sm:$0xf]  ;;  %v8420_v48 = vshrl.u32 %v18456_v58, 16 }
 0x731   : > { %v18478_v53 = vld [vmem:[#allocation2 + $0xac] sm:$0xf]  ;;  %v18480_v7 = vld [vmem:[#allocation2 + $0xb0] sm:$0xf]  ;;  %v8429_v38 = vshrl.u32 %v18464_v3, 16  ;;  %v20132_v16 = vrot.slane %v18369_v18, 5 }
 0x732   : > { %8636 = vrot.lane.b32.xlu1 %v8583_v21, %s13930_s13  ;;  %v20130_v21 = vrot.slane %v18182_v63, 5  ;;  %v8432_v63 = vshll.u32 %v18464_v3, 16  ;;  %v8408_v4 = vor.u32 %v8407_v50, %v8404_v11  ;;  %v18491_v20 = vor.u32 %v8416_v56, %v8413_v27 }
 0x733   : > { %v8587_v52 = vsel %vm809_vm0, %v8584_v17, %v20132_v16  ;;  %v18499_v34 = vcombine.low %v18478_v53, %v18480_v7  ;;  %v7765_v16 = vadd.f32 %v7718_v33, %v20134_v9  ;;  %v8422_v8 = vrot.slane %v8420_v48, 4 }
 0x734   : > { %8524 = vrot.lane.b32.xlu0 %v8373_v31, %s13931_s21  ;;  %v8581_v39 = vsel %vm809_vm0, %v20130_v21, %v8580_v60  ;;  %v8423_v31 = vshll.u32 %v18456_v58, 16  ;;  %v11421_v60 = vpack.c.bf16 %v7763_v25, %v7763_v25  ;;  %v8391_v21 = vsel %vm509_vm1, %v18387_v30, %v8390_v15  ;;  %v20133_v25 = vld [vmem:[#allocation149_spill] sm:$0xff] }
 0x735   : > { %v8431_v56 = vrot.slane %v8429_v38, 4  ;;  %v8434_v27 = vrot.slane %v8432_v63, 5  ;;  %v11423_v15 = vpack.c.bf16 %v7765_v16, %v7765_v16  ;;  %v8418_v11 = vsel %vm509_vm1, %v8408_v4, %v18491_v20 }
 0x736   : > { %8530 = vrot.lane.b32.xlu1 %v8400_v42, %s13931_s21  ;;  %v18495_v42 = vcombine.low %v18472_v57, %v18474_v0  ;;  %7999 = vst.msk [vmem:[#allocation2 + $0xc0] sm:$0xf] %vm199_vm2, %v11421_v60  ;;  %v8425_v26 = vrot.slane %v8423_v31, 5  ;;  %v8588_v50 = vrot.slane %v18416_v1, 5  ;;  %v19553_v60 = vrot.slane %v18423_v49, 5 }
 0x737   : > { %v8447_v31 = vshrl.u32 %v18499_v34, 16  ;;  %8001 = vst.msk [vmem:[#allocation2 + $0xc8] sm:$0xf] %vm199_vm2, %v11423_v15  ;;  %v8450_v38 = vshll.u32 %v18499_v34, 16  ;;  %v18520_v63 = vor.u32 %v8434_v27, %v8431_v56  ;;  %v19552_v16 = vrot.slane %v18464_v3, 5 }
 0x738   : > { %8634 = vrot.lane.b32.xlu0 %v8581_v39, %s13930_s13  ;;  %v7764_v39 = vadd.f32 %v7717_v51, %v20133_v25  ;;  %v20135_v51 = vrot.slane %v18318_v44, 5  ;;  %v8438_v9 = vshrl.u32 %v18495_v42, 16  ;;  %v8441_v33 = vshll.u32 %v18495_v42, 16  ;;  %v18522_v44 = vld [vmem:[#allocation2 + $0xb4] sm:$0xf] }
 0x739   : > { %v8426_v1 = vor.u32 %v8425_v26, %v8422_v8  ;;  %v8592_v25 = vrot.slane %v18456_v58, 5  ;;  %v8452_v15 = vrot.slane %v8450_v38, 5  ;;  %v20139_v38 = vld [vmem:[#allocation114_spill] sm:$0xff]  ;;  %v8596_v2 = vrot.slane %v18495_v42, 5 }
 0x73a   : > { %8640 = vrot.lane.b32.xlu1 %v8587_v52, %s13930_s13  ;;  %v11422_v30 = vpack.c.bf16 %v7764_v39, %v7764_v39  ;;  %v8585_v48 = vsel %vm809_vm0, %v20135_v51, %v8584_v17  ;;  %v18524_v17 = vld [vmem:[#allocation2 + $0xb8] sm:$0xf]  ;;  %v8591_v52 = vsel %vm809_vm0, %v8588_v50, %v19553_v60  ;;  %v18533_v39 = vld [vmem:[#allocation2 + $0xbc] sm:$0xf]  ;;  %v8440_v56 = vrot.slane %v8438_v9, 4 }
 0x73b   : > { %20136 = vst [vmem:[#allocation116_spill] sm:$0xff] %v18533_v39  ;;  %v8443_v27 = vrot.slane %v8441_v33, 5  ;;  %v8436_v58 = vsel %vm509_vm1, %v8426_v1, %v18520_v63  ;;  %v18551_v51 = vcombine.low %v18522_v44, %v18524_v17  ;;  %v20141_v9 = vld [vmem:[#allocation113_spill] sm:$0xff] }
 0x73c   : > { %8528 = vrot.lane.b32.xlu0 %v8391_v21, %s13931_s21  ;;  %8000 = vst.msk [vmem:[#allocation2 + $0xc4] sm:$0xf] %vm199_vm2, %v11422_v30  ;;  %v8409_v21 = vsel %vm509_vm1, %v18445_v29, %v8408_v4  ;;  %v8449_v30 = vrot.slane %v8447_v31, 4 }
 0x73d   : > { %v18535_v8 = vld [vmem:[#allocation2 + $0xc0] sm:$0xf]  ;;  %v8444_v4 = vor.u32 %v8443_v27, %v8440_v56  ;;  %v18586_v27 = vld [vmem:[#allocation2 + $0xcc] sm:$0xf] }
 0x73e   : > { %8534 = vrot.lane.b32.xlu1 %v8418_v11, %s13931_s21  ;;  %v18572_v11 = vor.u32 %v8452_v15, %v8449_v30  ;;  %v18588_v30 = vld [vmem:[#allocation2 + $0xd0] sm:$0xf]  ;;  %v18602_v60 = vld [vmem:[#allocation2 + $0xc8] sm:$0xf]  ;;  %v8598_v15 = vrot.slane %v18499_v34, 5 }
 0x73f   : > { %20138 = vst [vmem:[#allocation118_spill] sm:$0xff] %v18588_v30 }
 0x740   : > { %8638 = vrot.lane.b32.xlu0 %v8585_v48, %s13930_s13  ;;  %v18555_v48 = vcombine.low %v18533_v39, %v18535_v8  ;;  %v8454_v26 = vsel %vm509_vm1, %v8444_v4, %v18572_v11  ;;  %v8599_v14 = vsel %vm809_vm0, %v8596_v2, %v8598_v15 }
 0x742   : > { %8644 = vrot.lane.b32.xlu1 %v8591_v52, %s13930_s13  ;;  %v20137_v52 = vrot.slane %v18369_v18, 5  ;;  %v8456_v18 = vshrl.u32 %v18551_v51, 16  ;;  %v8468_v56 = vshll.u32 %v18555_v48, 16 }
 0x744   : > { %8532 = vrot.lane.b32.xlu0 %v8409_v21, %s13931_s21  ;;  %v8589_v29 = vsel %vm809_vm0, %v20137_v52, %v8588_v50  ;;  %v8595_v21 = vsel %vm809_vm0, %v8592_v25, %v19552_v16  ;;  %v8459_v50 = vshll.u32 %v18551_v51, 16  ;;  %v8465_v52 = vshrl.u32 %v18555_v48, 16 }
 0x745   : > { %v8427_v16 = vsel %vm509_vm1, %v18491_v20, %v8426_v1  ;;  %v8458_v20 = vrot.slane %v8456_v18, 4  ;;  %v11187_v1 = vcombine.low %v18586_v27, %v18588_v30 }
 0x746   : > { %8538 = vrot.lane.b32.xlu1 %v8436_v58, %s13931_s21  ;;  %v8461_v34 = vrot.slane %v8459_v50, 5  ;;  %v8467_v33 = vrot.slane %v8465_v52, 4  ;;  %v8470_v58 = vrot.slane %v8468_v56, 5 }
 0x747   : > { %v8483_v42 = vshrl.u32 %v11187_v1, 16  ;;  %v8486_v39 = vshll.u32 %v11187_v1, 16 }
 0x748   : > { %8642 = vrot.lane.b32.xlu0 %v8589_v29, %s13930_s13  ;;  %v18600_v29 = vld [vmem:[#allocation2 + $0xc4] sm:$0xf]  ;;  %v8471_v50 = vor.u32 %v8470_v58, %v8467_v33  ;;  %v8602_v33 = vrot.slane %v18555_v48, 5 }
 0x749   : > { %20142 = vst [vmem:[#allocation121_spill] sm:$0xff] %v18600_v29  ;;  %v11186_v31 = vcombine.low %v18600_v29, %v18602_v60  ;;  %v8488_v18 = vrot.slane %v8486_v39, 5 }
 0x74a   : > { %8648 = vrot.lane.b32.xlu1 %v8595_v21, %s13930_s13  ;;  %v20144_v21 = vrot.slane %v18423_v49, 5  ;;  %v8445_v49 = vsel %vm509_vm1, %v18520_v63, %v8444_v4 }
 0x74b   : > { %v8474_v52 = vshrl.u32 %v11186_v31, 16  ;;  %v8477_v56 = vshll.u32 %v11186_v31, 16 }
 0x74c   : > { %8536 = vrot.lane.b32.xlu0 %v8427_v16, %s13931_s21  ;;  %v8593_v57 = vsel %vm809_vm0, %v20144_v21, %v8592_v25  ;;  %v8462_v16 = vor.u32 %v8461_v34, %v8458_v20  ;;  %v8600_v25 = vrot.slane %v18551_v51, 5  ;;  %v8485_v21 = vrot.slane %v8483_v42, 4 }
 0x74d   : > { %v8476_v58 = vrot.slane %v8474_v52, 4  ;;  %v8479_v20 = vrot.slane %v8477_v56, 5  ;;  %v20145_v34 = vrot.slane %v18464_v3, 5  ;;  %v8604_v56 = vrot.slane %v11186_v31, 5 }
 0x74e   : > { %8542 = vrot.lane.b32.xlu1 %v8454_v26, %s13931_s21  ;;  %v8603_v4 = vsel %vm809_vm0, %v8600_v25, %v8602_v33  ;;  %v8489_v42 = vor.u32 %v8488_v18, %v8485_v21  ;;  %v8463_v48 = vsel %vm509_vm1, %v18572_v11, %v8462_v16 }
 0x74f   : > { %v8597_v63 = vsel %vm809_vm0, %v20145_v34, %v8596_v2  ;;  %v8480_v51 = vor.u32 %v8479_v20, %v8476_v58  ;;  %v8095_v2 = vld [vmem:[#allocation2 + $0xd8] sm:$0x1]  ;;  %v8601_v58 = vsel %vm809_vm0, %v8598_v15, %v8600_v25  ;;  %v8605_v25 = vsel %vm809_vm0, %v8602_v33, %v8604_v56 }
 0x750   : > { %8646 = vrot.lane.b32.xlu0 %v8593_v57, %s13930_s13  ;;  %v8472_v57 = vsel %vm509_vm1, %v8462_v16, %v8471_v50 }
 0x751   : > { %v8490_v52 = vsel %vm509_vm1, %v8480_v51, %v8489_v42  ;;  %v8481_v34 = vsel %vm509_vm1, %v8471_v50, %v8480_v51  ;;  %v8041_v51 = vld [vmem:[#allocation2] sm:$0x8] }
 0x752   : > { %8652 = vrot.lane.b32.xlu1 %v8599_v14, %s13930_s13  ;;  %v18640_v14 = vld [vmem:[#allocation2 + $0xd4] sm:$0xf] }
 0x753   : > { %20146 = vst [vmem:[#allocation123_spill] sm:$0xff] %v18640_v14  ;;  %v11188_v3 = vcombine.low %v18640_v14, %v18640_v14 }
 0x754   : > { %8540 = vrot.lane.b32.xlu0 %v8445_v49, %s13931_s21  ;;  %v8606_v49 = vrot.slane %v11187_v1, 5 }
 0x755   : > { %v8492_v18 = vshrl.u32 %v11188_v3, 16  ;;  %v8495_v21 = vshll.u32 %v11188_v3, 16 }
 0x756   : > { %8546 = vrot.lane.b32.xlu1 %v8472_v57, %s13931_s21  ;;  %v11189_v57 = vcombine.low %v18640_v14, %v8095_v2  ;;  %v8607_v16 = vsel %vm809_vm0, %v8604_v56, %v8606_v49  ;;  %v13528_v2 = vld [vmem:[#allocation2 + $0x4] sm:$0xf] }
 0x757   : > { %v8494_v31 = vrot.slane %v8492_v18, 4  ;;  %v8497_v1 = vrot.slane %v8495_v21, 5 }
 0x758   : > { %8650 = vrot.lane.b32.xlu0 %v8597_v63, %s13930_s13  ;;  %v8608_v20 = vrot.slane %v11189_v57, 5  ;;  %v13529_v57 = vld [vmem:[#allocation2 + $0x10] sm:$0xf] }
 0x759   : > { %v8498_v63 = vor.u32 %v8497_v1, %v8494_v31 }
 0x75a   : > { %8656 = vrot.lane.b32.xlu1 %v8603_v4, %s13930_s13  ;;  %v8609_v15 = vsel %vm809_vm0, %v8606_v49, %v8608_v20  ;;  %v13532_v20 = vld [vmem:[#allocation2 + $0x1c] sm:$0xf] }
 0x75b   : > { %v8499_v4 = vsel %vm509_vm1, %v8489_v42, %v8498_v63 }
 0x75c   : > { %8544 = vrot.lane.b32.xlu0 %v8463_v48, %s13931_s21 }
 0x75e   : > { %8550 = vrot.lane.b32.xlu1 %v8490_v52, %s13931_s21  ;;  %v11135_v52 = vcombine.low %v8041_v51, %v13528_v2  ;;  %v13533_v51 = vld [vmem:[#allocation2 + $0x8] sm:$0xf]  ;;  %v13534_v2 = vld [vmem:[#allocation2 + $0xc] sm:$0xf] }
 0x760   : > { %8654 = vrot.lane.b32.xlu0 %v8601_v58, %s13930_s13  ;;  %v13530_v58 = vld [vmem:[#allocation2 + $0x14] sm:$0xf] }
 0x761   : > { %v11137_v49 = vcombine.low %v13529_v57, %v13530_v58  ;;  %v11136_v57 = vcombine.low %v13533_v51, %v13534_v2  ;;  %v13536_v2 = vld [vmem:[#allocation2 + $0x24] sm:$0xf] }
 0x762   : > { %8660 = vrot.lane.b32.xlu1 %v8607_v16, %s13930_s13  ;;  %v13531_v16 = vld [vmem:[#allocation2 + $0x18] sm:$0xf] }
 0x763   : > { %v11138_v42 = vcombine.low %v13531_v16, %v13532_v20 }
 0x764   : > { %8548 = vrot.lane.b32.xlu0 %v8481_v34, %s13931_s21 }
 0x766   : > { %8662 = vrot.lane.b32.xlu1 %v8609_v15, %s13930_s13 }
 0x767   : > { %v8611_v48 = vpop.permute.xlu0 %8610 }
 0x768   : > { %8658 = vrot.lane.b32.xlu0 %v8605_v25, %s13930_s13 }
 0x76b   : > { %v8501_v50 = vpop.permute.xlu1 %8500 }
 0x76c   : > { %8552 = vrot.lane.b32.xlu0 %v8499_v4, %s13931_s21  ;;  %v8666_v56 = vsel %vm917_vm3, %v11135_v52, %v8501_v50 }
 0x76d   : > { %v8746_v1 = vsel %vm999_vm4, %v8666_v56, %v8611_v48  ;;  %v20147_v48 = vcombine.low %v18061_v55, %v18063_v32 }
 0x76e   : > { %v9302_v52 = vshrl.u32 %v8746_v1, 16  ;;  %v9305_v58 = vshll.u32 %v8746_v1, 16 }
 0x773   : > { %v8615_v3 = vpop.permute.xlu1 %8614 }
 0x777   : > { %v8617_v18 = vpop.permute.xlu1 %8616 }
 0x778   : > { %v8505_v33 = vpop.permute.xlu0 %8504 }
 0x779   : > { %v8672_v21 = vsel %vm917_vm3, %v11137_v49, %v8505_v33 }
 0x77a   : > { %v8750_v34 = vsel %vm999_vm4, %v8672_v21, %v8615_v3 }
 0x77b   : > { %v8613_v31 = vpop.permute.xlu1 %8612  ;;  %v8802_v15 = vshrl.u32 %v8750_v34, 16  ;;  %v8805_v25 = vshll.u32 %v8750_v34, 16 }
 0x77c   : > { %v8507_v63 = vpop.permute.xlu0 %8506 }
 0x77d   : > { %v8675_v4 = vsel %vm917_vm3, %v11138_v42, %v8507_v63  ;;  %v9315_v20 = vrot.slane %v8802_v15, 3  ;;  %v9316_v3 = vrot.slane %v8805_v25, 4  ;;  %v8804_v34 = vrot.slane %v8802_v15, 7 }
 0x77e   : > { %v8752_v50 = vsel %vm999_vm4, %v8675_v4, %v8617_v18  ;;  %v13535_v4 = vld [vmem:[#allocation2 + $0x20] sm:$0xf] }
 0x77f   : > { %v8809_v49 = vshrl.u32 %v8752_v50, 16  ;;  %v8812_v33 = vshll.u32 %v8752_v50, 16  ;;  %v8511_v16 = vpop.permute.xlu1 %8510  ;;  %v11139_v50 = vcombine.low %v13535_v4, %v13536_v2 }
 0x780   : > { %v8681_v56 = vsel %vm917_vm3, %v20147_v48, %v8511_v16  ;;  %v8503_v21 = vpop.permute.xlu0 %8502  ;;  %v9304_v16 = vrot.slane %v9302_v52, 3  ;;  %v9307_v48 = vrot.slane %v9305_v58, 4 }
 0x781   : > { %v18680_v42 = vrot.slane %v8809_v49, 7  ;;  %v9319_v63 = vrot.slane %v8809_v49, 3  ;;  %v9320_v51 = vrot.slane %v8812_v33, 4  ;;  %v8669_v18 = vsel %vm917_vm3, %v11136_v57, %v8503_v21 }
 0x782   : > { %v8748_v1 = vsel %vm999_vm4, %v8669_v18, %v8613_v31  ;;  %v9317_v49 = vor.u32 %v9316_v3, %v9315_v20  ;;  %v8807_v21 = vor.u32 %v8805_v25, %v8804_v34  ;;  %v20148_v25 = vcombine.low %v18085_v12, %v18088_v22  ;;  %v20149_v22 = vld [vmem:[#allocation105_spill] sm:$0xff] }
 0x783   : > { %v8799_v11 = vshrl.u32 %v8748_v1, 16  ;;  %v9310_v39 = vshll.u32 %v8748_v1, 16  ;;  %v8621_v26 = vpop.permute.xlu1 %8620  ;;  %v8814_v55 = vor.u32 %v8812_v33, %v18680_v42  ;;  %v9321_v32 = vor.u32 %v9320_v51, %v9319_v63 }
 0x784   : > { %v8756_v15 = vsel %vm999_vm4, %v8681_v56, %v8621_v26  ;;  %v8509_v14 = vpop.permute.xlu0 %8508  ;;  %v9308_v56 = vor.u32 %v9307_v48, %v9304_v16 }
 0x785   : > { %v9312_v30 = vrot.slane %v9310_v39, 4  ;;  %v8823_v29 = vshrl.u32 %v8756_v15, 16  ;;  %v8826_v57 = vshll.u32 %v8756_v15, 16  ;;  %v8801_v31 = vrot.slane %v8799_v11, 7 }
 0x786   : > { %v8815_v18 = vsel %vm1054_vm5, %v8804_v34, %v8814_v55  ;;  %v9309_v4 = vrot.slane %v8799_v11, 3  ;;  %v9322_v1 = vsel %vm1559_vm7, %v9317_v49, %v9321_v32  ;;  %v8678_v52 = vsel %vm917_vm3, %v11139_v50, %v8509_v14 }
 0x787   : > { %v18688_v2 = vrot.slane %v8823_v29, 7  ;;  %v8515_v33 = vpop.permute.xlu1 %8514  ;;  %v8808_v26 = vsel %vm1054_vm5, %v8801_v31, %v8807_v21  ;;  %v9327_v39 = vrot.slane %v8823_v29, 3  ;;  %v9328_v3 = vrot.slane %v8826_v57, 4 }
 0x788   : > { %v8619_v58 = vpop.permute.xlu0 %8618  ;;  %v9313_v20 = vor.u32 %v9312_v30, %v9309_v4  ;;  %v8687_v34 = vsel %vm917_vm3, %v20148_v25, %v8515_v33  ;;  %12336 = vmatprep.mubr.msk.bf16.mxu1 %vm1262_vm6, %v8808_v26  ;;  %v13521_v30 = vld [vmem:[%s19303_s1 + $0x458] sm:$0xff]   ;;  %v13522_v26 = vld [vmem:[%s19303_s1 + $0x460] sm:$0xff]  }
 0x789   : > { %v8754_v11 = vsel %vm999_vm4, %v8678_v52, %v8619_v58  ;;  %12337 = vmatmul.mubr.msk.bf16.vlgmr.msra.gmra.mrb[0].mxu1 %vm1262_vm6, %v8815_v18  ;;  %v8828_v12 = vor.u32 %v8826_v57, %v18688_v2  ;;  %v20151_v18 = vld [vmem:[#allocation115_spill] sm:$0xff]  ;;  %v9329_v57 = vor.u32 %v9328_v3, %v9327_v39  ;;  %v20152_v39 = vcombine.low %v18068_v10, %v18083_v19 }
 0x78a   : > { %v8816_v63 = vshrl.u32 %v8754_v11, 16  ;;  %v8819_v51 = vshll.u32 %v8754_v11, 16  ;;  %v9314_v14 = vsel %vm1559_vm7, %v9308_v56, %v9313_v20  ;;  %v9318_v50 = vsel %vm1559_vm7, %v9313_v20, %v9317_v49  ;;  %12786 = vmatpush3.bf16.msra.mxu1 %v20149_v22  ;;  %v20150_v49 = vld [vmem:[#allocation107_spill] sm:$0xff] }
 0x78b   : > { %12396 = vmatprep.mubr.msk.bf16.mxu0 %vm1262_vm6, %v9314_v14  ;;  %v8625_v29 = vpop.permute.xlu1 %8624  ;;  %12781 = vmatprep.subr.bf16.mxu1 %v20150_v49  ;;  %v20154_v14 = vcombine.low %v18100_v41, %v18119_v54  ;;  %v13523_v22 = vld [vmem:[%s19303_s1 + $0x468] sm:$0xff]  }
 0x78c   : > { %v8818_v55 = vrot.slane %v8816_v63, 7  ;;  %v9323_v16 = vrot.slane %v8816_v63, 3  ;;  %v9324_v48 = vrot.slane %v8819_v51, 4  ;;  %12397 = vmatmul.mubr.msk.bf16.vlgmr.msra.gmra.mrb[0].mxu0 %vm1262_vm6, %v9318_v50  ;;  %v8760_v15 = vsel %vm999_vm4, %v8687_v34, %v8625_v29  ;;  %v8513_v21 = vpop.permute.xlu0 %8512 }
 0x78d   : > { %v8837_v31 = vshrl.u32 %v8760_v15, 16  ;;  %12400 = vmatprep.mubr.msk.bf16.mxu0 %vm1262_vm6, %v9322_v1  ;;  %12445 = vmatpush3.bf16.msra.mxu0 %v20151_v18  ;;  %v8840_v33 = vshll.u32 %v8760_v15, 16  ;;  %v13537_v1 = vld [vmem:[%s19303_s1 + $0x3f8] sm:$0xff]   ;;  %v8684_v3 = vsel %vm917_vm3, %v20152_v39, %v8513_v21 }
 0x78e   : > { %v8821_v4 = vor.u32 %v8819_v51, %v8818_v55  ;;  %v8829_v52 = vsel %vm1054_vm5, %v8818_v55, %v8828_v12  ;;  %v9325_v58 = vor.u32 %v9324_v48, %v9323_v16  ;;  %12446 = vmatprep.subr.bf16.mxu0 %v13521_v30  ;;  %12787 = vmatpush3.bf16.msra.mxu1 %v13537_v1  ;;  %v20153_v51 = vld [vmem:[#allocation32_spill] sm:$0xff]  ;;  %v20155_v15 = vld [vmem:[#allocation106_spill] sm:$0xff] }
 0x78f   : > { %v18716_v56 = vrot.slane %v8837_v31, 7  ;;  %v8519_v20 = vpop.permute.xlu1 %8518  ;;  %12782 = vmatprep.subr.bf16.mxu1 %v20153_v51  ;;  %v9335_v19 = vrot.slane %v8837_v31, 3  ;;  %v20156_v1 = vcombine.low %v18093_v43, %v18098_v13 }
 0x790   : > { %v8623_v25 = vpop.permute.xlu0 %8622  ;;  %v8822_v34 = vsel %vm1054_vm5, %v18680_v42, %v8821_v4  ;;  %v18728_v11 = vsel %vm1559_vm7, %v9321_v32, %v9325_v58  ;;  %v18731_v63 = vsel %vm1559_vm7, %v9325_v58, %v9329_v57  ;;  %v8693_v50 = vsel %vm917_vm3, %v20154_v14, %v8519_v20 }
 0x791   : > { %v8758_v10 = vsel %vm999_vm4, %v8684_v3, %v8623_v25  ;;  %12340 = vmatprep.mubr.msk.bf16.mxu1 %vm1262_vm6, %v8822_v34  ;;  %12447 = vmatpush3.bf16.msra.mxu0 %v13521_v30  ;;  %v9336_v42 = vrot.slane %v8840_v33, 4  ;;  %v8842_v41 = vor.u32 %v8840_v33, %v18716_v56 }
 0x792   : > { %v8830_v12 = vshrl.u32 %v8758_v10, 16  ;;  %v8833_v32 = vshll.u32 %v8758_v10, 16  ;;  %12341 = vmatmul.mubr.msk.bf16.gmra.mrb[4].mxu1 %vm1262_vm6, %v8829_v52  ;;  %12448 = vmatprep.subr.bf16.mxu0 %v13522_v26  ;;  %v13524_v52 = vld [vmem:[%s19303_s1 + $0x470] sm:$0xff]   ;;  %v20158_v10 = vcombine.low %v18140_v35, %v18142_v59 }
 0x793   : > { %v8629_v54 = vpop.permute.xlu1 %8628  ;;  %12788 = vmatpush3.bf16.msra.mxu1 %v20153_v51  ;;  %v9337_v33 = vor.u32 %v9336_v42, %v9335_v19  ;;  %v20157_v51 = vld [vmem:[#allocation109_spill] sm:$0xff] }
 0x794   : > { %v8832_v29 = vrot.slane %v8830_v12, 7  ;;  %v9331_v55 = vrot.slane %v8830_v12, 3  ;;  %v9332_v16 = vrot.slane %v8833_v32, 4  ;;  %12401 = vmatmul.mubr.msk.bf16.gmra.mrb[4].mxu0 %vm1262_vm6, %v18728_v11  ;;  %v8764_v30 = vsel %vm999_vm4, %v8693_v50, %v8629_v54  ;;  %v8517_v48 = vpop.permute.xlu0 %8516  ;;  %12783 = vmatprep.subr.bf16.mxu1 %v20155_v15  ;;  %v13525_v19 = vld [vmem:[%s19303_s1 + $0x478] sm:$0xff]   ;;  %v20159_v54 = vld [vmem:[#allocation108_spill] sm:$0xff] }
 0x795   : > { %v8851_v21 = vshrl.u32 %v8764_v30, 16  ;;  %v8854_v49 = vshll.u32 %v8764_v30, 16  ;;  %12404 = vmatprep.mubr.msk.bf16.mxu0 %vm1262_vm6, %v18731_v63  ;;  %12449 = vmatpush3.bf16.msra.mxu0 %v13522_v26  ;;  %v8690_v26 = vsel %vm917_vm3, %v20156_v1, %v8517_v48 }
 0x796   : > { %v8835_v31 = vor.u32 %v8833_v32, %v8832_v29  ;;  %v8843_v18 = vsel %vm1054_vm5, %v8832_v29, %v8842_v41  ;;  %v9333_v4 = vor.u32 %v9332_v16, %v9331_v55  ;;  %12450 = vmatprep.subr.bf16.mxu0 %v13523_v22 }
 0x797   : > { %v18756_v58 = vrot.slane %v8851_v21, 7  ;;  %v8523_v20 = vpop.permute.xlu1 %8522  ;;  %12789 = vmatpush3.bf16.msra.mxu1 %v20155_v15  ;;  %v9343_v14 = vrot.slane %v8851_v21, 3  ;;  %v9344_v50 = vrot.slane %v8854_v49, 4 }
 0x798   : > { %v8836_v3 = vsel %vm1054_vm5, %v18688_v2, %v8835_v31  ;;  %v18766_v25 = vsel %vm1559_vm7, %v9329_v57, %v9333_v4  ;;  %v18769_v34 = vsel %vm1559_vm7, %v9333_v4, %v9337_v33  ;;  %12784 = vmatprep.subr.bf16.mxu1 %v20157_v51  ;;  %v8699_v43 = vsel %vm917_vm3, %v20158_v10, %v8523_v20 }
 0x799   : > { %12344 = vmatprep.mubr.msk.bf16.mxu1 %vm1262_vm6, %v8836_v3  ;;  %12451 = vmatpush3.bf16.msra.mxu0 %v13523_v22  ;;  %v8856_v42 = vor.u32 %v8854_v49, %v18756_v58  ;;  %v9345_v55 = vor.u32 %v9344_v50, %v9343_v14  ;;  %v20160_v31 = vcombine.low %v18130_v45, %v18138_v62 }
 0x79a   : > { %v8627_v39 = vpop.permute.xlu0 %8626  ;;  %12345 = vmatmul.mubr.msk.bf16.gmra.mrb[8].mxu1 %vm1262_vm6, %v8843_v18  ;;  %12452 = vmatprep.subr.bf16.mxu0 %v13524_v52 }
 0x79b   : > { %v8762_v13 = vsel %vm999_vm4, %v8690_v26, %v8627_v39  ;;  %12790 = vmatpush3.bf16.msra.mxu1 %v20157_v51  ;;  %v20161_v26 = vcombine.low %v18291_v6, %v18299_v28 }
 0x79c   : > { %v8844_v2 = vshrl.u32 %v8762_v13, 16  ;;  %v8847_v57 = vshll.u32 %v8762_v13, 16  ;;  %v8633_v12 = vpop.permute.xlu1 %8632  ;;  %12405 = vmatmul.mubr.msk.bf16.gmra.mrb[8].mxu0 %vm1262_vm6, %v18766_v25  ;;  %12785 = vmatprep.subr.bf16.mxu1 %v20159_v54 }
 0x79d   : > { %v8768_v22 = vsel %vm999_vm4, %v8699_v43, %v8633_v12  ;;  %12408 = vmatprep.mubr.msk.bf16.mxu0 %vm1262_vm6, %v18769_v34  ;;  %12453 = vmatpush3.bf16.msra.mxu0 %v13524_v52 }
 0x79e   : > { %v8846_v35 = vrot.slane %v8844_v2, 7  ;;  %v9339_v59 = vrot.slane %v8844_v2, 3  ;;  %v9340_v32 = vrot.slane %v8847_v57, 4  ;;  %v8521_v41 = vpop.permute.xlu0 %8520  ;;  %v8865_v29 = vshrl.u32 %v8768_v22, 16  ;;  %12454 = vmatprep.subr.bf16.mxu0 %v13525_v19 }
 0x79f   : > { %v8868_v30 = vshll.u32 %v8768_v22, 16  ;;  %12791 = vmatpush3.bf16.msra.mxu1 %v20159_v54  ;;  %v8696_v18 = vsel %vm917_vm3, %v20160_v31, %v8521_v41 }
 0x7a0   : > { %v8849_v16 = vor.u32 %v8847_v57, %v8846_v35  ;;  %v8857_v48 = vsel %vm1054_vm5, %v8846_v35, %v8856_v42  ;;  %v9341_v15 = vor.u32 %v9340_v32, %v9339_v59  ;;  %v18791_v21 = vrot.slane %v8865_v29, 7  ;;  %v8527_v49 = vpop.permute.xlu1 %8526 }
 0x7a1   : > { %v8705_v39 = vsel %vm917_vm3, %v20161_v26, %v8527_v49  ;;  %12455 = vmatpush3.bf16.msra.mxu0 %v13525_v19  ;;  %v9351_v45 = vrot.slane %v8865_v29, 3  ;;  %v9352_v62 = vrot.slane %v8868_v30, 4  ;;  %v20162_v32 = vcombine.low %v18151_v36, %v18267_v47 }
 0x7a2   : > { %v8631_v4 = vpop.permute.xlu0 %8630  ;;  %v8850_v52 = vsel %vm1054_vm5, %v18716_v56, %v8849_v16  ;;  %v18801_v20 = vsel %vm1559_vm7, %v9337_v33, %v9341_v15  ;;  %v18804_v1 = vsel %vm1559_vm7, %v9341_v15, %v9345_v55  ;;  %v8870_v33 = vor.u32 %v8868_v30, %v18791_v21 }
 0x7a3   : > { %v8766_v3 = vsel %vm999_vm4, %v8696_v18, %v8631_v4  ;;  %12348 = vmatprep.mubr.msk.bf16.mxu1 %vm1262_vm6, %v8850_v52  ;;  %v9353_v12 = vor.u32 %v9352_v62, %v9351_v45  ;;  %v20163_v15 = vcombine.low %v18351_v5, %v18353_v37 }
 0x7a4   : > { %v8858_v51 = vshrl.u32 %v8766_v3, 16  ;;  %v8861_v56 = vshll.u32 %v8766_v3, 16  ;;  %12349 = vmatmul.mubr.msk.bf16.gmra.mrb[12].mxu1 %vm1262_vm6, %v8857_v48  ;;  %v8637_v14 = vpop.permute.xlu1 %8636  ;;  %12409 = vmatmul.mubr.msk.bf16.gmra.mrb[12].mxu0 %vm1262_vm6, %v18801_v20 }
 0x7a5   : > { %v8772_v6 = vsel %vm999_vm4, %v8705_v39, %v8637_v14  ;;  %12412 = vmatprep.mubr.msk.bf16.mxu0 %vm1262_vm6, %v18804_v1  ;;  %v20164_v14 = vld [vmem:[#allocation111_spill] sm:$0xff] }
 0x7a6   : > { %v8860_v50 = vrot.slane %v8858_v51, 7  ;;  %v9347_v10 = vrot.slane %v8858_v51, 3  ;;  %v9348_v43 = vrot.slane %v8861_v56, 4  ;;  %v8525_v28 = vpop.permute.xlu0 %8524  ;;  %v8879_v13 = vshrl.u32 %v8772_v6, 16 }
 0x7a7   : > { %v8882_v2 = vshll.u32 %v8772_v6, 16  ;;  %v8702_v22 = vsel %vm917_vm3, %v20162_v32, %v8525_v28 }
 0x7a8   : > { %v8863_v57 = vor.u32 %v8861_v56, %v8860_v50  ;;  %v8871_v19 = vsel %vm1054_vm5, %v8860_v50, %v8870_v33  ;;  %v9349_v42 = vor.u32 %v9348_v43, %v9347_v10  ;;  %v18820_v35 = vrot.slane %v8879_v13, 7  ;;  %v8531_v59 = vpop.permute.xlu1 %8530 }
 0x7a9   : > { %v9359_v30 = vrot.slane %v8879_v13, 3  ;;  %v9360_v48 = vrot.slane %v8882_v2, 4  ;;  %v8711_v49 = vsel %vm917_vm3, %v20163_v15, %v8531_v59  ;;  %v20165_v50 = vcombine.low %v18301_v40, %v20164_v14 }
 0x7aa   : > { %v8635_v41 = vpop.permute.xlu0 %8634  ;;  %v8864_v54 = vsel %vm1054_vm5, %v18756_v58, %v8863_v57  ;;  %v18829_v29 = vsel %vm1559_vm7, %v9345_v55, %v9349_v42  ;;  %v18832_v16 = vsel %vm1559_vm7, %v9349_v42, %v9353_v12  ;;  %v8884_v58 = vor.u32 %v8882_v2, %v18820_v35 }
 0x7ab   : > { %v8770_v36 = vsel %vm999_vm4, %v8702_v22, %v8635_v41  ;;  %12352 = vmatprep.mubr.msk.bf16.mxu1 %vm1262_vm6, %v8864_v54  ;;  %v9361_v39 = vor.u32 %v9360_v48, %v9359_v30  ;;  %v20166_v2 = vcombine.low %v18393_v46, %v18400_v24 }
 0x7ac   : > { %v8872_v47 = vshrl.u32 %v8770_v36, 16  ;;  %v8875_v31 = vshll.u32 %v8770_v36, 16  ;;  %12353 = vmatmul.mubr.msk.bf16.gmra.mrb[16].mxu1 %vm1262_vm6, %v8871_v19  ;;  %v8641_v55 = vpop.permute.xlu1 %8640  ;;  %12413 = vmatmul.mubr.msk.bf16.gmra.mrb[16].mxu0 %vm1262_vm6, %v18829_v29 }
 0x7ad   : > { %v8776_v5 = vsel %vm999_vm4, %v8711_v49, %v8641_v55  ;;  %12416 = vmatprep.mubr.msk.bf16.mxu0 %vm1262_vm6, %v18832_v16  ;;  %v20167_v55 = vld [vmem:[#allocation110_spill] sm:$0xff] }
 0x7ae   : > { %v8874_v18 = vrot.slane %v8872_v47, 7  ;;  %v9355_v4 = vrot.slane %v8872_v47, 3  ;;  %v9356_v52 = vrot.slane %v8875_v31, 4  ;;  %v8529_v37 = vpop.permute.xlu0 %8528  ;;  %v8893_v26 = vshrl.u32 %v8776_v5, 16 }
 0x7af   : > { %v8896_v45 = vshll.u32 %v8776_v5, 16  ;;  %v8708_v10 = vsel %vm917_vm3, %v20165_v50, %v8529_v37 }
 0x7b0   : > { %v8877_v3 = vor.u32 %v8875_v31, %v8874_v18  ;;  %v8885_v62 = vsel %vm1054_vm5, %v8874_v18, %v8884_v58  ;;  %v9357_v51 = vor.u32 %v9356_v52, %v9355_v4  ;;  %v18848_v56 = vrot.slane %v8893_v26, 7  ;;  %v8535_v33 = vpop.permute.xlu1 %8534 }
 0x7b1   : > { %v8717_v57 = vsel %vm917_vm3, %v20166_v2, %v8535_v33  ;;  %v9367_v40 = vrot.slane %v8893_v26, 3  ;;  %v9368_v42 = vrot.slane %v8896_v45, 4  ;;  %v20168_v18 = vcombine.low %v18360_v23, %v20167_v55 }
 0x7b2   : > { %v8639_v43 = vpop.permute.xlu0 %8638  ;;  %v8878_v6 = vsel %vm1054_vm5, %v18791_v21, %v8877_v3  ;;  %v18857_v28 = vsel %vm1559_vm7, %v9353_v12, %v9357_v51  ;;  %v18860_v13 = vsel %vm1559_vm7, %v9357_v51, %v9361_v39  ;;  %v8898_v21 = vor.u32 %v8896_v45, %v18848_v56 }
 0x7b3   : > { %v8774_v19 = vsel %vm999_vm4, %v8708_v10, %v8639_v43  ;;  %12356 = vmatprep.mubr.msk.bf16.mxu1 %vm1262_vm6, %v8878_v6  ;;  %v9369_v47 = vor.u32 %v9368_v42, %v9367_v40  ;;  %v20169_v45 = vcombine.low %v20139_v38, %v18442_v61 }
 0x7b4   : > { %v8886_v59 = vshrl.u32 %v8774_v19, 16  ;;  %v8889_v32 = vshll.u32 %v8774_v19, 16  ;;  %12357 = vmatmul.mubr.msk.bf16.gmra.mrb[20].mxu1 %vm1262_vm6, %v8885_v62  ;;  %v8645_v12 = vpop.permute.xlu1 %8644  ;;  %12417 = vmatmul.mubr.msk.bf16.gmra.mrb[20].mxu0 %vm1262_vm6, %v18857_v28 }
 0x7b5   : > { %v8780_v46 = vsel %vm999_vm4, %v8717_v57, %v8645_v12  ;;  %12456 = vmatprep.mubr.msk.bf16.mxu0 %vm1262_vm6, %v18728_v11 }
 0x7b6   : > { %v8888_v22 = vrot.slane %v8886_v59, 7  ;;  %v9363_v41 = vrot.slane %v8886_v59, 3  ;;  %v9364_v54 = vrot.slane %v8889_v32, 4  ;;  %v8533_v24 = vpop.permute.xlu0 %8532  ;;  %v8907_v30 = vshrl.u32 %v8780_v46, 16 }
 0x7b7   : > { %v8910_v48 = vshll.u32 %v8780_v46, 16  ;;  %v8714_v4 = vsel %vm917_vm3, %v20168_v18, %v8533_v24 }
 0x7b8   : > { %v8891_v15 = vor.u32 %v8889_v32, %v8888_v22  ;;  %v8899_v49 = vsel %vm1054_vm5, %v8888_v22, %v8898_v21  ;;  %v9365_v36 = vor.u32 %v9364_v54, %v9363_v41  ;;  %v18876_v31 = vrot.slane %v8907_v30, 7  ;;  %v8539_v58 = vpop.permute.xlu1 %8538  ;;  %v20170_v32 = vld [vmem:[#allocation112_spill] sm:$0xff] }
 0x7b9   : > { %v9375_v26 = vrot.slane %v8907_v30, 3  ;;  %v9376_v3 = vrot.slane %v8910_v48, 4  ;;  %v8723_v62 = vsel %vm917_vm3, %v20169_v45, %v8539_v58  ;;  %v20171_v21 = vcombine.low %v20141_v9, %v20170_v32 }
 0x7ba   : > { %v8643_v52 = vpop.permute.xlu0 %8642  ;;  %v8892_v5 = vsel %vm1054_vm5, %v18820_v35, %v8891_v15  ;;  %v18885_v37 = vsel %vm1559_vm7, %v9361_v39, %v9365_v36  ;;  %v18888_v11 = vsel %vm1559_vm7, %v9365_v36, %v9369_v47  ;;  %v8912_v35 = vor.u32 %v8910_v48, %v18876_v31 }
 0x7bb   : > { %v8778_v23 = vsel %vm999_vm4, %v8714_v4, %v8643_v52  ;;  %12360 = vmatprep.mubr.msk.bf16.mxu1 %vm1262_vm6, %v8892_v5  ;;  %v9377_v6 = vor.u32 %v9376_v3, %v9375_v26  ;;  %v20172_v54 = vcombine.low %v18474_v0, %v18478_v53 }
 0x7bc   : > { %v8900_v51 = vshrl.u32 %v8778_v23, 16  ;;  %v8903_v33 = vshll.u32 %v8778_v23, 16  ;;  %12361 = vmatmul.mubr.msk.bf16.gmra.mrb[24].mxu1 %vm1262_vm6, %v8899_v49  ;;  %v8649_v39 = vpop.permute.xlu1 %8648  ;;  %12457 = vmatmul.mubr.msk.bf16.vlgmr.msra.gmra.mrb[0].mxu0 %vm1262_vm6, %v18731_v63  ;;  %v20174_v23 = vld [vmem:[#allocation119_spill] sm:$0xff] }
 0x7bd   : > { %v8784_v61 = vsel %vm999_vm4, %v8723_v62, %v8649_v39  ;;  %12460 = vmatprep.mubr.msk.bf16.mxu0 %vm1262_vm6, %v18766_v25  ;;  %v20173_v62 = vld [vmem:[#allocation117_spill] sm:$0xff] }
 0x7be   : > { %v8902_v14 = vrot.slane %v8900_v51, 7  ;;  %v9371_v50 = vrot.slane %v8900_v51, 3  ;;  %v9372_v10 = vrot.slane %v8903_v33, 4  ;;  %v8537_v38 = vpop.permute.xlu0 %8536  ;;  %v8921_v43 = vshrl.u32 %v8784_v61, 16 }
 0x7bf   : > { %v8924_v57 = vshll.u32 %v8784_v61, 16  ;;  %v8720_v63 = vsel %vm917_vm3, %v20171_v21, %v8537_v38  ;;  %v20175_v51 = vcombine.low %v20173_v62, %v20174_v23 }
 0x7c0   : > { %v8905_v2 = vor.u32 %v8903_v33, %v8902_v14  ;;  %v8913_v19 = vsel %vm1054_vm5, %v8902_v14, %v8912_v35  ;;  %v9373_v40 = vor.u32 %v9372_v10, %v9371_v50  ;;  %v18904_v42 = vrot.slane %v8921_v43, 7  ;;  %v8543_v59 = vpop.permute.xlu1 %8542  ;;  %v20176_v10 = vld [vmem:[#allocation116_spill] sm:$0xff] }
 0x7c1   : > { %v8729_v46 = vsel %vm917_vm3, %v20172_v54, %v8543_v59  ;;  %v9383_v9 = vrot.slane %v8921_v43, 3  ;;  %v9384_v30 = vrot.slane %v8924_v57, 4  ;;  %v20177_v61 = vcombine.low %v18524_v17, %v20176_v10 }
 0x7c2   : > { %v8647_v12 = vpop.permute.xlu0 %8646  ;;  %v8906_v22 = vsel %vm1054_vm5, %v18848_v56, %v8905_v2  ;;  %v18913_v25 = vsel %vm1559_vm7, %v9369_v47, %v9373_v40  ;;  %v18916_v41 = vsel %vm1559_vm7, %v9373_v40, %v9377_v6  ;;  %v8926_v56 = vor.u32 %v8924_v57, %v18904_v42 }
 0x7c3   : > { %v8782_v24 = vsel %vm999_vm4, %v8720_v63, %v8647_v12  ;;  %12364 = vmatprep.mubr.msk.bf16.mxu1 %vm1262_vm6, %v8906_v22  ;;  %v9385_v26 = vor.u32 %v9384_v30, %v9383_v9  ;;  %v20178_v30 = vcombine.low %v18480_v7, %v18522_v44 }
 0x7c4   : > { %v8914_v48 = vshrl.u32 %v8782_v24, 16  ;;  %v8917_v15 = vshll.u32 %v8782_v24, 16  ;;  %12365 = vmatmul.mubr.msk.bf16.gmra.mrb[28].mxu1 %vm1262_vm6, %v8913_v19  ;;  %v8653_v49 = vpop.permute.xlu1 %8652  ;;  %12461 = vmatmul.mubr.msk.bf16.gmra.mrb[4].mxu0 %vm1262_vm6, %v18769_v34 }
 0x7c5   : > { %v8788_v53 = vsel %vm999_vm4, %v8729_v46, %v8653_v49  ;;  %12464 = vmatprep.mubr.msk.bf16.mxu0 %vm1262_vm6, %v18801_v20  ;;  %v20179_v49 = vcombine.low %v18602_v60, %v18586_v27 }
 0x7c6   : > { %v8916_v36 = vrot.slane %v8914_v48, 7  ;;  %v9379_v47 = vrot.slane %v8914_v48, 3  ;;  %v9380_v58 = vrot.slane %v8917_v15, 4  ;;  %v8541_v0 = vpop.permute.xlu0 %8540  ;;  %v8935_v55 = vshrl.u32 %v8788_v53, 16 }
 0x7c7   : > { %v8938_v18 = vshll.u32 %v8788_v53, 16  ;;  %v8726_v34 = vsel %vm917_vm3, %v20175_v51, %v8541_v0  ;;  %v20180_v51 = vld [vmem:[#allocation121_spill] sm:$0xff] }
 0x7c8   : > { %v8919_v4 = vor.u32 %v8917_v15, %v8916_v36  ;;  %v8927_v52 = vsel %vm1054_vm5, %v8916_v36, %v8926_v56  ;;  %v9381_v5 = vor.u32 %v9380_v58, %v9379_v47  ;;  %v18932_v3 = vrot.slane %v8935_v55, 7  ;;  %v8547_v45 = vpop.permute.xlu1 %8546 }
 0x7c9   : > { %v9391_v14 = vrot.slane %v8935_v55, 3  ;;  %v9392_v50 = vrot.slane %v8938_v18, 4  ;;  %v8735_v38 = vsel %vm917_vm3, %v20177_v61, %v8547_v45 }
 0x7ca   : > { %v8651_v33 = vpop.permute.xlu0 %8650  ;;  %v8920_v35 = vsel %vm1054_vm5, %v18876_v31, %v8919_v4  ;;  %v18941_v39 = vsel %vm1559_vm7, %v9377_v6, %v9381_v5  ;;  %v18944_v20 = vsel %vm1559_vm7, %v9381_v5, %v9385_v26  ;;  %v8940_v31 = vor.u32 %v8938_v18, %v18932_v3 }
 0x7cb   : > { %v8786_v43 = vsel %vm999_vm4, %v8726_v34, %v8651_v33  ;;  %12368 = vmatprep.mubr.msk.bf16.mxu1 %vm1262_vm6, %v8920_v35  ;;  %v9393_v63 = vor.u32 %v9392_v50, %v9391_v14  ;;  %v20181_v34 = vcombine.low %v18535_v8, %v20180_v51 }
 0x7cc   : > { %v8928_v2 = vshrl.u32 %v8786_v43, 16  ;;  %v8931_v57 = vshll.u32 %v8786_v43, 16  ;;  %12369 = vmatmul.mubr.msk.bf16.gmra.mrb[32].mxu1 %vm1262_vm6, %v8927_v52  ;;  %v8657_v6 = vpop.permute.xlu1 %8656  ;;  %12465 = vmatmul.mubr.msk.bf16.gmra.mrb[8].mxu0 %vm1262_vm6, %v18804_v1 }
 0x7cd   : > { %v8792_v17 = vsel %vm999_vm4, %v8735_v38, %v8657_v6  ;;  %12468 = vmatprep.mubr.msk.bf16.mxu0 %vm1262_vm6, %v18829_v29 }
 0x7ce   : > { %v8930_v19 = vrot.slane %v8928_v2, 7  ;;  %v9387_v40 = vrot.slane %v8928_v2, 3  ;;  %v9388_v59 = vrot.slane %v8931_v57, 4  ;;  %v8545_v32 = vpop.permute.xlu0 %8544  ;;  %v8949_v21 = vshrl.u32 %v8792_v17, 16 }
 0x7cf   : > { %v8952_v22 = vshll.u32 %v8792_v17, 16  ;;  %v8732_v1 = vsel %vm917_vm3, %v20178_v30, %v8545_v32 }
 0x7d0   : > { %v8933_v12 = vor.u32 %v8931_v57, %v8930_v19  ;;  %v8941_v54 = vsel %vm1054_vm5, %v8930_v19, %v8940_v31  ;;  %v9389_v46 = vor.u32 %v9388_v59, %v9387_v40  ;;  %v8951_v24 = vrot.slane %v8949_v21, 7  ;;  %v8551_v9 = vpop.permute.xlu1 %8550  ;;  %v20182_v40 = vld [vmem:[#allocation118_spill] sm:$0xff]  ;;  %v20183_v59 = vld [vmem:[#allocation123_spill] sm:$0xff] }
 0x7d1   : > { %v8741_v36 = vsel %vm917_vm3, %v20179_v49, %v8551_v9  ;;  %v9399_v7 = vrot.slane %v8949_v21, 3  ;;  %v9400_v44 = vrot.slane %v8952_v22, 4  ;;  %v20184_v17 = vcombine.low %v20182_v40, %v20183_v59 }
 0x7d2   : > { %v8655_v48 = vpop.permute.xlu0 %8654  ;;  %v8934_v15 = vsel %vm1054_vm5, %v18904_v42, %v8933_v12  ;;  %v18967_v56 = vsel %vm1559_vm7, %v9385_v26, %v9389_v46  ;;  %v18970_v29 = vsel %vm1559_vm7, %v9389_v46, %v9393_v63  ;;  %v8954_v42 = vor.u32 %v8952_v22, %v8951_v24 }
 0x7d3   : > { %v8790_v47 = vsel %vm999_vm4, %v8732_v1, %v8655_v48  ;;  %12372 = vmatprep.mubr.msk.bf16.mxu1 %vm1262_vm6, %v8934_v15  ;;  %v18984_v26 = vor.u32 %v9400_v44, %v9399_v7 }
 0x7d4   : > { %v8942_v58 = vshrl.u32 %v8790_v47, 16  ;;  %v8945_v53 = vshll.u32 %v8790_v47, 16  ;;  %12373 = vmatmul.mubr.msk.bf16.gmra.mrb[36].mxu1 %vm1262_vm6, %v8941_v54  ;;  %v8661_v0 = vpop.permute.xlu1 %8660  ;;  %12469 = vmatmul.mubr.msk.bf16.gmra.mrb[12].mxu0 %vm1262_vm6, %v18832_v16 }
 0x7d5   : > { %v8796_v60 = vsel %vm999_vm4, %v8741_v36, %v8661_v0  ;;  %12472 = vmatprep.mubr.msk.bf16.mxu0 %vm1262_vm6, %v18857_v28 }
 0x7d6   : > { %v8944_v55 = vrot.slane %v8942_v58, 7  ;;  %v9395_v18 = vrot.slane %v8942_v58, 3  ;;  %v9396_v4 = vrot.slane %v8945_v53, 4  ;;  %v8549_v27 = vpop.permute.xlu0 %8548  ;;  %v8963_v52 = vshrl.u32 %v8796_v60, 16 }
 0x7d7   : > { %v8966_v5 = vshll.u32 %v8796_v60, 16  ;;  %v8738_v33 = vsel %vm917_vm3, %v20181_v34, %v8549_v27 }
 0x7d8   : > { %v8947_v45 = vor.u32 %v8945_v53, %v8944_v55  ;;  %v8955_v62 = vsel %vm1054_vm5, %v8944_v55, %v8954_v42  ;;  %v9397_v23 = vor.u32 %v9396_v4, %v9395_v18  ;;  %v8965_v16 = vrot.slane %v8963_v52, 7  ;;  %v8663_v2 = vpop.permute.xlu1 %8662 }
 0x7d9   : > { %v9739_v10 = vrot.slane %v8963_v52, 3  ;;  %v9740_v61 = vrot.slane %v8966_v5, 4 }
 0x7da   : > { %v8659_v35 = vpop.permute.xlu0 %8658  ;;  %v8948_v14 = vsel %vm1054_vm5, %v18932_v3, %v8947_v45  ;;  %v9398_v50 = vsel %vm1559_vm7, %v9393_v63, %v9397_v23  ;;  %v9402_v28 = vsel %vm1559_vm7, %v9397_v23, %v18984_v26  ;;  %v8968_v57 = vor.u32 %v8966_v5, %v8965_v16  ;;  %v19087_v45 = vld [vmem:[%s19304_s2 + $0x7] ss:$0 sm:$0xff] }
 0x7db   : > { %v8794_v38 = vsel %vm999_vm4, %v8738_v33, %v8659_v35  ;;  %12376 = vmatprep.mubr.msk.bf16.mxu1 %vm1262_vm6, %v8948_v14  ;;  %v9741_v21 = vor.u32 %v9740_v61, %v9739_v10  ;;  %v20185_v10 = vld [vmem:[#allocation9_spill] sm:$0xff] }
 0x7dc   : > { %v8956_v43 = vshrl.u32 %v8794_v38, 16  ;;  %v8959_v8 = vshll.u32 %v8794_v38, 16  ;;  %12377 = vmatmul.mubr.msk.bf16.gmra.mrb[40].mxu1 %vm1262_vm6, %v8955_v62  ;;  %12473 = vmatmul.mubr.msk.bf16.gmra.mrb[16].mxu0 %vm1262_vm6, %v18860_v13 }
 0x7dd   : > { %12476 = vmatprep.mubr.msk.bf16.mxu0 %vm1262_vm6, %v18885_v37 }
 0x7de   : > { %v8958_v31 = vrot.slane %v8956_v43, 7  ;;  %v9735_v6 = vrot.slane %v8956_v43, 3  ;;  %v9736_v3 = vrot.slane %v8959_v8, 4  ;;  %v8553_v19 = vpop.permute.xlu0 %8552  ;;  %v20186_v43 = vld [vmem:[#allocation28_spill] sm:$0xff] }
 0x7df   : > { %v8744_v32 = vsel %vm917_vm3, %v20184_v17, %v8553_v19 }
 0x7e0   : > { %v8961_v63 = vor.u32 %v8959_v8, %v8958_v31  ;;  %v8798_v12 = vsel %vm999_vm4, %v8744_v32, %v8663_v2  ;;  %v8969_v22 = vsel %vm1054_vm5, %v8958_v31, %v8968_v57  ;;  %v9737_v54 = vor.u32 %v9736_v3, %v9735_v6  ;;  %v20187_v57 = vld [vmem:[#allocation21_spill] sm:$0xff]  ;;  %v20188_v6 = vld [vmem:[#allocation11_spill] sm:$0xff] }
 0x7e1   : > { %v9743_v46 = vshrl.u32 %v8798_v12, 16  ;;  %v9746_v9 = vshll.u32 %v8798_v12, 16 }
 0x7e2   : > { %v8962_v30 = vsel %vm1054_vm5, %v8951_v24, %v8961_v63  ;;  %v9738_v1 = vsel %vm1559_vm7, %v18984_v26, %v9737_v54  ;;  %v9742_v48 = vsel %vm1559_vm7, %v9737_v54, %v9741_v21 }
 0x7e3   : > { %v9745_v15 = vrot.slane %v9743_v46, 3  ;;  %v9748_v49 = vrot.slane %v9746_v9, 4  ;;  %12380 = vmatprep.mubr.msk.bf16.mxu1 %vm1262_vm6, %v8962_v30  ;;  %v20189_v46 = vld [vmem:[#allocation20_spill] sm:$0xff] }
 0x7e4   : > { %12381 = vmatmul.mubr.msk.bf16.gmra.mrb[44].mxu1 %vm1262_vm6, %v8969_v22  ;;  %12477 = vmatmul.mubr.msk.bf16.gmra.mrb[20].mxu0 %vm1262_vm6, %v18888_v11 }
 0x7e5   : > { %12420 = vmatprep.mubr.msk.bf16.mxu1 %vm1262_vm6, %v18860_v13  ;;  %v9749_v36 = vor.u32 %v9748_v49, %v9745_v15  ;;  %12480 = vmatprep.mubr.msk.bf16.mxu0 %vm1262_vm6, %v18913_v25  ;;  %v20191_v49 = vld [vmem:[#allocation26_spill] sm:$0xff] }
 0x7e7   : > { %v9750_v24 = vsel %vm1559_vm7, %v9741_v21, %v9749_v36 }
 0x7ec   : > { %12421 = vmatmul.mubr.msk.bf16.vlgmr.msra.gmra.mrb[24].mxu1 %vm1262_vm6, %v18885_v37  ;;  %12481 = vmatmul.mubr.msk.bf16.gmra.mrb[24].mxu0 %vm1262_vm6, %v18916_v41 }
 0x7ed   : > { %12424 = vmatprep.mubr.msk.bf16.mxu1 %vm1262_vm6, %v18888_v11  ;;  %12484 = vmatprep.mubr.msk.bf16.mxu0 %vm1262_vm6, %v18941_v39 }
 0x7f4   : > { %12425 = vmatmul.mubr.msk.bf16.gmra.mrb[28].mxu1 %vm1262_vm6, %v18913_v25  ;;  %12485 = vmatmul.mubr.msk.bf16.gmra.mrb[28].mxu0 %vm1262_vm6, %v18944_v20 }
 0x7f5   : > { %12428 = vmatprep.mubr.msk.bf16.mxu1 %vm1262_vm6, %v18916_v41  ;;  %12488 = vmatprep.mubr.msk.bf16.mxu0 %vm1262_vm6, %v18967_v56 }
 0x7fc   : > { %12429 = vmatmul.mubr.msk.bf16.gmra.mrb[32].mxu1 %vm1262_vm6, %v18941_v39  ;;  %12489 = vmatmul.mubr.msk.bf16.gmra.mrb[32].mxu0 %vm1262_vm6, %v18970_v29 }
 0x7fd   : > { %12432 = vmatprep.mubr.msk.bf16.mxu1 %vm1262_vm6, %v18944_v20  ;;  %12492 = vmatprep.mubr.msk.bf16.mxu0 %vm1262_vm6, %v9398_v50 }
 0x804   : > { %12433 = vmatmul.mubr.msk.bf16.gmra.mrb[36].mxu1 %vm1262_vm6, %v18967_v56  ;;  %12493 = vmatmul.mubr.msk.bf16.gmra.mrb[36].mxu0 %vm1262_vm6, %v9402_v28 }
 0x805   : > { %12436 = vmatprep.mubr.msk.bf16.mxu1 %vm1262_vm6, %v18970_v29  ;;  %12496 = vmatprep.mubr.msk.bf16.mxu0 %vm1262_vm6, %v9738_v1  ;;  %v20190_v1 = vld [vmem:[#allocation29_spill] sm:$0xff] }
 0x80c   : > { %12437 = vmatmul.mubr.msk.bf16.gmra.mrb[40].mxu1 %vm1262_vm6, %v9398_v50  ;;  %12497 = vmatmul.mubr.msk.bf16.gmra.mrb[40].mxu0 %vm1262_vm6, %v9742_v48 }
 0x80d   : > { %12440 = vmatprep.mubr.msk.bf16.mxu1 %vm1262_vm6, %v9402_v28  ;;  %12500 = vmatprep.mubr.msk.bf16.mxu0 %vm1262_vm6, %v9750_v24  ;;  %v20192_v24 = vld [vmem:[#allocation19_spill] sm:$0xff] }
 0x814   : > { %12441 = vmatmul.mubr.msk.bf16.gmra.mrb[48].mxu1 %vm1262_vm6, %v18984_v26  ;;  %12501 = vmatmul.mubr.msk.bf16.gmra.mrb[44].mxu0 %vm1262_vm6, %v9749_v36 }
 0x85c   : > { %v12338_v13 = vpop.f32.mrb[0].mxu1 }
 0x85d   : > { %v9112_v37 = vpop.f32.mrb[1].mxu1 }
 0x85e   : > { %v12339_v11 = vpop.f32.mrb[2].mxu1 }
 0x85f   : > { %v9115_v25 = vpop.f32.mrb[3].mxu1 }
 0x865   : > { %v12342_v41 = vpop.f32.mrb[4].mxu1 }
 0x866   : > { %v9128_v39 = vpop.f32.mrb[5].mxu1 }
 0x867   : > { %v12343_v20 = vpop.f32.mrb[6].mxu1 }
 0x868   : > { %v9131_v56 = vpop.f32.mrb[7].mxu1 }
 0x86d   : > { %v12346_v29 = vpop.f32.mrb[8].mxu1 }
 0x86e   : > { %v9144_v47 = vpop.f32.mrb[9].mxu1 }
 0x86f   : > { %v12347_v7 = vpop.f32.mrb[10].mxu1 }
 0x870   : > { %v19058_v44 = vpop.f32.mrb[11].mxu1 }
 0x877   : > { %v19060_v58 = vpop.f32.mrb[12].mxu1 }
 0x878   : > { %v19062_v53 = vpop.f32.mrb[13].mxu1 }
 0x879   : > { %v19064_v42 = vpop.f32.mrb[14].mxu1 }
 0x87a   : > { %v19066_v0 = vpop.f32.mrb[15].mxu1 }
 0x87f   : > { %v19068_v55 = vpop.f32.mrb[16].mxu1 }
 0x880   : > { %v19070_v18 = vpop.f32.mrb[17].mxu1 }
 0x881   : > { %v19072_v4 = vpop.f32.mrb[18].mxu1 }
 0x882   : > { %v19074_v60 = vpop.f32.mrb[19].mxu1 }
 0x887   : > { %v19076_v27 = vpop.f32.mrb[20].mxu1 }
 0x888   : > { %v19078_v52 = vpop.f32.mrb[21].mxu1 }
 0x889   : > { %v19080_v5 = vpop.f32.mrb[22].mxu1 }
 0x88a   : > { %v19082_v26 = vpop.f32.mrb[23].mxu1 }
 0x88f   : > { %v12458_v62 = vpop.f32.mrb[0].mxu0 }
 0x890   : > { %v12792_v23 = vadd.f32 %v12458_v62, %v12338_v13  ;;  %v9833_v51 = vpop.f32.mrb[1].mxu0 }
 0x891   : > { %v12793_v34 = vadd.f32 %v9833_v51, %v9112_v37  ;;  %v12459_v33 = vpop.f32.mrb[2].mxu0 }
 0x892   : > { %v10078_v16 = vadd.f32 %v12792_v23, %v19087_v45  ;;  %v12794_v35 = vadd.f32 %v12459_v33, %v12339_v11  ;;  %v9836_v14 = vpop.f32.mrb[3].mxu0 }
 0x893   : > { %v10076_v50 = vadd.f32 %v12793_v34, %v19087_v45  ;;  %v12795_v28 = vadd.f32 %v9836_v14, %v9115_v25  ;;  %v20193_v34 = vld [vmem:[#allocation25_spill] sm:$0xff] }
 0x894   : > { %v10125_v61 = vmul.f32 %v10078_v16, %v20185_v10  ;;  %v10079_v38 = vadd.f32 %v12794_v35, %v19087_v45  ;;  %v20194_v16 = vld [vmem:[#allocation18_spill] sm:$0xff] }
 0x895   : > { %v10123_v8 = vmul.f32 %v10076_v50, %v20186_v43  ;;  %v10077_v2 = vadd.f32 %v12795_v28, %v19087_v45 }
 0x896   : > { %10172 = vst.msk [vmem:[%s13998_s10 + $0x30] sm:$0xff] %vm917_vm3, %v10125_v61  ;;  %v10126_v31 = vmul.f32 %v10079_v38, %v20187_v57 }
 0x897   : > { %10170 = vst.msk [vmem:[%s13998_s10 + $0x20] sm:$0xff] %vm917_vm3, %v10123_v8  ;;  %v10124_v3 = vmul.f32 %v10077_v2, %v20188_v6  ;;  %v12462_v19 = vpop.f32.mrb[4].mxu0 }
 0x898   : > { %10173 = vst.msk [vmem:[%s13998_s10 + $0x38] sm:$0xff] %vm917_vm3, %v10126_v31  ;;  %v12796_v40 = vadd.f32 %v12462_v19, %v12342_v41  ;;  %v9849_v59 = vpop.f32.mrb[5].mxu0 }
 0x899   : > { %10171 = vst.msk [vmem:[%s13998_s10 + $0x28] sm:$0xff] %vm917_vm3, %v10124_v3  ;;  %v12797_v17 = vadd.f32 %v9849_v59, %v9128_v39  ;;  %v12463_v32 = vpop.f32.mrb[6].mxu0  ;;  %v20197_v3 = vld [vmem:[#allocation36_spill] sm:$0xff] }
 0x89a   : > { %v10082_v21 = vadd.f32 %v12796_v40, %v19087_v45  ;;  %v12798_v63 = vadd.f32 %v12463_v32, %v12343_v20  ;;  %v9852_v12 = vpop.f32.mrb[7].mxu0  ;;  %v20198_v40 = vld [vmem:[#allocation23_spill] sm:$0xff] }
 0x89b   : > { %v10080_v22 = vadd.f32 %v12797_v17, %v19087_v45  ;;  %v12799_v54 = vadd.f32 %v9852_v12, %v9131_v56  ;;  %v20199_v17 = vld [vmem:[#allocation30_spill] sm:$0xff] }
 0x89c   : > { %v10129_v9 = vmul.f32 %v10082_v21, %v20189_v46  ;;  %v10083_v30 = vadd.f32 %v12798_v63, %v19087_v45 }
 0x89d   : > { %v10127_v48 = vmul.f32 %v10080_v22, %v20190_v1  ;;  %v10081_v15 = vadd.f32 %v12799_v54, %v19087_v45 }
 0x89e   : > { %10176 = vst.msk [vmem:[%s13998_s10 + $0x50] sm:$0xff] %vm917_vm3, %v10129_v9  ;;  %v10130_v36 = vmul.f32 %v10083_v30, %v20191_v49 }
 0x89f   : > { %10174 = vst.msk [vmem:[%s13998_s10 + $0x40] sm:$0xff] %vm917_vm3, %v10127_v48  ;;  %v10128_v13 = vmul.f32 %v10081_v15, %v20192_v24  ;;  %v12466_v37 = vpop.f32.mrb[8].mxu0  ;;  %v20201_v15 = vld [vmem:[#allocation33_spill] sm:$0xff] }
 0x8a0   : > { %10177 = vst.msk [vmem:[%s13998_s10 + $0x58] sm:$0xff] %vm917_vm3, %v10130_v36  ;;  %v12800_v11 = vadd.f32 %v12466_v37, %v12346_v29  ;;  %v9865_v25 = vpop.f32.mrb[9].mxu0  ;;  %v20202_v36 = vld [vmem:[#allocation31_spill] sm:$0xff] }
 0x8a1   : > { %10175 = vst.msk [vmem:[%s13998_s10 + $0x48] sm:$0xff] %vm917_vm3, %v10128_v13  ;;  %v12801_v41 = vadd.f32 %v9865_v25, %v9144_v47  ;;  %v12467_v39 = vpop.f32.mrb[10].mxu0  ;;  %v20195_v47 = vld [vmem:[#allocation27_spill] sm:$0xff] }
 0x8a2   : > { %v10086_v20 = vadd.f32 %v12800_v11, %v19087_v45  ;;  %v12802_v56 = vadd.f32 %v12467_v39, %v12347_v7  ;;  %v9868_v62 = vpop.f32.mrb[11].mxu0  ;;  %v20196_v7 = vld [vmem:[#allocation22_spill] sm:$0xff] }
 0x8a3   : > { %v10084_v23 = vadd.f32 %v12801_v41, %v19087_v45  ;;  %v12803_v51 = vadd.f32 %v9868_v62, %v19058_v44 }
 0x8a4   : > { %v10133_v33 = vmul.f32 %v10086_v20, %v20193_v34  ;;  %v10087_v29 = vadd.f32 %v12802_v56, %v19087_v45 }
 0x8a5   : > { %v10131_v35 = vmul.f32 %v10084_v23, %v20194_v16  ;;  %v10085_v14 = vadd.f32 %v12803_v51, %v19087_v45 }
 0x8a6   : > { %10180 = vst.msk [vmem:[%s13998_s10 + $0x70] sm:$0xff] %vm917_vm3, %v10133_v33  ;;  %v10134_v50 = vmul.f32 %v10087_v29, %v20195_v47 }
 0x8a7   : > { %10178 = vst.msk [vmem:[%s13998_s10 + $0x60] sm:$0xff] %vm917_vm3, %v10131_v35  ;;  %v10132_v28 = vmul.f32 %v10085_v14, %v20196_v7  ;;  %v12470_v10 = vpop.f32.mrb[12].mxu0  ;;  %v20205_v35 = vld [vmem:[#allocation4_spill] sm:$0xff] }
 0x8a8   : > { %10181 = vst.msk [vmem:[%s13998_s10 + $0x78] sm:$0xff] %vm917_vm3, %v10134_v50  ;;  %v12804_v44 = vadd.f32 %v12470_v10, %v19060_v58  ;;  %v9881_v61 = vpop.f32.mrb[13].mxu0  ;;  %v20206_v50 = vld [vmem:[#allocation34_spill] sm:$0xff] }
 0x8a9   : > { %10179 = vst.msk [vmem:[%s13998_s10 + $0x68] sm:$0xff] %vm917_vm3, %v10132_v28  ;;  %v12805_v38 = vadd.f32 %v9881_v61, %v19062_v53  ;;  %v12471_v43 = vpop.f32.mrb[14].mxu0  ;;  %v20207_v10 = vld [vmem:[#allocation6_spill] sm:$0xff]  ;;  %v20208_v61 = vld [vmem:[#allocation5_spill] sm:$0xff] }
 0x8aa   : > { %v10090_v8 = vadd.f32 %v12804_v44, %v19087_v45  ;;  %v12806_v2 = vadd.f32 %v12471_v43, %v19064_v42  ;;  %v9884_v57 = vpop.f32.mrb[15].mxu0  ;;  %v20200_v42 = vld [vmem:[#allocation35_spill] sm:$0xff] }
 0x8ab   : > { %v10088_v31 = vadd.f32 %v12805_v38, %v19087_v45  ;;  %v12807_v6 = vadd.f32 %v9884_v57, %v19066_v0 }
 0x8ac   : > { %v10137_v58 = vmul.f32 %v10090_v8, %v20197_v3  ;;  %v10091_v19 = vadd.f32 %v12806_v2, %v19087_v45 }
 0x8ad   : > { %v10135_v59 = vmul.f32 %v10088_v31, %v20198_v40  ;;  %v10089_v53 = vadd.f32 %v12807_v6, %v19087_v45 }
 0x8ae   : > { %10184 = vst.msk [vmem:[%s13998_s10 + $0x90] sm:$0xff] %vm917_vm3, %v10137_v58  ;;  %v10138_v32 = vmul.f32 %v10091_v19, %v20199_v17 }
 0x8af   : > { %10182 = vst.msk [vmem:[%s13998_s10 + $0x80] sm:$0xff] %vm917_vm3, %v10135_v59  ;;  %v10136_v21 = vmul.f32 %v10089_v53, %v20200_v42  ;;  %v12474_v63 = vpop.f32.mrb[16].mxu0  ;;  %v20209_v53 = vld [vmem:[#allocation7_spill] sm:$0xff]  ;;  %v20210_v42 = vld [vmem:[#allocation10_spill] sm:$0xff] }
 0x8b0   : > { %10185 = vst.msk [vmem:[%s13998_s10 + $0x98] sm:$0xff] %vm917_vm3, %v10138_v32  ;;  %v12808_v0 = vadd.f32 %v12474_v63, %v19068_v55  ;;  %v9897_v12 = vpop.f32.mrb[17].mxu0 }
 0x8b1   : > { %10183 = vst.msk [vmem:[%s13998_s10 + $0x88] sm:$0xff] %vm917_vm3, %v10136_v21  ;;  %v12809_v22 = vadd.f32 %v9897_v12, %v19070_v18  ;;  %v12475_v54 = vpop.f32.mrb[18].mxu0  ;;  %v20211_v12 = vld [vmem:[#allocation13_spill] sm:$0xff] }
 0x8b2   : > { %v10094_v46 = vadd.f32 %v12808_v0, %v19087_v45  ;;  %v12810_v9 = vadd.f32 %v12475_v54, %v19072_v4  ;;  %v9900_v30 = vpop.f32.mrb[19].mxu0  ;;  %v20203_v4 = vld [vmem:[#allocation38_spill] sm:$0xff] }
 0x8b3   : > { %v10092_v1 = vadd.f32 %v12809_v22, %v19087_v45  ;;  %v12811_v48 = vadd.f32 %v9900_v30, %v19074_v60  ;;  %v20204_v60 = vld [vmem:[#allocation37_spill] sm:$0xff] }
 0x8b4   : > { %v10141_v49 = vmul.f32 %v10094_v46, %v20201_v15  ;;  %v10095_v55 = vadd.f32 %v12810_v9, %v19087_v45  ;;  %v20212_v46 = vld [vmem:[#allocation8_spill] sm:$0xff] }
 0x8b5   : > { %v10139_v24 = vmul.f32 %v10092_v1, %v20202_v36  ;;  %v10093_v18 = vadd.f32 %v12811_v48, %v19087_v45 }
 0x8b6   : > { %10188 = vst.msk [vmem:[%s13998_s10 + $0xb0] sm:$0xff] %vm917_vm3, %v10141_v49  ;;  %v10142_v37 = vmul.f32 %v10095_v55, %v20203_v4 }
 0x8b7   : > { %v19168_v13 = vpop.f32.mrb[44].mxu1  ;;  %10186 = vst.msk [vmem:[%s13998_s10 + $0xa0] sm:$0xff] %vm917_vm3, %v10139_v24  ;;  %v10140_v25 = vmul.f32 %v10093_v18, %v20204_v60  ;;  %v12478_v41 = vpop.f32.mrb[20].mxu0 }
 0x8b8   : > { %v19173_v11 = vpop.f32.mrb[45].mxu1  ;;  %10189 = vst.msk [vmem:[%s13998_s10 + $0xb8] sm:$0xff] %vm917_vm3, %v10142_v37  ;;  %v12812_v20 = vadd.f32 %v12478_v41, %v19076_v27  ;;  %v9913_v56 = vpop.f32.mrb[21].mxu0 }
 0x8b9   : > { %v12383_v39 = vpop.f32.mrb[46].mxu1  ;;  %10187 = vst.msk [vmem:[%s13998_s10 + $0xa8] sm:$0xff] %vm917_vm3, %v10140_v25  ;;  %v12813_v23 = vadd.f32 %v9913_v56, %v19078_v52  ;;  %v12479_v51 = vpop.f32.mrb[22].mxu0  ;;  %v20213_v25 = vld [vmem:[#allocation16_spill] sm:$0xff] }
 0x8ba   : > { %v19181_v62 = vpop.f32.mrb[47].mxu1  ;;  %v10098_v34 = vadd.f32 %v12812_v20, %v19087_v45  ;;  %v12814_v33 = vadd.f32 %v12479_v51, %v19080_v5  ;;  %v9916_v29 = vpop.f32.mrb[23].mxu0  ;;  %v20214_v20 = vld [vmem:[#allocation12_spill] sm:$0xff] }
 0x8bb   : > { %v10096_v16 = vadd.f32 %v12813_v23, %v19087_v45  ;;  %v12815_v27 = vadd.f32 %v9916_v29, %v19082_v26 }
 0x8bc   : > { %v10145_v14 = vmul.f32 %v10098_v34, %v20205_v35  ;;  %v10099_v47 = vadd.f32 %v12814_v33, %v19087_v45  ;;  %v20215_v34 = vld [vmem:[#allocation15_spill] sm:$0xff] }
 0x8bd   : > { %v10143_v7 = vmul.f32 %v10096_v16, %v20206_v50  ;;  %v10097_v52 = vadd.f32 %v12815_v27, %v19087_v45  ;;  %v20216_v16 = vld [vmem:[#allocation17_spill] sm:$0xff] }
 0x8be   : > { %10192 = vst.msk [vmem:[%s13998_s10 + $0xd0] sm:$0xff] %vm917_vm3, %v10145_v14  ;;  %v10146_v5 = vmul.f32 %v10099_v47, %v20207_v10 }
 0x8bf   : > { %v12422_v28 = vpop.f32.mrb[24].mxu1  ;;  %10190 = vst.msk [vmem:[%s13998_s10 + $0xc0] sm:$0xff] %vm917_vm3, %v10143_v7  ;;  %v10144_v38 = vmul.f32 %v10097_v52, %v20208_v61  ;;  %v12482_v26 = vpop.f32.mrb[24].mxu0 }
 0x8c0   : > { %v9641_v44 = vpop.f32.mrb[25].mxu1  ;;  %10193 = vst.msk [vmem:[%s13998_s10 + $0xd8] sm:$0xff] %vm917_vm3, %v10146_v5  ;;  %v12816_v8 = vadd.f32 %v12482_v26, %v12422_v28  ;;  %v9929_v2 = vpop.f32.mrb[25].mxu0  ;;  %v20217_v26 = vld [vmem:[#allocation24_spill] sm:$0xff] }
 0x8c1   : > { %v12423_v43 = vpop.f32.mrb[26].mxu1  ;;  %10191 = vst.msk [vmem:[%s13998_s10 + $0xc8] sm:$0xff] %vm917_vm3, %v10144_v38  ;;  %v12817_v31 = vadd.f32 %v9929_v2, %v9641_v44  ;;  %v12483_v6 = vpop.f32.mrb[26].mxu0  ;;  %v20218_v2 = vld [vmem:[#allocation14_spill] sm:$0xff] }
 0x8c2   : > { %v9644_v57 = vpop.f32.mrb[27].mxu1  ;;  %v10102_v3 = vadd.f32 %v12816_v8, %v19087_v45  ;;  %v12818_v58 = vadd.f32 %v12483_v6, %v12423_v43  ;;  %v9932_v19 = vpop.f32.mrb[27].mxu0 }
 0x8c3   : > { %v10100_v40 = vadd.f32 %v12817_v31, %v19087_v45  ;;  %v12819_v59 = vadd.f32 %v9932_v19, %v9644_v57 }
 0x8c4   : > { %v10149_v17 = vmul.f32 %v10102_v3, %v20209_v53  ;;  %v10103_v32 = vadd.f32 %v12818_v58, %v19087_v45  ;;  %v20219_v3 = vld [vmem:[#allocation41_spill] sm:$0xff] }
 0x8c5   : > { %v10147_v21 = vmul.f32 %v10100_v40, %v20210_v42  ;;  %v10101_v63 = vadd.f32 %v12819_v59, %v19087_v45  ;;  %v20220_v40 = vld [vmem:[#allocation39_spill] sm:$0xff] }
 0x8c6   : > { %10196 = vst.msk [vmem:[%s13998_s10 + $0xf0] sm:$0xff] %vm917_vm3, %v10149_v17  ;;  %v10150_v22 = vmul.f32 %v10103_v32, %v20211_v12 }
 0x8c7   : > { %v12426_v0 = vpop.f32.mrb[28].mxu1  ;;  %10194 = vst.msk [vmem:[%s13998_s10 + $0xe0] sm:$0xff] %vm917_vm3, %v10147_v21  ;;  %v10148_v9 = vmul.f32 %v10101_v63, %v20212_v46  ;;  %v12486_v30 = vpop.f32.mrb[28].mxu0 }
 0x8c8   : > { %v9657_v54 = vpop.f32.mrb[29].mxu1  ;;  %10197 = vst.msk [vmem:[%s13998_s10 + $0xf8] sm:$0xff] %vm917_vm3, %v10150_v22  ;;  %v12820_v48 = vadd.f32 %v12486_v30, %v12426_v0  ;;  %v9945_v15 = vpop.f32.mrb[29].mxu0  ;;  %v20221_v30 = vld [vmem:[#allocation42_spill] sm:$0xff] }
 0x8c9   : > { %v12427_v1 = vpop.f32.mrb[30].mxu1  ;;  %10195 = vst.msk [vmem:[%s13998_s10 + $0xe8] sm:$0xff] %vm917_vm3, %v10148_v9  ;;  %v12821_v55 = vadd.f32 %v9945_v15, %v9657_v54  ;;  %v12487_v36 = vpop.f32.mrb[30].mxu0  ;;  %v20222_v15 = vld [vmem:[#allocation40_spill] sm:$0xff] }
 0x8ca   : > { %v9660_v49 = vpop.f32.mrb[31].mxu1  ;;  %v10106_v24 = vadd.f32 %v12820_v48, %v19087_v45  ;;  %v12822_v18 = vadd.f32 %v12487_v36, %v12427_v1  ;;  %v9948_v4 = vpop.f32.mrb[31].mxu0 }
 0x8cb   : > { %v10104_v37 = vadd.f32 %v12821_v55, %v19087_v45  ;;  %v12823_v60 = vadd.f32 %v9948_v4, %v9660_v49 }
 0x8cc   : > { %v10153_v41 = vmul.f32 %v10106_v24, %v20213_v25  ;;  %v10107_v39 = vadd.f32 %v12822_v18, %v19087_v45  ;;  %v20223_v24 = vld [vmem:[#allocation45_spill] sm:$0xff] }
 0x8cd   : > { %v10151_v56 = vmul.f32 %v10104_v37, %v20214_v20  ;;  %v10105_v23 = vadd.f32 %v12823_v60, %v19087_v45  ;;  %v20224_v37 = vld [vmem:[#allocation43_spill] sm:$0xff] }
 0x8ce   : > { %10200 = vst.msk [vmem:[%s13998_s10 + $0x110] sm:$0xff] %vm917_vm3, %v10153_v41  ;;  %v10154_v33 = vmul.f32 %v10107_v39, %v20215_v34 }
 0x8cf   : > { %v12430_v51 = vpop.f32.mrb[32].mxu1  ;;  %10198 = vst.msk [vmem:[%s13998_s10 + $0x100] sm:$0xff] %vm917_vm3, %v10151_v56  ;;  %v10152_v27 = vmul.f32 %v10105_v23, %v20216_v16  ;;  %v12490_v35 = vpop.f32.mrb[32].mxu0 }
 0x8d0   : > { %v9673_v29 = vpop.f32.mrb[33].mxu1  ;;  %10201 = vst.msk [vmem:[%s13998_s10 + $0x118] sm:$0xff] %vm917_vm3, %v10154_v33  ;;  %v12824_v47 = vadd.f32 %v12490_v35, %v12430_v51  ;;  %v9961_v50 = vpop.f32.mrb[33].mxu0  ;;  %v20225_v35 = vld [vmem:[#allocation46_spill] sm:$0xff] }
 0x8d1   : > { %v12431_v14 = vpop.f32.mrb[34].mxu1  ;;  %10199 = vst.msk [vmem:[%s13998_s10 + $0x108] sm:$0xff] %vm917_vm3, %v10152_v27  ;;  %v12825_v52 = vadd.f32 %v9961_v50, %v9673_v29  ;;  %v12491_v28 = vpop.f32.mrb[34].mxu0  ;;  %v20226_v50 = vld [vmem:[#allocation44_spill] sm:$0xff] }
 0x8d2   : > { %v9676_v7 = vpop.f32.mrb[35].mxu1  ;;  %v10110_v10 = vadd.f32 %v12824_v47, %v19087_v45  ;;  %v12826_v5 = vadd.f32 %v12491_v28, %v12431_v14  ;;  %v9964_v44 = vpop.f32.mrb[35].mxu0 }
 0x8d3   : > { %v10108_v61 = vadd.f32 %v12825_v52, %v19087_v45  ;;  %v12827_v38 = vadd.f32 %v9964_v44, %v9676_v7 }
 0x8d4   : > { %v10157_v43 = vmul.f32 %v10110_v10, %v20217_v26  ;;  %v10111_v8 = vadd.f32 %v12826_v5, %v19087_v45  ;;  %v20227_v10 = vld [vmem:[#allocation49_spill] sm:$0xff] }
 0x8d5   : > { %v10155_v57 = vmul.f32 %v10108_v61, %v20218_v2  ;;  %v10109_v31 = vadd.f32 %v12827_v38, %v19087_v45  ;;  %v20228_v38 = vld [vmem:[#allocation47_spill] sm:$0xff] }
 0x8d6   : > { %10204 = vst.msk [vmem:[%s13998_s10 + $0x130] sm:$0xff] %vm917_vm3, %v10157_v43  ;;  %v10158_v58 = vmul.f32 %v10111_v8, %v20219_v3 }
 0x8d7   : > { %v12434_v6 = vpop.f32.mrb[36].mxu1  ;;  %10202 = vst.msk [vmem:[%s13998_s10 + $0x120] sm:$0xff] %vm917_vm3, %v10155_v57  ;;  %v10156_v59 = vmul.f32 %v10109_v31, %v20220_v40  ;;  %v12494_v53 = vpop.f32.mrb[36].mxu0 }
 0x8d8   : > { %v9689_v19 = vpop.f32.mrb[37].mxu1  ;;  %10205 = vst.msk [vmem:[%s13998_s10 + $0x138] sm:$0xff] %vm917_vm3, %v10158_v58  ;;  %v12828_v32 = vadd.f32 %v12494_v53, %v12434_v6  ;;  %v9977_v42 = vpop.f32.mrb[37].mxu0  ;;  %v20229_v53 = vld [vmem:[#allocation50_spill] sm:$0xff] }
 0x8d9   : > { %v12435_v17 = vpop.f32.mrb[38].mxu1  ;;  %10203 = vst.msk [vmem:[%s13998_s10 + $0x128] sm:$0xff] %vm917_vm3, %v10156_v59  ;;  %v12829_v63 = vadd.f32 %v9977_v42, %v9689_v19  ;;  %v12495_v0 = vpop.f32.mrb[38].mxu0 }
 0x8da   : > { %v9692_v21 = vpop.f32.mrb[39].mxu1  ;;  %v10114_v12 = vadd.f32 %v12828_v32, %v19087_v45  ;;  %v12830_v22 = vadd.f32 %v12495_v0, %v12435_v17  ;;  %v9980_v54 = vpop.f32.mrb[39].mxu0  ;;  %v20230_v32 = vld [vmem:[#allocation48_spill] sm:$0xff] }
 0x8db   : > { %v10112_v46 = vadd.f32 %v12829_v63, %v19087_v45  ;;  %v12831_v9 = vadd.f32 %v9980_v54, %v9692_v21  ;;  %v20231_v63 = vld [vmem:[#allocation51_spill] sm:$0xff] }
 0x8dc   : > { %v10161_v1 = vmul.f32 %v10114_v12, %v20221_v30  ;;  %v10115_v48 = vadd.f32 %v12830_v22, %v19087_v45 }
 0x8dd   : > { %v10159_v49 = vmul.f32 %v10112_v46, %v20222_v15  ;;  %v10113_v55 = vadd.f32 %v12831_v9, %v19087_v45 }
 0x8de   : > { %10208 = vst.msk [vmem:[%s13998_s10 + $0x150] sm:$0xff] %vm917_vm3, %v10161_v1  ;;  %v10162_v18 = vmul.f32 %v10115_v48, %v20223_v24 }
 0x8df   : > { %v12438_v36 = vpop.f32.mrb[40].mxu1  ;;  %10206 = vst.msk [vmem:[%s13998_s10 + $0x140] sm:$0xff] %vm917_vm3, %v10159_v49  ;;  %v10160_v60 = vmul.f32 %v10113_v55, %v20224_v37  ;;  %v12498_v25 = vpop.f32.mrb[40].mxu0 }
 0x8e0   : > { %v9705_v4 = vpop.f32.mrb[41].mxu1  ;;  %10209 = vst.msk [vmem:[%s13998_s10 + $0x158] sm:$0xff] %vm917_vm3, %v10162_v18  ;;  %v12832_v39 = vadd.f32 %v12498_v25, %v12438_v36  ;;  %v9993_v20 = vpop.f32.mrb[41].mxu0 }
 0x8e1   : > { %v12439_v41 = vpop.f32.mrb[42].mxu1  ;;  %10207 = vst.msk [vmem:[%s13998_s10 + $0x148] sm:$0xff] %vm917_vm3, %v10160_v60  ;;  %v12833_v23 = vadd.f32 %v9993_v20, %v9705_v4  ;;  %v12499_v51 = vpop.f32.mrb[42].mxu0 }
 0x8e2   : > { %v9708_v56 = vpop.f32.mrb[43].mxu1  ;;  %v10118_v34 = vadd.f32 %v12832_v39, %v19087_v45  ;;  %v12834_v33 = vadd.f32 %v12499_v51, %v12439_v41  ;;  %v9996_v29 = vpop.f32.mrb[43].mxu0 }
 0x8e3   : > { %v10116_v16 = vadd.f32 %v12833_v23, %v19087_v45  ;;  %v12835_v27 = vadd.f32 %v9996_v29, %v9708_v56 }
 0x8e4   : > { %v10165_v14 = vmul.f32 %v10118_v34, %v20225_v35  ;;  %v10119_v47 = vadd.f32 %v12834_v33, %v19087_v45 }
 0x8e5   : > { %v10163_v7 = vmul.f32 %v10116_v16, %v20226_v50  ;;  %v10117_v52 = vadd.f32 %v12835_v27, %v19087_v45 }
 0x8e6   : > { %10212 = vst.msk [vmem:[%s13998_s10 + $0x170] sm:$0xff] %vm917_vm3, %v10165_v14  ;;  %v10166_v5 = vmul.f32 %v10119_v47, %v20227_v10 }
 0x8e7   : > { %v12442_v28 = vpop.f32.mrb[48].mxu1  ;;  %10210 = vst.msk [vmem:[%s13998_s10 + $0x160] sm:$0xff] %vm917_vm3, %v10163_v7  ;;  %v10164_v26 = vmul.f32 %v10117_v52, %v20228_v38  ;;  %v12502_v8 = vpop.f32.mrb[44].mxu0 }
 0x8e8   : > { %v9730_v44 = vadd.f32 %v12442_v28, %v19168_v13  ;;  %v9721_v61 = vpop.f32.mrb[49].mxu1  ;;  %10213 = vst.msk [vmem:[%s13998_s10 + $0x178] sm:$0xff] %vm917_vm3, %v10166_v5  ;;  %v10009_v31 = vpop.f32.mrb[45].mxu0 }
 0x8e9   : > { %v9722_v43 = vadd.f32 %v9721_v61, %v19173_v11  ;;  %v12443_v2 = vpop.f32.mrb[50].mxu1  ;;  %10211 = vst.msk [vmem:[%s13998_s10 + $0x168] sm:$0xff] %vm917_vm3, %v10164_v26  ;;  %v12503_v58 = vpop.f32.mrb[46].mxu0 }
 0x8ea   : > { %v10069_v57 = vadd.f32 %v12502_v8, %v9730_v44  ;;  %v9724_v6 = vpop.f32.mrb[51].mxu1  ;;  %v10012_v40 = vpop.f32.mrb[47].mxu0 }
 0x8eb   : > { %v10067_v13 = vadd.f32 %v10009_v31, %v9722_v43  ;;  %v9725_v3 = vadd.f32 %v9724_v6, %v19181_v62 }
 0x8ec   : > { %v10122_v19 = vadd.f32 %v19087_v45, %v10069_v57 }
 0x8ed   : > { %v10120_v11 = vadd.f32 %v19087_v45, %v10067_v13  ;;  %v10068_v59 = vadd.f32 %v10012_v40, %v9725_v3 }
 0x8ee   : > { %v10169_v17 = vmul.f32 %v10122_v19, %v20229_v53 }
 0x8ef   : > { %v10167_v42 = vmul.f32 %v10120_v11, %v20230_v32  ;;  %v10121_v21 = vadd.f32 %v19087_v45, %v10068_v59 }
 0x8f0   : > { %10216 = vst.msk [vmem:[%s13998_s10 + $0x190] sm:$0xff] %vm917_vm3, %v10169_v17 }
 0x8f1   : > { %10214 = vst.msk [vmem:[%s13998_s10 + $0x180] sm:$0xff] %vm917_vm3, %v10167_v42  ;;  %v10168_v0 = vmul.f32 %v10121_v21, %v20231_v63 }
 0x8f3   : > { %10215 = vst.msk [vmem:[%s13998_s10 + $0x188] sm:$0xff] %vm917_vm3, %v10168_v0 }
 0x8f4 PF: > { %s14_s15 = sadd.s32 1, %s13736_s15  }
 0x8f5   : > { %p11_p5 = scmp.ge.s32.totalorder %s14_s15, 4  }
 0x8f7   :  { %13 = sbr.rel (!%p11_p5) target bundleno = 1 (0x1), region = 90 }

</bundles_post_ra>
